<compile_context>
chip_gen: v6e
topology: v6e:2x2x1
jax: 0.10.0
libtpu: 0.0.40
codegen_flags: <defaults>
</compile_context>

<pallas_src>
import jax
import jax.numpy as jnp
from jax.experimental import pallas as pl
from jax.experimental.pallas import tpu as pltpu


TILE_N = 512  # output-feature tile (multiple of 128 -> lane-dense stores)


def point_decoder_kernel(x_ref, w1_ref, b1_ref, w2_ref, b2_ref, w3_ref, b3_ref,
                         out_ref, h2_ref):
    """One grid step = one TILE_N-wide slab of the final layer's output.

    Step 0 additionally runs the (tiny) first two layers and caches h2 in a
    VMEM scratch that all subsequent steps reuse.
    """
    @pl.when(pl.program_id(0) == 0)
    def _():
        x = x_ref[...]                                                   # [Bp, 512] bf16
        h1 = jnp.dot(x, w1_ref[...], preferred_element_type=jnp.float32)
        h1 = jnp.maximum(h1 + b1_ref[...], 0.0)                          # [Bp, 1024] f32
        h2 = jnp.dot(h1.astype(jnp.bfloat16), w2_ref[...],
                     preferred_element_type=jnp.float32)
        h2 = jnp.maximum(h2 + b2_ref[...], 0.0)                          # [Bp, 2048] f32
        h2_ref[...] = h2.astype(h2_ref.dtype)

    # Third layer, one output tile per grid step (W3 tile streamed via pipeline).
    h3 = jnp.dot(h2_ref[...], w3_ref[...],
                 preferred_element_type=jnp.float32) + b3_ref[...]       # [Bp, TILE_N]
    out_ref[...] = jnp.tanh(h3).astype(out_ref.dtype)


def _vmem_limit_bytes():
    # Per-generation VMEM budget: ~3/4 of physical capacity (64 MiB on v7x,
    # 128 MiB on v5e/v6e).  Never hard-code 96 MiB (exceeds v7x physical VMEM).
    try:
        cap = pltpu.get_tpu_info().vmem_capacity_bytes
    except Exception:
        cap = 64 << 20  # conservative floor (v7x)
    return min((cap * 3) // 4, 96 << 20)


def single_view_to_3d_point(encoded_feat, params, n_points, tile_n=TILE_N):
    """encoded_feat [B, 512] -> pointclouds_pred [B, n_points, 3]."""
    w1, b1, w2, b2, w3, b3 = params
    B, feat = encoded_feat.shape
    h1_dim = w1.shape[1]
    h2_dim = w2.shape[1]
    out_dim = n_points * 3

    num_tiles = pl.cdiv(out_dim, tile_n)
    out_pad = num_tiles * tile_n                 # lane-dense multiple of 128
    b_pad = max(8, pl.cdiv(B, 8) * 8)            # full f32 sublanes

    # Pad batch rows (zeros) and W3/b3 output columns (zeros -> tanh(0)=0, sliced off).
    x = jnp.pad(encoded_feat.astype(jnp.bfloat16), ((0, b_pad - B), (0, 0)))
    w3p = jnp.pad(w3, ((0, 0), (0, out_pad - out_dim)))
    b3p = jnp.pad(b3, ((0, 0), (0, out_pad - out_dim)))

    cost = pl.CostEstimate(
        flops=2 * b_pad * (feat * h1_dim + h1_dim * h2_dim + h2_dim * out_pad),
        transcendentals=b_pad * out_pad,
        bytes_accessed=(x.size * 2 + w1.size * 2 + w2.size * 2 + w3p.size * 2
                        + b1.size * 4 + b2.size * 4 + b3p.size * 4
                        + b_pad * out_pad * 4),
    )

    grid_spec = pltpu.PrefetchScalarGridSpec(
        num_scalar_prefetch=0,
        grid=(num_tiles,),
        in_specs=[
            pl.BlockSpec((b_pad, feat),    lambda j: (0, 0)),   # x        (resident)
            pl.BlockSpec((feat, h1_dim),   lambda j: (0, 0)),   # W1 bf16  (resident)
            pl.BlockSpec((1, h1_dim),      lambda j: (0, 0)),   # b1 f32
            pl.BlockSpec((h1_dim, h2_dim), lambda j: (0, 0)),   # W2 bf16  (resident)
            pl.BlockSpec((1, h2_dim),      lambda j: (0, 0)),   # b2 f32
            pl.BlockSpec((h2_dim, tile_n), lambda j: (0, j)),   # W3 tile  (streamed)
            pl.BlockSpec((1, tile_n),      lambda j: (0, j)),   # b3 tile
        ],
        out_specs=pl.BlockSpec((b_pad, tile_n), lambda j: (0, j)),
        scratch_shapes=[pltpu.VMEM((b_pad, h2_dim), jnp.bfloat16)],  # cached h2
    )

    out_flat = pl.pallas_call(
        point_decoder_kernel,
        out_shape=jax.ShapeDtypeStruct((b_pad, out_pad), jnp.float32),
        grid_spec=grid_spec,
        compiler_params=pltpu.CompilerParams(
            dimension_semantics=("arbitrary",),   # scratch carried across steps
            vmem_limit_bytes=_vmem_limit_bytes(),
        ),
        cost_estimate=cost,
    )(x, w1, b1, w2, b2, w3p, b3p)

    return out_flat[:B, :out_dim].reshape(B, n_points, 3)


# ----------------------------------------------------------------------------
# Deterministic synthetic parameters (PyTorch-style inits) + pure-JAX reference.
# ----------------------------------------------------------------------------
def _make_linear(key, fan_in, fan_out):
    # nn.Linear init: U(-1/sqrt(fan_in), 1/sqrt(fan_in)); stored [in, out] so the
    # kernel computes y = x @ W + b (same math as PyTorch's x @ W.T + b).
    bound = 1.0 / float(fan_in) ** 0.5
    kw, kb = jax.random.split(key)
    w = jax.random.uniform(kw, (fan_in, fan_out), jnp.float32, -bound, bound)
    b = jax.random.uniform(kb, (1, fan_out), jnp.float32, -bound, bound)
    return w, b


def _make_bn_folded(key, h, eps=1e-5):
    # Inference-mode BatchNorm1d with synthetic stats/affine -> per-feature
    # scale & shift (folded further into the Linear weights below).
    kg, kb, km, kv = jax.random.split(key, 4)
    gamma = jax.random.uniform(kg, (1, h), jnp.float32, 0.5, 1.5)
    beta = 0.1 * jax.random.normal(kb, (1, h), jnp.float32)
    running_mean = 0.1 * jax.random.normal(km, (1, h), jnp.float32)
    running_var = jax.random.uniform(kv, (1, h), jnp.float32, 0.5, 1.5)
    scale = gamma / jnp.sqrt(running_var + eps)
    shift = beta - running_mean * scale
    return scale, shift


def _reference(encoded_feat, params, n_points):
    # Pure-JAX reference of the same (BN-folded, bf16-weight) forward pass.
    w1, b1, w2, b2, w3, b3 = params
    x = encoded_feat.astype(jnp.bfloat16)
    h1 = jnp.maximum(jnp.dot(x, w1, preferred_element_type=jnp.float32) + b1, 0.0)
    h2 = jnp.maximum(jnp.dot(h1.astype(jnp.bfloat16), w2,
                             preferred_element_type=jnp.float32) + b2, 0.0)
    h3 = jnp.tanh(jnp.dot(h2.astype(jnp.bfloat16), w3,
                          preferred_element_type=jnp.float32) + b3)
    return h3.reshape(encoded_feat.shape[0], n_points, 3)


if __name__ == "__main__":
    B, FEAT, H1, H2 = 2, 512, 1024, 2048     # dims fixed by the module
    N_POINTS = 1024                          # small, but exercises the W3 output grid

    key = jax.random.PRNGKey(0)
    k_feat, k_l1, k_bn1, k_l2, k_bn2, k_l3 = jax.random.split(key, 6)

    # args.load_feat=True -> `images` are already the 512-d encoded features.
    encoded_feat = jax.random.normal(k_feat, (B, FEAT), jnp.float32)

    w1, b1 = _make_linear(k_l1, FEAT, H1)
    s1, t1 = _make_bn_folded(k_bn1, H1)
    w2, b2 = _make_linear(k_l2, H1, H2)
    s2, t2 = _make_bn_folded(k_bn2, H2)
    w3, b3 = _make_linear(k_l3, H2, N_POINTS * 3)

    # Host-side glue: fold BN into the Linear weights/biases, cast weights to bf16.
    params = (
        (w1 * s1).astype(jnp.bfloat16), b1 * s1 + t1,
        (w2 * s2).astype(jnp.bfloat16), b2 * s2 + t2,
        w3.astype(jnp.bfloat16), b3,
    )

    pointclouds_pred = single_view_to_3d_point(encoded_feat, params, N_POINTS)
    pointclouds_pred = jax.block_until_ready(pointclouds_pred)

    ref = _reference(encoded_feat, params, N_POINTS)
    assert pointclouds_pred.shape == (B, N_POINTS, 3)
    assert jnp.allclose(pointclouds_pred, ref, atol=1e-2, rtol=1e-2), (
        float(jnp.max(jnp.abs(pointclouds_pred - ref))))

    print("KERNEL_OK")
</pallas_src>

<mosaic_0001>
module attributes {stable_mosaic.version = 11 : i64} {
  func.func @point_decoder_kernel(%arg0: i32, %arg1: memref<8x512xbf16, #tpu.memory_space<vmem>>, %arg2: memref<512x1024xbf16, #tpu.memory_space<vmem>>, %arg3: memref<1x1024xf32, #tpu.memory_space<vmem>>, %arg4: memref<1024x2048xbf16, #tpu.memory_space<vmem>>, %arg5: memref<1x2048xf32, #tpu.memory_space<vmem>>, %arg6: memref<2048x512xbf16, #tpu.memory_space<vmem>>, %arg7: memref<1x512xf32, #tpu.memory_space<vmem>>, %arg8: memref<8x512xf32, #tpu.memory_space<vmem>>, %arg9: memref<8x2048xbf16, #tpu.memory_space<vmem>>) attributes {dimension_semantics = [#tpu.dimension_semantics<arbitrary>], iteration_bounds = array<i64: 6>, scalar_prefetch = 0 : i64, scratch_operands = 1 : i64, tpu.core_type = #tpu.core_type<tc>, window_params = [{pipeline_mode = #tpu.pipeline_mode<synchronous>, transform_indices = @transform_0, window_bounds = array<i64: 8, 512>}, {pipeline_mode = #tpu.pipeline_mode<synchronous>, transform_indices = @transform_1, window_bounds = array<i64: 512, 1024>}, {pipeline_mode = #tpu.pipeline_mode<synchronous>, transform_indices = @transform_2, window_bounds = array<i64: 1, 1024>}, {pipeline_mode = #tpu.pipeline_mode<synchronous>, transform_indices = @transform_3, window_bounds = array<i64: 1024, 2048>}, {pipeline_mode = #tpu.pipeline_mode<synchronous>, transform_indices = @transform_4, window_bounds = array<i64: 1, 2048>}, {transform_indices = @transform_5, window_bounds = array<i64: 2048, 512>}, {transform_indices = @transform_6, window_bounds = array<i64: 1, 512>}, {transform_indices = @transform_7, window_bounds = array<i64: 8, 512>}]} {
    %c0_i32 = arith.constant 0 : i32
    %0 = arith.cmpi eq, %arg0, %c0_i32 : i32
    %1 = arith.extui %0 : i1 to i32
    %c0_i32_0 = arith.constant 0 : i32
    %2 = arith.cmpi ne, %1, %c0_i32_0 : i32
    scf.if %2 {
      %c0_8 = arith.constant 0 : index
      %c0_9 = arith.constant 0 : index
      %11 = vector.load %arg1[%c0_8, %c0_9] : memref<8x512xbf16, #tpu.memory_space<vmem>>, vector<8x512xbf16>
      %c0_10 = arith.constant 0 : index
      %c0_11 = arith.constant 0 : index
      %12 = vector.load %arg2[%c0_10, %c0_11] : memref<512x1024xbf16, #tpu.memory_space<vmem>>, vector<512x1024xbf16>
      %cst_12 = arith.constant dense<0.000000e+00> : vector<8x1024xf32>
      %13 = tpu.matmul %11, %12, %cst_12 {dimension_numbers = #tpu.dot_dimension_numbers<[1], [0], [0], [1], [0, 0, 1, 1], [], []>} : vector<8x512xbf16>, vector<512x1024xbf16>, vector<8x1024xf32> -> vector<8x1024xf32>
      %c0_13 = arith.constant 0 : index
      %c0_14 = arith.constant 0 : index
      %14 = vector.load %arg3[%c0_13, %c0_14] : memref<1x1024xf32, #tpu.memory_space<vmem>>, vector<1x1024xf32>
      %15 = vector.broadcast %14 : vector<1x1024xf32> to vector<8x1024xf32>
      %16 = arith.addf %13, %15 : vector<8x1024xf32>
      %cst_15 = arith.constant 0.000000e+00 : f32
      %17 = vector.broadcast %cst_15 : f32 to vector<8x1024xf32>
      %18 = arith.maximumf %16, %17 : vector<8x1024xf32>
      %19 = arith.truncf %18 : vector<8x1024xf32> to vector<8x1024xbf16>
      %c0_16 = arith.constant 0 : index
      %c0_17 = arith.constant 0 : index
      %20 = vector.load %arg4[%c0_16, %c0_17] : memref<1024x2048xbf16, #tpu.memory_space<vmem>>, vector<1024x2048xbf16>
      %cst_18 = arith.constant dense<0.000000e+00> : vector<8x2048xf32>
      %21 = tpu.matmul %19, %20, %cst_18 {dimension_numbers = #tpu.dot_dimension_numbers<[1], [0], [0], [1], [0, 0, 1, 1], [], []>} : vector<8x1024xbf16>, vector<1024x2048xbf16>, vector<8x2048xf32> -> vector<8x2048xf32>
      %c0_19 = arith.constant 0 : index
      %c0_20 = arith.constant 0 : index
      %22 = vector.load %arg5[%c0_19, %c0_20] : memref<1x2048xf32, #tpu.memory_space<vmem>>, vector<1x2048xf32>
      %23 = vector.broadcast %22 : vector<1x2048xf32> to vector<8x2048xf32>
      %24 = arith.addf %21, %23 : vector<8x2048xf32>
      %cst_21 = arith.constant 0.000000e+00 : f32
      %25 = vector.broadcast %cst_21 : f32 to vector<8x2048xf32>
      %26 = arith.maximumf %24, %25 : vector<8x2048xf32>
      %27 = arith.truncf %26 : vector<8x2048xf32> to vector<8x2048xbf16>
      %c0_22 = arith.constant 0 : index
      %c0_23 = arith.constant 0 : index
      %28 = vector.load %arg9[%c0_22, %c0_23] : memref<8x2048xbf16, #tpu.memory_space<vmem>>, vector<8x2048xbf16>
      tpu.vector_store %arg9[%c0_22, %c0_23], %27 {strides = array<i32>} : memref<8x2048xbf16, #tpu.memory_space<vmem>>, vector<8x2048xbf16>,
    } else {
    }
    %c0 = arith.constant 0 : index
    %c0_1 = arith.constant 0 : index
    %3 = vector.load %arg9[%c0, %c0_1] : memref<8x2048xbf16, #tpu.memory_space<vmem>>, vector<8x2048xbf16>
    %c0_2 = arith.constant 0 : index
    %c0_3 = arith.constant 0 : index
    %4 = vector.load %arg6[%c0_2, %c0_3] : memref<2048x512xbf16, #tpu.memory_space<vmem>>, vector<2048x512xbf16>
    %cst = arith.constant dense<0.000000e+00> : vector<8x512xf32>
    %5 = tpu.matmul %3, %4, %cst {dimension_numbers = #tpu.dot_dimension_numbers<[1], [0], [0], [1], [0, 0, 1, 1], [], []>} : vector<8x2048xbf16>, vector<2048x512xbf16>, vector<8x512xf32> -> vector<8x512xf32>
    %c0_4 = arith.constant 0 : index
    %c0_5 = arith.constant 0 : index
    %6 = vector.load %arg7[%c0_4, %c0_5] : memref<1x512xf32, #tpu.memory_space<vmem>>, vector<1x512xf32>
    %7 = vector.broadcast %6 : vector<1x512xf32> to vector<8x512xf32>
    %8 = arith.addf %5, %7 : vector<8x512xf32>
    %9 = math.tanh %8 : vector<8x512xf32>
    %c0_6 = arith.constant 0 : index
    %c0_7 = arith.constant 0 : index
    %10 = vector.load %arg8[%c0_6, %c0_7] : memref<8x512xf32, #tpu.memory_space<vmem>>, vector<8x512xf32>
    tpu.vector_store %arg8[%c0_6, %c0_7], %9 {strides = array<i32>} : memref<8x512xf32, #tpu.memory_space<vmem>>, vector<8x512xf32>,
    return
  }
  func.func @transform_0(%arg0: i32) -> (i32, i32) {
    %c0_i32 = arith.constant 0 : i32
    %c0_i32_0 = arith.constant 0 : i32
    %c0_i32_1 = arith.constant 0 : i32
    return %c0_i32, %c0_i32_0 : i32, i32
  }
  func.func @transform_1(%arg0: i32) -> (i32, i32) {
    %c0_i32 = arith.constant 0 : i32
    %c0_i32_0 = arith.constant 0 : i32
    %c0_i32_1 = arith.constant 0 : i32
    return %c0_i32, %c0_i32_0 : i32, i32
  }
  func.func @transform_2(%arg0: i32) -> (i32, i32) {
    %c0_i32 = arith.constant 0 : i32
    %c0_i32_0 = arith.constant 0 : i32
    %c0_i32_1 = arith.constant 0 : i32
    return %c0_i32, %c0_i32_0 : i32, i32
  }
  func.func @transform_3(%arg0: i32) -> (i32, i32) {
    %c0_i32 = arith.constant 0 : i32
    %c0_i32_0 = arith.constant 0 : i32
    %c0_i32_1 = arith.constant 0 : i32
    return %c0_i32, %c0_i32_0 : i32, i32
  }
  func.func @transform_4(%arg0: i32) -> (i32, i32) {
    %c0_i32 = arith.constant 0 : i32
    %c0_i32_0 = arith.constant 0 : i32
    %c0_i32_1 = arith.constant 0 : i32
    return %c0_i32, %c0_i32_0 : i32, i32
  }
  func.func @transform_5(%arg0: i32) -> (i32, i32) {
    %c0_i32 = arith.constant 0 : i32
    %c0_i32_0 = arith.constant 0 : i32
    return %c0_i32, %arg0 : i32, i32
  }
  func.func @transform_6(%arg0: i32) -> (i32, i32) {
    %c0_i32 = arith.constant 0 : i32
    %c0_i32_0 = arith.constant 0 : i32
    return %c0_i32, %arg0 : i32, i32
  }
  func.func @transform_7(%arg0: i32) -> (i32, i32) {
    %c0_i32 = arith.constant 0 : i32
    %c0_i32_0 = arith.constant 0 : i32
    return %c0_i32, %arg0 : i32, i32
  }
}

</mosaic_0001>

<bundles_post_ra>
// kernel: tpu_custom_call.1
= control target key start
LH: loop header
LB: loop body
LE: loop exit
PB: predicated region body
PF: predicated region fallthrough
CT: control target
= control target key end

     0   :  { %s18257_s0 = inlined_call_operand.hbm [shape: bf16[8,512], index: 0, kind: input, shape index: {}]   ;;  %s18258_s1 = inlined_call_operand.hbm [shape: bf16[512,1024], index: 1, kind: input, shape index: {}]   ;;  %s18259_s2 = inlined_call_operand.hbm [shape: f32[1,1024], index: 2, kind: input, shape index: {}]   ;;  %s18260_s3 = inlined_call_operand.hbm [shape: bf16[1024,2048], index: 3, kind: input, shape index: {}]   ;;  %s18261_s4 = inlined_call_operand.hbm [shape: f32[1,2048], index: 4, kind: input, shape index: {}]   ;;  %s18262_s5 = inlined_call_operand.hbm [shape: bf16[2048,3072], index: 5, kind: input, shape index: {}]   ;;  %s18263_s6 = inlined_call_operand.hbm [shape: f32[1,3072], index: 6, kind: input, shape index: {}]   ;;  %s18264_s7 = inlined_call_operand.hbm [shape: f32[8,3072], index: 7, kind: output, shape index: {}]  }
   0x1   :  { %18275 = sst [smem:[#allocation22_spill]] %s18258_s1 }
   0x2   :  { %18276 = sst [smem:[#allocation23_spill]] %s18260_s3 }
   0x3   :  { %18277 = sst [smem:[#allocation24_spill]] %s18262_s5 }
   0x4   :  { %12 = vsyncpa [#allocation4], 0 }
   0x5   :  { %13 = vsyncpa [#allocation7], 0 }
   0x6   :  { %14 = vsyncpa [#allocation10], 0 }
   0x7   :  { %15 = vsyncpa [#allocation13], 0 }
   0x8   :  { %17 = vsyncpa [#allocation13 + $0x1], 0 }
   0x9   :  { %18 = vsyncpa [#allocation5], 0 }
   0xa   :  { %20 = vsyncpa [#allocation5 + $0x1], 0  ;;  %s17038_s24 = smov 0   ;;  %s17040_s25 = smov 0  }
   0xb   :  { %s17042_s26 = smov 0   ;;  %s17044_s27 = smov 0  }
   0xc LB: > { %s17059_s28 = sadd.s32 4294967295, %s16981_s27   ;;  %s13949_s29 = sadd.s32 4294967294, %s16981_s27   ;;  %s16981_s27 = sphi %s17044_s27, %s18310_s27   ;;  %s16977_s26 = sphi %s17042_s26, %s18309_s26   ;;  %s16973_s25 = sphi %s17040_s25, %s18308_s25   ;;  %s16969_s24 = sphi %s17038_s24, %s18307_s24  }
   0xd   : > { %p151_p0 = scmp.ne.s32.totalorder %s16973_s25, %s16969_s24  ;;  %p18265_p1 = scmp.eq.s32.totalorder %s17059_s28, 0 }
   0xe   : > { %p207_p3 = scmp.eq.s32.totalorder %s13949_s29, 5  ;;  %p13950_p5 = scmp.ge.s32.totalorder %s16981_s27, 1 }
   0xf   : > { %p17068_p4 = por %p18265_p1, %p151_p0  ;;  %p214_p7 = scmp.lt.s32.totalorder %s16981_s27, 7 }
  0x10   : > { %p17073_p6 = por %p207_p3, %p151_p0  ;;  %s16983_s10 = smov [#allocation6]  }
  0x11   : > { %s18278_s30 = scalar_select %p17068_p4, 1, 0 }
  0x12   : > { %s18279_s8 = scalar_select %p17073_p6, 1, 0 }
  0x13   : > { %p17079_p9 = pnand %p13950_p5, %p214_p7  ;;  %s237_s11 = sshll.u32 %s16983_s10, 4  ;;  %s238_s11 = int_to_ptr.vmem [resolvable:$true] %s237_s11 }
  0x14   : > { %s16984_s13 = smov [#allocation9]   ;;  %s16730_s16 = scalar_lea.vmem %s238_s11, 32768 }
  0x15   : > { %s18280_s9 = scalar_select %p17079_p9, 1, 0 }
  0x16   : > { %p15835_p10 = pneg %p17079_p9  ;;  %s261_s14 = sshll.u32 %s16984_s13, 4  ;;  %s262_s14 = int_to_ptr.vmem [resolvable:$true] %s261_s14 }
  0x17   : > { %p16731_p13 = scmp.ne.s32.totalorder %s238_s11, %s16730_s16  ;;  %p16738_p5 = scmp.lt.s32.totalorder %s238_s11, %s238_s11 }
  0x18   : > { %p17087_p11 = pnand %p15835_p10, %p18265_p1  ;;  %p16739_p7 = scmp.lt.s32.totalorder %s16730_s16, %s16730_s16 }
  0x1a   : > { %s18281_s12 = scalar_select %p17087_p11, 1, 0 }
  0x1b   : > { %p17093_p12 = pneg %p17087_p11  ;;  %p16740_p10 = por %p16739_p7, %p16738_p5 }
  0x1d   : > { %p16733_p0 = pnand %p16731_p13, %p17093_p12 }
  0x1f   : > { %p16734_p3 = pneg %p16733_p0 }
  0x21   : > { %p16741_p8 = pnand %p16740_p10, %p16734_p3 }
  0x23   : > { %16744 = shalt.err (!%p16741_p8)
}
  0x24   : > { %s16985_s17 = smov 512   ;;  %s16986_s18 = smov 32  }
  0x25   : > { %s18283_s1 = sld [smem:[#allocation22_spill]]  ;;  %s16756_s21 = scalar_lea.vmem %s262_s14, 131072 }
  0x26   : > { %p16757_p1 = scmp.ne.s32.totalorder %s262_s14, %s16756_s21  ;;  %p16764_p0 = scmp.lt.s32.totalorder %s262_s14, %s262_s14 }
  0x27   : > { %p16765_p6 = scmp.lt.s32.totalorder %s16756_s21, %s16756_s21 }
  0x28   : > { %p16759_p2 = pnand %p16757_p1, %p17093_p12 }
  0x29   : > { %p16766_p4 = por %p16765_p6, %p16764_p0 }
  0x2a   : > { %p16760_p13 = pneg %p16759_p2 }
  0x2b   : > { %15841 = dma.hbm_to_vmem [thread:$0]  (!%p17087_p11), %s18283_s1, 32768, %s238_s11, [#allocation7], %s16985_s17, %s16985_s17, %s16986_s18  }
  0x2c   : > { %p16767_p5 = pnand %p16766_p4, %p16760_p13 }
  0x2e   : > { %16770 = shalt.err (!%p16767_p5)
}
  0x2f   : > { %s16987_s22 = smov 1024   ;;  %s16988_s23 = smov 64  }
  0x30   : > { %s18284_s3 = sld [smem:[#allocation23_spill]]  ;;  %s17112_s11 = sadd.s32 1, %s16981_s27  }
  0x31   : > { %s135_s13 = ssub.s32 %s16981_s27, %s17112_s11  ;;  %s138_s16 = sadd.s32 1, %s16977_s26 }
  0x32   : > { %p136_p1 = scmp.eq.s32.totalorder %s135_s13, 0  ;;  %p145_p2 = scmp.ne.s32.totalorder %s16977_s26, %s16973_s25 }
  0x33   : > { %p146_p4 = scmp.eq.s32.totalorder %s16981_s27, 0  ;;  %p18286_p8 = scmp.eq.s32.totalorder %s17059_s28, 5 }
  0x34   : > { %s17121_s17 = scalar_select %p136_p1, %s16977_s26, %s138_s16  }
  0x35   : > { %p147_p6 = por %p146_p4, %p145_p2  ;;  %p17125_p3 = por %p18286_p8, %p145_p2 }
  0x36   : > { %15847 = dma.hbm_to_vmem [thread:$0]  (!%p17087_p11), %s18284_s3, 131072, %s262_s14, [#allocation10], %s16987_s22, %s16987_s22, %s16988_s23  }
  0x37   : > { %18285 = sst [smem:[#allocation21_spill]] %s17121_s17  ;;  %p15867_p7 = scmp.lt.s32.totalorder %s16981_s27, 6 }
  0x38   : > { %s18287_s18 = scalar_select %p17125_p3, 1, 0 }
  0x39   : > { %s286_s19 = sand.u32 1, %s16981_s27   ;;  %s18267_s20 = sand.u32 1, %s16977_s26  }
  0x3a   : > { %s13957_s14 = sshll.u32 %s18267_s20, 12  ;;  %s15798_s21 = sshll.u32 %s16981_s27, 8 }
  0x3b   : > { %s18288_s5 = sld [smem:[#allocation24_spill]]  ;;  %s290_s10 = scalar_lea.vmem [#allocation12], %s13957_s14 }
  0x3c   : > { %s297_s13 = sshll.u32 %s290_s10, 4  ;;  %p17140_p10 = pnand %p15867_p7, %p147_p6  ;;  %s17144_s13 = int_to_ptr.vmem [resolvable:$true] %s297_s13 }
  0x3d   : > { %s17146_s20 = scalar_lea.sflag [#allocation13], %s286_s19 }
  0x3e   : > { %s18289_s16 = scalar_select %p17140_p10, 1, 0 }
  0x3f   : > { %p18272_p0 = pneg %p17140_p10 }
  0x41   : > { %s17138_s29 = scalar_lea.hbm %s18288_s5, %s15798_s21  ;;  %s16776_s22 = scalar_lea.hbm %s18288_s5, 393216 }
  0x42   : > { %s16771_s1 = scalar_lea.hbm %s17138_s29, 65536  ;;  %p16777_p2 = scmp.lt.s32.totalorder %s17138_s29, %s18288_s5 }
  0x43   : > { %p16772_p13 = scmp.ne.s32.totalorder %s17138_s29, %s16771_s1  ;;  %p16778_p4 = scmp.lt.s32.totalorder %s16776_s22, %s16771_s1 }
  0x45   : > { %p16774_p5 = pnand %p18272_p0, %p16772_p13  ;;  %p16779_p6 = por %p16778_p4, %p16777_p2 }
  0x47   : > { %p16775_p1 = pneg %p16774_p5 }
  0x49   : > { %p16780_p8 = pnand %p16779_p6, %p16775_p1 }
  0x4b   : > { %16783 = shalt.err (!%p16780_p8)
}
  0x4c   : > { %s16784_s19 = scalar_lea.vmem %s17144_s13, 65536  ;;  %s16989_s14 = smov [#allocation12]  }
  0x4d   : > { %p16785_p7 = scmp.ne.s32.totalorder %s17144_s13, %s16784_s19  ;;  %s16789_s21 = sshll.u32 %s16989_s14, 4  ;;  %s16790_s21 = int_to_ptr.vmem [resolvable:$false] %s16789_s21 }
  0x4e   : > { %s16791_s3 = scalar_lea.vmem %s16790_s21, 131072  ;;  %p16792_p3 = scmp.lt.s32.totalorder %s17144_s13, %s16790_s21 }
  0x4f   : > { %p16787_p13 = pnand %p16785_p7, %p18272_p0  ;;  %p16793_p9 = scmp.lt.s32.totalorder %s16791_s3, %s16784_s19 }
  0x51   : > { %p16788_p5 = pneg %p16787_p13  ;;  %p16794_p11 = por %p16793_p9, %p16792_p3 }
  0x53   : > { %p16795_p2 = pnand %p16794_p11, %p16788_p5 }
  0x55   : > { %16798 = shalt.err (!%p16795_p2)
}
  0x56   : > { %s16990_s1 = smov 1536   ;;  %s16991_s22 = smov 256  }
  0x57   : > { %s16992_s23 = smov 16   ;;  %s16993_s10 = smov [#allocation3]  }
  0x58   : > { %15854 = dma.hbm_to_vmem [thread:$0]  (!%p17140_p10), %s17138_s29, 65536, %s17144_s13, %s17146_s20, %s16990_s1, %s16991_s22, %s16992_s23  }
  0x59   : > { %s227_s5 = sshll.u32 %s16993_s10, 4  ;;  %s16994_s14 = smov [#allocation8]   ;;  %s228_s5 = int_to_ptr.vmem [resolvable:$true] %s227_s5 }
  0x5a   : > { %s251_s17 = sshll.u32 %s16994_s14, 4  ;;  %s16810_s21 = scalar_lea.vmem %s228_s5, 256  ;;  %s252_s17 = int_to_ptr.vmem [resolvable:$true] %s251_s17 }
  0x5b   : > { %p16811_p1 = scmp.ne.s32.totalorder %s228_s5, %s16810_s21  ;;  %p16818_p3 = scmp.lt.s32.totalorder %s228_s5, %s228_s5 }
  0x5c   : > { %p16819_p4 = scmp.lt.s32.totalorder %s16810_s21, %s16810_s21 }
  0x5d   : > { %p16813_p9 = pnand %p16811_p1, %p17093_p12 }
  0x5e   : > { %p16820_p6 = por %p16819_p4, %p16818_p3 }
  0x5f   : > { %p16814_p11 = pneg %p16813_p9 }
  0x61   : > { %p16821_p8 = pnand %p16820_p6, %p16814_p11 }
  0x63   : > { %16824 = shalt.err (!%p16821_p8)
}
  0x64   : > { %p18290_p7 = scmp.ne.s32.totalorder %s18281_s12, 0  ;;  %s16836_s29 = scalar_lea.vmem %s252_s17, 128 }
  0x65   : > { %p16837_p13 = scmp.ne.s32.totalorder %s252_s17, %s16836_s29  ;;  %p16844_p1 = scmp.lt.s32.totalorder %s252_s17, %s252_s17 }
  0x66   : > { %15838 = dma.hbm_to_vmem [thread:$0]  (!%p18290_p7), %s18257_s0, 256, %s228_s5, [#allocation4]  }
  0x67   : > { %p16839_p5 = pnand %p16837_p13, %p17093_p12  ;;  %p16845_p9 = scmp.lt.s32.totalorder %s16836_s29, %s16836_s29 }
  0x69   : > { %p16840_p2 = pneg %p16839_p5  ;;  %p16846_p0 = por %p16845_p9, %p16844_p1 }
  0x6b   : > { %p16847_p10 = pnand %p16846_p0, %p16840_p2 }
  0x6d   : > { %16850 = shalt.err (!%p16847_p10)
}
  0x6e   : > { %15844 = dma.hbm_to_vmem [thread:$0]  (!%p18290_p7), %s18259_s2, 128, %s252_s17, [#allocation7]  }
  0x6f   : > { %s16995_s5 = smov [#allocation11]   ;;  %s18291_s23 = sand.u32 1, %s16977_s26  }
  0x70   : > { %s275_s22 = sshll.u32 %s16995_s5, 4  ;;  %s13960_s10 = sshll.u32 %s18291_s23, 2  ;;  %s276_s22 = int_to_ptr.vmem [resolvable:$true] %s275_s22 }
  0x71   : > { %s16862_s14 = scalar_lea.vmem %s276_s22, 256  ;;  %p16870_p0 = scmp.lt.s32.totalorder %s276_s22, %s276_s22 }
  0x72   : > { %p16863_p11 = scmp.ne.s32.totalorder %s276_s22, %s16862_s14  ;;  %p16871_p10 = scmp.lt.s32.totalorder %s16862_s14, %s16862_s14 }
  0x74   : > { %p16865_p3 = pnand %p16863_p11, %p17093_p12  ;;  %p16872_p6 = por %p16871_p10, %p16870_p0 }
  0x76   : > { %p16866_p4 = pneg %p16865_p3 }
  0x78   : > { %p16873_p8 = pnand %p16872_p6, %p16866_p4 }
  0x7a   : > { %16876 = shalt.err (!%p16873_p8)
}
  0x7b   : > { %15850 = dma.hbm_to_vmem [thread:$0]  (!%p18290_p7), %s18261_s4, 256, %s276_s22, [#allocation10]  }
  0x7c   : > { %s15799_s17 = sshll.u32 %s16981_s27, 6  ;;  %s311_s19 = scalar_lea.vmem [#allocation14], %s13960_s10 }
  0x7d   : > { %s319_s29 = sshll.u32 %s311_s19, 4  ;;  %s317_s1 = scalar_lea.hbm %s18263_s6, %s15799_s17  ;;  %s320_s29 = int_to_ptr.vmem [resolvable:$true] %s319_s29 }
  0x7e   : > { %s16877_s5 = scalar_lea.hbm %s317_s1, 64  ;;  %p18292_p13 = scmp.ne.s32.totalorder %s18289_s16, 0 }
  0x7f   : > { %p16878_p12 = scmp.ne.s32.totalorder %s317_s1, %s16877_s5  ;;  %s16882_s14 = scalar_lea.hbm %s18263_s6, 384 }
  0x80   : > { %p18293_p5 = pneg %p18292_p13  ;;  %p16883_p7 = scmp.lt.s32.totalorder %s317_s1, %s18263_s6 }
  0x81   : > { %p16884_p9 = scmp.lt.s32.totalorder %s16882_s14, %s16877_s5 }
  0x82   : > { %p16880_p2 = pnand %p16878_p12, %p18293_p5 }
  0x83   : > { %p16885_p11 = por %p16884_p9, %p16883_p7 }
  0x84   : > { %p16881_p1 = pneg %p16880_p2 }
  0x86   : > { %p16886_p3 = pnand %p16885_p11, %p16881_p1 }
  0x88   : > { %16889 = shalt.err (!%p16886_p3)
}
  0x89   : > { %s16890_s10 = scalar_lea.vmem %s320_s29, 64  ;;  %p18294_p0 = pmov %p18293_p5 }
  0x8a   : > { %p16891_p4 = scmp.ne.s32.totalorder %s320_s29, %s16890_s10  ;;  %s16996_s3 = smov [#allocation14]  }
  0x8b   : > { %s16895_s17 = sshll.u32 %s16996_s3, 4  ;;  %s16896_s17 = int_to_ptr.vmem [resolvable:$false] %s16895_s17 }
  0x8c   : > { %p16893_p10 = pnand %p16891_p4, %p18294_p0  ;;  %s16897_s19 = scalar_lea.vmem %s16896_s17, 128 }
  0x8d   : > { %p16898_p8 = scmp.lt.s32.totalorder %s320_s29, %s16896_s17  ;;  %p16899_p12 = scmp.lt.s32.totalorder %s16897_s19, %s16890_s10 }
  0x8e   : > { %p16894_p6 = pneg %p16893_p10 }
  0x8f   : > { %p16900_p5 = por %p16899_p12, %p16898_p8 }
  0x91   : > { %p16901_p2 = pnand %p16900_p5, %p16894_p6 }
  0x93   : > { %16904 = shalt.err (!%p16901_p2)
}
  0x94   : > { %15857 = dma.hbm_to_vmem [thread:$0]  (!%p18292_p13), %s317_s1, 64, %s320_s29, %s17146_s20  }
  0x95   : > { %p18295_p1 = scmp.ne.s32.totalorder %s18280_s9, 0 }
  0x96   : > { %p18296_p7 = scmp.eq.s32.totalorder (!%p18295_p1), %s17059_s28, 0 }
  0x97   : > { %328 = sbr.rel (%p18295_p1) target bundleno = 2479 (0x9af), region = 48 }
  0x9c   : > { %16948 = dma.done.wait (%p18296_p7), [#allocation4], 256   ;;  %p18297_p9 = pmov %p18296_p7 }
  0x9d   : > { %p18298_p11 = pmov %p18296_p7 }
  0x9e   : > { %16950 = vsyncadd (%p18297_p9), [#allocation4], 4294967040 }
  0x9f   : > { %16952 = dma.done.wait (%p18298_p11), [#allocation7], 32896   ;;  %p18299_p3 = pmov %p18296_p7 }
  0xa1   : > { %16954 = vsyncadd (%p18299_p3), [#allocation7], 4294934400  ;;  %p18300_p4 = pmov %p18299_p3 }
  0xa2   : > { %p18301_p13 = pmov %p18299_p3 }
  0xa3   : > { %16956 = dma.done.wait (%p18300_p4), [#allocation10], 131328  }
  0xa4   : > { %16958 = vsyncadd (%p18301_p13), [#allocation10], 4294835968  ;;  %s350_s9 = sand.u32 1, %s17059_s28   ;;  %s17231_s20 = sand.u32 1, %s16973_s25  }
  0xa5   : > { %s13969_s16 = sshll.u32 %s17231_s20, 12  ;;  %s351_s29 = scalar_lea.sflag [#allocation13], %s350_s9 }
  0xa6   : > { %s17234_s13 = scalar_lea.vmem [#allocation12], %s13969_s16  ;;  %p18302_p0 = scmp.ne.s32.totalorder %s18278_s30, 0 }
  0xa8   : > { %16960 = dma.done.wait (%p18302_p0), %s351_s29, 65600  }
  0xa9   : > { %16962 = vsyncadd (%p18302_p0), %s351_s29, 4294901696  ;;  %s13970_s15 = sshll.u32 %s17231_s20, 2  ;;  %s13971_s1 = sshll.u32 %s17231_s20, 5 }
  0xaa   : > { %s17242_s5 = scalar_lea.vmem [#allocation14], %s13970_s15  ;;  %s17244_s12 = scalar_lea.vmem [#allocation15], %s13971_s1 }
  0xab   : > { %p18303_p10 = scmp.ne.s32.totalorder %s17059_s28, 0 }
  0xad   : > { %405 = sbr.rel (%p18303_p10) target bundleno = 1740 (0x6cc), region = 80 }
  0xb2   : > { %v464_v0 = vld [vmem:[#allocation6 + $0x1c0] sm:$0xff]  ;;  %v17248_v53 = vld [vmem:[#allocation3] sm:$0xff]  ;;  %v17250_v54 = vld [vmem:[#allocation3 + $0x8] sm:$0xff] }
  0xb3   : > { %v468_v1 = vld [vmem:[#allocation6 + $0x1e0] sm:$0xff]  ;;  %v17254_v58 = vcombine.high %v17248_v53, %v17248_v53  ;;  %v17258_v59 = vcombine.high %v17250_v54, %v17250_v54 }
  0xb4   : > { %v592_v2 = vld [vmem:[#allocation6 + $0x5c0] sm:$0xff]  ;;  %v14034_v3 = vcombine.high %v464_v0, %v468_v1  ;;  %v14033_v5 = vcombine.low %v464_v0, %v468_v1 }
  0xb5   : > { %v596_v4 = vld [vmem:[#allocation6 + $0x5e0] sm:$0xff]  ;;  %2032 = vmatprep.mubr.bf16.mxu0 %v17254_v58  ;;  %2073 = vmatprep.mubr.bf16.mxu1 %v17258_v59 }
  0xb6   : > { %v456_v6 = vld [vmem:[#allocation6 + $0x180] sm:$0xff]  ;;  %v14162_v8 = vcombine.high %v592_v2, %v596_v4  ;;  %v14161_v9 = vcombine.low %v592_v2, %v596_v4  ;;  %2000 = vmatprep.subr.bf16.mxu0 %v14034_v3 }
  0xb7   : > { %v460_v7 = vld [vmem:[#allocation6 + $0x1a0] sm:$0xff]  ;;  %2001 = vmatpush1.bf16.msra.mxu0 %v14033_v5 }
  0xb8   : > { %v14026_v10 = vcombine.high %v456_v6, %v460_v7  ;;  %v584_v11 = vld [vmem:[#allocation6 + $0x580] sm:$0xff]  ;;  %2041 = vmatprep.subr.bf16.mxu1 %v14162_v8  ;;  %v14025_v18 = vcombine.low %v456_v6, %v460_v7 }
  0xb9   : > { %v588_v12 = vld [vmem:[#allocation6 + $0x5a0] sm:$0xff]  ;;  %2042 = vmatpush1.bf16.msra.mxu1 %v14161_v9 }
  0xba   : > { %v448_v13 = vld [vmem:[#allocation6 + $0x140] sm:$0xff]  ;;  %v14154_v14 = vcombine.high %v584_v11, %v588_v12  ;;  %2002 = vmatprep.subr.bf16.mxu0 %v14026_v10  ;;  %v14153_v19 = vcombine.low %v584_v11, %v588_v12 }
  0xbb   : > { %v452_v15 = vld [vmem:[#allocation6 + $0x160] sm:$0xff]  ;;  %2003 = vmatpush1.bf16.msra.mxu0 %v14025_v18 }
  0xbc   : > { %v576_v16 = vld [vmem:[#allocation6 + $0x540] sm:$0xff]  ;;  %v14018_v20 = vcombine.high %v448_v13, %v452_v15  ;;  %2043 = vmatprep.subr.bf16.mxu1 %v14154_v14  ;;  %v14017_v26 = vcombine.low %v448_v13, %v452_v15 }
  0xbd   : > { %v580_v17 = vld [vmem:[#allocation6 + $0x560] sm:$0xff]  ;;  %2044 = vmatpush1.bf16.msra.mxu1 %v14153_v19 }
  0xbe   : > { %v14146_v21 = vcombine.high %v576_v16, %v580_v17  ;;  %v440_v22 = vld [vmem:[#allocation6 + $0x100] sm:$0xff]  ;;  %2004 = vmatprep.subr.bf16.mxu0 %v14018_v20  ;;  %v14145_v27 = vcombine.low %v576_v16, %v580_v17 }
  0xbf   : > { %v444_v23 = vld [vmem:[#allocation6 + $0x120] sm:$0xff]  ;;  %2005 = vmatpush1.bf16.msra.mxu0 %v14017_v26 }
  0xc0   : > { %v568_v24 = vld [vmem:[#allocation6 + $0x500] sm:$0xff]  ;;  %v14010_v28 = vcombine.high %v440_v22, %v444_v23  ;;  %2045 = vmatprep.subr.bf16.mxu1 %v14146_v21  ;;  %v14009_v34 = vcombine.low %v440_v22, %v444_v23 }
  0xc1   : > { %v572_v25 = vld [vmem:[#allocation6 + $0x520] sm:$0xff]  ;;  %2046 = vmatpush1.bf16.msra.mxu1 %v14145_v27 }
  0xc2   : > { %v14138_v29 = vcombine.high %v568_v24, %v572_v25  ;;  %v432_v30 = vld [vmem:[#allocation6 + $0xc0] sm:$0xff]  ;;  %2006 = vmatprep.subr.bf16.mxu0 %v14010_v28  ;;  %v14137_v35 = vcombine.low %v568_v24, %v572_v25 }
  0xc3   : > { %v436_v31 = vld [vmem:[#allocation6 + $0xe0] sm:$0xff]  ;;  %2007 = vmatpush1.bf16.msra.mxu0 %v14009_v34 }
  0xc4   : > { %v560_v32 = vld [vmem:[#allocation6 + $0x4c0] sm:$0xff]  ;;  %v14002_v36 = vcombine.high %v432_v30, %v436_v31  ;;  %2047 = vmatprep.subr.bf16.mxu1 %v14138_v29  ;;  %v14001_v42 = vcombine.low %v432_v30, %v436_v31 }
  0xc5   : > { %v564_v33 = vld [vmem:[#allocation6 + $0x4e0] sm:$0xff]  ;;  %2048 = vmatpush1.bf16.msra.mxu1 %v14137_v35 }
  0xc6   : > { %v14130_v37 = vcombine.high %v560_v32, %v564_v33  ;;  %v424_v38 = vld [vmem:[#allocation6 + $0x80] sm:$0xff]  ;;  %2008 = vmatprep.subr.bf16.mxu0 %v14002_v36  ;;  %v14129_v43 = vcombine.low %v560_v32, %v564_v33 }
  0xc7   : > { %v428_v39 = vld [vmem:[#allocation6 + $0xa0] sm:$0xff]  ;;  %2009 = vmatpush1.bf16.msra.mxu0 %v14001_v42 }
  0xc8   : > { %v552_v40 = vld [vmem:[#allocation6 + $0x480] sm:$0xff]  ;;  %v13994_v44 = vcombine.high %v424_v38, %v428_v39  ;;  %2049 = vmatprep.subr.bf16.mxu1 %v14130_v37  ;;  %v13993_v50 = vcombine.low %v424_v38, %v428_v39 }
  0xc9   : > { %v556_v41 = vld [vmem:[#allocation6 + $0x4a0] sm:$0xff]  ;;  %2050 = vmatpush1.bf16.msra.mxu1 %v14129_v43 }
  0xca   : > { %v14122_v45 = vcombine.high %v552_v40, %v556_v41  ;;  %v416_v46 = vld [vmem:[#allocation6 + $0x40] sm:$0xff]  ;;  %2010 = vmatprep.subr.bf16.mxu0 %v13994_v44  ;;  %v14121_v51 = vcombine.low %v552_v40, %v556_v41 }
  0xcb   : > { %v420_v47 = vld [vmem:[#allocation6 + $0x60] sm:$0xff]  ;;  %2011 = vmatpush1.bf16.msra.mxu0 %v13993_v50 }
  0xcc   : > { %v544_v48 = vld [vmem:[#allocation6 + $0x440] sm:$0xff]  ;;  %v13986_v52 = vcombine.high %v416_v46, %v420_v47  ;;  %2051 = vmatprep.subr.bf16.mxu1 %v14122_v45  ;;  %v13985_v62 = vcombine.low %v416_v46, %v420_v47 }
  0xcd   : > { %v548_v49 = vld [vmem:[#allocation6 + $0x460] sm:$0xff]  ;;  %2052 = vmatpush1.bf16.msra.mxu1 %v14121_v51 }
  0xce   : > { %v14114_v55 = vcombine.high %v544_v48, %v548_v49  ;;  %v408_v56 = vld [vmem:[#allocation6] sm:$0xff]  ;;  %2012 = vmatprep.subr.bf16.mxu0 %v13986_v52  ;;  %v14113_v63 = vcombine.low %v544_v48, %v548_v49 }
  0xcf   : > { %v412_v57 = vld [vmem:[#allocation6 + $0x20] sm:$0xff]  ;;  %2013 = vmatpush1.bf16.msra.mxu0 %v13985_v62 }
  0xd0   : > { %v536_v60 = vld [vmem:[#allocation6 + $0x400] sm:$0xff]  ;;  %v13978_v0 = vcombine.high %v408_v56, %v412_v57  ;;  %2053 = vmatprep.subr.bf16.mxu1 %v14114_v55  ;;  %v13977_v6 = vcombine.low %v408_v56, %v412_v57 }
  0xd1   : > { %v540_v61 = vld [vmem:[#allocation6 + $0x420] sm:$0xff]  ;;  %2054 = vmatpush1.bf16.msra.mxu1 %v14113_v63 }
  0xd2   : > { %v14106_v1 = vcombine.high %v536_v60, %v540_v61  ;;  %v528_v2 = vld [vmem:[#allocation6 + $0x3c0] sm:$0xff]  ;;  %2014 = vmatprep.subr.bf16.mxu0 %v13978_v0  ;;  %v14105_v7 = vcombine.low %v536_v60, %v540_v61 }
  0xd3   : > { %v532_v3 = vld [vmem:[#allocation6 + $0x3e0] sm:$0xff]  ;;  %2015 = vmatpush1.bf16.msra.mxu0 %v13977_v6  ;;  %v465_v6 = vld [vmem:[#allocation6 + $0x1c8] sm:$0xff] }
  0xd4   : > { %v656_v4 = vld [vmem:[#allocation6 + $0x7c0] sm:$0xff]  ;;  %v14098_v8 = vcombine.high %v528_v2, %v532_v3  ;;  %2055 = vmatprep.subr.bf16.mxu1 %v14106_v1  ;;  %v14097_v14 = vcombine.low %v528_v2, %v532_v3 }
  0xd5   : > { %v660_v5 = vld [vmem:[#allocation6 + $0x7e0] sm:$0xff]  ;;  %2056 = vmatpush1.bf16.msra.mxu1 %v14105_v7  ;;  %v469_v7 = vld [vmem:[#allocation6 + $0x1e8] sm:$0xff] }
  0xd6   : > { %v14226_v9 = vcombine.high %v656_v4, %v660_v5  ;;  %v520_v10 = vld [vmem:[#allocation6 + $0x380] sm:$0xff]  ;;  %2016 = vmatprep.subr.bf16.mxu0 %v14098_v8  ;;  %v14225_v15 = vcombine.low %v656_v4, %v660_v5  ;;  %v593_v8 = vld [vmem:[#allocation6 + $0x5c8] sm:$0xff] }
  0xd7   : > { %v524_v11 = vld [vmem:[#allocation6 + $0x3a0] sm:$0xff]  ;;  %2017 = vmatpush2.bf16.msra.mxu0 %v14097_v14  ;;  %v457_v14 = vld [vmem:[#allocation6 + $0x188] sm:$0xff] }
  0xd8   : > { %v648_v12 = vld [vmem:[#allocation6 + $0x780] sm:$0xff]  ;;  %v14090_v16 = vcombine.high %v520_v10, %v524_v11  ;;  %2057 = vmatprep.subr.bf16.mxu1 %v14226_v9  ;;  %v14089_v22 = vcombine.low %v520_v10, %v524_v11  ;;  %v597_v9 = vld [vmem:[#allocation6 + $0x5e8] sm:$0xff] }
  0xd9   : > { %v652_v13 = vld [vmem:[#allocation6 + $0x7a0] sm:$0xff]  ;;  %2058 = vmatpush2.bf16.msra.mxu1 %v14225_v15  ;;  %v461_v15 = vld [vmem:[#allocation6 + $0x1a8] sm:$0xff] }
  0xda   : > { %v14218_v17 = vcombine.high %v648_v12, %v652_v13  ;;  %v512_v18 = vld [vmem:[#allocation6 + $0x340] sm:$0xff]  ;;  %2018 = vmatprep.subr.bf16.mxu0 %v14090_v16  ;;  %v14217_v23 = vcombine.low %v648_v12, %v652_v13  ;;  %v14036_v12 = vcombine.high %v465_v6, %v469_v7  ;;  %v14164_v13 = vcombine.high %v593_v8, %v597_v9 }
  0xdb   : > { %v516_v19 = vld [vmem:[#allocation6 + $0x360] sm:$0xff]  ;;  %2019 = vmatpush2.bf16.msra.mxu0 %v14089_v22  ;;  %v17264_v16 = vcombine.low %v17248_v53, %v17248_v53  ;;  %v14028_v22 = vcombine.high %v457_v14, %v461_v15  ;;  %v577_v53 = vld [vmem:[#allocation6 + $0x548] sm:$0xff] }
  0xdc   : > { %v640_v20 = vld [vmem:[#allocation6 + $0x740] sm:$0xff]  ;;  %v14082_v24 = vcombine.high %v512_v18, %v516_v19  ;;  %2059 = vmatprep.subr.bf16.mxu1 %v14218_v17  ;;  %v14081_v30 = vcombine.low %v512_v18, %v516_v19  ;;  %v585_v17 = vld [vmem:[#allocation6 + $0x588] sm:$0xff]  ;;  %v17268_v19 = vcombine.low %v17250_v54, %v17250_v54 }
  0xdd   : > { %v644_v21 = vld [vmem:[#allocation6 + $0x760] sm:$0xff]  ;;  %2060 = vmatpush2.bf16.msra.mxu1 %v14217_v23  ;;  %v589_v18 = vld [vmem:[#allocation6 + $0x5a8] sm:$0xff] }
  0xde   : > { %v14210_v25 = vcombine.high %v640_v20, %v644_v21  ;;  %v504_v26 = vld [vmem:[#allocation6 + $0x300] sm:$0xff]  ;;  %2020 = vmatprep.subr.bf16.mxu0 %v14082_v24  ;;  %v14209_v31 = vcombine.low %v640_v20, %v644_v21  ;;  %v14035_v20 = vcombine.low %v465_v6, %v469_v7  ;;  %v14163_v21 = vcombine.low %v593_v8, %v597_v9  ;;  %v449_v24 = vld [vmem:[#allocation6 + $0x148] sm:$0xff] }
  0xdf   : > { %v508_v27 = vld [vmem:[#allocation6 + $0x320] sm:$0xff]  ;;  %2021 = vmatpush2.bf16.msra.mxu0 %v14081_v30  ;;  %v14156_v23 = vcombine.high %v585_v17, %v589_v18  ;;  %v14155_v54 = vcombine.low %v585_v17, %v589_v18  ;;  %v441_v30 = vld [vmem:[#allocation6 + $0x108] sm:$0xff] }
  0xe0   : > { %v632_v28 = vld [vmem:[#allocation6 + $0x700] sm:$0xff]  ;;  %v14074_v32 = vcombine.high %v504_v26, %v508_v27  ;;  %2061 = vmatprep.subr.bf16.mxu1 %v14210_v25  ;;  %v14073_v38 = vcombine.low %v504_v26, %v508_v27  ;;  %v453_v25 = vld [vmem:[#allocation6 + $0x168] sm:$0xff]  ;;  %v14027_v27 = vcombine.low %v457_v14, %v461_v15 }
  0xe1   : > { %v636_v29 = vld [vmem:[#allocation6 + $0x720] sm:$0xff]  ;;  %2062 = vmatpush2.bf16.msra.mxu1 %v14209_v31  ;;  %v581_v26 = vld [vmem:[#allocation6 + $0x568] sm:$0xff] }
  0xe2   : > { %v14202_v33 = vcombine.high %v632_v28, %v636_v29  ;;  %v496_v34 = vld [vmem:[#allocation6 + $0x2c0] sm:$0xff]  ;;  %2022 = vmatprep.subr.bf16.mxu0 %v14074_v32  ;;  %v14201_v39 = vcombine.low %v632_v28, %v636_v29  ;;  %v14020_v28 = vcombine.high %v449_v24, %v453_v25  ;;  %v14148_v29 = vcombine.high %v577_v53, %v581_v26  ;;  %v445_v31 = vld [vmem:[#allocation6 + $0x128] sm:$0xff] }
  0xe3   : > { %v500_v35 = vld [vmem:[#allocation6 + $0x2e0] sm:$0xff]  ;;  %2023 = vmatpush2.bf16.msra.mxu0 %v14073_v38  ;;  %v569_v32 = vld [vmem:[#allocation6 + $0x508] sm:$0xff] }
  0xe4   : > { %v624_v36 = vld [vmem:[#allocation6 + $0x6c0] sm:$0xff]  ;;  %v14066_v40 = vcombine.high %v496_v34, %v500_v35  ;;  %2063 = vmatprep.subr.bf16.mxu1 %v14202_v33  ;;  %v14065_v46 = vcombine.low %v496_v34, %v500_v35  ;;  %v573_v33 = vld [vmem:[#allocation6 + $0x528] sm:$0xff]  ;;  %v14019_v34 = vcombine.low %v449_v24, %v453_v25  ;;  %v14147_v35 = vcombine.low %v577_v53, %v581_v26 }
  0xe5   : > { %v628_v37 = vld [vmem:[#allocation6 + $0x6e0] sm:$0xff]  ;;  %2064 = vmatpush2.bf16.msra.mxu1 %v14201_v39  ;;  %v433_v38 = vld [vmem:[#allocation6 + $0xc8] sm:$0xff] }
  0xe6   : > { %v14194_v41 = vcombine.high %v624_v36, %v628_v37  ;;  %v488_v42 = vld [vmem:[#allocation6 + $0x280] sm:$0xff]  ;;  %2024 = vmatprep.subr.bf16.mxu0 %v14066_v40  ;;  %v14193_v47 = vcombine.low %v624_v36, %v628_v37  ;;  %v14012_v36 = vcombine.high %v441_v30, %v445_v31  ;;  %v14140_v37 = vcombine.high %v569_v32, %v573_v33  ;;  %v437_v39 = vld [vmem:[#allocation6 + $0xe8] sm:$0xff] }
  0xe7   : > { %v492_v43 = vld [vmem:[#allocation6 + $0x2a0] sm:$0xff]  ;;  %2025 = vmatpush2.bf16.msra.mxu0 %v14065_v46  ;;  %v561_v40 = vld [vmem:[#allocation6 + $0x4c8] sm:$0xff] }
  0xe8   : > { %v616_v44 = vld [vmem:[#allocation6 + $0x680] sm:$0xff]  ;;  %v14058_v48 = vcombine.high %v488_v42, %v492_v43  ;;  %2065 = vmatprep.subr.bf16.mxu1 %v14194_v41  ;;  %v14057_v56 = vcombine.low %v488_v42, %v492_v43  ;;  %v565_v41 = vld [vmem:[#allocation6 + $0x4e8] sm:$0xff]  ;;  %v14011_v42 = vcombine.low %v441_v30, %v445_v31  ;;  %v14139_v43 = vcombine.low %v569_v32, %v573_v33 }
  0xe9   : > { %v620_v45 = vld [vmem:[#allocation6 + $0x6a0] sm:$0xff]  ;;  %2066 = vmatpush2.bf16.msra.mxu1 %v14193_v47  ;;  %v425_v46 = vld [vmem:[#allocation6 + $0x88] sm:$0xff] }
  0xea   : > { %v14186_v49 = vcombine.high %v616_v44, %v620_v45  ;;  %v480_v50 = vld [vmem:[#allocation6 + $0x240] sm:$0xff]  ;;  %2026 = vmatprep.subr.bf16.mxu0 %v14058_v48  ;;  %v14185_v57 = vcombine.low %v616_v44, %v620_v45  ;;  %v14004_v44 = vcombine.high %v433_v38, %v437_v39  ;;  %v14132_v45 = vcombine.high %v561_v40, %v565_v41  ;;  %v429_v47 = vld [vmem:[#allocation6 + $0xa8] sm:$0xff] }
  0xeb   : > { %v484_v51 = vld [vmem:[#allocation6 + $0x260] sm:$0xff]  ;;  %2027 = vmatpush2.bf16.msra.mxu0 %v14057_v56  ;;  %v553_v48 = vld [vmem:[#allocation6 + $0x488] sm:$0xff] }
  0xec   : > { %v608_v52 = vld [vmem:[#allocation6 + $0x640] sm:$0xff]  ;;  %v14050_v60 = vcombine.high %v480_v50, %v484_v51  ;;  %2067 = vmatprep.subr.bf16.mxu1 %v14186_v49  ;;  %v14049_v2 = vcombine.low %v480_v50, %v484_v51  ;;  %v557_v49 = vld [vmem:[#allocation6 + $0x4a8] sm:$0xff]  ;;  %v14003_v50 = vcombine.low %v433_v38, %v437_v39  ;;  %v14131_v51 = vcombine.low %v561_v40, %v565_v41 }
  0xed   : > { %v612_v55 = vld [vmem:[#allocation6 + $0x660] sm:$0xff]  ;;  %2068 = vmatpush2.bf16.msra.mxu1 %v14185_v57  ;;  %v417_v56 = vld [vmem:[#allocation6 + $0x48] sm:$0xff] }
  0xee   : > { %v14178_v61 = vcombine.high %v608_v52, %v612_v55  ;;  %v472_v62 = vld [vmem:[#allocation6 + $0x200] sm:$0xff]  ;;  %2028 = vmatprep.subr.bf16.mxu0 %v14050_v60  ;;  %v14177_v3 = vcombine.low %v608_v52, %v612_v55  ;;  %v13996_v52 = vcombine.high %v425_v46, %v429_v47  ;;  %v14124_v55 = vcombine.high %v553_v48, %v557_v49  ;;  %v421_v57 = vld [vmem:[#allocation6 + $0x68] sm:$0xff] }
  0xef   : > { %v476_v63 = vld [vmem:[#allocation6 + $0x220] sm:$0xff]  ;;  %2029 = vmatpush2.bf16.msra.mxu0 %v14049_v2  ;;  %v545_v60 = vld [vmem:[#allocation6 + $0x448] sm:$0xff]  ;;  %v13987_v6 = vcombine.low %v417_v56, %v421_v57 }
  0xf0   : > { %v600_v0 = vld [vmem:[#allocation6 + $0x600] sm:$0xff]  ;;  %v14042_v4 = vcombine.high %v472_v62, %v476_v63  ;;  %2069 = vmatprep.subr.bf16.mxu1 %v14178_v61  ;;  %v14041_v10 = vcombine.low %v472_v62, %v476_v63  ;;  %v549_v61 = vld [vmem:[#allocation6 + $0x468] sm:$0xff]  ;;  %v13995_v62 = vcombine.low %v425_v46, %v429_v47  ;;  %v14123_v63 = vcombine.low %v553_v48, %v557_v49 }
  0xf1   : > { %v604_v1 = vld [vmem:[#allocation6 + $0x620] sm:$0xff]  ;;  %2070 = vmatpush2.bf16.msra.mxu1 %v14177_v3  ;;  %v409_v2 = vld [vmem:[#allocation6 + $0x8] sm:$0xff]  ;;  %v14115_v7 = vcombine.low %v545_v60, %v549_v61 }
  0xf2   : > { %v14170_v5 = vcombine.high %v600_v0, %v604_v1  ;;  %2030 = vmatprep.subr.bf16.mxu0 %v14042_v4  ;;  %v14169_v11 = vcombine.low %v600_v0, %v604_v1  ;;  %v13988_v0 = vcombine.high %v417_v56, %v421_v57  ;;  %v14116_v1 = vcombine.high %v545_v60, %v549_v61  ;;  %v413_v3 = vld [vmem:[#allocation6 + $0x28] sm:$0xff] }
  0xf3   : > { %2031 = vmatpush2.bf16.msra.mxu0 %v14041_v10  ;;  %v537_v4 = vld [vmem:[#allocation6 + $0x408] sm:$0xff]  ;;  %v13980_v8 = vcombine.high %v409_v2, %v413_v3  ;;  %v13979_v14 = vcombine.low %v409_v2, %v413_v3 }
  0xf4   : > { %2071 = vmatprep.subr.bf16.mxu1 %v14170_v5  ;;  %2082 = vmatprep.subr.bf16.mxu0 %v14036_v12  ;;  %v541_v5 = vld [vmem:[#allocation6 + $0x428] sm:$0xff] }
  0xf5   : > { %2072 = vmatpush2.bf16.msra.mxu1 %v14169_v11  ;;  %v14108_v9 = vcombine.high %v537_v4, %v541_v5  ;;  %v529_v10 = vld [vmem:[#allocation6 + $0x3c8] sm:$0xff]  ;;  %v14107_v15 = vcombine.low %v537_v4, %v541_v5 }
  0xf6   : > { %2123 = vmatprep.subr.bf16.mxu1 %v14164_v13  ;;  %2033 = vmatmul.mubr.bf16.vlgmr.msra.gmra.mxu0 %v17264_v16  ;;  %v533_v11 = vld [vmem:[#allocation6 + $0x3e8] sm:$0xff] }
  0xf7   : > { %2083 = vmatpush1.bf16.msra.mxu0 %v14035_v20  ;;  %2114 = vmatprep.mubr.bf16.mxu0 %v17254_v58  ;;  %v657_v12 = vld [vmem:[#allocation6 + $0x7c8] sm:$0xff]  ;;  %v14100_v17 = vcombine.high %v529_v10, %v533_v11  ;;  %v14099_v24 = vcombine.low %v529_v10, %v533_v11 }
  0xf8   : > { %2074 = vmatmul.mubr.bf16.vlgmr.msra.gmra.mxu1 %v17268_v19  ;;  %2084 = vmatprep.subr.bf16.mxu0 %v14028_v22  ;;  %v661_v13 = vld [vmem:[#allocation6 + $0x7e8] sm:$0xff] }
  0xf9   : > { %2124 = vmatpush1.bf16.msra.mxu1 %v14163_v21  ;;  %2155 = vmatprep.mubr.bf16.mxu1 %v17258_v59  ;;  %v14228_v18 = vcombine.high %v657_v12, %v661_v13  ;;  %v521_v20 = vld [vmem:[#allocation6 + $0x388] sm:$0xff]  ;;  %v14227_v25 = vcombine.low %v657_v12, %v661_v13 }
  0xfa   : > { %2125 = vmatprep.subr.bf16.mxu1 %v14156_v23  ;;  %v525_v21 = vld [vmem:[#allocation6 + $0x3a8] sm:$0xff] }
  0xfb   : > { %2085 = vmatpush1.bf16.msra.mxu0 %v14027_v27  ;;  %v649_v22 = vld [vmem:[#allocation6 + $0x788] sm:$0xff]  ;;  %v14092_v53 = vcombine.high %v521_v20, %v525_v21  ;;  %v14091_v30 = vcombine.low %v521_v20, %v525_v21 }
  0xfc   : > { %2086 = vmatprep.subr.bf16.mxu0 %v14020_v28  ;;  %v653_v23 = vld [vmem:[#allocation6 + $0x7a8] sm:$0xff] }
  0xfd   : > { %2126 = vmatpush1.bf16.msra.mxu1 %v14155_v54  ;;  %v14220_v26 = vcombine.high %v649_v22, %v653_v23  ;;  %v513_v27 = vld [vmem:[#allocation6 + $0x348] sm:$0xff]  ;;  %v14219_v31 = vcombine.low %v649_v22, %v653_v23 }
  0xfe   : > { %2127 = vmatprep.subr.bf16.mxu1 %v14148_v29  ;;  %v517_v54 = vld [vmem:[#allocation6 + $0x368] sm:$0xff] }
  0xff   : > { %2087 = vmatpush1.bf16.msra.mxu0 %v14019_v34  ;;  %v641_v28 = vld [vmem:[#allocation6 + $0x748] sm:$0xff]  ;;  %v14084_v32 = vcombine.high %v513_v27, %v517_v54  ;;  %v14083_v38 = vcombine.low %v513_v27, %v517_v54 }
 0x100   : > { %2088 = vmatprep.subr.bf16.mxu0 %v14012_v36  ;;  %v645_v29 = vld [vmem:[#allocation6 + $0x768] sm:$0xff] }
 0x101   : > { %2128 = vmatpush1.bf16.msra.mxu1 %v14147_v35  ;;  %v14212_v33 = vcombine.high %v641_v28, %v645_v29  ;;  %v505_v34 = vld [vmem:[#allocation6 + $0x308] sm:$0xff]  ;;  %v14211_v39 = vcombine.low %v641_v28, %v645_v29 }
 0x102   : > { %2129 = vmatprep.subr.bf16.mxu1 %v14140_v37  ;;  %v509_v35 = vld [vmem:[#allocation6 + $0x328] sm:$0xff] }
 0x103   : > { %2089 = vmatpush1.bf16.msra.mxu0 %v14011_v42  ;;  %v633_v36 = vld [vmem:[#allocation6 + $0x708] sm:$0xff]  ;;  %v14076_v40 = vcombine.high %v505_v34, %v509_v35  ;;  %v14075_v46 = vcombine.low %v505_v34, %v509_v35 }
 0x104   : > { %2090 = vmatprep.subr.bf16.mxu0 %v14004_v44  ;;  %v637_v37 = vld [vmem:[#allocation6 + $0x728] sm:$0xff] }
 0x105   : > { %2130 = vmatpush1.bf16.msra.mxu1 %v14139_v43  ;;  %v14204_v41 = vcombine.high %v633_v36, %v637_v37  ;;  %v497_v42 = vld [vmem:[#allocation6 + $0x2c8] sm:$0xff]  ;;  %v14203_v47 = vcombine.low %v633_v36, %v637_v37 }
 0x106   : > { %2131 = vmatprep.subr.bf16.mxu1 %v14132_v45  ;;  %v501_v43 = vld [vmem:[#allocation6 + $0x2e8] sm:$0xff] }
 0x107   : > { %2091 = vmatpush1.bf16.msra.mxu0 %v14003_v50  ;;  %v625_v44 = vld [vmem:[#allocation6 + $0x6c8] sm:$0xff]  ;;  %v14068_v48 = vcombine.high %v497_v42, %v501_v43  ;;  %v14067_v56 = vcombine.low %v497_v42, %v501_v43 }
 0x108   : > { %2092 = vmatprep.subr.bf16.mxu0 %v13996_v52  ;;  %v629_v45 = vld [vmem:[#allocation6 + $0x6e8] sm:$0xff] }
 0x109   : > { %2132 = vmatpush1.bf16.msra.mxu1 %v14131_v51  ;;  %v14196_v49 = vcombine.high %v625_v44, %v629_v45  ;;  %v489_v50 = vld [vmem:[#allocation6 + $0x288] sm:$0xff]  ;;  %v14195_v57 = vcombine.low %v625_v44, %v629_v45 }
 0x10a   : > { %2133 = vmatprep.subr.bf16.mxu1 %v14124_v55  ;;  %v493_v51 = vld [vmem:[#allocation6 + $0x2a8] sm:$0xff] }
 0x10b   : > { %2093 = vmatpush1.bf16.msra.mxu0 %v13995_v62  ;;  %v617_v52 = vld [vmem:[#allocation6 + $0x688] sm:$0xff]  ;;  %v14060_v60 = vcombine.high %v489_v50, %v493_v51  ;;  %v14059_v2 = vcombine.low %v489_v50, %v493_v51 }
 0x10c   : > { %2094 = vmatprep.subr.bf16.mxu0 %v13988_v0  ;;  %v621_v55 = vld [vmem:[#allocation6 + $0x6a8] sm:$0xff] }
 0x10d   : > { %2134 = vmatpush1.bf16.msra.mxu1 %v14123_v63  ;;  %v14188_v61 = vcombine.high %v617_v52, %v621_v55  ;;  %v481_v62 = vld [vmem:[#allocation6 + $0x248] sm:$0xff]  ;;  %v14187_v3 = vcombine.low %v617_v52, %v621_v55 }
 0x10e   : > { %2135 = vmatprep.subr.bf16.mxu1 %v14116_v1  ;;  %v485_v63 = vld [vmem:[#allocation6 + $0x268] sm:$0xff] }
 0x10f   : > { %2095 = vmatpush1.bf16.msra.mxu0 %v13987_v6  ;;  %v609_v0 = vld [vmem:[#allocation6 + $0x648] sm:$0xff]  ;;  %v14052_v4 = vcombine.high %v481_v62, %v485_v63  ;;  %v14051_v10 = vcombine.low %v481_v62, %v485_v63 }
 0x110   : > { %2096 = vmatprep.subr.bf16.mxu0 %v13980_v8  ;;  %v613_v1 = vld [vmem:[#allocation6 + $0x668] sm:$0xff] }
 0x111   : > { %2136 = vmatpush1.bf16.msra.mxu1 %v14115_v7  ;;  %v14180_v5 = vcombine.high %v609_v0, %v613_v1  ;;  %v473_v6 = vld [vmem:[#allocation6 + $0x208] sm:$0xff]  ;;  %v14179_v11 = vcombine.low %v609_v0, %v613_v1 }
 0x112   : > { %2137 = vmatprep.subr.bf16.mxu1 %v14108_v9  ;;  %v477_v7 = vld [vmem:[#allocation6 + $0x228] sm:$0xff] }
 0x113   : > { %2097 = vmatpush1.bf16.msra.mxu0 %v13979_v14  ;;  %v601_v8 = vld [vmem:[#allocation6 + $0x608] sm:$0xff]  ;;  %v14044_v12 = vcombine.high %v473_v6, %v477_v7  ;;  %v466_v14 = vld [vmem:[#allocation6 + $0x1d0] sm:$0xff]  ;;  %v14043_v20 = vcombine.low %v473_v6, %v477_v7 }
 0x114   : > { %2098 = vmatprep.subr.bf16.mxu0 %v14100_v17  ;;  %v605_v9 = vld [vmem:[#allocation6 + $0x628] sm:$0xff]  ;;  %v594_v17 = vld [vmem:[#allocation6 + $0x5d0] sm:$0xff] }
 0x115   : > { %2138 = vmatpush1.bf16.msra.mxu1 %v14107_v15  ;;  %v14172_v13 = vcombine.high %v601_v8, %v605_v9  ;;  %v470_v15 = vld [vmem:[#allocation6 + $0x1f0] sm:$0xff]  ;;  %v14171_v21 = vcombine.low %v601_v8, %v605_v9 }
 0x116   : > { %2139 = vmatprep.subr.bf16.mxu1 %v14228_v18  ;;  %v598_v18 = vld [vmem:[#allocation6 + $0x5f0] sm:$0xff]  ;;  %v14038_v22 = vcombine.high %v466_v14, %v470_v15  ;;  %v14037_v27 = vcombine.low %v466_v14, %v470_v15 }
 0x117   : > { %2099 = vmatpush2.bf16.msra.mxu0 %v14099_v24  ;;  %v14166_v23 = vcombine.high %v594_v17, %v598_v18  ;;  %v458_v24 = vld [vmem:[#allocation6 + $0x190] sm:$0xff]  ;;  %v14165_v54 = vcombine.low %v594_v17, %v598_v18 }
 0x118   : > { %2100 = vmatprep.subr.bf16.mxu0 %v14092_v53  ;;  %v586_v53 = vld [vmem:[#allocation6 + $0x590] sm:$0xff] }
 0x119   : > { %2140 = vmatpush2.bf16.msra.mxu1 %v14227_v25  ;;  %v462_v25 = vld [vmem:[#allocation6 + $0x1b0] sm:$0xff] }
 0x11a   : > { %2141 = vmatprep.subr.bf16.mxu1 %v14220_v26  ;;  %v590_v26 = vld [vmem:[#allocation6 + $0x5b0] sm:$0xff]  ;;  %v14030_v28 = vcombine.high %v458_v24, %v462_v25  ;;  %v14029_v34 = vcombine.low %v458_v24, %v462_v25 }
 0x11b   : > { %2101 = vmatpush2.bf16.msra.mxu0 %v14091_v30  ;;  %v14158_v29 = vcombine.high %v586_v53, %v590_v26  ;;  %v450_v30 = vld [vmem:[#allocation6 + $0x150] sm:$0xff]  ;;  %v14157_v35 = vcombine.low %v586_v53, %v590_v26 }
 0x11c   : > { %2102 = vmatprep.subr.bf16.mxu0 %v14084_v32  ;;  %v578_v32 = vld [vmem:[#allocation6 + $0x550] sm:$0xff] }
 0x11d   : > { %2142 = vmatpush2.bf16.msra.mxu1 %v14219_v31  ;;  %v454_v31 = vld [vmem:[#allocation6 + $0x170] sm:$0xff] }
 0x11e   : > { %2143 = vmatprep.subr.bf16.mxu1 %v14212_v33  ;;  %v582_v33 = vld [vmem:[#allocation6 + $0x570] sm:$0xff]  ;;  %v14022_v36 = vcombine.high %v450_v30, %v454_v31  ;;  %v14021_v42 = vcombine.low %v450_v30, %v454_v31 }
 0x11f   : > { %2103 = vmatpush2.bf16.msra.mxu0 %v14083_v38  ;;  %v14150_v37 = vcombine.high %v578_v32, %v582_v33  ;;  %v442_v38 = vld [vmem:[#allocation6 + $0x110] sm:$0xff]  ;;  %v14149_v43 = vcombine.low %v578_v32, %v582_v33 }
 0x120   : > { %2104 = vmatprep.subr.bf16.mxu0 %v14076_v40  ;;  %v570_v40 = vld [vmem:[#allocation6 + $0x510] sm:$0xff] }
 0x121   : > { %2144 = vmatpush2.bf16.msra.mxu1 %v14211_v39  ;;  %v446_v39 = vld [vmem:[#allocation6 + $0x130] sm:$0xff] }
 0x122   : > { %2145 = vmatprep.subr.bf16.mxu1 %v14204_v41  ;;  %v574_v41 = vld [vmem:[#allocation6 + $0x530] sm:$0xff]  ;;  %v14014_v44 = vcombine.high %v442_v38, %v446_v39  ;;  %v14013_v50 = vcombine.low %v442_v38, %v446_v39 }
 0x123   : > { %2105 = vmatpush2.bf16.msra.mxu0 %v14075_v46  ;;  %v14142_v45 = vcombine.high %v570_v40, %v574_v41  ;;  %v434_v46 = vld [vmem:[#allocation6 + $0xd0] sm:$0xff]  ;;  %v14141_v51 = vcombine.low %v570_v40, %v574_v41 }
 0x124   : > { %2106 = vmatprep.subr.bf16.mxu0 %v14068_v48  ;;  %v562_v48 = vld [vmem:[#allocation6 + $0x4d0] sm:$0xff] }
 0x125   : > { %2146 = vmatpush2.bf16.msra.mxu1 %v14203_v47  ;;  %v438_v47 = vld [vmem:[#allocation6 + $0xf0] sm:$0xff] }
 0x126   : > { %2147 = vmatprep.subr.bf16.mxu1 %v14196_v49  ;;  %v566_v49 = vld [vmem:[#allocation6 + $0x4f0] sm:$0xff]  ;;  %v14006_v52 = vcombine.high %v434_v46, %v438_v47  ;;  %v14005_v62 = vcombine.low %v434_v46, %v438_v47 }
 0x127   : > { %2107 = vmatpush2.bf16.msra.mxu0 %v14067_v56  ;;  %v14134_v55 = vcombine.high %v562_v48, %v566_v49  ;;  %v426_v56 = vld [vmem:[#allocation6 + $0x90] sm:$0xff]  ;;  %v14133_v63 = vcombine.low %v562_v48, %v566_v49 }
 0x128   : > { %2108 = vmatprep.subr.bf16.mxu0 %v14060_v60  ;;  %v554_v60 = vld [vmem:[#allocation6 + $0x490] sm:$0xff] }
 0x129   : > { %2148 = vmatpush2.bf16.msra.mxu1 %v14195_v57  ;;  %v430_v57 = vld [vmem:[#allocation6 + $0xb0] sm:$0xff] }
 0x12a   : > { %2149 = vmatprep.subr.bf16.mxu1 %v14188_v61  ;;  %v558_v61 = vld [vmem:[#allocation6 + $0x4b0] sm:$0xff]  ;;  %v13998_v0 = vcombine.high %v426_v56, %v430_v57  ;;  %v13997_v6 = vcombine.low %v426_v56, %v430_v57 }
 0x12b   : > { %2109 = vmatpush2.bf16.msra.mxu0 %v14059_v2  ;;  %v14126_v1 = vcombine.high %v554_v60, %v558_v61  ;;  %v418_v2 = vld [vmem:[#allocation6 + $0x50] sm:$0xff]  ;;  %v14125_v7 = vcombine.low %v554_v60, %v558_v61 }
 0x12c   : > { %2110 = vmatprep.subr.bf16.mxu0 %v14052_v4  ;;  %v546_v4 = vld [vmem:[#allocation6 + $0x450] sm:$0xff] }
 0x12d   : > { %2150 = vmatpush2.bf16.msra.mxu1 %v14187_v3  ;;  %v422_v3 = vld [vmem:[#allocation6 + $0x70] sm:$0xff] }
 0x12e   : > { %2151 = vmatprep.subr.bf16.mxu1 %v14180_v5  ;;  %v550_v5 = vld [vmem:[#allocation6 + $0x470] sm:$0xff]  ;;  %v13990_v8 = vcombine.high %v418_v2, %v422_v3  ;;  %v13989_v14 = vcombine.low %v418_v2, %v422_v3 }
 0x12f   : > { %2111 = vmatpush2.bf16.msra.mxu0 %v14051_v10  ;;  %v14118_v9 = vcombine.high %v546_v4, %v550_v5  ;;  %v410_v10 = vld [vmem:[#allocation6 + $0x10] sm:$0xff]  ;;  %v14117_v15 = vcombine.low %v546_v4, %v550_v5 }
 0x130   : > { %2112 = vmatprep.subr.bf16.mxu0 %v14044_v12  ;;  %v538_v12 = vld [vmem:[#allocation6 + $0x410] sm:$0xff] }
 0x131   : > { %2152 = vmatpush2.bf16.msra.mxu1 %v14179_v11  ;;  %v414_v11 = vld [vmem:[#allocation6 + $0x30] sm:$0xff] }
 0x132   : > { %2153 = vmatprep.subr.bf16.mxu1 %v14172_v13  ;;  %v542_v13 = vld [vmem:[#allocation6 + $0x430] sm:$0xff]  ;;  %v13982_v17 = vcombine.high %v410_v10, %v414_v11  ;;  %v13981_v24 = vcombine.low %v410_v10, %v414_v11 }
 0x133   : > { %2113 = vmatpush2.bf16.msra.mxu0 %v14043_v20  ;;  %v14110_v18 = vcombine.high %v538_v12, %v542_v13  ;;  %v530_v20 = vld [vmem:[#allocation6 + $0x3d0] sm:$0xff]  ;;  %v14109_v25 = vcombine.low %v538_v12, %v542_v13 }
 0x134   : > { %2164 = vmatprep.subr.bf16.mxu0 %v14038_v22  ;;  %v658_v22 = vld [vmem:[#allocation6 + $0x7d0] sm:$0xff] }
 0x135   : > { %2154 = vmatpush2.bf16.msra.mxu1 %v14171_v21  ;;  %v534_v21 = vld [vmem:[#allocation6 + $0x3f0] sm:$0xff] }
 0x136   : > { %2205 = vmatprep.subr.bf16.mxu1 %v14166_v23  ;;  %2115 = vmatmul.mubr.bf16.vlgmr.msra.gmra.mxu0 %v17264_v16  ;;  %v662_v23 = vld [vmem:[#allocation6 + $0x7f0] sm:$0xff]  ;;  %v14102_v53 = vcombine.high %v530_v20, %v534_v21  ;;  %v14101_v30 = vcombine.low %v530_v20, %v534_v21 }
 0x137   : > { %2165 = vmatpush1.bf16.msra.mxu0 %v14037_v27  ;;  %2196 = vmatprep.mubr.bf16.mxu0 %v17254_v58  ;;  %v14230_v26 = vcombine.high %v658_v22, %v662_v23  ;;  %v522_v27 = vld [vmem:[#allocation6 + $0x390] sm:$0xff]  ;;  %v14229_v31 = vcombine.low %v658_v22, %v662_v23 }
 0x138   : > { %2156 = vmatmul.mubr.bf16.vlgmr.msra.gmra.mxu1 %v17268_v19  ;;  %2166 = vmatprep.subr.bf16.mxu0 %v14030_v28  ;;  %v650_v28 = vld [vmem:[#allocation6 + $0x790] sm:$0xff] }
 0x139   : > { %2206 = vmatpush1.bf16.msra.mxu1 %v14165_v54  ;;  %2237 = vmatprep.mubr.bf16.mxu1 %v17258_v59  ;;  %v526_v54 = vld [vmem:[#allocation6 + $0x3b0] sm:$0xff] }
 0x13a   : > { %2207 = vmatprep.subr.bf16.mxu1 %v14158_v29  ;;  %v654_v29 = vld [vmem:[#allocation6 + $0x7b0] sm:$0xff]  ;;  %v14094_v32 = vcombine.high %v522_v27, %v526_v54  ;;  %v14093_v38 = vcombine.low %v522_v27, %v526_v54 }
 0x13b   : > { %2167 = vmatpush1.bf16.msra.mxu0 %v14029_v34  ;;  %v14222_v33 = vcombine.high %v650_v28, %v654_v29  ;;  %v514_v34 = vld [vmem:[#allocation6 + $0x350] sm:$0xff]  ;;  %v14221_v39 = vcombine.low %v650_v28, %v654_v29 }
 0x13c   : > { %2168 = vmatprep.subr.bf16.mxu0 %v14022_v36  ;;  %v642_v36 = vld [vmem:[#allocation6 + $0x750] sm:$0xff] }
 0x13d   : > { %2208 = vmatpush1.bf16.msra.mxu1 %v14157_v35  ;;  %v518_v35 = vld [vmem:[#allocation6 + $0x370] sm:$0xff] }
 0x13e   : > { %2209 = vmatprep.subr.bf16.mxu1 %v14150_v37  ;;  %v646_v37 = vld [vmem:[#allocation6 + $0x770] sm:$0xff]  ;;  %v14086_v40 = vcombine.high %v514_v34, %v518_v35  ;;  %v14085_v46 = vcombine.low %v514_v34, %v518_v35 }
 0x13f   : > { %2169 = vmatpush1.bf16.msra.mxu0 %v14021_v42  ;;  %v14214_v41 = vcombine.high %v642_v36, %v646_v37  ;;  %v506_v42 = vld [vmem:[#allocation6 + $0x310] sm:$0xff]  ;;  %v14213_v47 = vcombine.low %v642_v36, %v646_v37 }
 0x140   : > { %2170 = vmatprep.subr.bf16.mxu0 %v14014_v44  ;;  %v634_v44 = vld [vmem:[#allocation6 + $0x710] sm:$0xff] }
 0x141   : > { %2210 = vmatpush1.bf16.msra.mxu1 %v14149_v43  ;;  %v510_v43 = vld [vmem:[#allocation6 + $0x330] sm:$0xff] }
 0x142   : > { %2211 = vmatprep.subr.bf16.mxu1 %v14142_v45  ;;  %v638_v45 = vld [vmem:[#allocation6 + $0x730] sm:$0xff]  ;;  %v14078_v48 = vcombine.high %v506_v42, %v510_v43  ;;  %v14077_v56 = vcombine.low %v506_v42, %v510_v43 }
 0x143   : > { %2171 = vmatpush1.bf16.msra.mxu0 %v14013_v50  ;;  %v14206_v49 = vcombine.high %v634_v44, %v638_v45  ;;  %v498_v50 = vld [vmem:[#allocation6 + $0x2d0] sm:$0xff]  ;;  %v14205_v57 = vcombine.low %v634_v44, %v638_v45 }
 0x144   : > { %2172 = vmatprep.subr.bf16.mxu0 %v14006_v52  ;;  %v626_v52 = vld [vmem:[#allocation6 + $0x6d0] sm:$0xff] }
 0x145   : > { %2212 = vmatpush1.bf16.msra.mxu1 %v14141_v51  ;;  %v502_v51 = vld [vmem:[#allocation6 + $0x2f0] sm:$0xff] }
 0x146   : > { %2213 = vmatprep.subr.bf16.mxu1 %v14134_v55  ;;  %v630_v55 = vld [vmem:[#allocation6 + $0x6f0] sm:$0xff]  ;;  %v14070_v60 = vcombine.high %v498_v50, %v502_v51  ;;  %v14069_v2 = vcombine.low %v498_v50, %v502_v51 }
 0x147   : > { %2173 = vmatpush1.bf16.msra.mxu0 %v14005_v62  ;;  %v14198_v61 = vcombine.high %v626_v52, %v630_v55  ;;  %v490_v62 = vld [vmem:[#allocation6 + $0x290] sm:$0xff]  ;;  %v14197_v3 = vcombine.low %v626_v52, %v630_v55 }
 0x148   : > { %2174 = vmatprep.subr.bf16.mxu0 %v13998_v0  ;;  %v618_v0 = vld [vmem:[#allocation6 + $0x690] sm:$0xff] }
 0x149   : > { %2214 = vmatpush1.bf16.msra.mxu1 %v14133_v63  ;;  %v494_v63 = vld [vmem:[#allocation6 + $0x2b0] sm:$0xff] }
 0x14a   : > { %2215 = vmatprep.subr.bf16.mxu1 %v14126_v1  ;;  %v622_v1 = vld [vmem:[#allocation6 + $0x6b0] sm:$0xff]  ;;  %v14062_v4 = vcombine.high %v490_v62, %v494_v63  ;;  %v14061_v10 = vcombine.low %v490_v62, %v494_v63 }
 0x14b   : > { %2175 = vmatpush1.bf16.msra.mxu0 %v13997_v6  ;;  %v14190_v5 = vcombine.high %v618_v0, %v622_v1  ;;  %v482_v6 = vld [vmem:[#allocation6 + $0x250] sm:$0xff]  ;;  %v14189_v11 = vcombine.low %v618_v0, %v622_v1  ;;  %v427_v0 = vld [vmem:[#allocation6 + $0x98] sm:$0xff] }
 0x14c   : > { %2176 = vmatprep.subr.bf16.mxu0 %v13990_v8  ;;  %v610_v8 = vld [vmem:[#allocation6 + $0x650] sm:$0xff]  ;;  %v431_v1 = vld [vmem:[#allocation6 + $0xb8] sm:$0xff] }
 0x14d   : > { %2216 = vmatpush1.bf16.msra.mxu1 %v14125_v7  ;;  %v486_v7 = vld [vmem:[#allocation6 + $0x270] sm:$0xff] }
 0x14e   : > { %2217 = vmatprep.subr.bf16.mxu1 %v14118_v9  ;;  %v614_v9 = vld [vmem:[#allocation6 + $0x670] sm:$0xff]  ;;  %v14054_v12 = vcombine.high %v482_v6, %v486_v7  ;;  %v14053_v20 = vcombine.low %v482_v6, %v486_v7  ;;  %v14000_v6 = vcombine.high %v427_v0, %v431_v1 }
 0x14f   : > { %2177 = vmatpush1.bf16.msra.mxu0 %v13989_v14  ;;  %v14182_v13 = vcombine.high %v610_v8, %v614_v9  ;;  %v474_v14 = vld [vmem:[#allocation6 + $0x210] sm:$0xff]  ;;  %v14181_v21 = vcombine.low %v610_v8, %v614_v9  ;;  %v419_v8 = vld [vmem:[#allocation6 + $0x58] sm:$0xff] }
 0x150   : > { %2178 = vmatprep.subr.bf16.mxu0 %v13982_v17  ;;  %v602_v17 = vld [vmem:[#allocation6 + $0x610] sm:$0xff]  ;;  %v423_v9 = vld [vmem:[#allocation6 + $0x78] sm:$0xff] }
 0x151   : > { %2218 = vmatpush1.bf16.msra.mxu1 %v14117_v15  ;;  %v478_v15 = vld [vmem:[#allocation6 + $0x230] sm:$0xff] }
 0x152   : > { %2219 = vmatprep.subr.bf16.mxu1 %v14110_v18  ;;  %v606_v18 = vld [vmem:[#allocation6 + $0x630] sm:$0xff]  ;;  %v14046_v22 = vcombine.high %v474_v14, %v478_v15  ;;  %v14045_v27 = vcombine.low %v474_v14, %v478_v15  ;;  %v13992_v14 = vcombine.high %v419_v8, %v423_v9 }
 0x153   : > { %2179 = vmatpush1.bf16.msra.mxu0 %v13981_v24  ;;  %v14174_v23 = vcombine.high %v602_v17, %v606_v18  ;;  %v467_v24 = vld [vmem:[#allocation6 + $0x1d8] sm:$0xff]  ;;  %v14173_v54 = vcombine.low %v602_v17, %v606_v18 }
 0x154   : > { %2180 = vmatprep.subr.bf16.mxu0 %v14102_v53  ;;  %v595_v53 = vld [vmem:[#allocation6 + $0x5d8] sm:$0xff] }
 0x155   : > { %2220 = vmatpush1.bf16.msra.mxu1 %v14109_v25  ;;  %v471_v25 = vld [vmem:[#allocation6 + $0x1f8] sm:$0xff] }
 0x156   : > { %2221 = vmatprep.subr.bf16.mxu1 %v14230_v26  ;;  %v599_v26 = vld [vmem:[#allocation6 + $0x5f8] sm:$0xff]  ;;  %v14040_v28 = vcombine.high %v467_v24, %v471_v25  ;;  %v14039_v34 = vcombine.low %v467_v24, %v471_v25 }
 0x157   : > { %2181 = vmatpush2.bf16.msra.mxu0 %v14101_v30  ;;  %v14168_v29 = vcombine.high %v595_v53, %v599_v26  ;;  %v459_v30 = vld [vmem:[#allocation6 + $0x198] sm:$0xff]  ;;  %v14167_v35 = vcombine.low %v595_v53, %v599_v26 }
 0x158   : > { %2182 = vmatprep.subr.bf16.mxu0 %v14094_v32  ;;  %v587_v32 = vld [vmem:[#allocation6 + $0x598] sm:$0xff] }
 0x159   : > { %2222 = vmatpush2.bf16.msra.mxu1 %v14229_v31  ;;  %v463_v31 = vld [vmem:[#allocation6 + $0x1b8] sm:$0xff] }
 0x15a   : > { %2223 = vmatprep.subr.bf16.mxu1 %v14222_v33  ;;  %v591_v33 = vld [vmem:[#allocation6 + $0x5b8] sm:$0xff]  ;;  %v14032_v36 = vcombine.high %v459_v30, %v463_v31  ;;  %v14031_v42 = vcombine.low %v459_v30, %v463_v31 }
 0x15b   : > { %2183 = vmatpush2.bf16.msra.mxu0 %v14093_v38  ;;  %v14160_v37 = vcombine.high %v587_v32, %v591_v33  ;;  %v451_v38 = vld [vmem:[#allocation6 + $0x158] sm:$0xff]  ;;  %v14159_v43 = vcombine.low %v587_v32, %v591_v33 }
 0x15c   : > { %2184 = vmatprep.subr.bf16.mxu0 %v14086_v40  ;;  %v579_v40 = vld [vmem:[#allocation6 + $0x558] sm:$0xff] }
 0x15d   : > { %2224 = vmatpush2.bf16.msra.mxu1 %v14221_v39  ;;  %v455_v39 = vld [vmem:[#allocation6 + $0x178] sm:$0xff] }
 0x15e   : > { %2225 = vmatprep.subr.bf16.mxu1 %v14214_v41  ;;  %v583_v41 = vld [vmem:[#allocation6 + $0x578] sm:$0xff]  ;;  %v14024_v44 = vcombine.high %v451_v38, %v455_v39  ;;  %v14023_v50 = vcombine.low %v451_v38, %v455_v39 }
 0x15f   : > { %2185 = vmatpush2.bf16.msra.mxu0 %v14085_v46  ;;  %v14152_v45 = vcombine.high %v579_v40, %v583_v41  ;;  %v443_v46 = vld [vmem:[#allocation6 + $0x118] sm:$0xff]  ;;  %v14151_v51 = vcombine.low %v579_v40, %v583_v41 }
 0x160   : > { %2186 = vmatprep.subr.bf16.mxu0 %v14078_v48  ;;  %v571_v48 = vld [vmem:[#allocation6 + $0x518] sm:$0xff] }
 0x161   : > { %2226 = vmatpush2.bf16.msra.mxu1 %v14213_v47  ;;  %v447_v47 = vld [vmem:[#allocation6 + $0x138] sm:$0xff] }
 0x162   : > { %2227 = vmatprep.subr.bf16.mxu1 %v14206_v49  ;;  %v575_v49 = vld [vmem:[#allocation6 + $0x538] sm:$0xff]  ;;  %v14016_v52 = vcombine.high %v443_v46, %v447_v47  ;;  %v14015_v62 = vcombine.low %v443_v46, %v447_v47 }
 0x163   : > { %2187 = vmatpush2.bf16.msra.mxu0 %v14077_v56  ;;  %v14144_v55 = vcombine.high %v571_v48, %v575_v49  ;;  %v435_v56 = vld [vmem:[#allocation6 + $0xd8] sm:$0xff] }
 0x164   : > { %2188 = vmatprep.subr.bf16.mxu0 %v14070_v60  ;;  %v563_v60 = vld [vmem:[#allocation6 + $0x4d8] sm:$0xff] }
 0x165   : > { %2228 = vmatpush2.bf16.msra.mxu1 %v14205_v57  ;;  %v439_v57 = vld [vmem:[#allocation6 + $0xf8] sm:$0xff] }
 0x166   : > { %2229 = vmatprep.subr.bf16.mxu1 %v14198_v61  ;;  %v567_v61 = vld [vmem:[#allocation6 + $0x4f8] sm:$0xff]  ;;  %v14008_v63 = vcombine.high %v435_v56, %v439_v57 }
 0x167   : > { %2189 = vmatpush2.bf16.msra.mxu0 %v14069_v2  ;;  %v555_v2 = vld [vmem:[#allocation6 + $0x498] sm:$0xff] }
 0x168   : > { %2190 = vmatprep.subr.bf16.mxu0 %v14062_v4  ;;  %v14007_v4 = vcombine.low %v435_v56, %v439_v57  ;;  %v411_v17 = vld [vmem:[#allocation6 + $0x18] sm:$0xff] }
 0x169   : > { %2230 = vmatpush2.bf16.msra.mxu1 %v14197_v3  ;;  %v559_v3 = vld [vmem:[#allocation6 + $0x4b8] sm:$0xff] }
 0x16a   : > { %2231 = vmatprep.subr.bf16.mxu1 %v14190_v5  ;;  %v14135_v5 = vcombine.low %v563_v60, %v567_v61  ;;  %v14128_v7 = vcombine.high %v555_v2, %v559_v3  ;;  %v415_v18 = vld [vmem:[#allocation6 + $0x38] sm:$0xff] }
 0x16b   : > { %2191 = vmatpush2.bf16.msra.mxu0 %v14061_v10  ;;  %v547_v10 = vld [vmem:[#allocation6 + $0x458] sm:$0xff]  ;;  %v13984_v24 = vcombine.high %v411_v17, %v415_v18 }
 0x16c   : > { %2192 = vmatprep.subr.bf16.mxu0 %v14054_v12  ;;  %v13999_v12 = vcombine.low %v427_v0, %v431_v1  ;;  %v531_v53 = vld [vmem:[#allocation6 + $0x3d8] sm:$0xff] }
 0x16d   : > { %2232 = vmatpush2.bf16.msra.mxu1 %v14189_v11  ;;  %v551_v11 = vld [vmem:[#allocation6 + $0x478] sm:$0xff] }
 0x16e   : > { %2233 = vmatprep.subr.bf16.mxu1 %v14182_v13  ;;  %v14127_v13 = vcombine.low %v555_v2, %v559_v3  ;;  %v14120_v15 = vcombine.high %v547_v10, %v551_v11  ;;  %v535_v26 = vld [vmem:[#allocation6 + $0x3f8] sm:$0xff] }
 0x16f   : > { %2193 = vmatpush2.bf16.msra.mxu0 %v14053_v20  ;;  %v539_v20 = vld [vmem:[#allocation6 + $0x418] sm:$0xff]  ;;  %v14104_v30 = vcombine.high %v531_v53, %v535_v26 }
 0x170   : > { %2194 = vmatprep.subr.bf16.mxu0 %v14046_v22  ;;  %v13991_v22 = vcombine.low %v419_v8, %v423_v9  ;;  %v523_v32 = vld [vmem:[#allocation6 + $0x398] sm:$0xff] }
 0x171   : > { %2234 = vmatpush2.bf16.msra.mxu1 %v14181_v21  ;;  %v543_v21 = vld [vmem:[#allocation6 + $0x438] sm:$0xff] }
 0x172   : > { %2235 = vmatprep.subr.bf16.mxu1 %v14174_v23  ;;  %v14119_v23 = vcombine.low %v547_v10, %v551_v11  ;;  %v14112_v25 = vcombine.high %v539_v20, %v543_v21  ;;  %v527_v33 = vld [vmem:[#allocation6 + $0x3b8] sm:$0xff] }
 0x173   : > { %2195 = vmatpush2.bf16.msra.mxu0 %v14045_v27  ;;  %v659_v27 = vld [vmem:[#allocation6 + $0x7d8] sm:$0xff]  ;;  %v14096_v38 = vcombine.high %v523_v32, %v527_v33 }
 0x174   : > { %2246 = vmatprep.subr.bf16.mxu0 %v14040_v28  ;;  %v13983_v28 = vcombine.low %v411_v17, %v415_v18  ;;  %v515_v40 = vld [vmem:[#allocation6 + $0x358] sm:$0xff] }
 0x175   : > { %2236 = vmatpush2.bf16.msra.mxu1 %v14173_v54  ;;  %v663_v54 = vld [vmem:[#allocation6 + $0x7f8] sm:$0xff] }
 0x176   : > { %2287 = vmatprep.subr.bf16.mxu1 %v14168_v29  ;;  %2197 = vmatmul.mubr.bf16.vlgmr.msra.gmra.mxu0 %v17264_v16  ;;  %v14111_v29 = vcombine.low %v539_v20, %v543_v21  ;;  %v14232_v31 = vcombine.high %v659_v27, %v663_v54  ;;  %v519_v41 = vld [vmem:[#allocation6 + $0x378] sm:$0xff] }
 0x177   : > { %2247 = vmatpush1.bf16.msra.mxu0 %v14039_v34  ;;  %2278 = vmatprep.mubr.bf16.mxu0 %v17254_v58  ;;  %v14143_v58 = vcombine.low %v571_v48, %v575_v49  ;;  %v651_v34 = vld [vmem:[#allocation6 + $0x798] sm:$0xff]  ;;  %v14088_v46 = vcombine.high %v515_v40, %v519_v41 }
 0x178   : > { %2238 = vmatmul.mubr.bf16.vlgmr.msra.gmra.mxu1 %v17268_v19  ;;  %2248 = vmatprep.subr.bf16.mxu0 %v14032_v36  ;;  %v14103_v36 = vcombine.low %v531_v53, %v535_v26  ;;  %v507_v48 = vld [vmem:[#allocation6 + $0x318] sm:$0xff] }
 0x179   : > { %2288 = vmatpush1.bf16.msra.mxu1 %v14167_v35  ;;  %2319 = vmatprep.mubr.bf16.mxu1 %v17258_v59  ;;  %v14136_v59 = vcombine.high %v563_v60, %v567_v61  ;;  %v655_v35 = vld [vmem:[#allocation6 + $0x7b8] sm:$0xff] }
 0x17a   : > { %2289 = vmatprep.subr.bf16.mxu1 %v14160_v37  ;;  %v14231_v37 = vcombine.low %v659_v27, %v663_v54  ;;  %v14224_v39 = vcombine.high %v651_v34, %v655_v35  ;;  %v511_v49 = vld [vmem:[#allocation6 + $0x338] sm:$0xff] }
 0x17b   : > { %2249 = vmatpush1.bf16.msra.mxu0 %v14031_v42  ;;  %v643_v42 = vld [vmem:[#allocation6 + $0x758] sm:$0xff]  ;;  %v14080_v56 = vcombine.high %v507_v48, %v511_v49 }
 0x17c   : > { %2250 = vmatprep.subr.bf16.mxu0 %v14024_v44  ;;  %v14095_v44 = vcombine.low %v523_v32, %v527_v33  ;;  %v499_v60 = vld [vmem:[#allocation6 + $0x2d8] sm:$0xff] }
 0x17d   : > { %2290 = vmatpush1.bf16.msra.mxu1 %v14159_v43  ;;  %v647_v43 = vld [vmem:[#allocation6 + $0x778] sm:$0xff] }
 0x17e   : > { %2291 = vmatprep.subr.bf16.mxu1 %v14152_v45  ;;  %v14223_v45 = vcombine.low %v651_v34, %v655_v35  ;;  %v14216_v47 = vcombine.high %v643_v42, %v647_v43  ;;  %v503_v61 = vld [vmem:[#allocation6 + $0x2f8] sm:$0xff] }
 0x17f   : > { %2251 = vmatpush1.bf16.msra.mxu0 %v14023_v50  ;;  %v635_v50 = vld [vmem:[#allocation6 + $0x718] sm:$0xff]  ;;  %v14072_v0 = vcombine.high %v499_v60, %v503_v61 }
 0x180   : > { %2252 = vmatprep.subr.bf16.mxu0 %v14016_v52  ;;  %v14087_v52 = vcombine.low %v515_v40, %v519_v41  ;;  %v491_v2 = vld [vmem:[#allocation6 + $0x298] sm:$0xff]  ;;  %v2696_v40 = vld [vmem:[#allocation9 + $0xb00] sm:$0xff] }
 0x181   : > { %2292 = vmatpush1.bf16.msra.mxu1 %v14151_v51  ;;  %v639_v51 = vld [vmem:[#allocation6 + $0x738] sm:$0xff]  ;;  %v2704_v41 = vld [vmem:[#allocation9 + $0xb40] sm:$0xff] }
 0x182   : > { %2293 = vmatprep.subr.bf16.mxu1 %v14144_v55  ;;  %v14215_v55 = vcombine.low %v643_v42, %v647_v43  ;;  %v14208_v57 = vcombine.high %v635_v50, %v639_v51  ;;  %v495_v3 = vld [vmem:[#allocation6 + $0x2b8] sm:$0xff] }
 0x183   : > { %2253 = vmatpush1.bf16.msra.mxu0 %v14015_v62  ;;  %v627_v62 = vld [vmem:[#allocation6 + $0x6d8] sm:$0xff]  ;;  %v14064_v8 = vcombine.high %v491_v2, %v495_v3 }
 0x184   : > { %2254 = vmatprep.subr.bf16.mxu0 %v14008_v63  ;;  %v14079_v63 = vcombine.low %v507_v48, %v511_v49  ;;  %v483_v10 = vld [vmem:[#allocation6 + $0x258] sm:$0xff]  ;;  %v14586_v48 = vcombine.high %v2696_v40, %v2704_v41 }
 0x185   : > { %2294 = vmatpush1.bf16.msra.mxu1 %v14143_v58  ;;  %v631_v58 = vld [vmem:[#allocation6 + $0x6f8] sm:$0xff] }
 0x186   : > { %2295 = vmatprep.subr.bf16.mxu1 %v14136_v59  ;;  %v14207_v59 = vcombine.low %v635_v50, %v639_v51  ;;  %v14200_v1 = vcombine.high %v627_v62, %v631_v58  ;;  %v487_v11 = vld [vmem:[#allocation6 + $0x278] sm:$0xff]  ;;  %v2680_v50 = vld [vmem:[#allocation9 + $0xa80] sm:$0xff] }
 0x187   : > { %2255 = vmatpush1.bf16.msra.mxu0 %v14007_v4  ;;  %v619_v4 = vld [vmem:[#allocation6 + $0x698] sm:$0xff]  ;;  %v14056_v17 = vcombine.high %v483_v10, %v487_v11  ;;  %v2688_v51 = vld [vmem:[#allocation9 + $0xac0] sm:$0xff] }
 0x188   : > { %2256 = vmatprep.subr.bf16.mxu0 %v14000_v6  ;;  %v14071_v6 = vcombine.low %v499_v60, %v503_v61  ;;  %v475_v20 = vld [vmem:[#allocation6 + $0x218] sm:$0xff]  ;;  %v14585_v60 = vcombine.low %v2696_v40, %v2704_v41  ;;  %v2600_v40 = vld [vmem:[#allocation9 + $0x800] sm:$0xff] }
 0x189   : > { %2296 = vmatpush1.bf16.msra.mxu1 %v14135_v5  ;;  %v623_v5 = vld [vmem:[#allocation6 + $0x6b8] sm:$0xff]  ;;  %v2608_v41 = vld [vmem:[#allocation9 + $0x840] sm:$0xff] }
 0x18a   : > { %2297 = vmatprep.subr.bf16.mxu1 %v14128_v7  ;;  %v14199_v7 = vcombine.low %v627_v62, %v631_v58  ;;  %v14192_v9 = vcombine.high %v619_v4, %v623_v5  ;;  %v479_v21 = vld [vmem:[#allocation6 + $0x238] sm:$0xff]  ;;  %v2408_v58 = vld [vmem:[#allocation9 + $0x200] sm:$0xff] }
 0x18b   : > { %2257 = vmatpush1.bf16.msra.mxu0 %v13999_v12  ;;  %v611_v12 = vld [vmem:[#allocation6 + $0x658] sm:$0xff]  ;;  %v14048_v26 = vcombine.high %v475_v20, %v479_v21  ;;  %v14047_v32 = vcombine.low %v475_v20, %v479_v21  ;;  %v2376_v20 = vld [vmem:[#allocation9 + $0x100] sm:$0xff] }
 0x18c   : > { %2258 = vmatprep.subr.bf16.mxu0 %v13992_v14  ;;  %v14063_v14 = vcombine.low %v491_v2, %v495_v3  ;;  %v2384_v21 = vld [vmem:[#allocation9 + $0x140] sm:$0xff] }
 0x18d   : > { %2298 = vmatpush1.bf16.msra.mxu1 %v14127_v13  ;;  %v615_v13 = vld [vmem:[#allocation6 + $0x678] sm:$0xff] }
 0x18e   : > { %2299 = vmatprep.subr.bf16.mxu1 %v14120_v15  ;;  %v14191_v15 = vcombine.low %v619_v4, %v623_v5  ;;  %v14184_v18 = vcombine.high %v611_v12, %v615_v13  ;;  %v14183_v53 = vcombine.low %v611_v12, %v615_v13  ;;  %v2648_v12 = vld [vmem:[#allocation9 + $0x980] sm:$0xff] }
 0x18f   : > { %2259 = vmatpush1.bf16.msra.mxu0 %v13991_v22  ;;  %v666_v22 = vlaneseq  ;;  %v2656_v13 = vld [vmem:[#allocation9 + $0x9c0] sm:$0xff] }
 0x190   : > { %2260 = vmatprep.subr.bf16.mxu0 %v13984_v24  ;;  %v607_v24 = vld [vmem:[#allocation6 + $0x638] sm:$0xff] }
 0x191   : > { %2300 = vmatpush1.bf16.msra.mxu1 %v14119_v23  ;;  %v603_v23 = vld [vmem:[#allocation6 + $0x618] sm:$0xff]  ;;  %v17282_v54 = vshrl.u32 %v666_v22, 7  ;;  %v14538_v22 = vcombine.high %v2648_v12, %v2656_v13 }
 0x192   : > { %2301 = vmatprep.subr.bf16.mxu1 %v14112_v25  ;;  %v14055_v25 = vcombine.low %v483_v10, %v487_v11  ;;  %v14176_v27 = vcombine.high %v603_v23, %v607_v24  ;;  %v14175_v33 = vcombine.low %v603_v23, %v607_v24  ;;  %v2400_v10 = vld [vmem:[#allocation9 + $0x1c0] sm:$0xff] }
 0x193   : > { %2261 = vmatpush1.bf16.msra.mxu0 %v13983_v28  ;;  %v2456_v28 = vld [vmem:[#allocation9 + $0x380] sm:$0xff]  ;;  %v17285_v35 = vsub.s32 1, %v17282_v54 }
 0x194   : > { %2262 = vmatprep.subr.bf16.mxu0 %v14104_v30  ;;  %v2712_v30 = vld [vmem:[#allocation9 + $0xb80] sm:$0xff] }
 0x195   : > { %2302 = vmatpush1.bf16.msra.mxu1 %v14111_v29  ;;  %v2464_v29 = vld [vmem:[#allocation9 + $0x3c0] sm:$0xff] }
 0x196   : > { %2303 = vmatprep.subr.bf16.mxu1 %v14232_v31  ;;  %v2720_v31 = vld [vmem:[#allocation9 + $0xbc0] sm:$0xff]  ;;  %v14346_v34 = vcombine.high %v2456_v28, %v2464_v29  ;;  %v14345_v42 = vcombine.low %v2456_v28, %v2464_v29 }
 0x197   : > { %2263 = vmatpush2.bf16.msra.mxu0 %v14103_v36  ;;  %v2440_v36 = vld [vmem:[#allocation9 + $0x300] sm:$0xff] }
 0x198   : > { %2264 = vmatprep.subr.bf16.mxu0 %v14096_v38  ;;  %v14602_v38 = vcombine.high %v2712_v30, %v2720_v31  ;;  %v2632_v23 = vld [vmem:[#allocation9 + $0x900] sm:$0xff] }
 0x199   : > { %2304 = vmatpush2.bf16.msra.mxu1 %v14231_v37  ;;  %v2448_v37 = vld [vmem:[#allocation9 + $0x340] sm:$0xff] }
 0x19a   : > { %2305 = vmatprep.subr.bf16.mxu1 %v14224_v39  ;;  %v17287_v39 = vld [vmem:[#allocation8] sm:$0xff]  ;;  %v14330_v43 = vcombine.high %v2440_v36, %v2448_v37  ;;  %v2640_v24 = vld [vmem:[#allocation9 + $0x940] sm:$0xff] }
 0x19b   : > { %2265 = vmatpush2.bf16.msra.mxu0 %v14095_v44  ;;  %v14601_v44 = vcombine.low %v2712_v30, %v2720_v31  ;;  %v2368_v28 = vld [vmem:[#allocation9 + $0xc0] sm:$0xff]  ;;  %v14522_v29 = vcombine.high %v2632_v23, %v2640_v24 }
 0x19c   : > { %2266 = vmatprep.subr.bf16.mxu0 %v14088_v46  ;;  %v2424_v46 = vld [vmem:[#allocation9 + $0x280] sm:$0xff] }
 0x19d   : > { %2306 = vmatpush2.bf16.msra.mxu1 %v14223_v45  ;;  %v673_v45 = vrot.slane %v17287_v39, %v17285_v35  ;;  %v2616_v30 = vld [vmem:[#allocation9 + $0x880] sm:$0xff] }
 0x19e   : > { %2307 = vmatprep.subr.bf16.mxu1 %v14216_v47  ;;  %v2432_v47 = vld [vmem:[#allocation9 + $0x2c0] sm:$0xff] }
 0x19f   : > { %2267 = vmatpush2.bf16.msra.mxu0 %v14087_v52  ;;  %v2624_v31 = vld [vmem:[#allocation9 + $0x8c0] sm:$0xff] }
 0x1a0   : > { %2268 = vmatprep.subr.bf16.mxu0 %v14080_v56 }
 0x1a1   : > { %2308 = vmatpush2.bf16.msra.mxu1 %v14215_v55  ;;  %v14329_v55 = vcombine.low %v2440_v36, %v2448_v37  ;;  %v2344_v36 = vld [vmem:[#allocation9] sm:$0xff] }
 0x1a2   : > { %2309 = vmatprep.subr.bf16.mxu1 %v14208_v57  ;;  %v14314_v57 = vcombine.high %v2424_v46, %v2432_v47  ;;  %v2352_v37 = vld [vmem:[#allocation9 + $0x40] sm:$0xff] }
 0x1a3   : > { %2269 = vmatpush2.bf16.msra.mxu0 %v14079_v63  ;;  %v2416_v63 = vld [vmem:[#allocation9 + $0x240] sm:$0xff] }
 0x1a4   : > { %2270 = vmatprep.subr.bf16.mxu0 %v14072_v0  ;;  %v2664_v0 = vld [vmem:[#allocation9 + $0xa00] sm:$0xff]  ;;  %v14298_v5 = vcombine.high %v2408_v58, %v2416_v63 }
 0x1a5   : > { %2310 = vmatpush2.bf16.msra.mxu1 %v14207_v59  ;;  %v14570_v59 = vcombine.high %v2680_v50, %v2688_v51 }
 0x1a6   : > { %2311 = vmatprep.subr.bf16.mxu1 %v14200_v1  ;;  %v2672_v1 = vld [vmem:[#allocation9 + $0xa40] sm:$0xff] }
 0x1a7   : > { %2271 = vmatpush2.bf16.msra.mxu0 %v14071_v6  ;;  %v14569_v6 = vcombine.low %v2680_v50, %v2688_v51  ;;  %v14554_v11 = vcombine.high %v2664_v0, %v2672_v1  ;;  %v2848_v50 = vld [vmem:[#allocation9 + $0xfc0] sm:$0xff]  ;;  %v14233_v51 = vcombine.low %v2344_v36, %v2352_v37 }
 0x1a8   : > { %2272 = vmatprep.subr.bf16.mxu0 %v14064_v8 }
 0x1a9   : > { %2312 = vmatpush2.bf16.msra.mxu1 %v14199_v7 }
 0x1aa   : > { %2313 = vmatprep.subr.bf16.mxu1 %v14192_v9  ;;  %v2392_v9 = vld [vmem:[#allocation9 + $0x180] sm:$0xff] }
 0x1ab   : > { %2273 = vmatpush2.bf16.msra.mxu0 %v14063_v14 }
 0x1ac   : > { %2274 = vmatprep.subr.bf16.mxu0 %v14056_v17  ;;  %v14282_v17 = vcombine.high %v2392_v9, %v2400_v10 }
 0x1ad   : > { %2314 = vmatpush2.bf16.msra.mxu1 %v14191_v15  ;;  %v14297_v15 = vcombine.low %v2408_v58, %v2416_v63  ;;  %v2832_v58 = vld [vmem:[#allocation9 + $0xf40] sm:$0xff] }
 0x1ae   : > { %2315 = vmatprep.subr.bf16.mxu1 %v14184_v18  ;;  %v14553_v18 = vcombine.low %v2664_v0, %v2672_v1  ;;  %v2552_v0 = vld [vmem:[#allocation9 + $0x680] sm:$0xff] }
 0x1af   : > { %2275 = vmatpush2.bf16.msra.mxu0 %v14055_v25  ;;  %v14281_v25 = vcombine.low %v2392_v9, %v2400_v10  ;;  %v2560_v1 = vld [vmem:[#allocation9 + $0x6c0] sm:$0xff] }
 0x1b0   : > { %2276 = vmatprep.subr.bf16.mxu0 %v14048_v26  ;;  %v14537_v26 = vcombine.low %v2648_v12, %v2656_v13  ;;  %v2792_v10 = vld [vmem:[#allocation9 + $0xe00] sm:$0xff]  ;;  %v14441_v12 = vcombine.low %v2552_v0, %v2560_v1 }
 0x1b1   : > { %2316 = vmatpush2.bf16.msra.mxu1 %v14183_v53  ;;  %v14266_v53 = vcombine.high %v2376_v20, %v2384_v21 }
 0x1b2   : > { %2317 = vmatprep.subr.bf16.mxu1 %v14176_v27  ;;  %v2360_v27 = vld [vmem:[#allocation9 + $0x80] sm:$0xff] }
 0x1b3   : > { %2277 = vmatpush2.bf16.msra.mxu0 %v14047_v32  ;;  %v14265_v32 = vcombine.low %v2376_v20, %v2384_v21  ;;  %v2776_v21 = vld [vmem:[#allocation9 + $0xd80] sm:$0xff] }
 0x1b4   : > { %8572 = vmatprep.subr.bf16.mxu0 %v14346_v34  ;;  %v14521_v34 = vcombine.low %v2632_v23, %v2640_v24  ;;  %v17301_v24 = vsub.s32 0, %v17282_v54 }
 0x1b5   : > { %2318 = vmatpush2.bf16.msra.mxu1 %v14175_v33  ;;  %v14250_v33 = vcombine.high %v2360_v27, %v2368_v28 }
 0x1b6   : > { %8613 = vmatprep.subr.bf16.mxu1 %v14602_v38  ;;  %v17291_v49 = vpop.f32.mrf.mxu0  ;;  %2279 = vmatmul.mubr.bf16.vlgmr.msra.gmra.mxu0 %v17264_v16  ;;  %v14506_v38 = vcombine.high %v2616_v30, %v2624_v31 }
 0x1b7   : > { %8573 = vmatpush1.bf16.msra.mxu0 %v14345_v42  ;;  %v14249_v42 = vcombine.low %v2360_v27, %v2368_v28  ;;  %v2512_v27 = vld [vmem:[#allocation9 + $0x540] sm:$0xff] }
 0x1b8   : > { %v17294_v52 = vpop.f32.mrf.mxu1  ;;  %2320 = vmatmul.mubr.bf16.vlgmr.msra.gmra.mxu1 %v17268_v19  ;;  %v2036_v56 = vpop.f32.mrf.mxu0  ;;  %8574 = vmatprep.subr.bf16.mxu0 %v14330_v43  ;;  %v14313_v19 = vcombine.low %v2424_v46, %v2432_v47  ;;  %v14234_v43 = vcombine.high %v2344_v36, %v2352_v37  ;;  %v2592_v46 = vld [vmem:[#allocation9 + $0x7c0] sm:$0xff]  ;;  %v14490_v47 = vcombine.high %v2600_v40, %v2608_v41 }
 0x1b9   : > { %8614 = vmatpush1.bf16.msra.mxu1 %v14601_v44  ;;  %v2037_v61 = vadd.f32 %v2036_v56, %v673_v45  ;;  %v14505_v44 = vcombine.low %v2616_v30, %v2624_v31  ;;  %v2584_v45 = vld [vmem:[#allocation9 + $0x780] sm:$0xff]  ;;  %v14489_v56 = vcombine.low %v2600_v40, %v2608_v41 }
 0x1ba   : > { %v2077_v62 = vpop.f32.mrf.mxu1  ;;  %8615 = vmatprep.subr.bf16.mxu1 %v14586_v48  ;;  %v2038_v16 = vpop.f32.mrf.mxu0  ;;  %v2840_v48 = vld [vmem:[#allocation9 + $0xf80] sm:$0xff]  ;;  %v14473_v63 = vcombine.low %v2584_v45, %v2592_v46 }
 0x1bb   : > { %v2078_v2 = vadd.f32 %v2077_v62, %v2037_v61  ;;  %8575 = vmatpush1.bf16.msra.mxu0 %v14329_v55  ;;  %v14474_v55 = vcombine.high %v2584_v45, %v2592_v46  ;;  %v14730_v61 = vcombine.high %v2840_v48, %v2848_v50  ;;  %v2824_v62 = vld [vmem:[#allocation9 + $0xf00] sm:$0xff]  ;;  %v14729_v16 = vcombine.low %v2840_v48, %v2848_v50 }
 0x1bc   : > { %v2079_v3 = vpop.f32.mrf.mxu1  ;;  %v2039_v4 = vpop.f32.mrf.mxu0  ;;  %8576 = vmatprep.subr.bf16.mxu0 %v14314_v57  ;;  %v2568_v57 = vld [vmem:[#allocation9 + $0x700] sm:$0xff] }
 0x1bd   : > { %8616 = vmatpush1.bf16.msra.mxu1 %v14585_v60  ;;  %v2329_v7 = vmax.f32 %v2078_v2, 0.0  ;;  %v2576_v60 = vld [vmem:[#allocation9 + $0x740] sm:$0xff]  ;;  %v14714_v2 = vcombine.high %v2824_v62, %v2832_v58 }
 0x1be   : > { %v2080_v8 = vpop.f32.mrf.mxu1  ;;  %8617 = vmatprep.subr.bf16.mxu1 %v14570_v59  ;;  %v14458_v59 = vcombine.high %v2568_v57, %v2576_v60  ;;  %v2808_v3 = vld [vmem:[#allocation9 + $0xe80] sm:$0xff]  ;;  %v14457_v4 = vcombine.low %v2568_v57, %v2576_v60 }
 0x1bf   : > { %v17297_v14 = vpack.c.bf16 %v2329_v7, %v2329_v7  ;;  %8577 = vmatpush1.bf16.msra.mxu0 %v14313_v19  ;;  %v2816_v19 = vld [vmem:[#allocation9 + $0xec0] sm:$0xff] }
 0x1c0   : > { %8578 = vmatprep.subr.bf16.mxu0 %v14298_v5  ;;  %v14442_v5 = vcombine.high %v2552_v0, %v2560_v1  ;;  %v2536_v7 = vld [vmem:[#allocation9 + $0x600] sm:$0xff]  ;;  %v14698_v9 = vcombine.high %v2808_v3, %v2816_v19 }
 0x1c1   : > { %8618 = vmatpush1.bf16.msra.mxu1 %v14569_v6  ;;  %8604 = vmatprep.mubr.bf16.mxu0 %v17297_v14  ;;  %v14713_v6 = vcombine.low %v2824_v62, %v2832_v58  ;;  %v2544_v8 = vld [vmem:[#allocation9 + $0x640] sm:$0xff] }
 0x1c2   : > { %8619 = vmatprep.subr.bf16.mxu1 %v14554_v11  ;;  %v2800_v11 = vld [vmem:[#allocation9 + $0xe40] sm:$0xff]  ;;  %v14426_v13 = vcombine.high %v2536_v7, %v2544_v8  ;;  %v14425_v23 = vcombine.low %v2536_v7, %v2544_v8 }
 0x1c3   : > { %8579 = vmatpush1.bf16.msra.mxu0 %v14297_v15  ;;  %v14697_v15 = vcombine.low %v2808_v3, %v2816_v19  ;;  %v14682_v20 = vcombine.high %v2792_v10, %v2800_v11  ;;  %v2768_v30 = vld [vmem:[#allocation9 + $0xd40] sm:$0xff] }
 0x1c4   : > { %8580 = vmatprep.subr.bf16.mxu0 %v14282_v17  ;;  %v2520_v17 = vld [vmem:[#allocation9 + $0x580] sm:$0xff] }
 0x1c5   : > { %8620 = vmatpush1.bf16.msra.mxu1 %v14553_v18  ;;  %v2528_v18 = vld [vmem:[#allocation9 + $0x5c0] sm:$0xff] }
 0x1c6   : > { %8621 = vmatprep.subr.bf16.mxu1 %v14538_v22  ;;  %v2784_v22 = vld [vmem:[#allocation9 + $0xdc0] sm:$0xff]  ;;  %v14409_v31 = vcombine.low %v2520_v17, %v2528_v18 }
 0x1c7   : > { %8581 = vmatpush1.bf16.msra.mxu0 %v14281_v25  ;;  %v14410_v25 = vcombine.high %v2520_v17, %v2528_v18  ;;  %v14666_v28 = vcombine.high %v2776_v21, %v2784_v22  ;;  %v2488_v36 = vld [vmem:[#allocation9 + $0x480] sm:$0xff] }
 0x1c8   : > { %8582 = vmatprep.subr.bf16.mxu0 %v14266_v53  ;;  %v14681_v53 = vcombine.low %v2792_v10, %v2800_v11  ;;  %v2496_v37 = vld [vmem:[#allocation9 + $0x4c0] sm:$0xff] }
 0x1c9   : > { %8622 = vmatpush1.bf16.msra.mxu1 %v14537_v26  ;;  %v2504_v26 = vld [vmem:[#allocation9 + $0x500] sm:$0xff] }
 0x1ca   : > { %8623 = vmatprep.subr.bf16.mxu1 %v14522_v29  ;;  %v2760_v29 = vld [vmem:[#allocation9 + $0xd00] sm:$0xff] }
 0x1cb   : > { %8583 = vmatpush1.bf16.msra.mxu0 %v14265_v32  ;;  %v669_v32 = vrot.slane %v17287_v39, %v17301_v24  ;;  %v2744_v40 = vld [vmem:[#allocation9 + $0xc80] sm:$0xff]  ;;  %v14649_v45 = vcombine.low %v2760_v29, %v2768_v30 }
 0x1cc   : > { %8584 = vmatprep.subr.bf16.mxu0 %v14250_v33  ;;  %v14394_v33 = vcombine.high %v2504_v26, %v2512_v27  ;;  %v2752_v41 = vld [vmem:[#allocation9 + $0xcc0] sm:$0xff] }
 0x1cd   : > { %8624 = vmatpush1.bf16.msra.mxu1 %v14521_v34  ;;  %v14665_v34 = vcombine.low %v2776_v21, %v2784_v22  ;;  %v2472_v46 = vld [vmem:[#allocation9 + $0x400] sm:$0xff]  ;;  %v14634_v48 = vcombine.high %v2744_v40, %v2752_v41  ;;  %v14633_v60 = vcombine.low %v2744_v40, %v2752_v41 }
 0x1ce   : > { %8625 = vmatprep.subr.bf16.mxu1 %v14506_v38  ;;  %v14650_v38 = vcombine.high %v2760_v29, %v2768_v30  ;;  %v2728_v50 = vld [vmem:[#allocation9 + $0xc00] sm:$0xff] }
 0x1cf   : > { %8585 = vmatpush1.bf16.msra.mxu0 %v14249_v42  ;;  %v14393_v42 = vcombine.low %v2504_v26, %v2512_v27  ;;  %v2976_v62 = vld [vmem:[#allocation9 + $0x13c0] sm:$0xff] }
 0x1d0   : > { %8586 = vmatprep.subr.bf16.mxu0 %v14234_v43  ;;  %v2035_v43 = vadd.f32 %v17291_v49, %v669_v32  ;;  %v17307_v58 = vld [vmem:[#allocation9 + $0x1b80] sm:$0xff] }
 0x1d1   : > { %8626 = vmatpush1.bf16.msra.mxu1 %v14505_v44  ;;  %v14378_v44 = vcombine.high %v2488_v36, %v2496_v37  ;;  %v2952_v3 = vld [vmem:[#allocation9 + $0x1300] sm:$0xff] }
 0x1d2   : > { %8627 = vmatprep.subr.bf16.mxu1 %v14490_v47  ;;  %v2480_v47 = vld [vmem:[#allocation9 + $0x440] sm:$0xff] }
 0x1d3   : > { %8587 = vmatpush1.bf16.msra.mxu0 %v14233_v51  ;;  %v2736_v51 = vld [vmem:[#allocation9 + $0xc40] sm:$0xff]  ;;  %v14362_v57 = vcombine.high %v2472_v46, %v2480_v47 }
 0x1d4   : > { %8588 = vmatprep.subr.bf16.mxu0 %v14474_v55  ;;  %v14377_v55 = vcombine.low %v2488_v36, %v2496_v37  ;;  %v14618_v49 = vcombine.high %v2728_v50, %v2736_v51  ;;  %v2960_v19 = vld [vmem:[#allocation9 + $0x1340] sm:$0xff] }
 0x1d5   : > { %8628 = vmatpush1.bf16.msra.mxu1 %v14489_v56  ;;  %v2076_v56 = vadd.f32 %v17294_v52, %v2035_v43  ;;  %v14617_v52 = vcombine.low %v2728_v50, %v2736_v51  ;;  %v14842_v8 = vcombine.high %v2952_v3, %v2960_v19  ;;  %v2936_v10 = vld [vmem:[#allocation9 + $0x1280] sm:$0xff]  ;;  %v14841_v17 = vcombine.low %v2952_v3, %v2960_v19 }
 0x1d6   : > { %8629 = vmatprep.subr.bf16.mxu1 %v14730_v61  ;;  %v2968_v61 = vld [vmem:[#allocation9 + $0x1380] sm:$0xff] }
 0x1d7   : > { %8589 = vmatpush2.bf16.msra.mxu0 %v14473_v63  ;;  %v17309_v63 = vld [vmem:[#allocation9 + $0x1bc0] sm:$0xff]  ;;  %v2328_v0 = vmax.f32 %v2076_v56, 0.0  ;;  %v14858_v1 = vcombine.high %v2968_v61, %v2976_v62 }
 0x1d8   : > { %8590 = vmatprep.subr.bf16.mxu0 %v14458_v59  ;;  %v14361_v59 = vcombine.low %v2472_v46, %v2480_v47  ;;  %v2944_v11 = vld [vmem:[#allocation9 + $0x12c0] sm:$0xff]  ;;  %v15113_v43 = vcombine.low %v17307_v58, %v17309_v63 }
 0x1d9   : > { %8630 = vmatpush2.bf16.msra.mxu1 %v14729_v16  ;;  %v17312_v16 = vsub.s32 2, %v17282_v54  ;;  %v17321_v7 = vpack.c.bf16 %v2328_v0, %v2328_v0  ;;  %v14825_v29 = vcombine.low %v2936_v10, %v2944_v11  ;;  %v2912_v37 = vld [vmem:[#allocation9 + $0x11c0] sm:$0xff] }
 0x1da   : > { %8631 = vmatprep.subr.bf16.mxu1 %v14714_v2  ;;  %v17315_v2 = vsub.s32 3, %v17282_v54  ;;  %v3216_v40 = vld [vmem:[#allocation9 + $0x1b40] sm:$0xff] }
 0x1db   : > { %8591 = vmatpush2.bf16.msra.mxu0 %v14457_v4  ;;  %v15114_v4 = vcombine.high %v17307_v58, %v17309_v63  ;;  %v2896_v51 = vld [vmem:[#allocation9 + $0x1140] sm:$0xff] }
 0x1dc   : > { %8592 = vmatprep.subr.bf16.mxu0 %v14442_v5  ;;  %v677_v5 = vrot.slane %v17287_v39, %v17312_v16  ;;  %v3200_v56 = vld [vmem:[#allocation9 + $0x1ac0] sm:$0xff] }
 0x1dd   : > { %8632 = vmatpush2.bf16.msra.mxu1 %v14713_v6  ;;  %v14857_v6 = vcombine.low %v2968_v61, %v2976_v62  ;;  %v2872_v62 = vld [vmem:[#allocation9 + $0x1080] sm:$0xff] }
 0x1de   : > { %8633 = vmatprep.subr.bf16.mxu1 %v14698_v9  ;;  %v681_v9 = vrot.slane %v17287_v39, %v17315_v2  ;;  %v2880_v63 = vld [vmem:[#allocation9 + $0x10c0] sm:$0xff] }
 0x1df   : > { %8593 = vmatpush2.bf16.msra.mxu0 %v14441_v12  ;;  %v3184_v0 = vld [vmem:[#allocation9 + $0x1a40] sm:$0xff]  ;;  %v14762_v3 = vcombine.high %v2872_v62, %v2880_v63 }
 0x1e0   : > { %8594 = vmatprep.subr.bf16.mxu0 %v14426_v13  ;;  %v2856_v19 = vld [vmem:[#allocation9 + $0x1000] sm:$0xff] }
 0x1e1   : > { %8634 = vmatpush2.bf16.msra.mxu1 %v14697_v15 }
 0x1e2   : > { %8635 = vmatprep.subr.bf16.mxu1 %v14682_v20  ;;  %v14826_v20 = vcombine.high %v2936_v10, %v2944_v11 }
 0x1e3   : > { %8595 = vmatpush2.bf16.msra.mxu0 %v14425_v23 }
 0x1e4   : > { %8596 = vmatprep.subr.bf16.mxu0 %v14410_v25  ;;  %v2920_v25 = vld [vmem:[#allocation9 + $0x1200] sm:$0xff] }
 0x1e5   : > { %8636 = vmatpush2.bf16.msra.mxu1 %v14681_v53  ;;  %v2928_v53 = vld [vmem:[#allocation9 + $0x1240] sm:$0xff] }
 0x1e6   : > { %8637 = vmatprep.subr.bf16.mxu1 %v14666_v28  ;;  %v14810_v32 = vcombine.high %v2920_v25, %v2928_v53 }
 0x1e7   : > { %8597 = vmatpush2.bf16.msra.mxu0 %v14409_v31 }
 0x1e8   : > { %8598 = vmatprep.subr.bf16.mxu0 %v14394_v33  ;;  %v2904_v33 = vld [vmem:[#allocation9 + $0x1180] sm:$0xff] }
 0x1e9   : > { %8638 = vmatpush2.bf16.msra.mxu1 %v14665_v34  ;;  %v14794_v47 = vcombine.high %v2904_v33, %v2912_v37 }
 0x1ea   : > { %8639 = vmatprep.subr.bf16.mxu1 %v14650_v38  ;;  %v3208_v38 = vld [vmem:[#allocation9 + $0x1b00] sm:$0xff] }
 0x1eb   : > { %8599 = vmatpush2.bf16.msra.mxu0 %v14393_v42  ;;  %v14809_v42 = vcombine.low %v2920_v25, %v2928_v53  ;;  %v15098_v50 = vcombine.high %v3208_v38, %v3216_v40  ;;  %v3088_v53 = vld [vmem:[#allocation9 + $0x1740] sm:$0xff] }
 0x1ec   : > { %8600 = vmatprep.subr.bf16.mxu0 %v14378_v44  ;;  %v17330_v44 = vld [vmem:[#allocation9 + $0xb88] sm:$0xff] }
 0x1ed   : > { %8640 = vmatpush2.bf16.msra.mxu1 %v14649_v45  ;;  %v17332_v45 = vld [vmem:[#allocation9 + $0xbc8] sm:$0xff] }
 0x1ee   : > { %8641 = vmatprep.subr.bf16.mxu1 %v14634_v48  ;;  %v2888_v48 = vld [vmem:[#allocation9 + $0x1100] sm:$0xff] }
 0x1ef   : > { %8601 = vmatpush2.bf16.msra.mxu0 %v14377_v55  ;;  %v3192_v55 = vld [vmem:[#allocation9 + $0x1a80] sm:$0xff]  ;;  %v14778_v61 = vcombine.high %v2888_v48, %v2896_v51 }
 0x1f0   : > { %8602 = vmatprep.subr.bf16.mxu0 %v14362_v57  ;;  %v14603_v57 = vcombine.low %v17330_v44, %v17332_v45  ;;  %v15082_v58 = vcombine.high %v3192_v55, %v3200_v56 }
 0x1f1   : > { %8642 = vmatpush2.bf16.msra.mxu1 %v14633_v60  ;;  %v14793_v60 = vcombine.low %v2904_v33, %v2912_v37  ;;  %v3072_v33 = vld [vmem:[#allocation9 + $0x16c0] sm:$0xff] }
 0x1f2   : > { %8643 = vmatprep.subr.bf16.mxu1 %v14618_v49  ;;  %v15097_v49 = vcombine.low %v3208_v38, %v3216_v40 }
 0x1f3   : > { %8603 = vmatpush2.bf16.msra.mxu0 %v14361_v59  ;;  %v3176_v59 = vld [vmem:[#allocation9 + $0x1a00] sm:$0xff] }
 0x1f4   : > { %8654 = vmatprep.subr.bf16.mxu0 %v14858_v1  ;;  %v15081_v1 = vcombine.low %v3192_v55, %v3200_v56  ;;  %v15065_v10 = vcombine.low %v3176_v59, %v3184_v0 }
 0x1f5   : > { %8644 = vmatpush2.bf16.msra.mxu1 %v14617_v52  ;;  %v14777_v52 = vcombine.low %v2888_v48, %v2896_v51  ;;  %v3352_v48 = vld [vmem:[#allocation9 + $0x1f80] sm:$0xff] }
 0x1f6   : > { %8695 = vmatprep.subr.bf16.mxu1 %v15114_v4  ;;  %v2116_v12 = vpop.f32.mrf.mxu0  ;;  %8605 = vmatmul.mubr.bf16.vlgmr.msra.gmra.mxu0 %v17321_v7  ;;  %v15066_v4 = vcombine.high %v3176_v59, %v3184_v0 }
 0x1f7   : > { %v2117_v13 = vadd.f32 %v2116_v12, %v677_v5  ;;  %8655 = vmatpush1.bf16.msra.mxu0 %v14857_v6  ;;  %v2864_v5 = vld [vmem:[#allocation9 + $0x1040] sm:$0xff] }
 0x1f8   : > { %v2157_v15 = vpop.f32.mrf.mxu1  ;;  %v2118_v18 = vpop.f32.mrf.mxu0  ;;  %8656 = vmatprep.subr.bf16.mxu0 %v14842_v8  ;;  %v3160_v6 = vld [vmem:[#allocation9 + $0x1980] sm:$0xff]  ;;  %v14746_v11 = vcombine.high %v2856_v19, %v2864_v5 }
 0x1f9   : > { %v2158_v21 = vadd.f32 %v2157_v15, %v2117_v13  ;;  %v2119_v22 = vadd.f32 %v2118_v18, %v681_v9  ;;  %v3168_v8 = vld [vmem:[#allocation9 + $0x19c0] sm:$0xff]  ;;  %v14761_v9 = vcombine.low %v2872_v62, %v2880_v63 }
 0x1fa   : > { %v2159_v23 = vpop.f32.mrf.mxu1  ;;  %v2120_v26 = vpop.f32.mrf.mxu0  ;;  %v3096_v12 = vld [vmem:[#allocation9 + $0x1780] sm:$0xff]  ;;  %v15050_v13 = vcombine.high %v3160_v6, %v3168_v8 }
 0x1fb   : > { %v2160_v27 = vadd.f32 %v2159_v23, %v2119_v22  ;;  %8657 = vmatpush1.bf16.msra.mxu0 %v14841_v17  ;;  %v2330_v30 = vmax.f32 %v2158_v21, 0.0  ;;  %v3104_v15 = vld [vmem:[#allocation9 + $0x17c0] sm:$0xff]  ;;  %v15049_v21 = vcombine.low %v3160_v6, %v3168_v8 }
 0x1fc   : > { %v2161_v28 = vpop.f32.mrf.mxu1  ;;  %v2121_v31 = vpop.f32.mrf.mxu0  ;;  %8658 = vmatprep.subr.bf16.mxu0 %v14826_v20  ;;  %v3144_v17 = vld [vmem:[#allocation9 + $0x1900] sm:$0xff]  ;;  %v14745_v20 = vcombine.low %v2856_v19, %v2864_v5  ;;  %v14986_v22 = vcombine.high %v3096_v12, %v3104_v15 }
 0x1fd   : > { %v2331_v34 = vmax.f32 %v2160_v27, 0.0  ;;  %v17334_v46 = vpack.c.bf16 %v2330_v30, %v2330_v30  ;;  %v3152_v18 = vld [vmem:[#allocation9 + $0x1940] sm:$0xff]  ;;  %v14985_v28 = vcombine.low %v3096_v12, %v3104_v15 }
 0x1fe   : > { %v2162_v36 = vpop.f32.mrf.mxu1  ;;  %v3080_v23 = vld [vmem:[#allocation9 + $0x1700] sm:$0xff]  ;;  %v15034_v25 = vcombine.high %v3144_v17, %v3152_v18 }
 0x1ff   : > { %v17326_v41 = vpack.c.bf16 %v2331_v34, %v2331_v34  ;;  %8659 = vmatpush1.bf16.msra.mxu0 %v14825_v29  ;;  %v3128_v26 = vld [vmem:[#allocation9 + $0x1880] sm:$0xff]  ;;  %v15033_v29 = vcombine.low %v3144_v17, %v3152_v18  ;;  %v14970_v30 = vcombine.high %v3080_v23, %v3088_v53  ;;  %v14969_v37 = vcombine.low %v3080_v23, %v3088_v53 }
 0x200   : > { %8660 = vmatprep.subr.bf16.mxu0 %v14810_v32  ;;  %v3136_v27 = vld [vmem:[#allocation9 + $0x18c0] sm:$0xff] }
 0x201   : > { %8645 = vmatprep.mubr.bf16.mxu1 %v17326_v41  ;;  %v3064_v31 = vld [vmem:[#allocation9 + $0x1680] sm:$0xff]  ;;  %v15018_v32 = vcombine.high %v3128_v26, %v3136_v27  ;;  %v15017_v38 = vcombine.low %v3128_v26, %v3136_v27 }
 0x202   : > { %8646 = vmatmul.mubr.bf16.vlgmr.msra.gmra.mxu1 %v17334_v46  ;;  %v3112_v34 = vld [vmem:[#allocation9 + $0x1800] sm:$0xff]  ;;  %v14954_v40 = vcombine.high %v3064_v31, %v3072_v33  ;;  %v14953_v51 = vcombine.low %v3064_v31, %v3072_v33  ;;  %v17341_v33 = vsub.s32 4, %v17282_v54 }
 0x203   : > { %8661 = vmatpush1.bf16.msra.mxu0 %v14809_v42  ;;  %8696 = vmatpush1.bf16.msra.mxu1 %v15113_v43  ;;  %v3120_v36 = vld [vmem:[#allocation9 + $0x1840] sm:$0xff] }
 0x204   : > { %8662 = vmatprep.subr.bf16.mxu0 %v14794_v47  ;;  %8697 = vmatprep.subr.bf16.mxu1 %v15098_v50  ;;  %v3048_v42 = vld [vmem:[#allocation9 + $0x1600] sm:$0xff]  ;;  %v15002_v43 = vcombine.high %v3112_v34, %v3120_v36  ;;  %v15001_v55 = vcombine.low %v3112_v34, %v3120_v36 }
 0x205   : > { %v3056_v47 = vld [vmem:[#allocation9 + $0x1640] sm:$0xff] }
 0x206   : > { %v3360_v50 = vld [vmem:[#allocation9 + $0x1fc0] sm:$0xff]  ;;  %v14938_v56 = vcombine.high %v3048_v42, %v3056_v47  ;;  %v14937_v63 = vcombine.low %v3048_v42, %v3056_v47  ;;  %v685_v47 = vrot.slane %v17287_v39, %v17341_v33 }
 0x207   : > { %8663 = vmatpush1.bf16.msra.mxu0 %v14793_v60  ;;  %8698 = vmatpush1.bf16.msra.mxu1 %v15097_v49  ;;  %v3032_v60 = vld [vmem:[#allocation9 + $0x1580] sm:$0xff]  ;;  %v15242_v49 = vcombine.high %v3352_v48, %v3360_v50  ;;  %v15241_v59 = vcombine.low %v3352_v48, %v3360_v50 }
 0x208   : > { %8664 = vmatprep.subr.bf16.mxu0 %v14778_v61  ;;  %8699 = vmatprep.subr.bf16.mxu1 %v15082_v58  ;;  %v3040_v61 = vld [vmem:[#allocation9 + $0x15c0] sm:$0xff] }
 0x209   : > { %v3336_v62 = vld [vmem:[#allocation9 + $0x1f00] sm:$0xff]  ;;  %v14922_v0 = vcombine.high %v3032_v60, %v3040_v61  ;;  %v14921_v5 = vcombine.low %v3032_v60, %v3040_v61 }
 0x20a   : > { %v3344_v58 = vld [vmem:[#allocation9 + $0x1f40] sm:$0xff] }
 0x20b   : > { %8665 = vmatpush1.bf16.msra.mxu0 %v14777_v52  ;;  %8700 = vmatpush1.bf16.msra.mxu1 %v15081_v1  ;;  %v3016_v52 = vld [vmem:[#allocation9 + $0x1500] sm:$0xff]  ;;  %v15226_v1 = vcombine.high %v3336_v62, %v3344_v58  ;;  %v15225_v6 = vcombine.low %v3336_v62, %v3344_v58 }
 0x20c   : > { %8666 = vmatprep.subr.bf16.mxu0 %v14762_v3  ;;  %8701 = vmatprep.subr.bf16.mxu1 %v15066_v4  ;;  %v3024_v3 = vld [vmem:[#allocation9 + $0x1540] sm:$0xff] }
 0x20d   : > { %v3320_v19 = vld [vmem:[#allocation9 + $0x1e80] sm:$0xff]  ;;  %v14906_v8 = vcombine.high %v3016_v52, %v3024_v3  ;;  %v14905_v15 = vcombine.low %v3016_v52, %v3024_v3 }
 0x20e   : > { %v3328_v4 = vld [vmem:[#allocation9 + $0x1ec0] sm:$0xff] }
 0x20f   : > { %8667 = vmatpush1.bf16.msra.mxu0 %v14761_v9  ;;  %8702 = vmatpush1.bf16.msra.mxu1 %v15065_v10  ;;  %v3000_v9 = vld [vmem:[#allocation9 + $0x1480] sm:$0xff]  ;;  %v15210_v10 = vcombine.high %v3320_v19, %v3328_v4  ;;  %v15209_v17 = vcombine.low %v3320_v19, %v3328_v4 }
 0x210   : > { %8668 = vmatprep.subr.bf16.mxu0 %v14746_v11  ;;  %8703 = vmatprep.subr.bf16.mxu1 %v15050_v13  ;;  %v3008_v11 = vld [vmem:[#allocation9 + $0x14c0] sm:$0xff] }
 0x211   : > { %v3304_v12 = vld [vmem:[#allocation9 + $0x1e00] sm:$0xff]  ;;  %v14890_v18 = vcombine.high %v3000_v9, %v3008_v11  ;;  %v14889_v53 = vcombine.low %v3000_v9, %v3008_v11  ;;  %v2449_v11 = vld [vmem:[#allocation9 + $0x348] sm:$0xff] }
 0x212   : > { %v3312_v13 = vld [vmem:[#allocation9 + $0x1e40] sm:$0xff] }
 0x213   : > { %8669 = vmatpush1.bf16.msra.mxu0 %v14745_v20  ;;  %8704 = vmatpush1.bf16.msra.mxu1 %v15049_v21  ;;  %v2984_v20 = vld [vmem:[#allocation9 + $0x1400] sm:$0xff]  ;;  %v15194_v21 = vcombine.high %v3304_v12, %v3312_v13  ;;  %v15193_v26 = vcombine.low %v3304_v12, %v3312_v13 }
 0x214   : > { %8670 = vmatprep.subr.bf16.mxu0 %v14986_v22  ;;  %8705 = vmatprep.subr.bf16.mxu1 %v15034_v25  ;;  %v2992_v22 = vld [vmem:[#allocation9 + $0x1440] sm:$0xff] }
 0x215   : > { %v3288_v23 = vld [vmem:[#allocation9 + $0x1d80] sm:$0xff]  ;;  %v14874_v27 = vcombine.high %v2984_v20, %v2992_v22  ;;  %v14873_v34 = vcombine.low %v2984_v20, %v2992_v22  ;;  %v2433_v20 = vld [vmem:[#allocation9 + $0x2c8] sm:$0xff] }
 0x216   : > { %v3296_v25 = vld [vmem:[#allocation9 + $0x1dc0] sm:$0xff] }
 0x217   : > { %8671 = vmatpush2.bf16.msra.mxu0 %v14985_v28  ;;  %8706 = vmatpush1.bf16.msra.mxu1 %v15033_v29  ;;  %v2457_v28 = vld [vmem:[#allocation9 + $0x388] sm:$0xff]  ;;  %v15178_v29 = vcombine.high %v3288_v23, %v3296_v25  ;;  %v3272_v31 = vld [vmem:[#allocation9 + $0x1d00] sm:$0xff]  ;;  %v15177_v36 = vcombine.low %v3288_v23, %v3296_v25 }
 0x218   : > { %8672 = vmatprep.subr.bf16.mxu0 %v14970_v30  ;;  %8707 = vmatprep.subr.bf16.mxu1 %v15018_v32  ;;  %v2465_v30 = vld [vmem:[#allocation9 + $0x3c8] sm:$0xff]  ;;  %v3280_v32 = vld [vmem:[#allocation9 + $0x1d40] sm:$0xff] }
 0x219   : > { %v3256_v42 = vld [vmem:[#allocation9 + $0x1c80] sm:$0xff]  ;;  %v15161_v48 = vcombine.low %v3272_v31, %v3280_v32  ;;  %v14347_v13 = vcombine.low %v2457_v28, %v2465_v30  ;;  %v2409_v23 = vld [vmem:[#allocation9 + $0x208] sm:$0xff] }
 0x21a   : > { %v2417_v25 = vld [vmem:[#allocation9 + $0x248] sm:$0xff] }
 0x21b   : > { %8673 = vmatpush2.bf16.msra.mxu0 %v14969_v37  ;;  %8708 = vmatpush1.bf16.msra.mxu1 %v15017_v38  ;;  %v14348_v37 = vcombine.high %v2457_v28, %v2465_v30  ;;  %v15162_v38 = vcombine.high %v3272_v31, %v3280_v32  ;;  %v2401_v28 = vld [vmem:[#allocation9 + $0x1c8] sm:$0xff] }
 0x21c   : > { %8674 = vmatprep.subr.bf16.mxu0 %v14954_v40  ;;  %8709 = vmatprep.subr.bf16.mxu1 %v15002_v43  ;;  %v17344_v40 = vsub.s32 5, %v17282_v54  ;;  %v3264_v43 = vld [vmem:[#allocation9 + $0x1cc0] sm:$0xff]  ;;  %v2377_v31 = vld [vmem:[#allocation9 + $0x108] sm:$0xff] }
 0x21d   : > { %v15146_v50 = vcombine.high %v3256_v42, %v3264_v43  ;;  %v15145_v62 = vcombine.low %v3256_v42, %v3264_v43  ;;  %v2385_v32 = vld [vmem:[#allocation9 + $0x148] sm:$0xff] }
 0x21e   : > { %v14267_v42 = vcombine.low %v2377_v31, %v2385_v32 }
 0x21f   : > { %8675 = vmatpush2.bf16.msra.mxu0 %v14953_v51  ;;  %8710 = vmatpush1.bf16.msra.mxu1 %v15001_v55  ;;  %v689_v51 = vrot.slane %v17287_v39, %v17344_v40  ;;  %v3240_v55 = vld [vmem:[#allocation9 + $0x1c00] sm:$0xff] }
 0x220   : > { %8676 = vmatprep.subr.bf16.mxu0 %v14938_v56  ;;  %8711 = vmatprep.subr.bf16.mxu1 %v15242_v49  ;;  %v3248_v56 = vld [vmem:[#allocation9 + $0x1c40] sm:$0xff] }
 0x221   : > { %v15129_v4 = vcombine.low %v3240_v55, %v3248_v56 }
 0x223   : > { %8677 = vmatpush2.bf16.msra.mxu0 %v14937_v63  ;;  %8712 = vmatpush2.bf16.msra.mxu1 %v15241_v59  ;;  %v15130_v63 = vcombine.high %v3240_v55, %v3248_v56  ;;  %v2585_v55 = vld [vmem:[#allocation9 + $0x788] sm:$0xff] }
 0x224   : > { %8678 = vmatprep.subr.bf16.mxu0 %v14922_v0  ;;  %8713 = vmatprep.subr.bf16.mxu1 %v15226_v1  ;;  %v2593_v56 = vld [vmem:[#allocation9 + $0x7c8] sm:$0xff] }
 0x227   : > { %8679 = vmatpush2.bf16.msra.mxu0 %v14921_v5  ;;  %8714 = vmatpush2.bf16.msra.mxu1 %v15225_v6  ;;  %v14604_v6 = vcombine.high %v17330_v44, %v17332_v45 }
 0x228   : > { %8680 = vmatprep.subr.bf16.mxu0 %v14906_v8  ;;  %8715 = vmatprep.subr.bf16.mxu1 %v15210_v10  ;;  %v2441_v10 = vld [vmem:[#allocation9 + $0x308] sm:$0xff] }
 0x22b   : > { %8681 = vmatpush2.bf16.msra.mxu0 %v14905_v15  ;;  %8716 = vmatpush2.bf16.msra.mxu1 %v15209_v17  ;;  %v14332_v17 = vcombine.high %v2441_v10, %v2449_v11 }
 0x22c   : > { %8682 = vmatprep.subr.bf16.mxu0 %v14890_v18  ;;  %8717 = vmatprep.subr.bf16.mxu1 %v15194_v21  ;;  %v2425_v18 = vld [vmem:[#allocation9 + $0x288] sm:$0xff]  ;;  %v14331_v21 = vcombine.low %v2441_v10, %v2449_v11 }
 0x22d   : > { %v14316_v22 = vcombine.high %v2425_v18, %v2433_v20  ;;  %v2505_v10 = vld [vmem:[#allocation9 + $0x508] sm:$0xff] }
 0x22e   : > { %v2513_v11 = vld [vmem:[#allocation9 + $0x548] sm:$0xff] }
 0x22f   : > { %8683 = vmatpush2.bf16.msra.mxu0 %v14889_v53  ;;  %8718 = vmatpush2.bf16.msra.mxu1 %v15193_v26  ;;  %v14315_v53 = vcombine.low %v2425_v18, %v2433_v20  ;;  %v14300_v26 = vcombine.high %v2409_v23, %v2417_v25  ;;  %v14396_v18 = vcombine.high %v2505_v10, %v2513_v11  ;;  %v17363_v20 = vsub.s32 7, %v17282_v54 }
 0x230   : > { %8684 = vmatprep.subr.bf16.mxu0 %v14874_v27  ;;  %8719 = vmatprep.subr.bf16.mxu1 %v15178_v29  ;;  %v2393_v27 = vld [vmem:[#allocation9 + $0x188] sm:$0xff]  ;;  %v14299_v29 = vcombine.low %v2409_v23, %v2417_v25  ;;  %v14395_v23 = vcombine.low %v2505_v10, %v2513_v11  ;;  %v15922_v25 = vld [vmem:[#allocation8] sm:$0xff] }
 0x231   : > { %v14284_v30 = vcombine.high %v2393_v27, %v2401_v28 }
 0x233   : > { %8685 = vmatpush2.bf16.msra.mxu0 %v14873_v34  ;;  %8720 = vmatpush2.bf16.msra.mxu1 %v15177_v36  ;;  %v14283_v34 = vcombine.low %v2393_v27, %v2401_v28  ;;  %v14268_v36 = vcombine.high %v2377_v31, %v2385_v32  ;;  %v697_v27 = vrot.slane %v15922_v25, %v17363_v20  ;;  %v2473_v28 = vld [vmem:[#allocation9 + $0x408] sm:$0xff] }
 0x234   : > { %8736 = vmatprep.subr.bf16.mxu0 %v14348_v37  ;;  %8721 = vmatprep.subr.bf16.mxu1 %v15162_v38  ;;  %v2361_v37 = vld [vmem:[#allocation9 + $0x88] sm:$0xff] }
 0x235   : > { %v2369_v38 = vld [vmem:[#allocation9 + $0xc8] sm:$0xff] }
 0x236   : > { %v2198_v60 = vpop.f32.mrf.mxu0  ;;  %v14252_v43 = vcombine.high %v2361_v37, %v2369_v38 }
 0x237   : > { %v2199_v49 = vadd.f32 %v2198_v60, %v685_v47  ;;  %8722 = vmatpush2.bf16.msra.mxu1 %v15161_v48  ;;  %v2345_v47 = vld [vmem:[#allocation9 + $0x8] sm:$0xff] }
 0x238   : > { %v2239_v61 = vpop.f32.mrf.mxu1  ;;  %v2200_v58 = vpop.f32.mrf.mxu0  ;;  %8723 = vmatprep.subr.bf16.mxu1 %v15146_v50  ;;  %v2353_v48 = vld [vmem:[#allocation9 + $0x48] sm:$0xff]  ;;  %v14251_v50 = vcombine.low %v2361_v37, %v2369_v38 }
 0x239   : > { %v2240_v59 = vadd.f32 %v2239_v61, %v2199_v49  ;;  %v2201_v0 = vadd.f32 %v2200_v58, %v689_v51  ;;  %v14236_v51 = vcombine.high %v2345_v47, %v2353_v48  ;;  %v14235_v60 = vcombine.low %v2345_v47, %v2353_v48  ;;  %v2569_v61 = vld [vmem:[#allocation9 + $0x708] sm:$0xff] }
 0x23a   : > { %v2241_v52 = vpop.f32.mrf.mxu1  ;;  %v2202_v1 = vpop.f32.mrf.mxu0  ;;  %v14476_v49 = vcombine.high %v2585_v55, %v2593_v56  ;;  %v14475_v58 = vcombine.low %v2585_v55, %v2593_v56  ;;  %v2977_v47 = vld [vmem:[#allocation9 + $0x13c8] sm:$0xff] }
 0x23b   : > { %v2242_v3 = vadd.f32 %v2241_v52, %v2201_v0  ;;  %8724 = vmatpush2.bf16.msra.mxu1 %v15145_v62  ;;  %v2332_v5 = vmax.f32 %v2240_v59, 0.0  ;;  %v2577_v62 = vld [vmem:[#allocation9 + $0x748] sm:$0xff] }
 0x23c   : > { %v2243_v19 = vpop.f32.mrf.mxu1  ;;  %v2203_v39 = vpop.f32.mrf.mxu0  ;;  %8725 = vmatprep.subr.bf16.mxu1 %v15130_v63  ;;  %v14460_v63 = vcombine.high %v2569_v61, %v2577_v62  ;;  %v2553_v59 = vld [vmem:[#allocation9 + $0x688] sm:$0xff]  ;;  %v14459_v52 = vcombine.low %v2569_v61, %v2577_v62 }
 0x23d   : > { %v2333_v8 = vmax.f32 %v2242_v3, 0.0  ;;  %v17354_v15 = vpack.c.bf16 %v2332_v5, %v2332_v5  ;;  %v2561_v0 = vld [vmem:[#allocation9 + $0x6c8] sm:$0xff] }
 0x23e   : > { %v2244_v9 = vpop.f32.mrf.mxu1  ;;  %v14444_v1 = vcombine.high %v2553_v59, %v2561_v0  ;;  %v2537_v3 = vld [vmem:[#allocation9 + $0x608] sm:$0xff] }
 0x23f   : > { %v17352_v12 = vpack.c.bf16 %v2333_v8, %v2333_v8  ;;  %8726 = vmatpush2.bf16.msra.mxu1 %v15129_v4  ;;  %v2545_v19 = vld [vmem:[#allocation9 + $0x648] sm:$0xff]  ;;  %v14443_v4 = vcombine.low %v2553_v59, %v2561_v0 }
 0x240   : > { %8777 = vmatprep.subr.bf16.mxu1 %v14604_v6  ;;  %v14428_v5 = vcombine.high %v2537_v3, %v2545_v19  ;;  %v2521_v39 = vld [vmem:[#allocation9 + $0x588] sm:$0xff]  ;;  %v14427_v8 = vcombine.low %v2537_v3, %v2545_v19 }
 0x241   : > { %8686 = vmatprep.mubr.bf16.mxu0 %v17352_v12  ;;  %v2529_v6 = vld [vmem:[#allocation9 + $0x5c8] sm:$0xff] }
 0x242   : > { %8687 = vmatmul.mubr.bf16.vlgmr.msra.gmra.mxu0 %v17354_v15  ;;  %v14412_v9 = vcombine.high %v2521_v39, %v2529_v6  ;;  %v2953_v59 = vld [vmem:[#allocation9 + $0x1308] sm:$0xff] }
 0x243   : > { %8737 = vmatpush1.bf16.msra.mxu0 %v14347_v13  ;;  %8768 = vmatprep.mubr.bf16.mxu0 %v17297_v14  ;;  %v14411_v13 = vcombine.low %v2521_v39, %v2529_v6  ;;  %v2961_v0 = vld [vmem:[#allocation9 + $0x1348] sm:$0xff] }
 0x244   : > { %8738 = vmatprep.subr.bf16.mxu0 %v14332_v17  ;;  %v17360_v17 = vsub.s32 6, %v17282_v54  ;;  %v2681_v19 = vld [vmem:[#allocation9 + $0xa88] sm:$0xff]  ;;  %v14843_v10 = vcombine.low %v2953_v59, %v2961_v0 }
 0x245   : > { %v2689_v39 = vld [vmem:[#allocation9 + $0xac8] sm:$0xff] }
 0x246   : > { %v2937_v6 = vld [vmem:[#allocation9 + $0x1288] sm:$0xff]  ;;  %v14572_v11 = vcombine.high %v2681_v19, %v2689_v39 }
 0x247   : > { %8739 = vmatpush1.bf16.msra.mxu0 %v14331_v21  ;;  %v2489_v21 = vld [vmem:[#allocation9 + $0x488] sm:$0xff] }
 0x248   : > { %8740 = vmatprep.subr.bf16.mxu0 %v14316_v22  ;;  %v2497_v22 = vld [vmem:[#allocation9 + $0x4c8] sm:$0xff] }
 0x24b   : > { %8741 = vmatpush1.bf16.msra.mxu0 %v14315_v53  ;;  %v693_v53 = vrot.slane %v15922_v25, %v17360_v17  ;;  %v14571_v25 = vcombine.low %v2681_v19, %v2689_v39  ;;  %v2849_v39 = vld [vmem:[#allocation9 + $0xfc8] sm:$0xff] }
 0x24c   : > { %8742 = vmatprep.subr.bf16.mxu0 %v14300_v26  ;;  %v14380_v26 = vcombine.high %v2489_v21, %v2497_v22 }
 0x24f   : > { %8743 = vmatpush1.bf16.msra.mxu0 %v14299_v29  ;;  %v2481_v29 = vld [vmem:[#allocation9 + $0x448] sm:$0xff] }
 0x250   : > { %8744 = vmatprep.subr.bf16.mxu0 %v14284_v30  ;;  %v14363_v55 = vcombine.low %v2473_v28, %v2481_v29 }
 0x253   : > { %8745 = vmatpush1.bf16.msra.mxu0 %v14283_v34  ;;  %v14379_v34 = vcombine.low %v2489_v21, %v2497_v22  ;;  %v2673_v21 = vld [vmem:[#allocation9 + $0xa48] sm:$0xff] }
 0x254   : > { %8746 = vmatprep.subr.bf16.mxu0 %v14268_v36  ;;  %v14364_v36 = vcombine.high %v2473_v28, %v2481_v29  ;;  %v2921_v22 = vld [vmem:[#allocation9 + $0x1208] sm:$0xff] }
 0x255   : > { %v2913_v28 = vld [vmem:[#allocation9 + $0x11c8] sm:$0xff] }
 0x257   : > { %8747 = vmatpush1.bf16.msra.mxu0 %v14267_v42 }
 0x258   : > { %8748 = vmatprep.subr.bf16.mxu0 %v14252_v43  ;;  %v2969_v43 = vld [vmem:[#allocation9 + $0x1388] sm:$0xff] }
 0x25b   : > { %8749 = vmatpush1.bf16.msra.mxu0 %v14251_v50 }
 0x25c   : > { %8750 = vmatprep.subr.bf16.mxu0 %v14236_v51 }
 0x25f   : > { %8751 = vmatpush1.bf16.msra.mxu0 %v14235_v60 }
 0x260   : > { %8752 = vmatprep.subr.bf16.mxu0 %v14476_v49  ;;  %v14860_v49 = vcombine.high %v2969_v43, %v2977_v47 }
 0x263   : > { %8753 = vmatpush2.bf16.msra.mxu0 %v14475_v58  ;;  %v2697_v58 = vld [vmem:[#allocation9 + $0xb08] sm:$0xff] }
 0x264   : > { %8754 = vmatprep.subr.bf16.mxu0 %v14460_v63  ;;  %v2705_v63 = vld [vmem:[#allocation9 + $0xb48] sm:$0xff] }
 0x267   : > { %8755 = vmatpush2.bf16.msra.mxu0 %v14459_v52 }
 0x268   : > { %8756 = vmatprep.subr.bf16.mxu0 %v14444_v1  ;;  %v14859_v1 = vcombine.low %v2969_v43, %v2977_v47 }
 0x26b   : > { %8757 = vmatpush2.bf16.msra.mxu0 %v14443_v4  ;;  %v14588_v4 = vcombine.high %v2697_v58, %v2705_v63 }
 0x26c   : > { %8758 = vmatprep.subr.bf16.mxu0 %v14428_v5  ;;  %v14844_v5 = vcombine.high %v2953_v59, %v2961_v0  ;;  %v2865_v59 = vld [vmem:[#allocation9 + $0x1048] sm:$0xff] }
 0x26f   : > { %8759 = vmatpush2.bf16.msra.mxu0 %v14427_v8  ;;  %v2945_v8 = vld [vmem:[#allocation9 + $0x12c8] sm:$0xff] }
 0x270   : > { %8760 = vmatprep.subr.bf16.mxu0 %v14412_v9  ;;  %v14587_v9 = vcombine.low %v2697_v58, %v2705_v63  ;;  %v14827_v44 = vcombine.low %v2937_v6, %v2945_v8  ;;  %v2609_v58 = vld [vmem:[#allocation9 + $0x848] sm:$0xff] }
 0x271   : > { %v2857_v63 = vld [vmem:[#allocation9 + $0x1008] sm:$0xff] }
 0x273   : > { %8761 = vmatpush2.bf16.msra.mxu0 %v14411_v13  ;;  %v14828_v13 = vcombine.high %v2937_v6, %v2945_v8  ;;  %v3097_v6 = vld [vmem:[#allocation9 + $0x1788] sm:$0xff] }
 0x274   : > { %8762 = vmatprep.subr.bf16.mxu0 %v14396_v18  ;;  %v2665_v18 = vld [vmem:[#allocation9 + $0xa08] sm:$0xff] }
 0x275   : > { %v14556_v45 = vcombine.high %v2665_v18, %v2673_v21  ;;  %v14555_v29 = vcombine.low %v2665_v18, %v2673_v21  ;;  %v3105_v8 = vld [vmem:[#allocation9 + $0x17c8] sm:$0xff] }
 0x276   : > { %v2280_v30 = vpop.f32.mrf.mxu0  ;;  %v2825_v18 = vld [vmem:[#allocation9 + $0xf08] sm:$0xff] }
 0x277   : > { %v2281_v31 = vadd.f32 %v2280_v30, %v693_v53  ;;  %8763 = vmatpush2.bf16.msra.mxu0 %v14395_v23  ;;  %v2929_v23 = vld [vmem:[#allocation9 + $0x1248] sm:$0xff] }
 0x278   : > { %v2321_v32 = vpop.f32.mrf.mxu1  ;;  %v2282_v54 = vpop.f32.mrf.mxu0  ;;  %8764 = vmatprep.subr.bf16.mxu0 %v14380_v26  ;;  %v2649_v53 = vld [vmem:[#allocation9 + $0x988] sm:$0xff]  ;;  %v14811_v30 = vcombine.low %v2921_v22, %v2929_v23 }
 0x279   : > { %v2322_v37 = vadd.f32 %v2321_v32, %v2281_v31  ;;  %v2283_v38 = vadd.f32 %v2282_v54, %v697_v27  ;;  %v2657_v26 = vld [vmem:[#allocation9 + $0x9c8] sm:$0xff] }
 0x27a   : > { %v2323_v42 = vpop.f32.mrf.mxu1  ;;  %v2284_v48 = vpop.f32.mrf.mxu0  ;;  %v2905_v27 = vld [vmem:[#allocation9 + $0x1188] sm:$0xff]  ;;  %v14540_v31 = vcombine.high %v2649_v53, %v2657_v26 }
 0x27b   : > { %v2324_v50 = vadd.f32 %v2323_v42, %v2283_v38  ;;  %8765 = vmatpush2.bf16.msra.mxu0 %v14379_v34  ;;  %v2334_v56 = vmax.f32 %v2322_v37, 0.0  ;;  %v14796_v32 = vcombine.high %v2905_v27, %v2913_v28  ;;  %v2633_v34 = vld [vmem:[#allocation9 + $0x908] sm:$0xff]  ;;  %v14539_v38 = vcombine.low %v2649_v53, %v2657_v26 }
 0x27c   : > { %v2325_v51 = vpop.f32.mrf.mxu1  ;;  %v2285_v60 = vpop.f32.mrf.mxu0  ;;  %8766 = vmatprep.subr.bf16.mxu0 %v14364_v36  ;;  %v2641_v54 = vld [vmem:[#allocation9 + $0x948] sm:$0xff]  ;;  %v14795_v42 = vcombine.low %v2905_v27, %v2913_v28 }
 0x27d   : > { %v2335_v61 = vmax.f32 %v2324_v50, 0.0  ;;  %v17369_v3 = vpack.c.bf16 %v2334_v56, %v2334_v56  ;;  %v2889_v36 = vld [vmem:[#allocation9 + $0x1108] sm:$0xff]  ;;  %v14524_v43 = vcombine.high %v2633_v34, %v2641_v54  ;;  %v14523_v56 = vcombine.low %v2633_v34, %v2641_v54 }
 0x27e   : > { %v2326_v62 = vpop.f32.mrf.mxu1  ;;  %v2897_v37 = vld [vmem:[#allocation9 + $0x1148] sm:$0xff] }
 0x27f   : > { %v17367_v52 = vpack.c.bf16 %v2335_v61, %v2335_v61  ;;  %8767 = vmatpush2.bf16.msra.mxu0 %v14363_v55  ;;  %v14780_v47 = vcombine.high %v2889_v36, %v2897_v37  ;;  %v2617_v48 = vld [vmem:[#allocation9 + $0x888] sm:$0xff]  ;;  %v14779_v60 = vcombine.low %v2889_v36, %v2897_v37 }
 0x280   : > { %8818 = vmatprep.subr.bf16.mxu0 %v14860_v49  ;;  %v2625_v50 = vld [vmem:[#allocation9 + $0x8c8] sm:$0xff] }
 0x281   : > { %8727 = vmatprep.mubr.bf16.mxu1 %v17367_v52  ;;  %v2873_v51 = vld [vmem:[#allocation9 + $0x1088] sm:$0xff]  ;;  %v14508_v49 = vcombine.high %v2617_v48, %v2625_v50  ;;  %v14507_v0 = vcombine.low %v2617_v48, %v2625_v50 }
 0x282   : > { %8769 = vmatmul.mubr.bf16.vlgmr.msra.gmra.mxu0 %v17321_v7  ;;  %8728 = vmatmul.mubr.bf16.vlgmr.msra.gmra.mxu1 %v17369_v3  ;;  %v2881_v55 = vld [vmem:[#allocation9 + $0x10c8] sm:$0xff] }
 0x283   : > { %8778 = vmatpush1.bf16.msra.mxu1 %v14603_v57  ;;  %8819 = vmatpush1.bf16.msra.mxu0 %v14859_v1  ;;  %v14812_v57 = vcombine.high %v2921_v22, %v2929_v23  ;;  %v14764_v61 = vcombine.high %v2873_v51, %v2881_v55  ;;  %v2601_v62 = vld [vmem:[#allocation9 + $0x808] sm:$0xff]  ;;  %v14763_v1 = vcombine.low %v2873_v51, %v2881_v55 }
 0x284   : > { %8850 = vmatprep.mubr.bf16.mxu0 %v17352_v12  ;;  %8809 = vmatprep.mubr.bf16.mxu1 %v17326_v41  ;;  %v14492_v19 = vcombine.high %v2601_v62, %v2609_v58  ;;  %v2833_v21 = vld [vmem:[#allocation9 + $0xf48] sm:$0xff] }
 0x285   : > { %8779 = vmatprep.subr.bf16.mxu1 %v14588_v4  ;;  %8820 = vmatprep.subr.bf16.mxu0 %v14844_v5  ;;  %v14748_v4 = vcombine.high %v2857_v63, %v2865_v59  ;;  %v2841_v5 = vld [vmem:[#allocation9 + $0xf88] sm:$0xff] }
 0x286   : > { %v3081_v22 = vld [vmem:[#allocation9 + $0x1708] sm:$0xff] }
 0x287   : > { %8780 = vmatpush1.bf16.msra.mxu1 %v14587_v9  ;;  %8821 = vmatpush1.bf16.msra.mxu0 %v14843_v10  ;;  %v14491_v9 = vcombine.low %v2601_v62, %v2609_v58  ;;  %v14747_v10 = vcombine.low %v2857_v63, %v2865_v59  ;;  %v3089_v23 = vld [vmem:[#allocation9 + $0x1748] sm:$0xff] }
 0x288   : > { %8781 = vmatprep.subr.bf16.mxu1 %v14572_v11  ;;  %8822 = vmatprep.subr.bf16.mxu0 %v14828_v13  ;;  %v14732_v11 = vcombine.high %v2841_v5, %v2849_v39  ;;  %v14988_v13 = vcombine.high %v3097_v6, %v3105_v8  ;;  %v2809_v53 = vld [vmem:[#allocation9 + $0xe88] sm:$0xff] }
 0x289   : > { %v2817_v26 = vld [vmem:[#allocation9 + $0xec8] sm:$0xff] }
 0x28a   : > { %v3065_v27 = vld [vmem:[#allocation9 + $0x1688] sm:$0xff] }
 0x28b   : > { %8782 = vmatpush1.bf16.msra.mxu1 %v14571_v25  ;;  %8823 = vmatpush1.bf16.msra.mxu0 %v14827_v44  ;;  %v14731_v25 = vcombine.low %v2841_v5, %v2849_v39  ;;  %v14987_v44 = vcombine.low %v3097_v6, %v3105_v8  ;;  %v3073_v28 = vld [vmem:[#allocation9 + $0x16c8] sm:$0xff] }
 0x28c   : > { %8783 = vmatprep.subr.bf16.mxu1 %v14556_v45  ;;  %8824 = vmatprep.subr.bf16.mxu0 %v14812_v57  ;;  %v14716_v45 = vcombine.high %v2825_v18, %v2833_v21  ;;  %v14972_v57 = vcombine.high %v3081_v22, %v3089_v23  ;;  %v2793_v34 = vld [vmem:[#allocation9 + $0xe08] sm:$0xff] }
 0x28d   : > { %v2801_v54 = vld [vmem:[#allocation9 + $0xe48] sm:$0xff] }
 0x28e   : > { %v3049_v36 = vld [vmem:[#allocation9 + $0x1608] sm:$0xff] }
 0x28f   : > { %8784 = vmatpush1.bf16.msra.mxu1 %v14555_v29  ;;  %8825 = vmatpush1.bf16.msra.mxu0 %v14811_v30  ;;  %v14715_v29 = vcombine.low %v2825_v18, %v2833_v21  ;;  %v14971_v30 = vcombine.low %v3081_v22, %v3089_v23  ;;  %v3057_v37 = vld [vmem:[#allocation9 + $0x1648] sm:$0xff] }
 0x290   : > { %8785 = vmatprep.subr.bf16.mxu1 %v14540_v31  ;;  %8826 = vmatprep.subr.bf16.mxu0 %v14796_v32  ;;  %v14700_v31 = vcombine.high %v2809_v53, %v2817_v26  ;;  %v14956_v32 = vcombine.high %v3065_v27, %v3073_v28  ;;  %v2777_v48 = vld [vmem:[#allocation9 + $0xd88] sm:$0xff] }
 0x291   : > { %v2785_v50 = vld [vmem:[#allocation9 + $0xdc8] sm:$0xff] }
 0x292   : > { %v3033_v51 = vld [vmem:[#allocation9 + $0x1588] sm:$0xff] }
 0x293   : > { %8786 = vmatpush1.bf16.msra.mxu1 %v14539_v38  ;;  %8827 = vmatpush1.bf16.msra.mxu0 %v14795_v42  ;;  %v14699_v38 = vcombine.low %v2809_v53, %v2817_v26  ;;  %v14955_v42 = vcombine.low %v3065_v27, %v3073_v28  ;;  %v3041_v55 = vld [vmem:[#allocation9 + $0x15c8] sm:$0xff] }
 0x294   : > { %8787 = vmatprep.subr.bf16.mxu1 %v14524_v43  ;;  %8828 = vmatprep.subr.bf16.mxu0 %v14780_v47  ;;  %v14684_v43 = vcombine.high %v2793_v34, %v2801_v54  ;;  %v14940_v47 = vcombine.high %v3049_v36, %v3057_v37  ;;  %v2761_v62 = vld [vmem:[#allocation9 + $0xd08] sm:$0xff] }
 0x295   : > { %v2769_v58 = vld [vmem:[#allocation9 + $0xd48] sm:$0xff] }
 0x296   : > { %v3017_v63 = vld [vmem:[#allocation9 + $0x1508] sm:$0xff] }
 0x297   : > { %8788 = vmatpush1.bf16.msra.mxu1 %v14523_v56  ;;  %8829 = vmatpush1.bf16.msra.mxu0 %v14779_v60  ;;  %v14683_v56 = vcombine.low %v2793_v34, %v2801_v54  ;;  %v14939_v60 = vcombine.low %v3049_v36, %v3057_v37  ;;  %v3025_v59 = vld [vmem:[#allocation9 + $0x1548] sm:$0xff] }
 0x298   : > { %8789 = vmatprep.subr.bf16.mxu1 %v14508_v49  ;;  %8830 = vmatprep.subr.bf16.mxu0 %v14764_v61  ;;  %v14668_v49 = vcombine.high %v2777_v48, %v2785_v50  ;;  %v14924_v61 = vcombine.high %v3033_v51, %v3041_v55  ;;  %v2745_v5 = vld [vmem:[#allocation9 + $0xc88] sm:$0xff] }
 0x299   : > { %v2753_v39 = vld [vmem:[#allocation9 + $0xcc8] sm:$0xff] }
 0x29a   : > { %v3001_v6 = vld [vmem:[#allocation9 + $0x1488] sm:$0xff] }
 0x29b   : > { %8790 = vmatpush1.bf16.msra.mxu1 %v14507_v0  ;;  %8831 = vmatpush1.bf16.msra.mxu0 %v14763_v1  ;;  %v14667_v0 = vcombine.low %v2777_v48, %v2785_v50  ;;  %v14923_v1 = vcombine.low %v3033_v51, %v3041_v55  ;;  %v3009_v8 = vld [vmem:[#allocation9 + $0x14c8] sm:$0xff]  ;;  %v2442_v48 = vld [vmem:[#allocation9 + $0x310] sm:$0xff] }
 0x29c   : > { %8791 = vmatprep.subr.bf16.mxu1 %v14492_v19  ;;  %8832 = vmatprep.subr.bf16.mxu0 %v14748_v4  ;;  %v14652_v19 = vcombine.high %v2761_v62, %v2769_v58  ;;  %v14908_v4 = vcombine.high %v3017_v63, %v3025_v59  ;;  %v2729_v18 = vld [vmem:[#allocation9 + $0xc08] sm:$0xff]  ;;  %v2450_v50 = vld [vmem:[#allocation9 + $0x350] sm:$0xff] }
 0x29d   : > { %v2737_v21 = vld [vmem:[#allocation9 + $0xc48] sm:$0xff] }
 0x29e   : > { %v2985_v22 = vld [vmem:[#allocation9 + $0x1408] sm:$0xff]  ;;  %v14620_v53 = vcombine.high %v2729_v18, %v2737_v21  ;;  %v14619_v34 = vcombine.low %v2729_v18, %v2737_v21  ;;  %v2410_v18 = vld [vmem:[#allocation9 + $0x210] sm:$0xff] }
 0x29f   : > { %8792 = vmatpush1.bf16.msra.mxu1 %v14491_v9  ;;  %8833 = vmatpush1.bf16.msra.mxu0 %v14747_v10  ;;  %v14651_v9 = vcombine.low %v2761_v62, %v2769_v58  ;;  %v14907_v10 = vcombine.low %v3017_v63, %v3025_v59  ;;  %v2993_v23 = vld [vmem:[#allocation9 + $0x1448] sm:$0xff]  ;;  %v2426_v59 = vld [vmem:[#allocation9 + $0x290] sm:$0xff] }
 0x2a0   : > { %8793 = vmatprep.subr.bf16.mxu1 %v14732_v11  ;;  %8834 = vmatprep.subr.bf16.mxu0 %v14988_v13  ;;  %v14636_v11 = vcombine.high %v2745_v5, %v2753_v39  ;;  %v14892_v13 = vcombine.high %v3001_v6, %v3009_v8  ;;  %v14876_v26 = vcombine.high %v2985_v22, %v2993_v23  ;;  %v3225_v27 = vld [vmem:[#allocation9 + $0x1b88] sm:$0xff]  ;;  %v2418_v21 = vld [vmem:[#allocation9 + $0x250] sm:$0xff] }
 0x2a1   : > { %v3233_v28 = vld [vmem:[#allocation9 + $0x1bc8] sm:$0xff]  ;;  %v14875_v54 = vcombine.low %v2985_v22, %v2993_v23 }
 0x2a2   : > { %v15116_v37 = vcombine.high %v3225_v27, %v3233_v28  ;;  %v15115_v55 = vcombine.low %v3225_v27, %v3233_v28  ;;  %v3193_v62 = vld [vmem:[#allocation9 + $0x1a88] sm:$0xff]  ;;  %v2402_v27 = vld [vmem:[#allocation9 + $0x1d0] sm:$0xff] }
 0x2a3   : > { %8794 = vmatpush2.bf16.msra.mxu1 %v14731_v25  ;;  %8835 = vmatpush2.bf16.msra.mxu0 %v14987_v44  ;;  %v14635_v44 = vcombine.low %v2745_v5, %v2753_v39  ;;  %v3201_v58 = vld [vmem:[#allocation9 + $0x1ac8] sm:$0xff]  ;;  %v14333_v39 = vcombine.low %v2442_v48, %v2450_v50 }
 0x2a4   : > { %8795 = vmatprep.subr.bf16.mxu1 %v14716_v45  ;;  %8836 = vmatprep.subr.bf16.mxu0 %v14972_v57  ;;  %v14891_v45 = vcombine.low %v3001_v6, %v3009_v8  ;;  %v15084_v6 = vcombine.high %v3193_v62, %v3201_v58  ;;  %v15083_v22 = vcombine.low %v3193_v62, %v3201_v58  ;;  %v3121_v62 = vld [vmem:[#allocation9 + $0x1848] sm:$0xff]  ;;  %v2346_v58 = vld [vmem:[#allocation9 + $0x10] sm:$0xff] }
 0x2a7   : > { %8796 = vmatpush2.bf16.msra.mxu1 %v14715_v29  ;;  %8837 = vmatpush2.bf16.msra.mxu0 %v14971_v30  ;;  %v2458_v29 = vld [vmem:[#allocation9 + $0x390] sm:$0xff] }
 0x2a8   : > { %8797 = vmatprep.subr.bf16.mxu1 %v14700_v31  ;;  %8838 = vmatprep.subr.bf16.mxu0 %v14956_v32  ;;  %v2466_v30 = vld [vmem:[#allocation9 + $0x3d0] sm:$0xff]  ;;  %v3368_v31 = vld [vmem:[#allocation11] sm:$0xff] }
 0x2a9   : > { %v3379_v51 = vrot.slane %v3368_v31, %v17285_v35 }
 0x2ab   : > { %8798 = vmatpush2.bf16.msra.mxu1 %v14699_v38  ;;  %8839 = vmatpush2.bf16.msra.mxu0 %v14955_v42  ;;  %v14350_v38 = vcombine.high %v2458_v29, %v2466_v30  ;;  %v3375_v42 = vrot.slane %v3368_v31, %v17301_v24 }
 0x2ac   : > { %8799 = vmatprep.subr.bf16.mxu1 %v14684_v43  ;;  %8840 = vmatprep.subr.bf16.mxu0 %v14940_v47  ;;  %v3209_v43 = vld [vmem:[#allocation9 + $0x1b08] sm:$0xff] }
 0x2ad   : > { %v3217_v47 = vld [vmem:[#allocation9 + $0x1b48] sm:$0xff] }
 0x2af   : > { %8800 = vmatpush2.bf16.msra.mxu1 %v14683_v56  ;;  %8841 = vmatpush2.bf16.msra.mxu0 %v14939_v60  ;;  %v14349_v56 = vcombine.low %v2458_v29, %v2466_v30  ;;  %v14301_v29 = vcombine.low %v2410_v18, %v2418_v21 }
 0x2b0   : > { %8801 = vmatprep.subr.bf16.mxu1 %v14668_v49  ;;  %8842 = vmatprep.subr.bf16.mxu0 %v14924_v61  ;;  %v15100_v49 = vcombine.high %v3209_v43, %v3217_v47  ;;  %v14334_v61 = vcombine.high %v2442_v48, %v2450_v50  ;;  %v3137_v48 = vld [vmem:[#allocation9 + $0x18c8] sm:$0xff]  ;;  %v2362_v50 = vld [vmem:[#allocation9 + $0x90] sm:$0xff] }
 0x2b3   : > { %8802 = vmatpush2.bf16.msra.mxu1 %v14667_v0  ;;  %8843 = vmatpush2.bf16.msra.mxu0 %v14923_v1  ;;  %v2434_v0 = vld [vmem:[#allocation9 + $0x2d0] sm:$0xff] }
 0x2b4   : > { %8803 = vmatprep.subr.bf16.mxu1 %v14652_v19  ;;  %8844 = vmatprep.subr.bf16.mxu0 %v14908_v4  ;;  %v15099_v4 = vcombine.low %v3209_v43, %v3217_v47  ;;  %v3129_v47 = vld [vmem:[#allocation9 + $0x1888] sm:$0xff] }
 0x2b6   : > { %v8606_v25 = vpop.f32.mrf.mxu0 }
 0x2b7   : > { %8804 = vmatpush2.bf16.msra.mxu1 %v14651_v9  ;;  %8845 = vmatpush2.bf16.msra.mxu0 %v14907_v10  ;;  %v8607_v60 = vadd.f32 %v8606_v25, %v3375_v42  ;;  %v14318_v9 = vcombine.high %v2426_v59, %v2434_v0  ;;  %v3177_v10 = vld [vmem:[#allocation9 + $0x1a08] sm:$0xff]  ;;  %v14317_v25 = vcombine.low %v2426_v59, %v2434_v0 }
 0x2b8   : > { %v8608_v57 = vpop.f32.mrf.mxu0  ;;  %8805 = vmatprep.subr.bf16.mxu1 %v14636_v11  ;;  %8846 = vmatprep.subr.bf16.mxu0 %v14892_v13  ;;  %v3185_v11 = vld [vmem:[#allocation9 + $0x1a48] sm:$0xff]  ;;  %v15019_v59 = vcombine.low %v3129_v47, %v3137_v48 }
 0x2b9   : > { %v8609_v1 = vadd.f32 %v8608_v57, %v3379_v51  ;;  %v3161_v57 = vld [vmem:[#allocation9 + $0x1988] sm:$0xff]  ;;  %v15067_v28 = vcombine.low %v3177_v10, %v3185_v11  ;;  %v2370_v51 = vld [vmem:[#allocation9 + $0xd0] sm:$0xff] }
 0x2ba   : > { %v8610_v32 = vpop.f32.mrf.mxu0  ;;  %v14253_v0 = vcombine.low %v2362_v50, %v2370_v51 }
 0x2bb   : > { %8806 = vmatpush2.bf16.msra.mxu1 %v14635_v44  ;;  %8847 = vmatpush2.bf16.msra.mxu0 %v14891_v45  ;;  %v15068_v44 = vcombine.high %v3177_v10, %v3185_v11  ;;  %v14302_v45 = vcombine.high %v2410_v18, %v2418_v21  ;;  %v3145_v32 = vld [vmem:[#allocation9 + $0x1908] sm:$0xff] }
 0x2bc   : > { %v8611_v36 = vpop.f32.mrf.mxu0  ;;  %8807 = vmatprep.subr.bf16.mxu1 %v14620_v53  ;;  %8848 = vmatprep.subr.bf16.mxu0 %v14876_v26  ;;  %v3169_v53 = vld [vmem:[#allocation9 + $0x19c8] sm:$0xff]  ;;  %v2394_v26 = vld [vmem:[#allocation9 + $0x190] sm:$0xff] }
 0x2bd   : > { %v15052_v30 = vcombine.high %v3161_v57, %v3169_v53  ;;  %v14286_v31 = vcombine.high %v2394_v26, %v2402_v27  ;;  %v2386_v36 = vld [vmem:[#allocation9 + $0x150] sm:$0xff]  ;;  %v3337_v21 = vld [vmem:[#allocation9 + $0x1f08] sm:$0xff] }
 0x2bf   : > { %8808 = vmatpush2.bf16.msra.mxu1 %v14619_v34  ;;  %8849 = vmatpush2.bf16.msra.mxu0 %v14875_v54  ;;  %v3153_v34 = vld [vmem:[#allocation9 + $0x1948] sm:$0xff]  ;;  %v2378_v54 = vld [vmem:[#allocation9 + $0x110] sm:$0xff] }
 0x2c0   : > { %8859 = vmatprep.subr.bf16.mxu1 %v15116_v37  ;;  %8900 = vmatprep.subr.bf16.mxu0 %v14350_v38  ;;  %v15051_v37 = vcombine.low %v3161_v57, %v3169_v53  ;;  %v14285_v38 = vcombine.low %v2394_v26, %v2402_v27  ;;  %v15036_v42 = vcombine.high %v3145_v32, %v3153_v34  ;;  %v3321_v26 = vld [vmem:[#allocation9 + $0x1e88] sm:$0xff] }
 0x2c1   : > { %v14270_v43 = vcombine.high %v2378_v54, %v2386_v36  ;;  %v3329_v27 = vld [vmem:[#allocation9 + $0x1ec8] sm:$0xff] }
 0x2c2   : > { %8810 = vmatmul.mubr.bf16.vlgmr.msra.gmra.mxu1 %v17334_v46  ;;  %8851 = vmatmul.mubr.bf16.vlgmr.msra.gmra.mxu0 %v17354_v15  ;;  %v8647_v63 = vpop.f32.mrf.mxu1 }
 0x2c3   : > { %v17383_v19 = vadd.f32 %v8647_v63, %v8607_v60  ;;  %8860 = vmatpush1.bf16.msra.mxu1 %v15115_v55  ;;  %8891 = vmatprep.mubr.bf16.mxu1 %v17367_v52  ;;  %v15035_v55 = vcombine.low %v3145_v32, %v3153_v34  ;;  %v15020_v60 = vcombine.high %v3129_v47, %v3137_v48  ;;  %v2354_v63 = vld [vmem:[#allocation9 + $0x50] sm:$0xff] }
 0x2c4   : > { %8901 = vmatpush1.bf16.msra.mxu0 %v14349_v56  ;;  %8932 = vmatprep.mubr.bf16.mxu0 %v17297_v14  ;;  %v8649_v5 = vpop.f32.mrf.mxu1  ;;  %v14269_v56 = vcombine.low %v2378_v54, %v2386_v36  ;;  %v14237_v11 = vcombine.low %v2346_v58, %v2354_v63  ;;  %v15212_v32 = vcombine.high %v3321_v26, %v3329_v27  ;;  %v3305_v54 = vld [vmem:[#allocation9 + $0x1e08] sm:$0xff] }
 0x2c5   : > { %v17387_v8 = vadd.f32 %v8649_v5, %v8609_v1  ;;  %8861 = vmatprep.subr.bf16.mxu1 %v15100_v49  ;;  %8902 = vmatprep.subr.bf16.mxu0 %v14334_v61  ;;  %v14254_v49 = vcombine.high %v2362_v50, %v2370_v51  ;;  %v3113_v61 = vld [vmem:[#allocation9 + $0x1808] sm:$0xff] }
 0x2c6   : > { %v8651_v13 = vpop.f32.mrf.mxu1  ;;  %v15004_v1 = vcombine.high %v3113_v61, %v3121_v62  ;;  %v3353_v5 = vld [vmem:[#allocation9 + $0x1f88] sm:$0xff]  ;;  %v15003_v10 = vcombine.low %v3113_v61, %v3121_v62 }
 0x2c7   : > { %8862 = vmatpush1.bf16.msra.mxu1 %v15099_v4  ;;  %v14238_v4 = vcombine.high %v2346_v58, %v2354_v63  ;;  %v3313_v36 = vld [vmem:[#allocation9 + $0x1e48] sm:$0xff] }
 0x2c8   : > { %8903 = vmatpush1.bf16.msra.mxu0 %v14333_v39  ;;  %v8652_v23 = vpop.f32.mrf.mxu1  ;;  %8863 = vmatprep.subr.bf16.mxu1 %v15084_v6  ;;  %v3361_v39 = vld [vmem:[#allocation9 + $0x1fc8] sm:$0xff]  ;;  %v2586_v6 = vld [vmem:[#allocation9 + $0x790] sm:$0xff]  ;;  %v15196_v47 = vcombine.high %v3305_v54, %v3313_v36 }
 0x2c9   : > { %8904 = vmatprep.subr.bf16.mxu0 %v14318_v9  ;;  %v2594_v9 = vld [vmem:[#allocation9 + $0x7d0] sm:$0xff]  ;;  %v15244_v13 = vcombine.high %v3353_v5, %v3361_v39  ;;  %v3289_v50 = vld [vmem:[#allocation9 + $0x1d88] sm:$0xff] }
 0x2ca   : > { %v14478_v18 = vcombine.high %v2586_v6, %v2594_v9  ;;  %v2570_v23 = vld [vmem:[#allocation9 + $0x710] sm:$0xff]  ;;  %v3297_v51 = vld [vmem:[#allocation9 + $0x1dc8] sm:$0xff] }
 0x2cb   : > { %8864 = vmatpush1.bf16.msra.mxu1 %v15083_v22  ;;  %v3345_v22 = vld [vmem:[#allocation9 + $0x1f48] sm:$0xff]  ;;  %v15180_v61 = vcombine.high %v3289_v50, %v3297_v51 }
 0x2cc   : > { %8905 = vmatpush1.bf16.msra.mxu0 %v14317_v25  ;;  %8865 = vmatprep.subr.bf16.mxu1 %v15068_v44  ;;  %v2578_v25 = vld [vmem:[#allocation9 + $0x750] sm:$0xff]  ;;  %v15243_v44 = vcombine.low %v3353_v5, %v3361_v39  ;;  %v15228_v57 = vcombine.high %v3337_v21, %v3345_v22  ;;  %v3273_v58 = vld [vmem:[#allocation9 + $0x1d08] sm:$0xff] }
 0x2cd   : > { %8906 = vmatprep.subr.bf16.mxu0 %v14302_v45  ;;  %v14477_v45 = vcombine.low %v2586_v6, %v2594_v9  ;;  %v14462_v53 = vcombine.high %v2570_v23, %v2578_v25  ;;  %v3281_v63 = vld [vmem:[#allocation9 + $0x1d48] sm:$0xff] }
 0x2ce   : > { %v15164_v5 = vcombine.high %v3273_v58, %v3281_v63  ;;  %v3257_v6 = vld [vmem:[#allocation9 + $0x1c88] sm:$0xff] }
 0x2cf   : > { %8866 = vmatpush1.bf16.msra.mxu1 %v15067_v28  ;;  %v2554_v28 = vld [vmem:[#allocation9 + $0x690] sm:$0xff]  ;;  %v3265_v9 = vld [vmem:[#allocation9 + $0x1cc8] sm:$0xff] }
 0x2d0   : > { %8907 = vmatpush1.bf16.msra.mxu0 %v14301_v29  ;;  %8867 = vmatprep.subr.bf16.mxu1 %v15052_v30  ;;  %v2562_v29 = vld [vmem:[#allocation9 + $0x6d0] sm:$0xff]  ;;  %v15227_v30 = vcombine.low %v3337_v21, %v3345_v22  ;;  %v15148_v21 = vcombine.high %v3257_v6, %v3265_v9 }
 0x2d1   : > { %8908 = vmatprep.subr.bf16.mxu0 %v14286_v31  ;;  %v14461_v31 = vcombine.low %v2570_v23, %v2578_v25  ;;  %v14446_v34 = vcombine.high %v2554_v28, %v2562_v29  ;;  %v3241_v23 = vld [vmem:[#allocation9 + $0x1c08] sm:$0xff] }
 0x2d2   : > { %v3249_v25 = vld [vmem:[#allocation9 + $0x1c48] sm:$0xff] }
 0x2d3   : > { %8868 = vmatpush1.bf16.msra.mxu1 %v15051_v37  ;;  %v2538_v37 = vld [vmem:[#allocation9 + $0x610] sm:$0xff] }
 0x2d4   : > { %8909 = vmatpush1.bf16.msra.mxu0 %v14285_v38  ;;  %8869 = vmatprep.subr.bf16.mxu1 %v15036_v42  ;;  %v2546_v38 = vld [vmem:[#allocation9 + $0x650] sm:$0xff]  ;;  %v15211_v42 = vcombine.low %v3321_v26, %v3329_v27  ;;  %v15132_v26 = vcombine.high %v3241_v23, %v3249_v25 }
 0x2d5   : > { %8910 = vmatprep.subr.bf16.mxu0 %v14270_v43  ;;  %v14445_v43 = vcombine.low %v2554_v28, %v2562_v29  ;;  %v14430_v48 = vcombine.high %v2538_v37, %v2546_v38  ;;  %v2714_v28 = vld [vmem:[#allocation9 + $0xb90] sm:$0xff] }
 0x2d6   : > { %v2722_v29 = vld [vmem:[#allocation9 + $0xbd0] sm:$0xff] }
 0x2d7   : > { %8870 = vmatpush1.bf16.msra.mxu1 %v15035_v55  ;;  %v2522_v55 = vld [vmem:[#allocation9 + $0x590] sm:$0xff] }
 0x2d8   : > { %8911 = vmatpush1.bf16.msra.mxu0 %v14269_v56  ;;  %8871 = vmatprep.subr.bf16.mxu1 %v15020_v60  ;;  %v2530_v56 = vld [vmem:[#allocation9 + $0x5d0] sm:$0xff]  ;;  %v15195_v60 = vcombine.low %v3305_v54, %v3313_v36  ;;  %v14606_v54 = vcombine.high %v2714_v28, %v2722_v29 }
 0x2d9   : > { %8912 = vmatprep.subr.bf16.mxu0 %v14254_v49  ;;  %v14429_v49 = vcombine.low %v2538_v37, %v2546_v38  ;;  %v14414_v62 = vcombine.high %v2522_v55, %v2530_v56  ;;  %v2698_v37 = vld [vmem:[#allocation9 + $0xb10] sm:$0xff] }
 0x2da   : > { %v2706_v38 = vld [vmem:[#allocation9 + $0xb50] sm:$0xff] }
 0x2db   : > { %8872 = vmatpush1.bf16.msra.mxu1 %v15019_v59  ;;  %v2506_v59 = vld [vmem:[#allocation9 + $0x510] sm:$0xff] }
 0x2dc   : > { %8913 = vmatpush1.bf16.msra.mxu0 %v14253_v0  ;;  %8873 = vmatprep.subr.bf16.mxu1 %v15004_v1  ;;  %v2514_v0 = vld [vmem:[#allocation9 + $0x550] sm:$0xff]  ;;  %v15179_v1 = vcombine.low %v3289_v50, %v3297_v51  ;;  %v14590_v50 = vcombine.high %v2698_v37, %v2706_v38 }
 0x2dd   : > { %8914 = vmatprep.subr.bf16.mxu0 %v14238_v4  ;;  %v14413_v4 = vcombine.low %v2522_v55, %v2530_v56  ;;  %v14398_v39 = vcombine.high %v2506_v59, %v2514_v0  ;;  %v2682_v51 = vld [vmem:[#allocation9 + $0xa90] sm:$0xff] }
 0x2de   : > { %v2690_v55 = vld [vmem:[#allocation9 + $0xad0] sm:$0xff] }
 0x2df   : > { %8874 = vmatpush1.bf16.msra.mxu1 %v15003_v10  ;;  %v2490_v10 = vld [vmem:[#allocation9 + $0x490] sm:$0xff] }
 0x2e0   : > { %8915 = vmatpush1.bf16.msra.mxu0 %v14237_v11  ;;  %8875 = vmatprep.subr.bf16.mxu1 %v15244_v13  ;;  %v2498_v11 = vld [vmem:[#allocation9 + $0x4d0] sm:$0xff]  ;;  %v15163_v13 = vcombine.low %v3273_v58, %v3281_v63  ;;  %v14589_v58 = vcombine.low %v2698_v37, %v2706_v38 }
 0x2e1   : > { %8916 = vmatprep.subr.bf16.mxu0 %v14478_v18  ;;  %v14397_v18 = vcombine.low %v2506_v59, %v2514_v0  ;;  %v14382_v22 = vcombine.high %v2490_v10, %v2498_v11  ;;  %v14574_v0 = vcombine.high %v2682_v51, %v2690_v55  ;;  %v2874_v37 = vld [vmem:[#allocation9 + $0x1090] sm:$0xff] }
 0x2e2   : > { %v2882_v38 = vld [vmem:[#allocation9 + $0x10d0] sm:$0xff] }
 0x2e3   : > { %8876 = vmatpush2.bf16.msra.mxu1 %v15243_v44  ;;  %v2474_v44 = vld [vmem:[#allocation9 + $0x410] sm:$0xff] }
 0x2e4   : > { %8917 = vmatpush2.bf16.msra.mxu0 %v14477_v45  ;;  %8877 = vmatprep.subr.bf16.mxu1 %v15228_v57  ;;  %v2482_v45 = vld [vmem:[#allocation9 + $0x450] sm:$0xff]  ;;  %v15147_v57 = vcombine.low %v3257_v6, %v3265_v9  ;;  %v14573_v9 = vcombine.low %v2682_v51, %v2690_v55 }
 0x2e5   : > { %8918 = vmatprep.subr.bf16.mxu0 %v14462_v53  ;;  %v14381_v53 = vcombine.low %v2490_v10, %v2498_v11  ;;  %v14366_v27 = vcombine.high %v2474_v44, %v2482_v45  ;;  %v2922_v6 = vld [vmem:[#allocation9 + $0x1210] sm:$0xff] }
 0x2e6   : > { %v2610_v51 = vld [vmem:[#allocation9 + $0x850] sm:$0xff] }
 0x2e7   : > { %8878 = vmatpush2.bf16.msra.mxu1 %v15227_v30  ;;  %v2970_v30 = vld [vmem:[#allocation9 + $0x1390] sm:$0xff] }
 0x2e8   : > { %8919 = vmatpush2.bf16.msra.mxu0 %v14461_v31  ;;  %8879 = vmatprep.subr.bf16.mxu1 %v15212_v32  ;;  %v2978_v31 = vld [vmem:[#allocation9 + $0x13d0] sm:$0xff]  ;;  %v15131_v32 = vcombine.low %v3241_v23, %v3249_v25 }
 0x2e9   : > { %8920 = vmatprep.subr.bf16.mxu0 %v14446_v34  ;;  %v14365_v34 = vcombine.low %v2474_v44, %v2482_v45  ;;  %v14862_v36 = vcombine.high %v2970_v30, %v2978_v31  ;;  %v2906_v23 = vld [vmem:[#allocation9 + $0x1190] sm:$0xff] }
 0x2ea   : > { %v2914_v25 = vld [vmem:[#allocation9 + $0x11d0] sm:$0xff] }
 0x2eb   : > { %8880 = vmatpush2.bf16.msra.mxu1 %v15211_v42  ;;  %v14605_v42 = vcombine.low %v2714_v28, %v2722_v29  ;;  %v2890_v28 = vld [vmem:[#allocation9 + $0x1110] sm:$0xff] }
 0x2ec   : > { %8921 = vmatpush2.bf16.msra.mxu0 %v14445_v43  ;;  %8881 = vmatprep.subr.bf16.mxu1 %v15196_v47  ;;  %v2954_v43 = vld [vmem:[#allocation9 + $0x1310] sm:$0xff] }
 0x2ed   : > { %8922 = vmatprep.subr.bf16.mxu0 %v14430_v48  ;;  %v2962_v47 = vld [vmem:[#allocation9 + $0x1350] sm:$0xff]  ;;  %v14861_v48 = vcombine.low %v2970_v30, %v2978_v31  ;;  %v14797_v31 = vcombine.low %v2906_v23, %v2914_v25 }
 0x2ee   : > { %v14845_v59 = vcombine.low %v2954_v43, %v2962_v47  ;;  %v2898_v29 = vld [vmem:[#allocation9 + $0x1150] sm:$0xff] }
 0x2ef   : > { %8882 = vmatpush2.bf16.msra.mxu1 %v15195_v60  ;;  %v14846_v60 = vcombine.high %v2954_v43, %v2962_v47  ;;  %v14781_v43 = vcombine.low %v2890_v28, %v2898_v29  ;;  %v2858_v55 = vld [vmem:[#allocation9 + $0x1010] sm:$0xff] }
 0x2f0   : > { %8923 = vmatpush2.bf16.msra.mxu0 %v14429_v49  ;;  %8883 = vmatprep.subr.bf16.mxu1 %v15180_v61  ;;  %v2938_v49 = vld [vmem:[#allocation9 + $0x1290] sm:$0xff] }
 0x2f1   : > { %8924 = vmatprep.subr.bf16.mxu0 %v14414_v62  ;;  %v2946_v61 = vld [vmem:[#allocation9 + $0x12d0] sm:$0xff] }
 0x2f2   : > { %v14829_v11 = vcombine.low %v2938_v49, %v2946_v61 }
 0x2f3   : > { %8884 = vmatpush2.bf16.msra.mxu1 %v15179_v1  ;;  %v14830_v1 = vcombine.high %v2938_v49, %v2946_v61  ;;  %v14765_v49 = vcombine.low %v2874_v37, %v2882_v38 }
 0x2f4   : > { %8925 = vmatpush2.bf16.msra.mxu0 %v14413_v4  ;;  %8885 = vmatprep.subr.bf16.mxu1 %v15164_v5  ;;  %v2666_v4 = vld [vmem:[#allocation9 + $0xa10] sm:$0xff] }
 0x2f5   : > { %8926 = vmatprep.subr.bf16.mxu0 %v14398_v39  ;;  %v2674_v5 = vld [vmem:[#allocation9 + $0xa50] sm:$0xff] }
 0x2f6   : > { %v14557_v44 = vcombine.low %v2666_v4, %v2674_v5 }
 0x2f7   : > { %8886 = vmatpush2.bf16.msra.mxu1 %v15163_v13  ;;  %v14558_v13 = vcombine.high %v2666_v4, %v2674_v5  ;;  %v3106_v4 = vld [vmem:[#allocation9 + $0x17d0] sm:$0xff] }
 0x2f8   : > { %8927 = vmatpush2.bf16.msra.mxu0 %v14397_v18  ;;  %8887 = vmatprep.subr.bf16.mxu1 %v15148_v21  ;;  %v2650_v21 = vld [vmem:[#allocation9 + $0x990] sm:$0xff] }
 0x2f9   : > { %8928 = vmatprep.subr.bf16.mxu0 %v14382_v22  ;;  %v2658_v22 = vld [vmem:[#allocation9 + $0x9d0] sm:$0xff] }
 0x2fa   : > { %v14541_v30 = vcombine.low %v2650_v21, %v2658_v22 }
 0x2fb   : > { %8888 = vmatpush2.bf16.msra.mxu1 %v15147_v57  ;;  %v14542_v57 = vcombine.high %v2650_v21, %v2658_v22 }
 0x2fc   : > { %8929 = vmatpush2.bf16.msra.mxu0 %v14381_v53  ;;  %8889 = vmatprep.subr.bf16.mxu1 %v15132_v26  ;;  %v14798_v53 = vcombine.high %v2906_v23, %v2914_v25  ;;  %v2634_v26 = vld [vmem:[#allocation9 + $0x910] sm:$0xff] }
 0x2fd   : > { %8930 = vmatprep.subr.bf16.mxu0 %v14366_v27  ;;  %v2642_v27 = vld [vmem:[#allocation9 + $0x950] sm:$0xff] }
 0x2fe   : > { %v2810_v25 = vld [vmem:[#allocation9 + $0xe90] sm:$0xff] }
 0x2ff   : > { %8890 = vmatpush2.bf16.msra.mxu1 %v15131_v32  ;;  %v14526_v32 = vcombine.high %v2634_v26, %v2642_v27 }
 0x300   : > { %8931 = vmatpush2.bf16.msra.mxu0 %v14365_v34  ;;  %8941 = vmatprep.subr.bf16.mxu1 %v14606_v54  ;;  %v14782_v34 = vcombine.high %v2890_v28, %v2898_v29  ;;  %v2618_v54 = vld [vmem:[#allocation9 + $0x890] sm:$0xff] }
 0x301   : > { %8982 = vmatprep.subr.bf16.mxu0 %v14862_v36  ;;  %v2626_v36 = vld [vmem:[#allocation9 + $0x8d0] sm:$0xff] }
 0x302   : > { %8892 = vmatmul.mubr.bf16.vlgmr.msra.gmra.mxu1 %v17369_v3  ;;  %v8688_v56 = vpop.f32.mrf.mxu0  ;;  %v14510_v47 = vcombine.high %v2618_v54, %v2626_v36  ;;  %v2794_v29 = vld [vmem:[#allocation9 + $0xe10] sm:$0xff] }
 0x303   : > { %8933 = vmatmul.mubr.bf16.vlgmr.msra.gmra.mxu0 %v17321_v7  ;;  %v17392_v62 = vadd.f32 %v8688_v56, %v17383_v19  ;;  %8942 = vmatpush1.bf16.msra.mxu1 %v14605_v42  ;;  %v2930_v19 = vld [vmem:[#allocation9 + $0x1250] sm:$0xff]  ;;  %v14525_v42 = vcombine.low %v2634_v26, %v2642_v27 }
 0x304   : > { %8973 = vmatprep.mubr.bf16.mxu1 %v17326_v41  ;;  %8983 = vmatpush1.bf16.msra.mxu0 %v14861_v48  ;;  %v17395_v63 = vpop.f32.mrf.mxu0  ;;  %v14814_v18 = vcombine.high %v2922_v6, %v2930_v19  ;;  %v14813_v45 = vcombine.low %v2922_v6, %v2930_v19  ;;  %v14766_v48 = vcombine.high %v2874_v37, %v2882_v38  ;;  %v2866_v56 = vld [vmem:[#allocation9 + $0x1050] sm:$0xff] }
 0x305   : > { %9014 = vmatprep.mubr.bf16.mxu0 %v17352_v12  ;;  %8943 = vmatprep.subr.bf16.mxu1 %v14590_v50  ;;  %v2602_v50 = vld [vmem:[#allocation9 + $0x810] sm:$0xff] }
 0x306   : > { %8984 = vmatprep.subr.bf16.mxu0 %v14846_v60  ;;  %v8692_v39 = vpop.f32.mrf.mxu0  ;;  %v14509_v60 = vcombine.low %v2618_v54, %v2626_v36  ;;  %v14494_v61 = vcombine.high %v2602_v50, %v2610_v51  ;;  %v14493_v5 = vcombine.low %v2602_v50, %v2610_v51  ;;  %v2778_v38 = vld [vmem:[#allocation9 + $0xd90] sm:$0xff] }
 0x307   : > { %8944 = vmatpush1.bf16.msra.mxu1 %v14589_v58  ;;  %v14750_v58 = vcombine.high %v2858_v55, %v2866_v56  ;;  %v14749_v39 = vcombine.low %v2858_v55, %v2866_v56  ;;  %v2762_v56 = vld [vmem:[#allocation9 + $0xd10] sm:$0xff] }
 0x308   : > { %8985 = vmatpush1.bf16.msra.mxu0 %v14845_v59  ;;  %v8693_v10 = vpop.f32.mrf.mxu0  ;;  %8945 = vmatprep.subr.bf16.mxu1 %v14574_v0  ;;  %v2842_v59 = vld [vmem:[#allocation9 + $0xf90] sm:$0xff] }
 0x309   : > { %8986 = vmatprep.subr.bf16.mxu0 %v14830_v1  ;;  %v2850_v0 = vld [vmem:[#allocation9 + $0xfd0] sm:$0xff] }
 0x30a   : > { %v3098_v1 = vld [vmem:[#allocation9 + $0x1790] sm:$0xff]  ;;  %v14734_v6 = vcombine.high %v2842_v59, %v2850_v0 }
 0x30b   : > { %8946 = vmatpush1.bf16.msra.mxu1 %v14573_v9  ;;  %v14990_v19 = vcombine.high %v3098_v1, %v3106_v4  ;;  %v2826_v9 = vld [vmem:[#allocation9 + $0xf10] sm:$0xff]  ;;  %v14989_v21 = vcombine.low %v3098_v1, %v3106_v4 }
 0x30c   : > { %8987 = vmatpush1.bf16.msra.mxu0 %v14829_v11  ;;  %8947 = vmatprep.subr.bf16.mxu1 %v14558_v13  ;;  %v2834_v10 = vld [vmem:[#allocation9 + $0xf50] sm:$0xff] }
 0x30d   : > { %8988 = vmatprep.subr.bf16.mxu0 %v14814_v18  ;;  %v3082_v11 = vld [vmem:[#allocation9 + $0x1710] sm:$0xff]  ;;  %v14733_v18 = vcombine.low %v2842_v59, %v2850_v0  ;;  %v14718_v22 = vcombine.high %v2826_v9, %v2834_v10 }
 0x30e   : > { %v3090_v13 = vld [vmem:[#allocation9 + $0x1750] sm:$0xff] }
 0x30f   : > { %8948 = vmatpush1.bf16.msra.mxu1 %v14557_v44  ;;  %v14974_v23 = vcombine.high %v3082_v11, %v3090_v13  ;;  %v2818_v44 = vld [vmem:[#allocation9 + $0xed0] sm:$0xff]  ;;  %v14973_v26 = vcombine.low %v3082_v11, %v3090_v13 }
 0x310   : > { %8989 = vmatpush1.bf16.msra.mxu0 %v14813_v45  ;;  %8949 = vmatprep.subr.bf16.mxu1 %v14542_v57  ;;  %v3066_v45 = vld [vmem:[#allocation9 + $0x1690] sm:$0xff]  ;;  %v14702_v27 = vcombine.high %v2810_v25, %v2818_v44 }
 0x311   : > { %8990 = vmatprep.subr.bf16.mxu0 %v14798_v53  ;;  %v3074_v57 = vld [vmem:[#allocation9 + $0x16d0] sm:$0xff]  ;;  %v14717_v53 = vcombine.low %v2826_v9, %v2834_v10 }
 0x312   : > { %v14958_v28 = vcombine.high %v3066_v45, %v3074_v57  ;;  %v14957_v54 = vcombine.low %v3066_v45, %v3074_v57  ;;  %v2746_v4 = vld [vmem:[#allocation9 + $0xc90] sm:$0xff] }
 0x313   : > { %8950 = vmatpush1.bf16.msra.mxu1 %v14541_v30  ;;  %v2802_v30 = vld [vmem:[#allocation9 + $0xe50] sm:$0xff] }
 0x314   : > { %8991 = vmatpush1.bf16.msra.mxu0 %v14797_v31  ;;  %8951 = vmatprep.subr.bf16.mxu1 %v14526_v32  ;;  %v3050_v31 = vld [vmem:[#allocation9 + $0x1610] sm:$0xff]  ;;  %v14686_v36 = vcombine.high %v2794_v29, %v2802_v30 }
 0x315   : > { %8992 = vmatprep.subr.bf16.mxu0 %v14782_v34  ;;  %v3058_v32 = vld [vmem:[#allocation9 + $0x1650] sm:$0xff]  ;;  %v14701_v34 = vcombine.low %v2810_v25, %v2818_v44 }
 0x316   : > { %v14942_v37 = vcombine.high %v3050_v31, %v3058_v32  ;;  %v14941_v50 = vcombine.low %v3050_v31, %v3058_v32  ;;  %v2730_v13 = vld [vmem:[#allocation9 + $0xc10] sm:$0xff] }
 0x317   : > { %8952 = vmatpush1.bf16.msra.mxu1 %v14525_v42  ;;  %v2786_v42 = vld [vmem:[#allocation9 + $0xdd0] sm:$0xff] }
 0x318   : > { %8993 = vmatpush1.bf16.msra.mxu0 %v14781_v43  ;;  %8953 = vmatprep.subr.bf16.mxu1 %v14510_v47  ;;  %v3034_v43 = vld [vmem:[#allocation9 + $0x1590] sm:$0xff]  ;;  %v14670_v51 = vcombine.high %v2778_v38, %v2786_v42 }
 0x319   : > { %8994 = vmatprep.subr.bf16.mxu0 %v14766_v48  ;;  %v3042_v47 = vld [vmem:[#allocation9 + $0x15d0] sm:$0xff]  ;;  %v14685_v48 = vcombine.low %v2794_v29, %v2802_v30 }
 0x31a   : > { %v14926_v55 = vcombine.high %v3034_v43, %v3042_v47  ;;  %v14925_v59 = vcombine.low %v3034_v43, %v3042_v47  ;;  %v3226_v57 = vld [vmem:[#allocation9 + $0x1b90] sm:$0xff] }
 0x31b   : > { %8954 = vmatpush1.bf16.msra.mxu1 %v14509_v60  ;;  %v2770_v60 = vld [vmem:[#allocation9 + $0xd50] sm:$0xff] }
 0x31c   : > { %8995 = vmatpush1.bf16.msra.mxu0 %v14765_v49  ;;  %8955 = vmatprep.subr.bf16.mxu1 %v14494_v61  ;;  %v3018_v49 = vld [vmem:[#allocation9 + $0x1510] sm:$0xff]  ;;  %v14654_v0 = vcombine.high %v2762_v56, %v2770_v60 }
 0x31d   : > { %8996 = vmatprep.subr.bf16.mxu0 %v14750_v58  ;;  %v3026_v61 = vld [vmem:[#allocation9 + $0x1550] sm:$0xff]  ;;  %v14669_v58 = vcombine.low %v2778_v38, %v2786_v42 }
 0x31e   : > { %v14910_v1 = vcombine.high %v3018_v49, %v3026_v61  ;;  %v14909_v9 = vcombine.low %v3018_v49, %v3026_v61  ;;  %v3210_v32 = vld [vmem:[#allocation9 + $0x1b10] sm:$0xff] }
 0x31f   : > { %8956 = vmatpush1.bf16.msra.mxu1 %v14493_v5  ;;  %v2754_v5 = vld [vmem:[#allocation9 + $0xcd0] sm:$0xff] }
 0x320   : > { %8997 = vmatpush1.bf16.msra.mxu0 %v14749_v39  ;;  %8957 = vmatprep.subr.bf16.mxu1 %v14734_v6  ;;  %v3002_v39 = vld [vmem:[#allocation9 + $0x1490] sm:$0xff]  ;;  %v14638_v10 = vcombine.high %v2746_v4, %v2754_v5 }
 0x321   : > { %8998 = vmatprep.subr.bf16.mxu0 %v14990_v19  ;;  %v3010_v6 = vld [vmem:[#allocation9 + $0x14d0] sm:$0xff]  ;;  %v14653_v19 = vcombine.low %v2762_v56, %v2770_v60  ;;  %v2435_v56 = vld [vmem:[#allocation9 + $0x2d8] sm:$0xff]  ;;  %v8691_v60 = vadd.f32 %v17395_v63, %v17387_v8 }
 0x322   : > { %v14894_v11 = vcombine.high %v3002_v39, %v3010_v6  ;;  %v14893_v25 = vcombine.low %v3002_v39, %v3010_v6  ;;  %v3194_v43 = vld [vmem:[#allocation9 + $0x1a90] sm:$0xff]  ;;  %v2411_v6 = vld [vmem:[#allocation9 + $0x218] sm:$0xff] }
 0x323   : > { %8958 = vmatpush2.bf16.msra.mxu1 %v14733_v18  ;;  %v2738_v18 = vld [vmem:[#allocation9 + $0xc50] sm:$0xff] }
 0x324   : > { %8999 = vmatpush2.bf16.msra.mxu0 %v14989_v21  ;;  %8959 = vmatprep.subr.bf16.mxu1 %v14718_v22  ;;  %v2986_v21 = vld [vmem:[#allocation9 + $0x1410] sm:$0xff]  ;;  %v14622_v44 = vcombine.high %v2730_v13, %v2738_v18 }
 0x325   : > { %9000 = vmatprep.subr.bf16.mxu0 %v14974_v23  ;;  %v2994_v22 = vld [vmem:[#allocation9 + $0x1450] sm:$0xff]  ;;  %v14637_v23 = vcombine.low %v2746_v4, %v2754_v5 }
 0x326   : > { %v14878_v45 = vcombine.high %v2986_v21, %v2994_v22  ;;  %v14877_v29 = vcombine.low %v2986_v21, %v2994_v22  ;;  %v3202_v47 = vld [vmem:[#allocation9 + $0x1ad0] sm:$0xff] }
 0x327   : > { %8960 = vmatpush2.bf16.msra.mxu1 %v14717_v53  ;;  %v3234_v53 = vld [vmem:[#allocation9 + $0x1bd0] sm:$0xff] }
 0x328   : > { %9001 = vmatpush2.bf16.msra.mxu0 %v14973_v26  ;;  %8961 = vmatprep.subr.bf16.mxu1 %v14702_v27  ;;  %v2459_v26 = vld [vmem:[#allocation9 + $0x398] sm:$0xff]  ;;  %v15118_v30 = vcombine.high %v3226_v57, %v3234_v53  ;;  %v3178_v8 = vld [vmem:[#allocation9 + $0x1a10] sm:$0xff] }
 0x329   : > { %9002 = vmatprep.subr.bf16.mxu0 %v14958_v28  ;;  %v2467_v27 = vld [vmem:[#allocation9 + $0x3d8] sm:$0xff]  ;;  %v14621_v28 = vcombine.low %v2730_v13, %v2738_v18  ;;  %v3186_v63 = vld [vmem:[#allocation9 + $0x1a50] sm:$0xff] }
 0x32a   : > { %v14352_v31 = vcombine.high %v2459_v26, %v2467_v27  ;;  %v14351_v38 = vcombine.low %v2459_v26, %v2467_v27  ;;  %v15070_v22 = vcombine.high %v3178_v8, %v3186_v63  ;;  %v15069_v26 = vcombine.low %v3178_v8, %v3186_v63  ;;  %v3354_v63 = vld [vmem:[#allocation9 + $0x1f90] sm:$0xff] }
 0x32b   : > { %8962 = vmatpush2.bf16.msra.mxu1 %v14701_v34  ;;  %v3218_v34 = vld [vmem:[#allocation9 + $0x1b50] sm:$0xff] }
 0x32c   : > { %9003 = vmatpush2.bf16.msra.mxu0 %v14957_v54  ;;  %8963 = vmatprep.subr.bf16.mxu1 %v14686_v36  ;;  %v15117_v54 = vcombine.low %v3226_v57, %v3234_v53  ;;  %v2443_v36 = vld [vmem:[#allocation9 + $0x318] sm:$0xff]  ;;  %v15102_v42 = vcombine.high %v3210_v32, %v3218_v34  ;;  %v15101_v61 = vcombine.low %v3210_v32, %v3218_v34 }
 0x32d   : > { %9004 = vmatprep.subr.bf16.mxu0 %v14942_v37  ;;  %v2451_v37 = vld [vmem:[#allocation9 + $0x358] sm:$0xff] }
 0x32e   : > { %v2395_v57 = vld [vmem:[#allocation9 + $0x198] sm:$0xff] }
 0x32f   : > { %8964 = vmatpush2.bf16.msra.mxu1 %v14685_v48  ;;  %v2403_v53 = vld [vmem:[#allocation9 + $0x1d8] sm:$0xff] }
 0x330   : > { %9005 = vmatpush2.bf16.msra.mxu0 %v14941_v50  ;;  %8965 = vmatprep.subr.bf16.mxu1 %v14670_v51  ;;  %v14336_v51 = vcombine.high %v2443_v36, %v2451_v37  ;;  %v2379_v32 = vld [vmem:[#allocation9 + $0x118] sm:$0xff] }
 0x331   : > { %9006 = vmatprep.subr.bf16.mxu0 %v14926_v55  ;;  %v2427_v55 = vld [vmem:[#allocation9 + $0x298] sm:$0xff] }
 0x332   : > { %v14320_v5 = vcombine.high %v2427_v55, %v2435_v56  ;;  %v14319_v21 = vcombine.low %v2427_v55, %v2435_v56  ;;  %v2387_v34 = vld [vmem:[#allocation9 + $0x158] sm:$0xff] }
 0x333   : > { %8966 = vmatpush2.bf16.msra.mxu1 %v14669_v58  ;;  %v14271_v55 = vcombine.low %v2379_v32, %v2387_v34 }
 0x334   : > { %9007 = vmatpush2.bf16.msra.mxu0 %v14925_v59  ;;  %8967 = vmatprep.subr.bf16.mxu1 %v14654_v0  ;;  %v14335_v0 = vcombine.low %v2443_v36, %v2451_v37  ;;  %v14287_v36 = vcombine.low %v2395_v57, %v2403_v53 }
 0x335   : > { %9008 = vmatprep.subr.bf16.mxu0 %v14910_v1  ;;  %v15086_v1 = vcombine.high %v3194_v43, %v3202_v47 }
 0x337   : > { %8968 = vmatpush2.bf16.msra.mxu1 %v14653_v19  ;;  %v2419_v19 = vld [vmem:[#allocation9 + $0x258] sm:$0xff] }
 0x338   : > { %9009 = vmatpush2.bf16.msra.mxu0 %v14909_v9  ;;  %8969 = vmatprep.subr.bf16.mxu1 %v14638_v10  ;;  %v14303_v27 = vcombine.low %v2411_v6, %v2419_v19 }
 0x339   : > { %9010 = vmatprep.subr.bf16.mxu0 %v14894_v11  ;;  %v15085_v11 = vcombine.low %v3194_v43, %v3202_v47  ;;  %v3138_v43 = vld [vmem:[#allocation9 + $0x18d0] sm:$0xff]  ;;  %v2363_v47 = vld [vmem:[#allocation9 + $0x98] sm:$0xff] }
 0x33b   : > { %8970 = vmatpush2.bf16.msra.mxu1 %v14637_v23 }
 0x33c   : > { %9011 = vmatpush2.bf16.msra.mxu0 %v14893_v25  ;;  %8971 = vmatprep.subr.bf16.mxu1 %v14622_v44  ;;  %v14304_v25 = vcombine.high %v2411_v6, %v2419_v19  ;;  %v3162_v44 = vld [vmem:[#allocation9 + $0x1990] sm:$0xff]  ;;  %v2595_v6 = vld [vmem:[#allocation9 + $0x7d8] sm:$0xff] }
 0x33d   : > { %9012 = vmatprep.subr.bf16.mxu0 %v14878_v45  ;;  %v3170_v45 = vld [vmem:[#allocation9 + $0x19d0] sm:$0xff] }
 0x33f   : > { %8972 = vmatpush2.bf16.msra.mxu1 %v14621_v28  ;;  %v15054_v28 = vcombine.high %v3162_v44, %v3170_v45 }
 0x340   : > { %9013 = vmatpush2.bf16.msra.mxu0 %v14877_v29  ;;  %9023 = vmatprep.subr.bf16.mxu1 %v15118_v30  ;;  %v14288_v29 = vcombine.high %v2395_v57, %v2403_v53  ;;  %v3146_v30 = vld [vmem:[#allocation9 + $0x1910] sm:$0xff] }
 0x341   : > { %9064 = vmatprep.subr.bf16.mxu0 %v14352_v31  ;;  %v3154_v31 = vld [vmem:[#allocation9 + $0x1950] sm:$0xff] }
 0x342   : > { %v17398_v48 = vpop.f32.mrf.mxu0  ;;  %8974 = vmatmul.mubr.bf16.vlgmr.msra.gmra.mxu1 %v17334_v46  ;;  %v8729_v50 = vpop.f32.mrf.mxu1  ;;  %v15038_v37 = vcombine.high %v3146_v30, %v3154_v31  ;;  %v3322_v57 = vld [vmem:[#allocation9 + $0x1e90] sm:$0xff] }
 0x343   : > { %9015 = vmatmul.mubr.bf16.vlgmr.msra.gmra.mxu0 %v17354_v15  ;;  %v8730_v49 = vadd.f32 %v8729_v50, %v17392_v62  ;;  %9024 = vmatpush1.bf16.msra.mxu1 %v15117_v54  ;;  %v15053_v54 = vcombine.low %v3162_v44, %v3170_v45  ;;  %v2371_v50 = vld [vmem:[#allocation9 + $0xd8] sm:$0xff]  ;;  %v3330_v53 = vld [vmem:[#allocation9 + $0x1ed0] sm:$0xff] }
 0x344   : > { %9055 = vmatprep.mubr.bf16.mxu1 %v17367_v52  ;;  %9065 = vmatpush1.bf16.msra.mxu0 %v14351_v38  ;;  %v17406_v58 = vpop.f32.mrf.mxu0  ;;  %v8731_v59 = vpop.f32.mrf.mxu1  ;;  %v14272_v38 = vcombine.high %v2379_v32, %v2387_v34  ;;  %v3306_v32 = vld [vmem:[#allocation9 + $0x1e10] sm:$0xff] }
 0x345   : > { %9096 = vmatprep.mubr.bf16.mxu0 %v17297_v14  ;;  %v8732_v4 = vadd.f32 %v8731_v59, %v8691_v60  ;;  %9025 = vmatprep.subr.bf16.mxu1 %v15102_v42  ;;  %v9884_v9 = vmax.f32 %v8730_v49, 0.0  ;;  %v3130_v42 = vld [vmem:[#allocation9 + $0x1890] sm:$0xff]  ;;  %v14256_v60 = vcombine.high %v2363_v47, %v2371_v50  ;;  %v2347_v59 = vld [vmem:[#allocation9 + $0x18] sm:$0xff] }
 0x346   : > { %v8774_v39 = vpop.f32.mrf.mxu0  ;;  %9066 = vmatprep.subr.bf16.mxu0 %v14336_v51  ;;  %v8733_v62 = vpop.f32.mrf.mxu1  ;;  %v15037_v51 = vcombine.low %v3146_v30, %v3154_v31  ;;  %v15022_v56 = vcombine.high %v3130_v42, %v3138_v43  ;;  %v3114_v49 = vld [vmem:[#allocation9 + $0x1810] sm:$0xff]  ;;  %v15214_v30 = vcombine.high %v3322_v57, %v3330_v53 }
 0x347   : > { %v9885_v10 = vmax.f32 %v8732_v4, 0.0  ;;  %9026 = vmatpush1.bf16.msra.mxu1 %v15101_v61  ;;  %v3122_v61 = vld [vmem:[#allocation9 + $0x1850] sm:$0xff]  ;;  %v14255_v4 = vcombine.low %v2363_v47, %v2371_v50  ;;  %v2587_v62 = vld [vmem:[#allocation9 + $0x798] sm:$0xff] }
 0x348   : > { %9067 = vmatpush1.bf16.msra.mxu0 %v14335_v0  ;;  %v8775_v13 = vpop.f32.mrf.mxu0  ;;  %v8734_v18 = vpop.f32.mrf.mxu1  ;;  %9027 = vmatprep.subr.bf16.mxu1 %v15086_v1  ;;  %v2355_v0 = vld [vmem:[#allocation9 + $0x58] sm:$0xff]  ;;  %v15021_v1 = vcombine.low %v3130_v42, %v3138_v43  ;;  %v3362_v39 = vld [vmem:[#allocation9 + $0x1fd0] sm:$0xff]  ;;  %v15005_v19 = vcombine.low %v3114_v49, %v3122_v61 }
 0x349   : > { %v15800_v23 = vpack.c.bf16 %v9885_v10, %v9884_v9  ;;  %9068 = vmatprep.subr.bf16.mxu0 %v14320_v5  ;;  %v15006_v5 = vcombine.high %v3114_v49, %v3122_v61  ;;  %v14240_v8 = vcombine.high %v2347_v59, %v2355_v0  ;;  %v14239_v9 = vcombine.low %v2347_v59, %v2355_v0  ;;  %v3338_v13 = vld [vmem:[#allocation9 + $0x1f10] sm:$0xff] }
 0x34a   : > { %v15246_v10 = vcombine.high %v3354_v63, %v3362_v39  ;;  %v3346_v18 = vld [vmem:[#allocation9 + $0x1f50] sm:$0xff] }
 0x34b   : > { %9964 = vst [vmem:[#allocation2 + $0x30] sm:$0xff] %v15800_v23  ;;  %9028 = vmatpush1.bf16.msra.mxu1 %v15085_v11  ;;  %v14480_v11 = vcombine.high %v2587_v62, %v2595_v6  ;;  %v15245_v23 = vcombine.low %v3354_v63, %v3362_v39  ;;  %v15230_v44 = vcombine.high %v3338_v13, %v3346_v18  ;;  %v3314_v34 = vld [vmem:[#allocation9 + $0x1e50] sm:$0xff] }
 0x34c   : > { %9069 = vmatpush1.bf16.msra.mxu0 %v14319_v21  ;;  %9029 = vmatprep.subr.bf16.mxu1 %v15070_v22  ;;  %v2571_v21 = vld [vmem:[#allocation9 + $0x718] sm:$0xff]  ;;  %v15198_v42 = vcombine.high %v3306_v32, %v3314_v34  ;;  %v3290_v47 = vld [vmem:[#allocation9 + $0x1d90] sm:$0xff] }
 0x34d   : > { %9070 = vmatprep.subr.bf16.mxu0 %v14304_v25  ;;  %v2579_v22 = vld [vmem:[#allocation9 + $0x758] sm:$0xff]  ;;  %v14479_v25 = vcombine.low %v2587_v62, %v2595_v6  ;;  %v3298_v50 = vld [vmem:[#allocation9 + $0x1dd0] sm:$0xff] }
 0x34e   : > { %v14464_v45 = vcombine.high %v2571_v21, %v2579_v22  ;;  %v15182_v49 = vcombine.high %v3290_v47, %v3298_v50  ;;  %v3274_v59 = vld [vmem:[#allocation9 + $0x1d10] sm:$0xff] }
 0x34f   : > { %9030 = vmatpush1.bf16.msra.mxu1 %v15069_v26  ;;  %v2555_v26 = vld [vmem:[#allocation9 + $0x698] sm:$0xff]  ;;  %v3282_v0 = vld [vmem:[#allocation9 + $0x1d50] sm:$0xff] }
 0x350   : > { %9071 = vmatpush1.bf16.msra.mxu0 %v14303_v27  ;;  %9031 = vmatprep.subr.bf16.mxu1 %v15054_v28  ;;  %v2563_v27 = vld [vmem:[#allocation9 + $0x6d8] sm:$0xff]  ;;  %v15229_v28 = vcombine.low %v3338_v13, %v3346_v18  ;;  %v15166_v63 = vcombine.high %v3274_v59, %v3282_v0  ;;  %v3258_v62 = vld [vmem:[#allocation9 + $0x1c90] sm:$0xff] }
 0x351   : > { %9072 = vmatprep.subr.bf16.mxu0 %v14288_v29  ;;  %v14463_v29 = vcombine.low %v2571_v21, %v2579_v22  ;;  %v14448_v31 = vcombine.high %v2555_v26, %v2563_v27  ;;  %v3266_v6 = vld [vmem:[#allocation9 + $0x1cd0] sm:$0xff] }
 0x352   : > { %v15150_v13 = vcombine.high %v3258_v62, %v3266_v6  ;;  %v3242_v21 = vld [vmem:[#allocation9 + $0x1c10] sm:$0xff] }
 0x353   : > { %9032 = vmatpush1.bf16.msra.mxu1 %v15053_v54  ;;  %v2539_v54 = vld [vmem:[#allocation9 + $0x618] sm:$0xff]  ;;  %v3250_v22 = vld [vmem:[#allocation9 + $0x1c50] sm:$0xff] }
 0x354   : > { %9073 = vmatpush1.bf16.msra.mxu0 %v14287_v36  ;;  %9033 = vmatprep.subr.bf16.mxu1 %v15038_v37  ;;  %v2547_v36 = vld [vmem:[#allocation9 + $0x658] sm:$0xff]  ;;  %v15213_v37 = vcombine.low %v3322_v57, %v3330_v53  ;;  %v15134_v57 = vcombine.high %v3242_v21, %v3250_v22 }
 0x355   : > { %9074 = vmatprep.subr.bf16.mxu0 %v14272_v38  ;;  %v14447_v38 = vcombine.low %v2555_v26, %v2563_v27  ;;  %v14432_v43 = vcombine.high %v2539_v54, %v2547_v36  ;;  %v2715_v26 = vld [vmem:[#allocation9 + $0xb98] sm:$0xff] }
 0x356   : > { %v2723_v27 = vld [vmem:[#allocation9 + $0xbd8] sm:$0xff] }
 0x357   : > { %9034 = vmatpush1.bf16.msra.mxu1 %v15037_v51  ;;  %v2523_v51 = vld [vmem:[#allocation9 + $0x598] sm:$0xff] }
 0x358   : > { %9075 = vmatpush1.bf16.msra.mxu0 %v14271_v55  ;;  %9035 = vmatprep.subr.bf16.mxu1 %v15022_v56  ;;  %v2531_v55 = vld [vmem:[#allocation9 + $0x5d8] sm:$0xff]  ;;  %v15197_v56 = vcombine.low %v3306_v32, %v3314_v34  ;;  %v14608_v32 = vcombine.high %v2715_v26, %v2723_v27  ;;  %v17409_v34 = vld [vmem:[#allocation11] sm:$0xff] }
 0x359   : > { %9076 = vmatprep.subr.bf16.mxu0 %v14256_v60  ;;  %v14431_v60 = vcombine.low %v2539_v54, %v2547_v36  ;;  %v14416_v61 = vcombine.high %v2523_v51, %v2531_v55  ;;  %v3383_v54 = vrot.slane %v17409_v34, %v17312_v16 }
 0x35b   : > { %9036 = vmatpush1.bf16.msra.mxu1 %v15021_v1  ;;  %v2507_v1 = vld [vmem:[#allocation9 + $0x518] sm:$0xff] }
 0x35c   : > { %9077 = vmatpush1.bf16.msra.mxu0 %v14255_v4  ;;  %9037 = vmatprep.subr.bf16.mxu1 %v15006_v5  ;;  %v2515_v4 = vld [vmem:[#allocation9 + $0x558] sm:$0xff]  ;;  %v15181_v5 = vcombine.low %v3290_v47, %v3298_v50 }
 0x35d   : > { %9078 = vmatprep.subr.bf16.mxu0 %v14240_v8  ;;  %v14415_v8 = vcombine.low %v2523_v51, %v2531_v55  ;;  %v14400_v39 = vcombine.high %v2507_v1, %v2515_v4  ;;  %v2963_v47 = vld [vmem:[#allocation9 + $0x1358] sm:$0xff]  ;;  %v8771_v51 = vadd.f32 %v17398_v48, %v3383_v54 }
 0x35e   : > { %v2643_v54 = vld [vmem:[#allocation9 + $0x958] sm:$0xff] }
 0x35f   : > { %9038 = vmatpush1.bf16.msra.mxu1 %v15005_v19  ;;  %v2491_v19 = vld [vmem:[#allocation9 + $0x498] sm:$0xff] }
 0x360   : > { %9079 = vmatpush1.bf16.msra.mxu0 %v14239_v9  ;;  %9039 = vmatprep.subr.bf16.mxu1 %v15246_v10  ;;  %v2499_v9 = vld [vmem:[#allocation9 + $0x4d8] sm:$0xff]  ;;  %v15165_v10 = vcombine.low %v3274_v59, %v3282_v0 }
 0x361   : > { %9080 = vmatprep.subr.bf16.mxu0 %v14480_v11  ;;  %v14399_v11 = vcombine.low %v2507_v1, %v2515_v4  ;;  %v14384_v18 = vcombine.high %v2491_v19, %v2499_v9  ;;  %v2939_v0 = vld [vmem:[#allocation9 + $0x1298] sm:$0xff] }
 0x362   : > { %v2947_v1 = vld [vmem:[#allocation9 + $0x12d8] sm:$0xff] }
 0x363   : > { %9040 = vmatpush2.bf16.msra.mxu1 %v15245_v23  ;;  %v2475_v23 = vld [vmem:[#allocation9 + $0x418] sm:$0xff] }
 0x364   : > { %9081 = vmatpush2.bf16.msra.mxu0 %v14479_v25  ;;  %9041 = vmatprep.subr.bf16.mxu1 %v15230_v44  ;;  %v2483_v25 = vld [vmem:[#allocation9 + $0x458] sm:$0xff]  ;;  %v15149_v44 = vcombine.low %v3258_v62, %v3266_v6  ;;  %v14832_v6 = vcombine.high %v2939_v0, %v2947_v1 }
 0x365   : > { %9082 = vmatprep.subr.bf16.mxu0 %v14464_v45  ;;  %v14383_v45 = vcombine.low %v2491_v19, %v2499_v9  ;;  %v14368_v53 = vcombine.high %v2475_v23, %v2483_v25  ;;  %v2667_v19 = vld [vmem:[#allocation9 + $0xa18] sm:$0xff] }
 0x366   : > { %v2675_v9 = vld [vmem:[#allocation9 + $0xa58] sm:$0xff] }
 0x367   : > { %9042 = vmatpush2.bf16.msra.mxu1 %v15229_v28  ;;  %v2971_v28 = vld [vmem:[#allocation9 + $0x1398] sm:$0xff] }
 0x368   : > { %9083 = vmatpush2.bf16.msra.mxu0 %v14463_v29  ;;  %9043 = vmatprep.subr.bf16.mxu1 %v15214_v30  ;;  %v2979_v29 = vld [vmem:[#allocation9 + $0x13d8] sm:$0xff]  ;;  %v15133_v30 = vcombine.low %v3242_v21, %v3250_v22 }
 0x369   : > { %9084 = vmatprep.subr.bf16.mxu0 %v14448_v31  ;;  %v14367_v31 = vcombine.low %v2475_v23, %v2483_v25  ;;  %v14864_v36 = vcombine.high %v2971_v28, %v2979_v29  ;;  %v14863_v50 = vcombine.low %v2971_v28, %v2979_v29  ;;  %v14831_v25 = vcombine.low %v2939_v0, %v2947_v1  ;;  %v2603_v0 = vld [vmem:[#allocation9 + $0x818] sm:$0xff] }
 0x36a   : > { %v14559_v28 = vcombine.low %v2667_v19, %v2675_v9  ;;  %v2611_v1 = vld [vmem:[#allocation9 + $0x858] sm:$0xff] }
 0x36b   : > { %9044 = vmatpush2.bf16.msra.mxu1 %v15213_v37  ;;  %v2699_v37 = vld [vmem:[#allocation9 + $0xb18] sm:$0xff] }
 0x36c   : > { %9085 = vmatpush2.bf16.msra.mxu0 %v14447_v38  ;;  %9045 = vmatprep.subr.bf16.mxu1 %v15198_v42  ;;  %v2707_v38 = vld [vmem:[#allocation9 + $0xb58] sm:$0xff]  ;;  %v14607_v42 = vcombine.low %v2715_v26, %v2723_v27 }
 0x36d   : > { %9086 = vmatprep.subr.bf16.mxu0 %v14432_v43  ;;  %v2955_v43 = vld [vmem:[#allocation9 + $0x1318] sm:$0xff]  ;;  %v14592_v55 = vcombine.high %v2699_v37, %v2707_v38 }
 0x36e   : > { %v14848_v59 = vcombine.high %v2955_v43, %v2963_v47  ;;  %v2907_v26 = vld [vmem:[#allocation9 + $0x1198] sm:$0xff] }
 0x36f   : > { %9046 = vmatpush2.bf16.msra.mxu1 %v15197_v56  ;;  %v2683_v56 = vld [vmem:[#allocation9 + $0xa98] sm:$0xff] }
 0x370   : > { %9087 = vmatpush2.bf16.msra.mxu0 %v14431_v60  ;;  %9047 = vmatprep.subr.bf16.mxu1 %v15182_v49  ;;  %v2691_v60 = vld [vmem:[#allocation9 + $0xad8] sm:$0xff] }
 0x371   : > { %9088 = vmatprep.subr.bf16.mxu0 %v14416_v61  ;;  %v14575_v21 = vcombine.low %v2683_v56, %v2691_v60  ;;  %v2915_v27 = vld [vmem:[#allocation9 + $0x11d8] sm:$0xff] }
 0x373   : > { %9048 = vmatpush2.bf16.msra.mxu1 %v15181_v5  ;;  %v14591_v5 = vcombine.low %v2699_v37, %v2707_v38  ;;  %v2899_v37 = vld [vmem:[#allocation9 + $0x1158] sm:$0xff] }
 0x374   : > { %9089 = vmatpush2.bf16.msra.mxu0 %v14415_v8  ;;  %9049 = vmatprep.subr.bf16.mxu1 %v15166_v63  ;;  %v14847_v63 = vcombine.low %v2955_v43, %v2963_v47 }
 0x375   : > { %9090 = vmatprep.subr.bf16.mxu0 %v14400_v39  ;;  %v14576_v39 = vcombine.high %v2683_v56, %v2691_v60  ;;  %v2883_v56 = vld [vmem:[#allocation9 + $0x10d8] sm:$0xff] }
 0x377   : > { %9050 = vmatpush2.bf16.msra.mxu1 %v15165_v10 }
 0x378   : > { %9091 = vmatpush2.bf16.msra.mxu0 %v14399_v11  ;;  %9051 = vmatprep.subr.bf16.mxu1 %v15150_v13  ;;  %v2923_v13 = vld [vmem:[#allocation9 + $0x1218] sm:$0xff] }
 0x379   : > { %9092 = vmatprep.subr.bf16.mxu0 %v14384_v18  ;;  %v2931_v18 = vld [vmem:[#allocation9 + $0x1258] sm:$0xff] }
 0x37a   : > { %v14815_v29 = vcombine.low %v2923_v13, %v2931_v18 }
 0x37b   : > { %9052 = vmatpush2.bf16.msra.mxu1 %v15149_v44  ;;  %v14560_v44 = vcombine.high %v2667_v19, %v2675_v9  ;;  %v2843_v9 = vld [vmem:[#allocation9 + $0xf98] sm:$0xff] }
 0x37c   : > { %9093 = vmatpush2.bf16.msra.mxu0 %v14383_v45  ;;  %9053 = vmatprep.subr.bf16.mxu1 %v15134_v57  ;;  %v14816_v45 = vcombine.high %v2923_v13, %v2931_v18  ;;  %v2651_v57 = vld [vmem:[#allocation9 + $0x998] sm:$0xff]  ;;  %v14495_v18 = vcombine.low %v2603_v0, %v2611_v1 }
 0x37d   : > { %9094 = vmatprep.subr.bf16.mxu0 %v14368_v53  ;;  %v2659_v53 = vld [vmem:[#allocation9 + $0x9d8] sm:$0xff] }
 0x37e   : > { %v14543_v38 = vcombine.low %v2651_v57, %v2659_v53  ;;  %v3107_v13 = vld [vmem:[#allocation9 + $0x17d8] sm:$0xff] }
 0x37f   : > { %9054 = vmatpush2.bf16.msra.mxu1 %v15133_v30  ;;  %v14544_v30 = vcombine.high %v2651_v57, %v2659_v53  ;;  %v3091_v57 = vld [vmem:[#allocation9 + $0x1758] sm:$0xff] }
 0x380   : > { %9095 = vmatpush2.bf16.msra.mxu0 %v14367_v31  ;;  %9105 = vmatprep.subr.bf16.mxu1 %v14608_v32  ;;  %v14800_v31 = vcombine.high %v2907_v26, %v2915_v27  ;;  %v2635_v32 = vld [vmem:[#allocation9 + $0x918] sm:$0xff] }
 0x381   : > { %9146 = vmatprep.subr.bf16.mxu0 %v14864_v36  ;;  %v2891_v36 = vld [vmem:[#allocation9 + $0x1118] sm:$0xff]  ;;  %v14528_v43 = vcombine.high %v2635_v32, %v2643_v54  ;;  %v14527_v60 = vcombine.low %v2635_v32, %v2643_v54 }
 0x382   : > { %v8811_v49 = vpop.f32.mrf.mxu1  ;;  %v8852_v61 = vpop.f32.mrf.mxu0  ;;  %9056 = vmatmul.mubr.bf16.vlgmr.msra.gmra.mxu1 %v17369_v3  ;;  %v14784_v47 = vcombine.high %v2891_v36, %v2899_v37  ;;  %v3075_v32 = vld [vmem:[#allocation9 + $0x16d8] sm:$0xff] }
 0x383   : > { %v8812_v4 = vadd.f32 %v8811_v49, %v8771_v51  ;;  %9097 = vmatmul.mubr.bf16.vlgmr.msra.gmra.mxu0 %v17321_v7  ;;  %9106 = vmatpush1.bf16.msra.mxu1 %v14607_v42  ;;  %v14799_v42 = vcombine.low %v2907_v26, %v2915_v27  ;;  %v2627_v51 = vld [vmem:[#allocation9 + $0x8d8] sm:$0xff]  ;;  %v14783_v49 = vcombine.low %v2891_v36, %v2899_v37 }
 0x384   : > { %9137 = vmatprep.mubr.bf16.mxu1 %v17326_v41  ;;  %9147 = vmatpush1.bf16.msra.mxu0 %v14863_v50  ;;  %v17417_v48 = vpop.f32.mrf.mxu1  ;;  %v17419_v8 = vpop.f32.mrf.mxu0  ;;  %v2619_v50 = vld [vmem:[#allocation9 + $0x898] sm:$0xff] }
 0x385   : > { %v17421_v62 = vadd.f32 %v8852_v61, %v8812_v4  ;;  %9178 = vmatprep.mubr.bf16.mxu0 %v17352_v12  ;;  %9107 = vmatprep.subr.bf16.mxu1 %v14592_v55  ;;  %v2875_v55 = vld [vmem:[#allocation9 + $0x1098] sm:$0xff]  ;;  %v14512_v61 = vcombine.high %v2619_v50, %v2627_v51 }
 0x386   : > { %v8815_v10 = vpop.f32.mrf.mxu1  ;;  %v8856_v11 = vpop.f32.mrf.mxu0  ;;  %9148 = vmatprep.subr.bf16.mxu0 %v14848_v59  ;;  %v14768_v59 = vcombine.high %v2875_v55, %v2883_v56  ;;  %v2859_v4 = vld [vmem:[#allocation9 + $0x1018] sm:$0xff] }
 0x387   : > { %9108 = vmatpush1.bf16.msra.mxu1 %v14591_v5  ;;  %v2867_v5 = vld [vmem:[#allocation9 + $0x1058] sm:$0xff] }
 0x388   : > { %9149 = vmatpush1.bf16.msra.mxu0 %v14847_v63  ;;  %v8816_v22 = vpop.f32.mrf.mxu1  ;;  %v8857_v23 = vpop.f32.mrf.mxu0  ;;  %9109 = vmatprep.subr.bf16.mxu1 %v14576_v39  ;;  %v14511_v63 = vcombine.low %v2619_v50, %v2627_v51  ;;  %v14767_v39 = vcombine.low %v2875_v55, %v2883_v56  ;;  %v14752_v19 = vcombine.high %v2859_v4, %v2867_v5  ;;  %v2851_v10 = vld [vmem:[#allocation9 + $0xfd8] sm:$0xff] }
 0x389   : > { %9150 = vmatprep.subr.bf16.mxu0 %v14832_v6  ;;  %v14496_v6 = vcombine.high %v2603_v0, %v2611_v1  ;;  %v3099_v11 = vld [vmem:[#allocation9 + $0x1798] sm:$0xff]  ;;  %v14736_v22 = vcombine.high %v2843_v9, %v2851_v10  ;;  %v14735_v53 = vcombine.low %v2843_v9, %v2851_v10 }
 0x38a   : > { %v14992_v23 = vcombine.high %v3099_v11, %v3107_v13  ;;  %v14991_v26 = vcombine.low %v3099_v11, %v3107_v13  ;;  %v3059_v50 = vld [vmem:[#allocation9 + $0x1658] sm:$0xff] }
 0x38b   : > { %9110 = vmatpush1.bf16.msra.mxu1 %v14575_v21  ;;  %v14751_v21 = vcombine.low %v2859_v4, %v2867_v5  ;;  %v3043_v0 = vld [vmem:[#allocation9 + $0x15d8] sm:$0xff] }
 0x38c   : > { %9151 = vmatpush1.bf16.msra.mxu0 %v14831_v25  ;;  %9111 = vmatprep.subr.bf16.mxu1 %v14560_v44  ;;  %v2827_v25 = vld [vmem:[#allocation9 + $0xf18] sm:$0xff] }
 0x38d   : > { %9152 = vmatprep.subr.bf16.mxu0 %v14816_v45  ;;  %v2835_v44 = vld [vmem:[#allocation9 + $0xf58] sm:$0xff] }
 0x38e   : > { %v3083_v45 = vld [vmem:[#allocation9 + $0x1718] sm:$0xff]  ;;  %v14720_v27 = vcombine.high %v2827_v25, %v2835_v44  ;;  %v14719_v54 = vcombine.low %v2827_v25, %v2835_v44 }
 0x38f   : > { %9112 = vmatpush1.bf16.msra.mxu1 %v14559_v28  ;;  %v14976_v28 = vcombine.high %v3083_v45, %v3091_v57  ;;  %v14975_v36 = vcombine.low %v3083_v45, %v3091_v57  ;;  %v3027_v9 = vld [vmem:[#allocation9 + $0x1558] sm:$0xff] }
 0x390   : > { %9153 = vmatpush1.bf16.msra.mxu0 %v14815_v29  ;;  %9113 = vmatprep.subr.bf16.mxu1 %v14544_v30  ;;  %v2811_v29 = vld [vmem:[#allocation9 + $0xe98] sm:$0xff] }
 0x391   : > { %9154 = vmatprep.subr.bf16.mxu0 %v14800_v31  ;;  %v2819_v30 = vld [vmem:[#allocation9 + $0xed8] sm:$0xff] }
 0x392   : > { %v3067_v31 = vld [vmem:[#allocation9 + $0x1698] sm:$0xff]  ;;  %v14704_v37 = vcombine.high %v2811_v29, %v2819_v30  ;;  %v14703_v51 = vcombine.low %v2811_v29, %v2819_v30 }
 0x393   : > { %9114 = vmatpush1.bf16.msra.mxu1 %v14543_v38  ;;  %v14960_v38 = vcombine.high %v3067_v31, %v3075_v32  ;;  %v14959_v55 = vcombine.low %v3067_v31, %v3075_v32  ;;  %v3011_v25 = vld [vmem:[#allocation9 + $0x14d8] sm:$0xff] }
 0x394   : > { %9155 = vmatpush1.bf16.msra.mxu0 %v14799_v42  ;;  %9115 = vmatprep.subr.bf16.mxu1 %v14528_v43  ;;  %v2795_v42 = vld [vmem:[#allocation9 + $0xe18] sm:$0xff] }
 0x395   : > { %9156 = vmatprep.subr.bf16.mxu0 %v14784_v47  ;;  %v2803_v43 = vld [vmem:[#allocation9 + $0xe58] sm:$0xff] }
 0x396   : > { %v3051_v47 = vld [vmem:[#allocation9 + $0x1618] sm:$0xff]  ;;  %v14688_v56 = vcombine.high %v2795_v42, %v2803_v43  ;;  %v14687_v1 = vcombine.low %v2795_v42, %v2803_v43  ;;  %v2460_v42 = vld [vmem:[#allocation9 + $0x3a0] sm:$0xff] }
 0x397   : > { %9116 = vmatpush1.bf16.msra.mxu1 %v14527_v60  ;;  %v14944_v60 = vcombine.high %v3051_v47, %v3059_v50  ;;  %v14943_v4 = vcombine.low %v3051_v47, %v3059_v50  ;;  %v2995_v29 = vld [vmem:[#allocation9 + $0x1458] sm:$0xff]  ;;  %v2468_v43 = vld [vmem:[#allocation9 + $0x3e0] sm:$0xff] }
 0x398   : > { %9157 = vmatpush1.bf16.msra.mxu0 %v14783_v49  ;;  %9117 = vmatprep.subr.bf16.mxu1 %v14512_v61  ;;  %v2779_v49 = vld [vmem:[#allocation9 + $0xd98] sm:$0xff] }
 0x399   : > { %9158 = vmatprep.subr.bf16.mxu0 %v14768_v59  ;;  %v2787_v61 = vld [vmem:[#allocation9 + $0xdd8] sm:$0xff] }
 0x39a   : > { %v3035_v59 = vld [vmem:[#allocation9 + $0x1598] sm:$0xff]  ;;  %v14672_v5 = vcombine.high %v2779_v49, %v2787_v61  ;;  %v14671_v10 = vcombine.low %v2779_v49, %v2787_v61 }
 0x39b   : > { %9118 = vmatpush1.bf16.msra.mxu1 %v14511_v63  ;;  %v14928_v63 = vcombine.high %v3035_v59, %v3043_v0  ;;  %v14927_v11 = vcombine.low %v3035_v59, %v3043_v0  ;;  %v3219_v49 = vld [vmem:[#allocation9 + $0x1b58] sm:$0xff]  ;;  %v2444_v59 = vld [vmem:[#allocation9 + $0x320] sm:$0xff] }
 0x39c   : > { %9159 = vmatpush1.bf16.msra.mxu0 %v14767_v39  ;;  %9119 = vmatprep.subr.bf16.mxu1 %v14496_v6  ;;  %v2763_v39 = vld [vmem:[#allocation9 + $0xd18] sm:$0xff]  ;;  %v2452_v0 = vld [vmem:[#allocation9 + $0x360] sm:$0xff] }
 0x39d   : > { %9160 = vmatprep.subr.bf16.mxu0 %v14752_v19  ;;  %v2771_v6 = vld [vmem:[#allocation9 + $0xd58] sm:$0xff] }
 0x39e   : > { %v3019_v19 = vld [vmem:[#allocation9 + $0x1518] sm:$0xff]  ;;  %v14656_v13 = vcombine.high %v2763_v39, %v2771_v6  ;;  %v14655_v44 = vcombine.low %v2763_v39, %v2771_v6  ;;  %v2428_v6 = vld [vmem:[#allocation9 + $0x2a0] sm:$0xff] }
 0x39f   : > { %9120 = vmatpush1.bf16.msra.mxu1 %v14495_v18  ;;  %v14912_v18 = vcombine.high %v3019_v19, %v3027_v9  ;;  %v14911_v45 = vcombine.low %v3019_v19, %v3027_v9  ;;  %v2436_v19 = vld [vmem:[#allocation9 + $0x2e0] sm:$0xff] }
 0x3a0   : > { %9161 = vmatpush1.bf16.msra.mxu0 %v14751_v21  ;;  %9121 = vmatprep.subr.bf16.mxu1 %v14736_v22  ;;  %v2747_v21 = vld [vmem:[#allocation9 + $0xc98] sm:$0xff] }
 0x3a1   : > { %9162 = vmatprep.subr.bf16.mxu0 %v14992_v23  ;;  %v2755_v22 = vld [vmem:[#allocation9 + $0xcd8] sm:$0xff] }
 0x3a2   : > { %v3003_v23 = vld [vmem:[#allocation9 + $0x1498] sm:$0xff]  ;;  %v14640_v57 = vcombine.high %v2747_v21, %v2755_v22  ;;  %v14639_v30 = vcombine.low %v2747_v21, %v2755_v22 }
 0x3a3   : > { %9122 = vmatpush2.bf16.msra.mxu1 %v14735_v53  ;;  %v14896_v53 = vcombine.high %v3003_v23, %v3011_v25  ;;  %v14895_v31 = vcombine.low %v3003_v23, %v3011_v25  ;;  %v3187_v25 = vld [vmem:[#allocation9 + $0x1a58] sm:$0xff] }
 0x3a4   : > { %9163 = vmatpush2.bf16.msra.mxu0 %v14991_v26  ;;  %9123 = vmatprep.subr.bf16.mxu1 %v14720_v27  ;;  %v2731_v26 = vld [vmem:[#allocation9 + $0xc18] sm:$0xff] }
 0x3a5   : > { %9164 = vmatprep.subr.bf16.mxu0 %v14976_v28  ;;  %v2739_v27 = vld [vmem:[#allocation9 + $0xc58] sm:$0xff] }
 0x3a6   : > { %v2987_v28 = vld [vmem:[#allocation9 + $0x1418] sm:$0xff]  ;;  %v14624_v32 = vcombine.high %v2731_v26, %v2739_v27  ;;  %v14623_v47 = vcombine.low %v2731_v26, %v2739_v27 }
 0x3a7   : > { %9124 = vmatpush2.bf16.msra.mxu1 %v14719_v54  ;;  %v3387_v54 = vrot.slane %v17409_v34, %v17315_v2  ;;  %v14879_v50 = vcombine.low %v2987_v28, %v2995_v29 }
 0x3a8   : > { %9165 = vmatpush2.bf16.msra.mxu0 %v14975_v36  ;;  %9125 = vmatprep.subr.bf16.mxu1 %v14704_v37  ;;  %v14880_v36 = vcombine.high %v2987_v28, %v2995_v29  ;;  %v3227_v37 = vld [vmem:[#allocation9 + $0x1b98] sm:$0xff] }
 0x3a9   : > { %9166 = vmatprep.subr.bf16.mxu0 %v14960_v38  ;;  %v3235_v38 = vld [vmem:[#allocation9 + $0x1bd8] sm:$0xff] }
 0x3aa   : > { %v15119_v61 = vcombine.low %v3227_v37, %v3235_v38 }
 0x3ab   : > { %9126 = vmatpush2.bf16.msra.mxu1 %v14703_v51  ;;  %v15120_v51 = vcombine.high %v3227_v37, %v3235_v38  ;;  %v3163_v37 = vld [vmem:[#allocation9 + $0x1998] sm:$0xff] }
 0x3ac   : > { %9167 = vmatpush2.bf16.msra.mxu0 %v14959_v55  ;;  %9127 = vmatprep.subr.bf16.mxu1 %v14688_v56  ;;  %v8773_v55 = vadd.f32 %v17406_v58, %v3387_v54  ;;  %v14354_v56 = vcombine.high %v2460_v42, %v2468_v43  ;;  %v14338_v58 = vcombine.high %v2444_v59, %v2452_v0  ;;  %v3171_v38 = vld [vmem:[#allocation9 + $0x19d8] sm:$0xff] }
 0x3ad   : > { %9168 = vmatprep.subr.bf16.mxu0 %v14944_v60  ;;  %v3211_v60 = vld [vmem:[#allocation9 + $0x1b18] sm:$0xff] }
 0x3ae   : > { %v8814_v34 = vadd.f32 %v17417_v48, %v8773_v55 }
 0x3af   : > { %9128 = vmatpush2.bf16.msra.mxu1 %v14687_v1  ;;  %v14353_v1 = vcombine.low %v2460_v42, %v2468_v43  ;;  %v2396_v42 = vld [vmem:[#allocation9 + $0x1a0] sm:$0xff] }
 0x3b0   : > { %9169 = vmatpush2.bf16.msra.mxu0 %v14943_v4  ;;  %9129 = vmatprep.subr.bf16.mxu1 %v14672_v5  ;;  %v15104_v4 = vcombine.high %v3211_v60, %v3219_v49  ;;  %v3195_v5 = vld [vmem:[#allocation9 + $0x1a98] sm:$0xff]  ;;  %v8855_v9 = vadd.f32 %v17419_v8, %v8814_v34  ;;  %v14322_v8 = vcombine.high %v2428_v6, %v2436_v19  ;;  %v2404_v43 = vld [vmem:[#allocation9 + $0x1e0] sm:$0xff] }
 0x3b1   : > { %9170 = vmatprep.subr.bf16.mxu0 %v14928_v63  ;;  %v3203_v63 = vld [vmem:[#allocation9 + $0x1ad8] sm:$0xff]  ;;  %v14290_v55 = vcombine.high %v2396_v42, %v2404_v43  ;;  %v2388_v34 = vld [vmem:[#allocation9 + $0x160] sm:$0xff] }
 0x3b2   : > { %v15088_v21 = vcombine.high %v3195_v5, %v3203_v63  ;;  %v15087_v28 = vcombine.low %v3195_v5, %v3203_v63  ;;  %v3139_v5 = vld [vmem:[#allocation9 + $0x18d8] sm:$0xff]  ;;  %v2364_v63 = vld [vmem:[#allocation9 + $0xa0] sm:$0xff] }
 0x3b3   : > { %9130 = vmatpush2.bf16.msra.mxu1 %v14671_v10 }
 0x3b4   : > { %9171 = vmatpush2.bf16.msra.mxu0 %v14927_v11  ;;  %9131 = vmatprep.subr.bf16.mxu1 %v14656_v13  ;;  %v15103_v11 = vcombine.low %v3211_v60, %v3219_v49  ;;  %v3155_v60 = vld [vmem:[#allocation9 + $0x1958] sm:$0xff]  ;;  %v2380_v49 = vld [vmem:[#allocation9 + $0x120] sm:$0xff] }
 0x3b5   : > { %9172 = vmatprep.subr.bf16.mxu0 %v14912_v18  ;;  %v14337_v18 = vcombine.low %v2444_v59, %v2452_v0  ;;  %v14289_v59 = vcombine.low %v2396_v42, %v2404_v43  ;;  %v3323_v42 = vld [vmem:[#allocation9 + $0x1e98] sm:$0xff] }
 0x3b6   : > { %v3331_v43 = vld [vmem:[#allocation9 + $0x1ed8] sm:$0xff] }
 0x3b7   : > { %9132 = vmatpush2.bf16.msra.mxu1 %v14655_v44 }
 0x3b8   : > { %9173 = vmatpush2.bf16.msra.mxu0 %v14911_v45  ;;  %9133 = vmatprep.subr.bf16.mxu1 %v14640_v57  ;;  %v2412_v45 = vld [vmem:[#allocation9 + $0x220] sm:$0xff] }
 0x3b9   : > { %9174 = vmatprep.subr.bf16.mxu0 %v14896_v53  ;;  %v2420_v57 = vld [vmem:[#allocation9 + $0x260] sm:$0xff] }
 0x3bb   : > { %9134 = vmatpush2.bf16.msra.mxu1 %v14639_v30  ;;  %v14321_v30 = vcombine.low %v2428_v6, %v2436_v19  ;;  %v14273_v6 = vcombine.low %v2380_v49, %v2388_v34 }
 0x3bc   : > { %9175 = vmatpush2.bf16.msra.mxu0 %v14895_v31  ;;  %9135 = vmatprep.subr.bf16.mxu1 %v14624_v32 }
 0x3bd   : > { %9176 = vmatprep.subr.bf16.mxu0 %v14880_v36  ;;  %v14306_v36 = vcombine.high %v2412_v45, %v2420_v57 }
 0x3bf   : > { %9136 = vmatpush2.bf16.msra.mxu1 %v14623_v47 }
 0x3c0   : > { %9177 = vmatpush2.bf16.msra.mxu0 %v14879_v50  ;;  %9187 = vmatprep.subr.bf16.mxu1 %v15120_v51  ;;  %v14305_v50 = vcombine.low %v2412_v45, %v2420_v57  ;;  %v15056_v51 = vcombine.high %v3163_v37, %v3171_v38  ;;  %v2588_v45 = vld [vmem:[#allocation9 + $0x7a0] sm:$0xff] }
 0x3c1   : > { %9228 = vmatprep.subr.bf16.mxu0 %v14354_v56  ;;  %v3147_v56 = vld [vmem:[#allocation9 + $0x1918] sm:$0xff]  ;;  %v2596_v57 = vld [vmem:[#allocation9 + $0x7e0] sm:$0xff] }
 0x3c2   : > { %v8893_v39 = vpop.f32.mrf.mxu1  ;;  %9138 = vmatmul.mubr.bf16.vlgmr.msra.gmra.mxu1 %v17334_v46  ;;  %v15040_v0 = vcombine.high %v3147_v56, %v3155_v60 }
 0x3c3   : > { %v8894_v48 = vadd.f32 %v8893_v39, %v17421_v62  ;;  %v17431_v10 = vpop.f32.mrf.mxu0  ;;  %9179 = vmatmul.mubr.bf16.vlgmr.msra.gmra.mxu0 %v17354_v15  ;;  %9188 = vmatpush1.bf16.msra.mxu1 %v15119_v61  ;;  %v3179_v62 = vld [vmem:[#allocation9 + $0x1a18] sm:$0xff]  ;;  %v15055_v61 = vcombine.low %v3163_v37, %v3171_v38  ;;  %v2372_v39 = vld [vmem:[#allocation9 + $0xe0] sm:$0xff] }
 0x3c4   : > { %9219 = vmatprep.mubr.bf16.mxu1 %v17367_v52  ;;  %9229 = vmatpush1.bf16.msra.mxu0 %v14353_v1  ;;  %v8895_v13 = vpop.f32.mrf.mxu1  ;;  %v15072_v31 = vcombine.high %v3179_v62, %v3187_v25  ;;  %v15071_v47 = vcombine.low %v3179_v62, %v3187_v25  ;;  %v14274_v1 = vcombine.high %v2380_v49, %v2388_v34  ;;  %v3355_v25 = vld [vmem:[#allocation9 + $0x1f98] sm:$0xff] }
 0x3c5   : > { %9260 = vmatprep.mubr.bf16.mxu0 %v17297_v14  ;;  %v8896_v22 = vadd.f32 %v8895_v13, %v8855_v9  ;;  %v17436_v23 = vpop.f32.mrf.mxu0  ;;  %9189 = vmatprep.subr.bf16.mxu1 %v15104_v4  ;;  %v9886_v53 = vmax.f32 %v8894_v48, 0.0  ;;  %v3131_v4 = vld [vmem:[#allocation9 + $0x1898] sm:$0xff]  ;;  %v14258_v9 = vcombine.high %v2364_v63, %v2372_v39  ;;  %v2348_v13 = vld [vmem:[#allocation9 + $0x20] sm:$0xff] }
 0x3c6   : > { %v8897_v44 = vpop.f32.mrf.mxu1  ;;  %9230 = vmatprep.subr.bf16.mxu0 %v14338_v58  ;;  %v15039_v58 = vcombine.low %v3147_v56, %v3155_v60  ;;  %v15024_v19 = vcombine.high %v3131_v4, %v3139_v5  ;;  %v3115_v48 = vld [vmem:[#allocation9 + $0x1818] sm:$0xff]  ;;  %v15216_v56 = vcombine.high %v3323_v42, %v3331_v43 }
 0x3c7   : > { %v9887_v26 = vmax.f32 %v8896_v22, 0.0  ;;  %v8938_v27 = vpop.f32.mrf.mxu0  ;;  %9190 = vmatpush1.bf16.msra.mxu1 %v15103_v11  ;;  %v3123_v11 = vld [vmem:[#allocation9 + $0x1858] sm:$0xff]  ;;  %v14257_v22 = vcombine.low %v2364_v63, %v2372_v39 }
 0x3c8   : > { %9231 = vmatpush1.bf16.msra.mxu0 %v14337_v18  ;;  %v8898_v29 = vpop.f32.mrf.mxu1  ;;  %9191 = vmatprep.subr.bf16.mxu1 %v15088_v21  ;;  %v2356_v18 = vld [vmem:[#allocation9 + $0x60] sm:$0xff]  ;;  %v15023_v21 = vcombine.low %v3131_v4, %v3139_v5  ;;  %v3363_v44 = vld [vmem:[#allocation9 + $0x1fd8] sm:$0xff] }
 0x3c9   : > { %v15801_v32 = vpack.c.bf16 %v9887_v26, %v9886_v53  ;;  %v8939_v54 = vpop.f32.mrf.mxu0  ;;  %9232 = vmatprep.subr.bf16.mxu0 %v14322_v8  ;;  %v15008_v8 = vcombine.high %v3115_v48, %v3123_v11  ;;  %v14242_v62 = vcombine.high %v2348_v13, %v2356_v18  ;;  %v15007_v53 = vcombine.low %v3115_v48, %v3123_v11  ;;  %v3339_v29 = vld [vmem:[#allocation9 + $0x1f18] sm:$0xff] }
 0x3ca   : > { %v14241_v26 = vcombine.low %v2348_v13, %v2356_v18  ;;  %v15248_v27 = vcombine.high %v3355_v25, %v3363_v44  ;;  %v15247_v54 = vcombine.low %v3355_v25, %v3363_v44  ;;  %v3307_v49 = vld [vmem:[#allocation9 + $0x1e18] sm:$0xff] }
 0x3cb   : > { %9965 = vst [vmem:[#allocation2] sm:$0xff] %v15801_v32  ;;  %9192 = vmatpush1.bf16.msra.mxu1 %v15087_v28  ;;  %v14482_v28 = vcombine.high %v2588_v45, %v2596_v57  ;;  %v2580_v32 = vld [vmem:[#allocation9 + $0x760] sm:$0xff]  ;;  %v3315_v34 = vld [vmem:[#allocation9 + $0x1e58] sm:$0xff] }
 0x3cc   : > { %9233 = vmatpush1.bf16.msra.mxu0 %v14321_v30  ;;  %9193 = vmatprep.subr.bf16.mxu1 %v15072_v31  ;;  %v3347_v30 = vld [vmem:[#allocation9 + $0x1f58] sm:$0xff]  ;;  %v2572_v31 = vld [vmem:[#allocation9 + $0x720] sm:$0xff]  ;;  %v15200_v4 = vcombine.high %v3307_v49, %v3315_v34 }
 0x3cd   : > { %9234 = vmatprep.subr.bf16.mxu0 %v14306_v36  ;;  %v14481_v36 = vcombine.low %v2588_v45, %v2596_v57  ;;  %v15232_v37 = vcombine.high %v3339_v29, %v3347_v30  ;;  %v14466_v38 = vcombine.high %v2572_v31, %v2580_v32  ;;  %v3291_v63 = vld [vmem:[#allocation9 + $0x1d98] sm:$0xff] }
 0x3ce   : > { %v3299_v39 = vld [vmem:[#allocation9 + $0x1dd8] sm:$0xff] }
 0x3cf   : > { %9194 = vmatpush1.bf16.msra.mxu1 %v15071_v47  ;;  %v2556_v47 = vld [vmem:[#allocation9 + $0x6a0] sm:$0xff]  ;;  %v15184_v48 = vcombine.high %v3291_v63, %v3299_v39  ;;  %v3275_v13 = vld [vmem:[#allocation9 + $0x1d18] sm:$0xff] }
 0x3d0   : > { %9235 = vmatpush1.bf16.msra.mxu0 %v14305_v50  ;;  %9195 = vmatprep.subr.bf16.mxu1 %v15056_v51  ;;  %v2564_v50 = vld [vmem:[#allocation9 + $0x6e0] sm:$0xff]  ;;  %v15231_v51 = vcombine.low %v3339_v29, %v3347_v30  ;;  %v3283_v18 = vld [vmem:[#allocation9 + $0x1d58] sm:$0xff] }
 0x3d1   : > { %9236 = vmatprep.subr.bf16.mxu0 %v14290_v55  ;;  %v14465_v55 = vcombine.low %v2572_v31, %v2580_v32  ;;  %v14450_v60 = vcombine.high %v2556_v47, %v2564_v50  ;;  %v15168_v25 = vcombine.high %v3275_v13, %v3283_v18  ;;  %v3259_v45 = vld [vmem:[#allocation9 + $0x1c98] sm:$0xff] }
 0x3d2   : > { %v3267_v57 = vld [vmem:[#allocation9 + $0x1cd8] sm:$0xff] }
 0x3d3   : > { %9196 = vmatpush1.bf16.msra.mxu1 %v15055_v61  ;;  %v2540_v61 = vld [vmem:[#allocation9 + $0x620] sm:$0xff]  ;;  %v15152_v29 = vcombine.high %v3259_v45, %v3267_v57  ;;  %v3243_v31 = vld [vmem:[#allocation9 + $0x1c18] sm:$0xff] }
 0x3d4   : > { %9237 = vmatpush1.bf16.msra.mxu0 %v14289_v59  ;;  %9197 = vmatprep.subr.bf16.mxu1 %v15040_v0  ;;  %v2548_v59 = vld [vmem:[#allocation9 + $0x660] sm:$0xff]  ;;  %v15215_v0 = vcombine.low %v3323_v42, %v3331_v43  ;;  %v3251_v32 = vld [vmem:[#allocation9 + $0x1c58] sm:$0xff] }
 0x3d5   : > { %9238 = vmatprep.subr.bf16.mxu0 %v14274_v1  ;;  %v14449_v1 = vcombine.low %v2556_v47, %v2564_v50  ;;  %v14434_v5 = vcombine.high %v2540_v61, %v2548_v59  ;;  %v15136_v42 = vcombine.high %v3243_v31, %v3251_v32  ;;  %v2716_v47 = vld [vmem:[#allocation9 + $0xba0] sm:$0xff] }
 0x3d6   : > { %v2724_v50 = vld [vmem:[#allocation9 + $0xbe0] sm:$0xff] }
 0x3d7   : > { %9198 = vmatpush1.bf16.msra.mxu1 %v15039_v58  ;;  %v2524_v58 = vld [vmem:[#allocation9 + $0x5a0] sm:$0xff] }
 0x3d8   : > { %9239 = vmatpush1.bf16.msra.mxu0 %v14273_v6  ;;  %9199 = vmatprep.subr.bf16.mxu1 %v15024_v19  ;;  %v2532_v6 = vld [vmem:[#allocation9 + $0x5e0] sm:$0xff]  ;;  %v15199_v19 = vcombine.low %v3307_v49, %v3315_v34  ;;  %v14610_v49 = vcombine.high %v2716_v47, %v2724_v50 }
 0x3d9   : > { %9240 = vmatprep.subr.bf16.mxu0 %v14258_v9  ;;  %v14433_v9 = vcombine.low %v2540_v61, %v2548_v59  ;;  %v14418_v11 = vcombine.high %v2524_v58, %v2532_v6  ;;  %v2700_v61 = vld [vmem:[#allocation9 + $0xb20] sm:$0xff] }
 0x3da   : > { %v2708_v59 = vld [vmem:[#allocation9 + $0xb60] sm:$0xff] }
 0x3db   : > { %9200 = vmatpush1.bf16.msra.mxu1 %v15023_v21  ;;  %v2508_v21 = vld [vmem:[#allocation9 + $0x520] sm:$0xff] }
 0x3dc   : > { %9241 = vmatpush1.bf16.msra.mxu0 %v14257_v22  ;;  %9201 = vmatprep.subr.bf16.mxu1 %v15008_v8  ;;  %v2516_v22 = vld [vmem:[#allocation9 + $0x560] sm:$0xff]  ;;  %v15183_v8 = vcombine.low %v3291_v63, %v3299_v39  ;;  %v14594_v63 = vcombine.high %v2700_v61, %v2708_v59 }
 0x3dd   : > { %9242 = vmatprep.subr.bf16.mxu0 %v14242_v62  ;;  %v14417_v62 = vcombine.low %v2524_v58, %v2532_v6  ;;  %v14402_v44 = vcombine.high %v2508_v21, %v2516_v22  ;;  %v2684_v39 = vld [vmem:[#allocation9 + $0xaa0] sm:$0xff] }
 0x3de   : > { %v2692_v58 = vld [vmem:[#allocation9 + $0xae0] sm:$0xff] }
 0x3df   : > { %9202 = vmatpush1.bf16.msra.mxu1 %v15007_v53  ;;  %v2492_v53 = vld [vmem:[#allocation9 + $0x4a0] sm:$0xff] }
 0x3e0   : > { %9243 = vmatpush1.bf16.msra.mxu0 %v14241_v26  ;;  %9203 = vmatprep.subr.bf16.mxu1 %v15248_v27  ;;  %v2500_v26 = vld [vmem:[#allocation9 + $0x4e0] sm:$0xff]  ;;  %v15167_v27 = vcombine.low %v3275_v13, %v3283_v18  ;;  %v14593_v13 = vcombine.low %v2700_v61, %v2708_v59 }
 0x3e1   : > { %9244 = vmatprep.subr.bf16.mxu0 %v14482_v28  ;;  %v14401_v28 = vcombine.low %v2508_v21, %v2516_v22  ;;  %v14386_v30 = vcombine.high %v2492_v53, %v2500_v26  ;;  %v14578_v22 = vcombine.high %v2684_v39, %v2692_v58 }
 0x3e3   : > { %9204 = vmatpush2.bf16.msra.mxu1 %v15247_v54  ;;  %v2476_v54 = vld [vmem:[#allocation9 + $0x420] sm:$0xff] }
 0x3e4   : > { %9245 = vmatpush2.bf16.msra.mxu0 %v14481_v36  ;;  %9205 = vmatprep.subr.bf16.mxu1 %v15232_v37  ;;  %v2484_v36 = vld [vmem:[#allocation9 + $0x460] sm:$0xff]  ;;  %v15151_v37 = vcombine.low %v3259_v45, %v3267_v57 }
 0x3e5   : > { %9246 = vmatprep.subr.bf16.mxu0 %v14466_v38  ;;  %v14385_v38 = vcombine.low %v2492_v53, %v2500_v26  ;;  %v14370_v43 = vcombine.high %v2476_v54, %v2484_v36  ;;  %v2924_v57 = vld [vmem:[#allocation9 + $0x1220] sm:$0xff] }
 0x3e6   : > { %v2932_v53 = vld [vmem:[#allocation9 + $0x1260] sm:$0xff] }
 0x3e7   : > { %9206 = vmatpush2.bf16.msra.mxu1 %v15231_v51  ;;  %v2972_v51 = vld [vmem:[#allocation9 + $0x13a0] sm:$0xff] }
 0x3e8   : > { %9247 = vmatpush2.bf16.msra.mxu0 %v14465_v55  ;;  %9207 = vmatprep.subr.bf16.mxu1 %v15216_v56  ;;  %v2980_v55 = vld [vmem:[#allocation9 + $0x13e0] sm:$0xff]  ;;  %v15135_v56 = vcombine.low %v3243_v31, %v3251_v32  ;;  %v14818_v32 = vcombine.high %v2924_v57, %v2932_v53 }
 0x3e9   : > { %9248 = vmatprep.subr.bf16.mxu0 %v14450_v60  ;;  %v14369_v60 = vcombine.low %v2476_v54, %v2484_v36  ;;  %v14866_v34 = vcombine.high %v2972_v51, %v2980_v55  ;;  %v2652_v54 = vld [vmem:[#allocation9 + $0x9a0] sm:$0xff] }
 0x3ea   : > { %v2660_v36 = vld [vmem:[#allocation9 + $0x9e0] sm:$0xff] }
 0x3eb   : > { %9208 = vmatpush2.bf16.msra.mxu1 %v15215_v0  ;;  %v14609_v0 = vcombine.low %v2716_v47, %v2724_v50  ;;  %v14546_v47 = vcombine.high %v2652_v54, %v2660_v36 }
 0x3ec   : > { %9249 = vmatpush2.bf16.msra.mxu0 %v14449_v1  ;;  %9209 = vmatprep.subr.bf16.mxu1 %v15200_v4  ;;  %v2956_v1 = vld [vmem:[#allocation9 + $0x1320] sm:$0xff] }
 0x3ed   : > { %9250 = vmatprep.subr.bf16.mxu0 %v14434_v5  ;;  %v2964_v4 = vld [vmem:[#allocation9 + $0x1360] sm:$0xff]  ;;  %v14865_v5 = vcombine.low %v2972_v51, %v2980_v55 }
 0x3ee   : > { %v14849_v21 = vcombine.low %v2956_v1, %v2964_v4  ;;  %v2636_v51 = vld [vmem:[#allocation9 + $0x920] sm:$0xff] }
 0x3ef   : > { %9210 = vmatpush2.bf16.msra.mxu1 %v15199_v19  ;;  %v14850_v19 = vcombine.high %v2956_v1, %v2964_v4  ;;  %v2644_v55 = vld [vmem:[#allocation9 + $0x960] sm:$0xff] }
 0x3f0   : > { %9251 = vmatpush2.bf16.msra.mxu0 %v14433_v9  ;;  %9211 = vmatprep.subr.bf16.mxu1 %v15184_v48  ;;  %v2940_v9 = vld [vmem:[#allocation9 + $0x12a0] sm:$0xff]  ;;  %v14530_v61 = vcombine.high %v2636_v51, %v2644_v55 }
 0x3f1   : > { %9252 = vmatprep.subr.bf16.mxu0 %v14418_v11  ;;  %v2948_v48 = vld [vmem:[#allocation9 + $0x12e0] sm:$0xff] }
 0x3f2   : > { %v2628_v1 = vld [vmem:[#allocation9 + $0x8e0] sm:$0xff] }
 0x3f3   : > { %9212 = vmatpush2.bf16.msra.mxu1 %v15183_v8  ;;  %v2876_v4 = vld [vmem:[#allocation9 + $0x10a0] sm:$0xff] }
 0x3f4   : > { %9253 = vmatpush2.bf16.msra.mxu0 %v14417_v62  ;;  %9213 = vmatprep.subr.bf16.mxu1 %v15168_v25  ;;  %v14834_v62 = vcombine.high %v2940_v9, %v2948_v48  ;;  %v2668_v25 = vld [vmem:[#allocation9 + $0xa20] sm:$0xff] }
 0x3f5   : > { %9254 = vmatprep.subr.bf16.mxu0 %v14402_v44  ;;  %v2676_v44 = vld [vmem:[#allocation9 + $0xa60] sm:$0xff] }
 0x3f7   : > { %9214 = vmatpush2.bf16.msra.mxu1 %v15167_v27  ;;  %v14577_v27 = vcombine.low %v2684_v39, %v2692_v58 }
 0x3f8   : > { %9255 = vmatpush2.bf16.msra.mxu0 %v14401_v28  ;;  %9215 = vmatprep.subr.bf16.mxu1 %v15152_v29  ;;  %v14833_v29 = vcombine.low %v2940_v9, %v2948_v48  ;;  %v2604_v9 = vld [vmem:[#allocation9 + $0x820] sm:$0xff] }
 0x3f9   : > { %9256 = vmatprep.subr.bf16.mxu0 %v14386_v30  ;;  %v14562_v30 = vcombine.high %v2668_v25, %v2676_v44  ;;  %v2612_v48 = vld [vmem:[#allocation9 + $0x860] sm:$0xff] }
 0x3fb   : > { %9216 = vmatpush2.bf16.msra.mxu1 %v15151_v37  ;;  %v2908_v37 = vld [vmem:[#allocation9 + $0x11a0] sm:$0xff] }
 0x3fc   : > { %9257 = vmatpush2.bf16.msra.mxu0 %v14385_v38  ;;  %9217 = vmatprep.subr.bf16.mxu1 %v15136_v42  ;;  %v2916_v38 = vld [vmem:[#allocation9 + $0x11e0] sm:$0xff]  ;;  %v14561_v42 = vcombine.low %v2668_v25, %v2676_v44  ;;  %v14498_v25 = vcombine.high %v2604_v9, %v2612_v48 }
 0x3fd   : > { %9258 = vmatprep.subr.bf16.mxu0 %v14370_v43  ;;  %v14817_v43 = vcombine.low %v2924_v57, %v2932_v53  ;;  %v14802_v50 = vcombine.high %v2908_v37, %v2916_v38  ;;  %v2852_v57 = vld [vmem:[#allocation9 + $0xfe0] sm:$0xff] }
 0x3fe   : > { %v3100_v53 = vld [vmem:[#allocation9 + $0x17a0] sm:$0xff] }
 0x3ff   : > { %9218 = vmatpush2.bf16.msra.mxu1 %v15135_v56  ;;  %v2892_v56 = vld [vmem:[#allocation9 + $0x1120] sm:$0xff] }
 0x400   : > { %9259 = vmatpush2.bf16.msra.mxu0 %v14369_v60  ;;  %9269 = vmatprep.subr.bf16.mxu1 %v14610_v49  ;;  %v2900_v60 = vld [vmem:[#allocation9 + $0x1160] sm:$0xff]  ;;  %v14545_v49 = vcombine.low %v2652_v54, %v2660_v36 }
 0x401   : > { %9310 = vmatprep.subr.bf16.mxu0 %v14866_v34  ;;  %v14801_v34 = vcombine.low %v2908_v37, %v2916_v38  ;;  %v14786_v59 = vcombine.high %v2892_v56, %v2900_v60  ;;  %v14785_v39 = vcombine.low %v2892_v56, %v2900_v60  ;;  %v3084_v54 = vld [vmem:[#allocation9 + $0x1720] sm:$0xff] }
 0x402   : > { %v17438_v6 = vpop.f32.mrf.mxu1  ;;  %9220 = vmatmul.mubr.bf16.vlgmr.msra.gmra.mxu1 %v17369_v3  ;;  %v3092_v36 = vld [vmem:[#allocation9 + $0x1760] sm:$0xff] }
 0x403   : > { %v17441_v11 = vpop.f32.mrf.mxu0  ;;  %9261 = vmatmul.mubr.bf16.vlgmr.msra.gmra.mxu0 %v17321_v7  ;;  %9270 = vmatpush1.bf16.msra.mxu1 %v14609_v0  ;;  %v2620_v0 = vld [vmem:[#allocation9 + $0x8a0] sm:$0xff]  ;;  %v14977_v60 = vcombine.low %v3084_v54, %v3092_v36 }
 0x404   : > { %9301 = vmatprep.mubr.bf16.mxu1 %v17326_v41  ;;  %9311 = vmatpush1.bf16.msra.mxu0 %v14865_v5  ;;  %v17445_v18 = vpop.f32.mrf.mxu1  ;;  %v2884_v5 = vld [vmem:[#allocation9 + $0x10e0] sm:$0xff]  ;;  %v14514_v58 = vcombine.high %v2620_v0, %v2628_v1 }
 0x405   : > { %9342 = vmatprep.mubr.bf16.mxu0 %v17352_v12  ;;  %v17448_v8 = vpop.f32.mrf.mxu0  ;;  %9271 = vmatprep.subr.bf16.mxu1 %v14594_v63  ;;  %v14529_v63 = vcombine.low %v2636_v51, %v2644_v55  ;;  %v3068_v51 = vld [vmem:[#allocation9 + $0x16a0] sm:$0xff] }
 0x406   : > { %v8979_v45 = vpop.f32.mrf.mxu1  ;;  %9312 = vmatprep.subr.bf16.mxu0 %v14850_v19  ;;  %v14770_v19 = vcombine.high %v2876_v4, %v2884_v5  ;;  %v3076_v55 = vld [vmem:[#allocation9 + $0x16e0] sm:$0xff] }
 0x407   : > { %v9020_v26 = vpop.f32.mrf.mxu0  ;;  %9272 = vmatpush1.bf16.msra.mxu1 %v14593_v13  ;;  %v2860_v13 = vld [vmem:[#allocation9 + $0x1020] sm:$0xff] }
 0x408   : > { %9313 = vmatpush1.bf16.msra.mxu0 %v14849_v21  ;;  %v8980_v28 = vpop.f32.mrf.mxu1  ;;  %9273 = vmatprep.subr.bf16.mxu1 %v14578_v22  ;;  %v2868_v21 = vld [vmem:[#allocation9 + $0x1060] sm:$0xff]  ;;  %v14513_v22 = vcombine.low %v2620_v0, %v2628_v1 }
 0x409   : > { %v9021_v31 = vpop.f32.mrf.mxu0  ;;  %9314 = vmatprep.subr.bf16.mxu0 %v14834_v62  ;;  %v14769_v62 = vcombine.low %v2876_v4, %v2884_v5  ;;  %v14754_v44 = vcombine.high %v2860_v13, %v2868_v21  ;;  %v2844_v45 = vld [vmem:[#allocation9 + $0xfa0] sm:$0xff]  ;;  %v14753_v28 = vcombine.low %v2860_v13, %v2868_v21  ;;  %v14961_v5 = vcombine.low %v3068_v51, %v3076_v55 }
 0x40a   : > { %v3108_v26 = vld [vmem:[#allocation9 + $0x17e0] sm:$0xff]  ;;  %v14737_v37 = vcombine.low %v2844_v45, %v2852_v57 }
 0x40b   : > { %9274 = vmatpush1.bf16.msra.mxu1 %v14577_v27  ;;  %v14497_v27 = vcombine.low %v2604_v9, %v2612_v48  ;;  %v2828_v31 = vld [vmem:[#allocation9 + $0xf20] sm:$0xff]  ;;  %v14993_v38 = vcombine.low %v3100_v53, %v3108_v26 }
 0x40c   : > { %9315 = vmatpush1.bf16.msra.mxu0 %v14833_v29  ;;  %9275 = vmatprep.subr.bf16.mxu1 %v14562_v30  ;;  %v14738_v29 = vcombine.high %v2844_v45, %v2852_v57  ;;  %v14994_v30 = vcombine.high %v3100_v53, %v3108_v26  ;;  %v3052_v0 = vld [vmem:[#allocation9 + $0x1620] sm:$0xff] }
 0x40d   : > { %9316 = vmatprep.subr.bf16.mxu0 %v14818_v32  ;;  %v2836_v32 = vld [vmem:[#allocation9 + $0xf60] sm:$0xff] }
 0x40e   : > { %v14721_v56 = vcombine.low %v2828_v31, %v2836_v32  ;;  %v3060_v1 = vld [vmem:[#allocation9 + $0x1660] sm:$0xff] }
 0x40f   : > { %9276 = vmatpush1.bf16.msra.mxu1 %v14561_v42  ;;  %v14722_v42 = vcombine.high %v2828_v31, %v2836_v32  ;;  %v3036_v9 = vld [vmem:[#allocation9 + $0x15a0] sm:$0xff]  ;;  %v14945_v21 = vcombine.low %v3052_v0, %v3060_v1 }
 0x410   : > { %9317 = vmatpush1.bf16.msra.mxu0 %v14817_v43  ;;  %9277 = vmatprep.subr.bf16.mxu1 %v14546_v47  ;;  %v14978_v43 = vcombine.high %v3084_v54, %v3092_v36  ;;  %v2812_v47 = vld [vmem:[#allocation9 + $0xea0] sm:$0xff] }
 0x411   : > { %9318 = vmatprep.subr.bf16.mxu0 %v14802_v50  ;;  %v2820_v50 = vld [vmem:[#allocation9 + $0xee0] sm:$0xff] }
 0x412   : > { %v14705_v4 = vcombine.low %v2812_v47, %v2820_v50  ;;  %v3044_v48 = vld [vmem:[#allocation9 + $0x15e0] sm:$0xff] }
 0x413   : > { %9278 = vmatpush1.bf16.msra.mxu1 %v14545_v49  ;;  %v14706_v49 = vcombine.high %v2812_v47, %v2820_v50  ;;  %v3020_v45 = vld [vmem:[#allocation9 + $0x1520] sm:$0xff]  ;;  %v14929_v26 = vcombine.low %v3036_v9, %v3044_v48 }
 0x414   : > { %9319 = vmatpush1.bf16.msra.mxu0 %v14801_v34  ;;  %9279 = vmatprep.subr.bf16.mxu1 %v14530_v61  ;;  %v14962_v34 = vcombine.high %v3068_v51, %v3076_v55  ;;  %v2796_v61 = vld [vmem:[#allocation9 + $0xe20] sm:$0xff] }
 0x415   : > { %9320 = vmatprep.subr.bf16.mxu0 %v14786_v59  ;;  %v2804_v59 = vld [vmem:[#allocation9 + $0xe60] sm:$0xff] }
 0x416   : > { %v14689_v13 = vcombine.low %v2796_v61, %v2804_v59  ;;  %v3028_v57 = vld [vmem:[#allocation9 + $0x1560] sm:$0xff] }
 0x417   : > { %9280 = vmatpush1.bf16.msra.mxu1 %v14529_v63  ;;  %v14690_v63 = vcombine.high %v2796_v61, %v2804_v59  ;;  %v3004_v31 = vld [vmem:[#allocation9 + $0x14a0] sm:$0xff]  ;;  %v14913_v36 = vcombine.low %v3020_v45, %v3028_v57 }
 0x418   : > { %9321 = vmatpush1.bf16.msra.mxu0 %v14785_v39  ;;  %9281 = vmatprep.subr.bf16.mxu1 %v14514_v58  ;;  %v14946_v39 = vcombine.high %v3052_v0, %v3060_v1  ;;  %v2780_v58 = vld [vmem:[#allocation9 + $0xda0] sm:$0xff]  ;;  %v2461_v1 = vld [vmem:[#allocation9 + $0x3a8] sm:$0xff] }
 0x419   : > { %9322 = vmatprep.subr.bf16.mxu0 %v14770_v19  ;;  %v2788_v19 = vld [vmem:[#allocation9 + $0xde0] sm:$0xff] }
 0x41a   : > { %v14673_v53 = vcombine.low %v2780_v58, %v2788_v19  ;;  %v3012_v32 = vld [vmem:[#allocation9 + $0x14e0] sm:$0xff] }
 0x41b   : > { %9282 = vmatpush1.bf16.msra.mxu1 %v14513_v22  ;;  %v14674_v22 = vcombine.high %v2780_v58, %v2788_v19  ;;  %v2988_v47 = vld [vmem:[#allocation9 + $0x1420] sm:$0xff] }
 0x41c   : > { %9323 = vmatpush1.bf16.msra.mxu0 %v14769_v62  ;;  %9283 = vmatprep.subr.bf16.mxu1 %v14498_v25  ;;  %v14930_v62 = vcombine.high %v3036_v9, %v3044_v48  ;;  %v2764_v25 = vld [vmem:[#allocation9 + $0xd20] sm:$0xff] }
 0x41d   : > { %9324 = vmatprep.subr.bf16.mxu0 %v14754_v44  ;;  %v2772_v44 = vld [vmem:[#allocation9 + $0xd60] sm:$0xff] }
 0x41e   : > { %v14657_v54 = vcombine.low %v2764_v25, %v2772_v44  ;;  %v2996_v50 = vld [vmem:[#allocation9 + $0x1460] sm:$0xff] }
 0x41f   : > { %9284 = vmatpush1.bf16.msra.mxu1 %v14497_v27  ;;  %v14658_v27 = vcombine.high %v2764_v25, %v2772_v44  ;;  %v17450_v51 = vld [vmem:[#allocation11] sm:$0xff]  ;;  %v14882_v61 = vcombine.high %v2988_v47, %v2996_v50  ;;  %v2445_v25 = vld [vmem:[#allocation9 + $0x328] sm:$0xff] }
 0x420   : > { %9325 = vmatpush1.bf16.msra.mxu0 %v14753_v28  ;;  %9285 = vmatprep.subr.bf16.mxu1 %v14738_v29  ;;  %v14914_v28 = vcombine.high %v3020_v45, %v3028_v57  ;;  %v2748_v29 = vld [vmem:[#allocation9 + $0xca0] sm:$0xff]  ;;  %v3391_v55 = vrot.slane %v17450_v51, %v17341_v33 }
 0x421   : > { %9326 = vmatprep.subr.bf16.mxu0 %v14994_v30  ;;  %v2756_v30 = vld [vmem:[#allocation9 + $0xce0] sm:$0xff] }
 0x422   : > { %v3228_v59 = vld [vmem:[#allocation9 + $0x1ba0] sm:$0xff] }
 0x423   : > { %9286 = vmatpush2.bf16.msra.mxu1 %v14737_v37  ;;  %v14642_v37 = vcombine.high %v2748_v29, %v2756_v30  ;;  %v3236_v0 = vld [vmem:[#allocation9 + $0x1be0] sm:$0xff] }
 0x424   : > { %9327 = vmatpush2.bf16.msra.mxu0 %v14993_v38  ;;  %9287 = vmatprep.subr.bf16.mxu1 %v14722_v42  ;;  %v14898_v38 = vcombine.high %v3004_v31, %v3012_v32  ;;  %v2732_v42 = vld [vmem:[#allocation9 + $0xc20] sm:$0xff]  ;;  %v15122_v58 = vcombine.high %v3228_v59, %v3236_v0 }
 0x425   : > { %9328 = vmatprep.subr.bf16.mxu0 %v14978_v43  ;;  %v2740_v43 = vld [vmem:[#allocation9 + $0xc60] sm:$0xff] }
 0x427   : > { %9288 = vmatpush2.bf16.msra.mxu1 %v14721_v56  ;;  %v14641_v56 = vcombine.low %v2748_v29, %v2756_v30 }
 0x428   : > { %9329 = vmatpush2.bf16.msra.mxu0 %v14977_v60  ;;  %9289 = vmatprep.subr.bf16.mxu1 %v14706_v49  ;;  %v14897_v60 = vcombine.low %v3004_v31, %v3012_v32  ;;  %v14626_v49 = vcombine.high %v2732_v42, %v2740_v43 }
 0x429   : > { %9330 = vmatprep.subr.bf16.mxu0 %v14962_v34  ;;  %v3395_v34 = vrot.slane %v17450_v51, %v17344_v40 }
 0x42b   : > { %9290 = vmatpush2.bf16.msra.mxu1 %v14705_v4  ;;  %v2469_v4 = vld [vmem:[#allocation9 + $0x3e8] sm:$0xff]  ;;  %v8937_v19 = vadd.f32 %v17436_v23, %v3395_v34  ;;  %v3196_v23 = vld [vmem:[#allocation9 + $0x1aa0] sm:$0xff] }
 0x42c   : > { %9331 = vmatpush2.bf16.msra.mxu0 %v14961_v5  ;;  %9291 = vmatprep.subr.bf16.mxu1 %v14690_v63  ;;  %v8935_v5 = vadd.f32 %v17431_v10, %v3391_v55  ;;  %v14625_v63 = vcombine.low %v2732_v42, %v2740_v43  ;;  %v14356_v48 = vcombine.high %v2461_v1, %v2469_v4  ;;  %v2453_v10 = vld [vmem:[#allocation9 + $0x368] sm:$0xff]  ;;  %v3188_v42 = vld [vmem:[#allocation9 + $0x1a60] sm:$0xff] }
 0x42d   : > { %9332 = vmatprep.subr.bf16.mxu0 %v14946_v39  ;;  %v14881_v39 = vcombine.low %v2988_v47, %v2996_v50  ;;  %v14355_v44 = vcombine.low %v2461_v1, %v2469_v4  ;;  %v14339_v32 = vcombine.low %v2445_v25, %v2453_v10  ;;  %v2413_v47 = vld [vmem:[#allocation9 + $0x228] sm:$0xff] }
 0x42e   : > { %v8976_v9 = vadd.f32 %v17438_v6, %v8935_v5  ;;  %v2421_v50 = vld [vmem:[#allocation9 + $0x268] sm:$0xff]  ;;  %v3164_v5 = vld [vmem:[#allocation9 + $0x19a0] sm:$0xff] }
 0x42f   : > { %9292 = vmatpush2.bf16.msra.mxu1 %v14689_v13  ;;  %v3212_v13 = vld [vmem:[#allocation9 + $0x1b20] sm:$0xff]  ;;  %v14308_v4 = vcombine.high %v2413_v47, %v2421_v50 }
 0x430   : > { %9333 = vmatpush2.bf16.msra.mxu0 %v14945_v21  ;;  %9293 = vmatprep.subr.bf16.mxu1 %v14674_v22  ;;  %v3220_v21 = vld [vmem:[#allocation9 + $0x1b60] sm:$0xff]  ;;  %v8978_v22 = vadd.f32 %v17445_v18, %v8937_v19  ;;  %v9017_v45 = vadd.f32 %v17441_v11, %v8976_v9  ;;  %v14307_v9 = vcombine.low %v2413_v47, %v2421_v50  ;;  %v2589_v50 = vld [vmem:[#allocation9 + $0x7a8] sm:$0xff] }
 0x431   : > { %9334 = vmatprep.subr.bf16.mxu0 %v14930_v62  ;;  %v15121_v62 = vcombine.low %v3228_v59, %v3236_v0  ;;  %v15106_v57 = vcombine.high %v3212_v13, %v3220_v21  ;;  %v15105_v31 = vcombine.low %v3212_v13, %v3220_v21  ;;  %v3148_v21 = vld [vmem:[#allocation9 + $0x1920] sm:$0xff] }
 0x432   : > { %v9019_v18 = vadd.f32 %v17448_v8, %v8978_v22  ;;  %v3156_v22 = vld [vmem:[#allocation9 + $0x1960] sm:$0xff] }
 0x433   : > { %9294 = vmatpush2.bf16.msra.mxu1 %v14673_v53  ;;  %v3204_v53 = vld [vmem:[#allocation9 + $0x1ae0] sm:$0xff] }
 0x434   : > { %9335 = vmatpush2.bf16.msra.mxu0 %v14929_v26  ;;  %9295 = vmatprep.subr.bf16.mxu1 %v14658_v27  ;;  %v14340_v26 = vcombine.high %v2445_v25, %v2453_v10  ;;  %v2429_v27 = vld [vmem:[#allocation9 + $0x2a8] sm:$0xff]  ;;  %v3364_v47 = vld [vmem:[#allocation9 + $0x1fe0] sm:$0xff] }
 0x435   : > { %9336 = vmatprep.subr.bf16.mxu0 %v14914_v28  ;;  %v2437_v28 = vld [vmem:[#allocation9 + $0x2e8] sm:$0xff] }
 0x436   : > { %v14324_v8 = vcombine.high %v2429_v27, %v2437_v28  ;;  %v2389_v25 = vld [vmem:[#allocation9 + $0x168] sm:$0xff] }
 0x437   : > { %9296 = vmatpush2.bf16.msra.mxu1 %v14657_v54  ;;  %v15090_v54 = vcombine.high %v3196_v23, %v3204_v53 }
 0x438   : > { %9337 = vmatpush2.bf16.msra.mxu0 %v14913_v36  ;;  %9297 = vmatprep.subr.bf16.mxu1 %v14642_v37 }
 0x439   : > { %9338 = vmatprep.subr.bf16.mxu0 %v14898_v38  ;;  %v3180_v38 = vld [vmem:[#allocation9 + $0x1a20] sm:$0xff] }
 0x43a   : > { %v15074_v59 = vcombine.high %v3180_v38, %v3188_v42  ;;  %v15073_v19 = vcombine.low %v3180_v38, %v3188_v42 }
 0x43b   : > { %9298 = vmatpush2.bf16.msra.mxu1 %v14641_v56 }
 0x43c   : > { %9339 = vmatpush2.bf16.msra.mxu0 %v14897_v60  ;;  %9299 = vmatprep.subr.bf16.mxu1 %v14626_v49  ;;  %v15089_v49 = vcombine.low %v3196_v23, %v3204_v53  ;;  %v3132_v23 = vld [vmem:[#allocation9 + $0x18a0] sm:$0xff] }
 0x43d   : > { %9340 = vmatprep.subr.bf16.mxu0 %v14882_v61  ;;  %v14323_v61 = vcombine.low %v2429_v27, %v2437_v28  ;;  %v3140_v53 = vld [vmem:[#allocation9 + $0x18e0] sm:$0xff]  ;;  %v15041_v27 = vcombine.low %v3148_v21, %v3156_v22 }
 0x43f   : > { %9300 = vmatpush2.bf16.msra.mxu1 %v14625_v63  ;;  %v3172_v63 = vld [vmem:[#allocation9 + $0x19e0] sm:$0xff] }
 0x440   : > { %9341 = vmatpush2.bf16.msra.mxu0 %v14881_v39  ;;  %9351 = vmatprep.subr.bf16.mxu1 %v15122_v58  ;;  %v2397_v39 = vld [vmem:[#allocation9 + $0x1a8] sm:$0xff]  ;;  %v15057_v10 = vcombine.low %v3164_v5, %v3172_v63 }
 0x441   : > { %9392 = vmatprep.subr.bf16.mxu0 %v14356_v48  ;;  %v2405_v58 = vld [vmem:[#allocation9 + $0x1e8] sm:$0xff]  ;;  %v15058_v48 = vcombine.high %v3164_v5, %v3172_v63 }
 0x442   : > { %v9057_v6 = vpop.f32.mrf.mxu1  ;;  %9302 = vmatmul.mubr.bf16.vlgmr.msra.gmra.mxu1 %v17334_v46  ;;  %v14292_v13 = vcombine.high %v2397_v39, %v2405_v58 }
 0x443   : > { %v9058_v29 = vadd.f32 %v9057_v6, %v9017_v45  ;;  %v17463_v30 = vpop.f32.mrf.mxu0  ;;  %9343 = vmatmul.mubr.bf16.vlgmr.msra.gmra.mxu0 %v17354_v15  ;;  %9352 = vmatpush1.bf16.msra.mxu1 %v15121_v62  ;;  %v2381_v62 = vld [vmem:[#allocation9 + $0x128] sm:$0xff]  ;;  %v15042_v45 = vcombine.high %v3148_v21, %v3156_v22 }
 0x444   : > { %9383 = vmatprep.mubr.bf16.mxu1 %v17367_v52  ;;  %9393 = vmatpush1.bf16.msra.mxu0 %v14355_v44  ;;  %v9059_v11 = vpop.f32.mrf.mxu1  ;;  %v14291_v44 = vcombine.low %v2397_v39, %v2405_v58  ;;  %v2365_v6 = vld [vmem:[#allocation9 + $0xa8] sm:$0xff]  ;;  %v14275_v28 = vcombine.low %v2381_v62, %v2389_v25  ;;  %v3324_v58 = vld [vmem:[#allocation9 + $0x1ea0] sm:$0xff] }
 0x445   : > { %9424 = vmatprep.mubr.bf16.mxu0 %v17297_v14  ;;  %v9060_v36 = vadd.f32 %v9059_v11, %v9019_v18  ;;  %v17468_v37 = vpop.f32.mrf.mxu0  ;;  %9353 = vmatprep.subr.bf16.mxu1 %v15106_v57  ;;  %v9888_v55 = vmax.f32 %v9058_v29, 0.0  ;;  %v14276_v57 = vcombine.high %v2381_v62, %v2389_v25  ;;  %v15026_v18 = vcombine.high %v3132_v23, %v3140_v53  ;;  %v3124_v11 = vld [vmem:[#allocation9 + $0x1860] sm:$0xff] }
 0x446   : > { %v9061_v43 = vpop.f32.mrf.mxu1  ;;  %9394 = vmatprep.subr.bf16.mxu0 %v14340_v26  ;;  %v2373_v26 = vld [vmem:[#allocation9 + $0xe8] sm:$0xff]  ;;  %v3308_v25 = vld [vmem:[#allocation9 + $0x1e20] sm:$0xff] }
 0x447   : > { %v9889_v56 = vmax.f32 %v9060_v36, 0.0  ;;  %v9102_v60 = vpop.f32.mrf.mxu0  ;;  %9354 = vmatpush1.bf16.msra.mxu1 %v15105_v31  ;;  %v14260_v29 = vcombine.high %v2365_v6, %v2373_v26  ;;  %v3116_v31 = vld [vmem:[#allocation9 + $0x1820] sm:$0xff]  ;;  %v15025_v36 = vcombine.low %v3132_v23, %v3140_v53 }
 0x448   : > { %9395 = vmatpush1.bf16.msra.mxu0 %v14339_v32  ;;  %v9062_v34 = vpop.f32.mrf.mxu1  ;;  %9355 = vmatprep.subr.bf16.mxu1 %v15090_v54  ;;  %v2349_v32 = vld [vmem:[#allocation9 + $0x28] sm:$0xff]  ;;  %v15010_v38 = vcombine.high %v3116_v31, %v3124_v11  ;;  %v3356_v43 = vld [vmem:[#allocation9 + $0x1fa0] sm:$0xff] }
 0x449   : > { %v15802_v0 = vpack.c.bf16 %v9889_v56, %v9888_v55  ;;  %v9103_v1 = vpop.f32.mrf.mxu0  ;;  %9396 = vmatprep.subr.bf16.mxu0 %v14324_v8  ;;  %v2357_v54 = vld [vmem:[#allocation9 + $0x68] sm:$0xff]  ;;  %v14259_v8 = vcombine.low %v2365_v6, %v2373_v26  ;;  %v15009_v56 = vcombine.low %v3116_v31, %v3124_v11  ;;  %v3292_v26 = vld [vmem:[#allocation9 + $0x1da0] sm:$0xff] }
 0x44a   : > { %v14244_v42 = vcombine.high %v2349_v32, %v2357_v54  ;;  %v2597_v55 = vld [vmem:[#allocation9 + $0x7e8] sm:$0xff]  ;;  %v14243_v60 = vcombine.low %v2349_v32, %v2357_v54  ;;  %v3276_v54 = vld [vmem:[#allocation9 + $0x1d20] sm:$0xff] }
 0x44b   : > { %9966 = vst [vmem:[#allocation2 + $0x18] sm:$0xff] %v15802_v0  ;;  %9356 = vmatpush1.bf16.msra.mxu1 %v15089_v49  ;;  %v15250_v49 = vcombine.high %v3356_v43, %v3364_v47  ;;  %v14484_v34 = vcombine.high %v2589_v50, %v2597_v55  ;;  %v2573_v0 = vld [vmem:[#allocation9 + $0x728] sm:$0xff]  ;;  %v14483_v5 = vcombine.low %v2589_v50, %v2597_v55  ;;  %v3260_v55 = vld [vmem:[#allocation9 + $0x1ca0] sm:$0xff] }
 0x44c   : > { %9397 = vmatpush1.bf16.msra.mxu0 %v14323_v61  ;;  %9357 = vmatprep.subr.bf16.mxu1 %v15074_v59  ;;  %v3340_v61 = vld [vmem:[#allocation9 + $0x1f20] sm:$0xff]  ;;  %v2581_v1 = vld [vmem:[#allocation9 + $0x768] sm:$0xff] }
 0x44d   : > { %9398 = vmatprep.subr.bf16.mxu0 %v14308_v4  ;;  %v3348_v59 = vld [vmem:[#allocation9 + $0x1f60] sm:$0xff]  ;;  %v15249_v4 = vcombine.low %v3356_v43, %v3364_v47  ;;  %v14468_v39 = vcombine.high %v2573_v0, %v2581_v1  ;;  %v14467_v21 = vcombine.low %v2573_v0, %v2581_v1 }
 0x44e   : > { %v15234_v63 = vcombine.high %v3340_v61, %v3348_v59  ;;  %v3244_v1 = vld [vmem:[#allocation9 + $0x1c20] sm:$0xff] }
 0x44f   : > { %9358 = vmatpush1.bf16.msra.mxu1 %v15073_v19  ;;  %v3332_v19 = vld [vmem:[#allocation9 + $0x1ee0] sm:$0xff] }
 0x450   : > { %9399 = vmatpush1.bf16.msra.mxu0 %v14307_v9  ;;  %9359 = vmatprep.subr.bf16.mxu1 %v15058_v48  ;;  %v2557_v9 = vld [vmem:[#allocation9 + $0x6a8] sm:$0xff]  ;;  %v15218_v22 = vcombine.high %v3324_v58, %v3332_v19 }
 0x451   : > { %9400 = vmatprep.subr.bf16.mxu0 %v14292_v13  ;;  %v2565_v48 = vld [vmem:[#allocation9 + $0x6e8] sm:$0xff]  ;;  %v15233_v13 = vcombine.low %v3340_v61, %v3348_v59 }
 0x452   : > { %v14452_v62 = vcombine.high %v2557_v9, %v2565_v48  ;;  %v14451_v23 = vcombine.low %v2557_v9, %v2565_v48  ;;  %v2717_v48 = vld [vmem:[#allocation9 + $0xba8] sm:$0xff] }
 0x453   : > { %9360 = vmatpush1.bf16.msra.mxu1 %v15057_v10  ;;  %v3316_v10 = vld [vmem:[#allocation9 + $0x1e60] sm:$0xff] }
 0x454   : > { %9401 = vmatpush1.bf16.msra.mxu0 %v14291_v44  ;;  %9361 = vmatprep.subr.bf16.mxu1 %v15042_v45  ;;  %v2541_v44 = vld [vmem:[#allocation9 + $0x628] sm:$0xff]  ;;  %v15202_v53 = vcombine.high %v3308_v25, %v3316_v10 }
 0x455   : > { %9402 = vmatprep.subr.bf16.mxu0 %v14276_v57  ;;  %v2549_v45 = vld [vmem:[#allocation9 + $0x668] sm:$0xff]  ;;  %v15217_v57 = vcombine.low %v3324_v58, %v3332_v19 }
 0x456   : > { %v14436_v6 = vcombine.high %v2541_v44, %v2549_v45  ;;  %v14435_v31 = vcombine.low %v2541_v44, %v2549_v45  ;;  %v2701_v45 = vld [vmem:[#allocation9 + $0xb28] sm:$0xff] }
 0x457   : > { %9362 = vmatpush1.bf16.msra.mxu1 %v15041_v27  ;;  %v3300_v27 = vld [vmem:[#allocation9 + $0x1de0] sm:$0xff] }
 0x458   : > { %9403 = vmatpush1.bf16.msra.mxu0 %v14275_v28  ;;  %9363 = vmatprep.subr.bf16.mxu1 %v15026_v18  ;;  %v2525_v28 = vld [vmem:[#allocation9 + $0x5a8] sm:$0xff]  ;;  %v15186_v11 = vcombine.high %v3292_v26, %v3300_v27 }
 0x459   : > { %9404 = vmatprep.subr.bf16.mxu0 %v14260_v29  ;;  %v2533_v18 = vld [vmem:[#allocation9 + $0x5e8] sm:$0xff]  ;;  %v15201_v29 = vcombine.low %v3308_v25, %v3316_v10 }
 0x45a   : > { %v14420_v32 = vcombine.high %v2525_v28, %v2533_v18  ;;  %v14419_v43 = vcombine.low %v2525_v28, %v2533_v18  ;;  %v2685_v28 = vld [vmem:[#allocation9 + $0xaa8] sm:$0xff] }
 0x45b   : > { %9364 = vmatpush1.bf16.msra.mxu1 %v15025_v36  ;;  %v3284_v36 = vld [vmem:[#allocation9 + $0x1d60] sm:$0xff]  ;;  %v2693_v18 = vld [vmem:[#allocation9 + $0xae8] sm:$0xff] }
 0x45c   : > { %9405 = vmatpush1.bf16.msra.mxu0 %v14259_v8  ;;  %9365 = vmatprep.subr.bf16.mxu1 %v15010_v38  ;;  %v2509_v8 = vld [vmem:[#allocation9 + $0x528] sm:$0xff]  ;;  %v15170_v47 = vcombine.high %v3276_v54, %v3284_v36 }
 0x45d   : > { %9406 = vmatprep.subr.bf16.mxu0 %v14244_v42  ;;  %v2517_v38 = vld [vmem:[#allocation9 + $0x568] sm:$0xff]  ;;  %v15185_v42 = vcombine.low %v3292_v26, %v3300_v27 }
 0x45e   : > { %v14404_v50 = vcombine.high %v2509_v8, %v2517_v38  ;;  %v14403_v61 = vcombine.low %v2509_v8, %v2517_v38 }
 0x45f   : > { %9366 = vmatpush1.bf16.msra.mxu1 %v15009_v56  ;;  %v3268_v56 = vld [vmem:[#allocation9 + $0x1ce0] sm:$0xff] }
 0x460   : > { %9407 = vmatpush1.bf16.msra.mxu0 %v14243_v60  ;;  %9367 = vmatprep.subr.bf16.mxu1 %v15250_v49  ;;  %v2493_v60 = vld [vmem:[#allocation9 + $0x4a8] sm:$0xff]  ;;  %v15154_v59 = vcombine.high %v3260_v55, %v3268_v56 }
 0x461   : > { %9408 = vmatprep.subr.bf16.mxu0 %v14484_v34  ;;  %v2501_v49 = vld [vmem:[#allocation9 + $0x4e8] sm:$0xff]  ;;  %v15169_v34 = vcombine.low %v3276_v54, %v3284_v36 }
 0x462   : > { %v14388_v0 = vcombine.high %v2493_v60, %v2501_v49  ;;  %v14387_v58 = vcombine.low %v2493_v60, %v2501_v49  ;;  %v2925_v60 = vld [vmem:[#allocation9 + $0x1228] sm:$0xff] }
 0x463   : > { %9368 = vmatpush2.bf16.msra.mxu1 %v15249_v4  ;;  %v3252_v4 = vld [vmem:[#allocation9 + $0x1c60] sm:$0xff]  ;;  %v2933_v49 = vld [vmem:[#allocation9 + $0x1268] sm:$0xff] }
 0x464   : > { %9409 = vmatpush2.bf16.msra.mxu0 %v14483_v5  ;;  %9369 = vmatprep.subr.bf16.mxu1 %v15234_v63  ;;  %v2477_v5 = vld [vmem:[#allocation9 + $0x428] sm:$0xff]  ;;  %v15138_v19 = vcombine.high %v3244_v1, %v3252_v4 }
 0x465   : > { %9410 = vmatprep.subr.bf16.mxu0 %v14468_v39  ;;  %v2485_v63 = vld [vmem:[#allocation9 + $0x468] sm:$0xff]  ;;  %v15153_v39 = vcombine.low %v3260_v55, %v3268_v56 }
 0x466   : > { %v14372_v9 = vcombine.high %v2477_v5, %v2485_v63  ;;  %v14371_v25 = vcombine.low %v2477_v5, %v2485_v63  ;;  %v2677_v55 = vld [vmem:[#allocation9 + $0xa68] sm:$0xff]  ;;  %v14820_v5 = vcombine.high %v2925_v60, %v2933_v49 }
 0x467   : > { %9370 = vmatpush2.bf16.msra.mxu1 %v15233_v13  ;;  %v2725_v13 = vld [vmem:[#allocation9 + $0xbe8] sm:$0xff] }
 0x468   : > { %9411 = vmatpush2.bf16.msra.mxu0 %v14467_v21  ;;  %9371 = vmatprep.subr.bf16.mxu1 %v15218_v22  ;;  %v2973_v21 = vld [vmem:[#allocation9 + $0x13a8] sm:$0xff]  ;;  %v14612_v10 = vcombine.high %v2717_v48, %v2725_v13 }
 0x469   : > { %9412 = vmatprep.subr.bf16.mxu0 %v14452_v62  ;;  %v2981_v22 = vld [vmem:[#allocation9 + $0x13e8] sm:$0xff]  ;;  %v15137_v62 = vcombine.low %v3244_v1, %v3252_v4 }
 0x46a   : > { %v14868_v44 = vcombine.high %v2973_v21, %v2981_v22  ;;  %v14867_v26 = vcombine.low %v2973_v21, %v2981_v22  ;;  %v2653_v63 = vld [vmem:[#allocation9 + $0x9a8] sm:$0xff] }
 0x46b   : > { %9372 = vmatpush2.bf16.msra.mxu1 %v15217_v57  ;;  %v2709_v57 = vld [vmem:[#allocation9 + $0xb68] sm:$0xff] }
 0x46c   : > { %9413 = vmatpush2.bf16.msra.mxu0 %v14451_v23  ;;  %9373 = vmatprep.subr.bf16.mxu1 %v15202_v53  ;;  %v14611_v23 = vcombine.low %v2717_v48, %v2725_v13  ;;  %v2957_v53 = vld [vmem:[#allocation9 + $0x1328] sm:$0xff]  ;;  %v14596_v27 = vcombine.high %v2701_v45, %v2709_v57  ;;  %v14595_v36 = vcombine.low %v2701_v45, %v2709_v57 }
 0x46d   : > { %9414 = vmatprep.subr.bf16.mxu0 %v14436_v6  ;;  %v2965_v6 = vld [vmem:[#allocation9 + $0x1368] sm:$0xff]  ;;  %v14819_v48 = vcombine.low %v2925_v60, %v2933_v49 }
 0x46e   : > { %v14851_v38 = vcombine.low %v2957_v53, %v2965_v6  ;;  %v2637_v22 = vld [vmem:[#allocation9 + $0x928] sm:$0xff] }
 0x46f   : > { %9374 = vmatpush2.bf16.msra.mxu1 %v15201_v29  ;;  %v2845_v60 = vld [vmem:[#allocation9 + $0xfa8] sm:$0xff] }
 0x470   : > { %9415 = vmatpush2.bf16.msra.mxu0 %v14435_v31  ;;  %9375 = vmatprep.subr.bf16.mxu1 %v15186_v11  ;;  %v14852_v31 = vcombine.high %v2957_v53, %v2965_v6  ;;  %v2941_v11 = vld [vmem:[#allocation9 + $0x12a8] sm:$0xff] }
 0x471   : > { %9416 = vmatprep.subr.bf16.mxu0 %v14420_v32  ;;  %v2949_v32 = vld [vmem:[#allocation9 + $0x12e8] sm:$0xff] }
 0x472   : > { %v2621_v53 = vld [vmem:[#allocation9 + $0x8a8] sm:$0xff] }
 0x473   : > { %9376 = vmatpush2.bf16.msra.mxu1 %v15185_v42  ;;  %v14580_v42 = vcombine.high %v2685_v28, %v2693_v18  ;;  %v2629_v6 = vld [vmem:[#allocation9 + $0x8e8] sm:$0xff] }
 0x474   : > { %9417 = vmatpush2.bf16.msra.mxu0 %v14419_v43  ;;  %9377 = vmatprep.subr.bf16.mxu1 %v15170_v47  ;;  %v14836_v47 = vcombine.high %v2941_v11, %v2949_v32  ;;  %v2853_v49 = vld [vmem:[#allocation9 + $0xfe8] sm:$0xff] }
 0x475   : > { %9418 = vmatprep.subr.bf16.mxu0 %v14404_v50  ;;  %v2669_v50 = vld [vmem:[#allocation9 + $0xa28] sm:$0xff] }
 0x476   : > { %v14564_v1 = vcombine.high %v2669_v50, %v2677_v55 }
 0x477   : > { %9378 = vmatpush2.bf16.msra.mxu1 %v15169_v34 }
 0x478   : > { %9419 = vmatpush2.bf16.msra.mxu0 %v14403_v61  ;;  %9379 = vmatprep.subr.bf16.mxu1 %v15154_v59  ;;  %v14579_v61 = vcombine.low %v2685_v28, %v2693_v18 }
 0x479   : > { %9420 = vmatprep.subr.bf16.mxu0 %v14388_v0  ;;  %v14835_v0 = vcombine.low %v2941_v11, %v2949_v32  ;;  %v2605_v32 = vld [vmem:[#allocation9 + $0x828] sm:$0xff] }
 0x47b   : > { %9380 = vmatpush2.bf16.msra.mxu1 %v15153_v39  ;;  %v2661_v39 = vld [vmem:[#allocation9 + $0x9e8] sm:$0xff] }
 0x47c   : > { %9421 = vmatpush2.bf16.msra.mxu0 %v14387_v58  ;;  %9381 = vmatprep.subr.bf16.mxu1 %v15138_v19  ;;  %v2909_v58 = vld [vmem:[#allocation9 + $0x11a8] sm:$0xff]  ;;  %v14548_v13 = vcombine.high %v2653_v63, %v2661_v39 }
 0x47d   : > { %9422 = vmatprep.subr.bf16.mxu0 %v14372_v9  ;;  %v2917_v19 = vld [vmem:[#allocation9 + $0x11e8] sm:$0xff]  ;;  %v14563_v9 = vcombine.low %v2669_v50, %v2677_v55 }
 0x47e   : > { %v14804_v21 = vcombine.high %v2909_v58, %v2917_v19  ;;  %v14803_v45 = vcombine.low %v2909_v58, %v2917_v19  ;;  %v3093_v58 = vld [vmem:[#allocation9 + $0x1768] sm:$0xff]  ;;  %v14739_v19 = vcombine.low %v2845_v60, %v2853_v49 }
 0x47f   : > { %9382 = vmatpush2.bf16.msra.mxu1 %v15137_v62  ;;  %v2645_v62 = vld [vmem:[#allocation9 + $0x968] sm:$0xff] }
 0x480   : > { %9423 = vmatpush2.bf16.msra.mxu0 %v14371_v25  ;;  %9433 = vmatprep.subr.bf16.mxu1 %v14612_v10  ;;  %v2893_v25 = vld [vmem:[#allocation9 + $0x1128] sm:$0xff]  ;;  %v14532_v57 = vcombine.high %v2637_v22, %v2645_v62  ;;  %v14531_v28 = vcombine.low %v2637_v22, %v2645_v62 }
 0x481   : > { %9474 = vmatprep.subr.bf16.mxu0 %v14868_v44  ;;  %v2901_v10 = vld [vmem:[#allocation9 + $0x1168] sm:$0xff]  ;;  %v14547_v44 = vcombine.low %v2653_v63, %v2661_v39 }
 0x482   : > { %v17470_v29 = vpop.f32.mrf.mxu1  ;;  %9384 = vmatmul.mubr.bf16.vlgmr.msra.gmra.mxu1 %v17369_v3  ;;  %v14787_v18 = vcombine.low %v2893_v25, %v2901_v10  ;;  %v2837_v63 = vld [vmem:[#allocation9 + $0xf68] sm:$0xff] }
 0x483   : > { %v17473_v54 = vpop.f32.mrf.mxu0  ;;  %9425 = vmatmul.mubr.bf16.vlgmr.msra.gmra.mxu0 %v17321_v7  ;;  %9434 = vmatpush1.bf16.msra.mxu1 %v14611_v23  ;;  %v14788_v23 = vcombine.high %v2893_v25, %v2901_v10  ;;  %v3085_v39 = vld [vmem:[#allocation9 + $0x1728] sm:$0xff] }
 0x484   : > { %9465 = vmatprep.mubr.bf16.mxu1 %v17326_v41  ;;  %9475 = vmatpush1.bf16.msra.mxu0 %v14867_v26  ;;  %v17477_v8 = vpop.f32.mrf.mxu1  ;;  %v2877_v26 = vld [vmem:[#allocation9 + $0x10a8] sm:$0xff] }
 0x485   : > { %9506 = vmatprep.mubr.bf16.mxu0 %v17352_v12  ;;  %v17480_v43 = vpop.f32.mrf.mxu0  ;;  %9435 = vmatprep.subr.bf16.mxu1 %v14596_v27  ;;  %v2885_v27 = vld [vmem:[#allocation9 + $0x10e8] sm:$0xff] }
 0x486   : > { %v9143_v56 = vpop.f32.mrf.mxu1  ;;  %9476 = vmatprep.subr.bf16.mxu0 %v14852_v31  ;;  %v14516_v31 = vcombine.high %v2621_v53, %v2629_v6  ;;  %v14772_v11 = vcombine.high %v2877_v26, %v2885_v27  ;;  %v14771_v50 = vcombine.low %v2877_v26, %v2885_v27  ;;  %v2821_v22 = vld [vmem:[#allocation9 + $0xee8] sm:$0xff] }
 0x487   : > { %v9184_v34 = vpop.f32.mrf.mxu0  ;;  %9436 = vmatpush1.bf16.msra.mxu1 %v14595_v36  ;;  %v2613_v36 = vld [vmem:[#allocation9 + $0x868] sm:$0xff] }
 0x488   : > { %9477 = vmatpush1.bf16.msra.mxu0 %v14851_v38  ;;  %v9144_v59 = vpop.f32.mrf.mxu1  ;;  %9437 = vmatprep.subr.bf16.mxu1 %v14580_v42  ;;  %v2861_v38 = vld [vmem:[#allocation9 + $0x1028] sm:$0xff]  ;;  %v14500_v55 = vcombine.high %v2605_v32, %v2613_v36 }
 0x489   : > { %v9185_v4 = vpop.f32.mrf.mxu0  ;;  %9478 = vmatprep.subr.bf16.mxu0 %v14836_v47  ;;  %v2869_v42 = vld [vmem:[#allocation9 + $0x1068] sm:$0xff]  ;;  %v14515_v47 = vcombine.low %v2621_v53, %v2629_v6  ;;  %v14499_v59 = vcombine.low %v2605_v32, %v2613_v36 }
 0x48a   : > { %v14756_v56 = vcombine.high %v2861_v38, %v2869_v42  ;;  %v3101_v34 = vld [vmem:[#allocation9 + $0x17a8] sm:$0xff] }
 0x48b   : > { %9438 = vmatpush1.bf16.msra.mxu1 %v14579_v61  ;;  %v3109_v61 = vld [vmem:[#allocation9 + $0x17e8] sm:$0xff] }
 0x48c   : > { %9479 = vmatpush1.bf16.msra.mxu0 %v14835_v0  ;;  %9439 = vmatprep.subr.bf16.mxu1 %v14564_v1  ;;  %v14755_v0 = vcombine.low %v2861_v38, %v2869_v42  ;;  %v14740_v1 = vcombine.high %v2845_v60, %v2853_v49  ;;  %v14996_v4 = vcombine.high %v3101_v34, %v3109_v61  ;;  %v3069_v62 = vld [vmem:[#allocation9 + $0x16a8] sm:$0xff] }
 0x48d   : > { %9480 = vmatprep.subr.bf16.mxu0 %v14820_v5  ;;  %v2829_v5 = vld [vmem:[#allocation9 + $0xf28] sm:$0xff] }
 0x48e   : > { %v3077_v25 = vld [vmem:[#allocation9 + $0x16e8] sm:$0xff]  ;;  %v14723_v10 = vcombine.low %v2829_v5, %v2837_v63 }
 0x48f   : > { %9440 = vmatpush1.bf16.msra.mxu1 %v14563_v9  ;;  %v14995_v9 = vcombine.low %v3101_v34, %v3109_v61  ;;  %v2805_v53 = vld [vmem:[#allocation9 + $0xe68] sm:$0xff] }
 0x490   : > { %9481 = vmatpush1.bf16.msra.mxu0 %v14819_v48  ;;  %9441 = vmatprep.subr.bf16.mxu1 %v14548_v13  ;;  %v14724_v48 = vcombine.high %v2829_v5, %v2837_v63  ;;  %v14980_v13 = vcombine.high %v3085_v39, %v3093_v58  ;;  %v3053_v6 = vld [vmem:[#allocation9 + $0x1628] sm:$0xff] }
 0x491   : > { %9482 = vmatprep.subr.bf16.mxu0 %v14804_v21  ;;  %v2813_v21 = vld [vmem:[#allocation9 + $0xea8] sm:$0xff] }
 0x492   : > { %v3061_v26 = vld [vmem:[#allocation9 + $0x1668] sm:$0xff]  ;;  %v14707_v27 = vcombine.low %v2813_v21, %v2821_v22 }
 0x493   : > { %9442 = vmatpush1.bf16.msra.mxu1 %v14547_v44  ;;  %v14979_v44 = vcombine.low %v3085_v39, %v3093_v58  ;;  %v2789_v32 = vld [vmem:[#allocation9 + $0xde8] sm:$0xff] }
 0x494   : > { %9483 = vmatpush1.bf16.msra.mxu0 %v14803_v45  ;;  %9443 = vmatprep.subr.bf16.mxu1 %v14532_v57  ;;  %v14708_v45 = vcombine.high %v2813_v21, %v2821_v22  ;;  %v14964_v57 = vcombine.high %v3069_v62, %v3077_v25  ;;  %v3037_v36 = vld [vmem:[#allocation9 + $0x15a8] sm:$0xff] }
 0x495   : > { %9484 = vmatprep.subr.bf16.mxu0 %v14788_v23  ;;  %v2797_v23 = vld [vmem:[#allocation9 + $0xe28] sm:$0xff] }
 0x496   : > { %v3045_v38 = vld [vmem:[#allocation9 + $0x15e8] sm:$0xff]  ;;  %v14691_v42 = vcombine.low %v2797_v23, %v2805_v53 }
 0x497   : > { %9444 = vmatpush1.bf16.msra.mxu1 %v14531_v28  ;;  %v14963_v28 = vcombine.low %v3069_v62, %v3077_v25  ;;  %v2773_v60 = vld [vmem:[#allocation9 + $0xd68] sm:$0xff]  ;;  %v3399_v25 = vrot.slane %v17450_v51, %v17360_v17 }
 0x498   : > { %9485 = vmatpush1.bf16.msra.mxu0 %v14787_v18  ;;  %9445 = vmatprep.subr.bf16.mxu1 %v14516_v31  ;;  %v14692_v18 = vcombine.high %v2797_v23, %v2805_v53  ;;  %v14948_v31 = vcombine.high %v3053_v6, %v3061_v26  ;;  %v3021_v49 = vld [vmem:[#allocation9 + $0x1528] sm:$0xff] }
 0x499   : > { %9486 = vmatprep.subr.bf16.mxu0 %v14772_v11  ;;  %v2781_v11 = vld [vmem:[#allocation9 + $0xda8] sm:$0xff] }
 0x49a   : > { %v3029_v34 = vld [vmem:[#allocation9 + $0x1568] sm:$0xff]  ;;  %v14675_v61 = vcombine.low %v2781_v11, %v2789_v32 }
 0x49b   : > { %9446 = vmatpush1.bf16.msra.mxu1 %v14515_v47  ;;  %v14947_v47 = vcombine.low %v3053_v6, %v3061_v26  ;;  %v2757_v5 = vld [vmem:[#allocation9 + $0xce8] sm:$0xff]  ;;  %v2462_v26 = vld [vmem:[#allocation9 + $0x3b0] sm:$0xff] }
 0x49c   : > { %9487 = vmatpush1.bf16.msra.mxu0 %v14771_v50  ;;  %9447 = vmatprep.subr.bf16.mxu1 %v14500_v55  ;;  %v14676_v50 = vcombine.high %v2781_v11, %v2789_v32  ;;  %v14932_v55 = vcombine.high %v3037_v36, %v3045_v38  ;;  %v3005_v63 = vld [vmem:[#allocation9 + $0x14a8] sm:$0xff] }
 0x49d   : > { %9488 = vmatprep.subr.bf16.mxu0 %v14756_v56  ;;  %v2765_v56 = vld [vmem:[#allocation9 + $0xd28] sm:$0xff] }
 0x49e   : > { %v3013_v39 = vld [vmem:[#allocation9 + $0x14e8] sm:$0xff]  ;;  %v14659_v58 = vcombine.low %v2765_v56, %v2773_v60 }
 0x49f   : > { %9448 = vmatpush1.bf16.msra.mxu1 %v14499_v59  ;;  %v14931_v59 = vcombine.low %v3037_v36, %v3045_v38  ;;  %v2741_v21 = vld [vmem:[#allocation9 + $0xc68] sm:$0xff] }
 0x4a0   : > { %9489 = vmatpush1.bf16.msra.mxu0 %v14755_v0  ;;  %9449 = vmatprep.subr.bf16.mxu1 %v14740_v1  ;;  %v14660_v0 = vcombine.high %v2765_v56, %v2773_v60  ;;  %v14916_v1 = vcombine.high %v3021_v49, %v3029_v34  ;;  %v2989_v22 = vld [vmem:[#allocation9 + $0x1428] sm:$0xff] }
 0x4a1   : > { %9490 = vmatprep.subr.bf16.mxu0 %v14996_v4  ;;  %v2749_v4 = vld [vmem:[#allocation9 + $0xca8] sm:$0xff] }
 0x4a2   : > { %v2997_v62 = vld [vmem:[#allocation9 + $0x1468] sm:$0xff] }
 0x4a3   : > { %9450 = vmatpush2.bf16.msra.mxu1 %v14739_v19  ;;  %v14915_v19 = vcombine.low %v3021_v49, %v3029_v34  ;;  %v14884_v23 = vcombine.high %v2989_v22, %v2997_v62  ;;  %v3229_v53 = vld [vmem:[#allocation9 + $0x1ba8] sm:$0xff] }
 0x4a4   : > { %9491 = vmatpush2.bf16.msra.mxu0 %v14995_v9  ;;  %9451 = vmatprep.subr.bf16.mxu1 %v14724_v48  ;;  %v14644_v9 = vcombine.high %v2749_v4, %v2757_v5  ;;  %v14900_v48 = vcombine.high %v3005_v63, %v3013_v39  ;;  %v3237_v6 = vld [vmem:[#allocation9 + $0x1be8] sm:$0xff] }
 0x4a5   : > { %9492 = vmatprep.subr.bf16.mxu0 %v14980_v13  ;;  %v2733_v13 = vld [vmem:[#allocation9 + $0xc28] sm:$0xff]  ;;  %v15124_v11 = vcombine.high %v3229_v53, %v3237_v6 }
 0x4a6   : > { %v3213_v38 = vld [vmem:[#allocation9 + $0x1b28] sm:$0xff] }
 0x4a7   : > { %9452 = vmatpush2.bf16.msra.mxu1 %v14723_v10  ;;  %v14643_v10 = vcombine.low %v2749_v4, %v2757_v5  ;;  %v3205_v34 = vld [vmem:[#allocation9 + $0x1ae8] sm:$0xff] }
 0x4a8   : > { %9493 = vmatpush2.bf16.msra.mxu0 %v14979_v44  ;;  %9453 = vmatprep.subr.bf16.mxu1 %v14708_v45  ;;  %v14899_v44 = vcombine.low %v3005_v63, %v3013_v39  ;;  %v14628_v45 = vcombine.high %v2733_v13, %v2741_v21 }
 0x4a9   : > { %9494 = vmatprep.subr.bf16.mxu0 %v14964_v57  ;;  %v3403_v57 = vrot.slane %v17450_v51, %v17363_v20 }
 0x4ab   : > { %9454 = vmatpush2.bf16.msra.mxu1 %v14707_v27  ;;  %v2470_v27 = vld [vmem:[#allocation9 + $0x3f0] sm:$0xff]  ;;  %v9101_v32 = vadd.f32 %v17468_v37, %v3403_v57  ;;  %v3197_v37 = vld [vmem:[#allocation9 + $0x1aa8] sm:$0xff] }
 0x4ac   : > { %9495 = vmatpush2.bf16.msra.mxu0 %v14963_v28  ;;  %9455 = vmatprep.subr.bf16.mxu1 %v14692_v18  ;;  %v9099_v28 = vadd.f32 %v17463_v30, %v3399_v25  ;;  %v14627_v18 = vcombine.low %v2733_v13, %v2741_v21  ;;  %v14358_v51 = vcombine.high %v2462_v26, %v2470_v27  ;;  %v2454_v30 = vld [vmem:[#allocation9 + $0x370] sm:$0xff] }
 0x4ad   : > { %9496 = vmatprep.subr.bf16.mxu0 %v14948_v31  ;;  %v14883_v31 = vcombine.low %v2989_v22, %v2997_v62  ;;  %v14357_v56 = vcombine.low %v2462_v26, %v2470_v27  ;;  %v15092_v39 = vcombine.high %v3197_v37, %v3205_v34  ;;  %v2414_v21 = vld [vmem:[#allocation9 + $0x230] sm:$0xff]  ;;  %v3165_v27 = vld [vmem:[#allocation9 + $0x19a8] sm:$0xff] }
 0x4ae   : > { %v9140_v36 = vadd.f32 %v17470_v29, %v9099_v28  ;;  %v2422_v22 = vld [vmem:[#allocation9 + $0x270] sm:$0xff]  ;;  %v3173_v28 = vld [vmem:[#allocation9 + $0x19e8] sm:$0xff] }
 0x4af   : > { %9456 = vmatpush2.bf16.msra.mxu1 %v14691_v42  ;;  %v3221_v42 = vld [vmem:[#allocation9 + $0x1b68] sm:$0xff]  ;;  %v14310_v26 = vcombine.high %v2414_v21, %v2422_v22 }
 0x4b0   : > { %9497 = vmatpush2.bf16.msra.mxu0 %v14947_v47  ;;  %9457 = vmatprep.subr.bf16.mxu1 %v14676_v50  ;;  %v9142_v47 = vadd.f32 %v17477_v8, %v9101_v32  ;;  %v15123_v50 = vcombine.low %v3229_v53, %v3237_v6  ;;  %v9181_v60 = vadd.f32 %v17473_v54, %v9140_v36 }
 0x4b1   : > { %9498 = vmatprep.subr.bf16.mxu0 %v14932_v55  ;;  %v2446_v55 = vld [vmem:[#allocation9 + $0x330] sm:$0xff]  ;;  %v15108_v49 = vcombine.high %v3213_v38, %v3221_v42  ;;  %v15107_v5 = vcombine.low %v3213_v38, %v3221_v42  ;;  %v14309_v32 = vcombine.low %v2414_v21, %v2422_v22  ;;  %v15060_v36 = vcombine.high %v3165_v27, %v3173_v28  ;;  %v3149_v38 = vld [vmem:[#allocation9 + $0x1928] sm:$0xff] }
 0x4b2   : > { %v9183_v8 = vadd.f32 %v17480_v43, %v9142_v47  ;;  %v14341_v63 = vcombine.low %v2446_v55, %v2454_v30  ;;  %v3157_v42 = vld [vmem:[#allocation9 + $0x1968] sm:$0xff]  ;;  %v2382_v47 = vld [vmem:[#allocation9 + $0x130] sm:$0xff] }
 0x4b3   : > { %9458 = vmatpush2.bf16.msra.mxu1 %v14675_v61  ;;  %v14342_v61 = vcombine.high %v2446_v55, %v2454_v30  ;;  %v15059_v55 = vcombine.low %v3165_v27, %v3173_v28  ;;  %v2590_v21 = vld [vmem:[#allocation9 + $0x7b0] sm:$0xff] }
 0x4b4   : > { %9499 = vmatpush2.bf16.msra.mxu0 %v14931_v59  ;;  %9459 = vmatprep.subr.bf16.mxu1 %v14660_v0  ;;  %v2430_v59 = vld [vmem:[#allocation9 + $0x2b0] sm:$0xff] }
 0x4b5   : > { %9500 = vmatprep.subr.bf16.mxu0 %v14916_v1  ;;  %v2438_v0 = vld [vmem:[#allocation9 + $0x2f0] sm:$0xff] }
 0x4b6   : > { %v14326_v43 = vcombine.high %v2430_v59, %v2438_v0  ;;  %v14325_v57 = vcombine.low %v2430_v59, %v2438_v0  ;;  %v2598_v22 = vld [vmem:[#allocation9 + $0x7f0] sm:$0xff] }
 0x4b7   : > { %9460 = vmatpush2.bf16.msra.mxu1 %v14659_v58 }
 0x4b8   : > { %9501 = vmatpush2.bf16.msra.mxu0 %v14915_v19  ;;  %9461 = vmatprep.subr.bf16.mxu1 %v14644_v9  ;;  %v3181_v9 = vld [vmem:[#allocation9 + $0x1a28] sm:$0xff] }
 0x4b9   : > { %9502 = vmatprep.subr.bf16.mxu0 %v14900_v48  ;;  %v3189_v48 = vld [vmem:[#allocation9 + $0x1a68] sm:$0xff] }
 0x4bb   : > { %9462 = vmatpush2.bf16.msra.mxu1 %v14643_v10 }
 0x4bc   : > { %9503 = vmatpush2.bf16.msra.mxu0 %v14899_v44  ;;  %9463 = vmatprep.subr.bf16.mxu1 %v14628_v45  ;;  %v15091_v44 = vcombine.low %v3197_v37, %v3205_v34  ;;  %v3141_v37 = vld [vmem:[#allocation9 + $0x18e8] sm:$0xff]  ;;  %v2366_v34 = vld [vmem:[#allocation9 + $0xb0] sm:$0xff] }
 0x4bd   : > { %9504 = vmatprep.subr.bf16.mxu0 %v14884_v23  ;;  %v15076_v23 = vcombine.high %v3181_v9, %v3189_v48 }
 0x4bf   : > { %9464 = vmatpush2.bf16.msra.mxu1 %v14627_v18  ;;  %v2398_v18 = vld [vmem:[#allocation9 + $0x1b0] sm:$0xff] }
 0x4c0   : > { %9505 = vmatpush2.bf16.msra.mxu0 %v14883_v31  ;;  %9515 = vmatprep.subr.bf16.mxu1 %v15124_v11  ;;  %v2406_v31 = vld [vmem:[#allocation9 + $0x1f0] sm:$0xff]  ;;  %v15075_v11 = vcombine.low %v3181_v9, %v3189_v48  ;;  %v3357_v48 = vld [vmem:[#allocation9 + $0x1fa8] sm:$0xff] }
 0x4c1   : > { %9556 = vmatprep.subr.bf16.mxu0 %v14358_v51  ;;  %v14294_v51 = vcombine.high %v2398_v18, %v2406_v31  ;;  %v14293_v30 = vcombine.low %v2398_v18, %v2406_v31  ;;  %v3325_v18 = vld [vmem:[#allocation9 + $0x1ea8] sm:$0xff] }
 0x4c2   : > { %v9221_v29 = vpop.f32.mrf.mxu1  ;;  %9466 = vmatmul.mubr.bf16.vlgmr.msra.gmra.mxu1 %v17334_v46  ;;  %v3333_v31 = vld [vmem:[#allocation9 + $0x1ee8] sm:$0xff] }
 0x4c3   : > { %v9222_v1 = vadd.f32 %v9221_v29, %v9181_v60  ;;  %v17493_v4 = vpop.f32.mrf.mxu0  ;;  %9507 = vmatmul.mubr.bf16.vlgmr.msra.gmra.mxu0 %v17354_v15  ;;  %9516 = vmatpush1.bf16.msra.mxu1 %v15123_v50  ;;  %v2390_v50 = vld [vmem:[#allocation9 + $0x170] sm:$0xff] }
 0x4c4   : > { %9547 = vmatprep.mubr.bf16.mxu1 %v17367_v52  ;;  %9557 = vmatpush1.bf16.msra.mxu0 %v14357_v56  ;;  %v9223_v54 = vpop.f32.mrf.mxu1  ;;  %v15044_v56 = vcombine.high %v3149_v38, %v3157_v42  ;;  %v14278_v60 = vcombine.high %v2382_v47, %v2390_v50  ;;  %v2374_v29 = vld [vmem:[#allocation9 + $0xf0] sm:$0xff]  ;;  %v14277_v59 = vcombine.low %v2382_v47, %v2390_v50  ;;  %v3309_v47 = vld [vmem:[#allocation9 + $0x1e28] sm:$0xff] }
 0x4c5   : > { %9588 = vmatprep.mubr.bf16.mxu0 %v17297_v14  ;;  %v9224_v58 = vadd.f32 %v9223_v54, %v9183_v8  ;;  %v17498_v19 = vpop.f32.mrf.mxu0  ;;  %9517 = vmatprep.subr.bf16.mxu1 %v15108_v49  ;;  %v9890_v62 = vmax.f32 %v9222_v1, 0.0  ;;  %v3133_v49 = vld [vmem:[#allocation9 + $0x18a8] sm:$0xff]  ;;  %v14262_v8 = vcombine.high %v2366_v34, %v2374_v29  ;;  %v2350_v54 = vld [vmem:[#allocation9 + $0x30] sm:$0xff] }
 0x4c6   : > { %v9225_v13 = vpop.f32.mrf.mxu1  ;;  %9558 = vmatprep.subr.bf16.mxu0 %v14342_v61  ;;  %v15043_v61 = vcombine.low %v3149_v38, %v3157_v42  ;;  %v15028_v0 = vcombine.high %v3133_v49, %v3141_v37  ;;  %v3117_v1 = vld [vmem:[#allocation9 + $0x1828] sm:$0xff]  ;;  %v15220_v38 = vcombine.high %v3325_v18, %v3333_v31 }
 0x4c7   : > { %v9891_v25 = vmax.f32 %v9224_v58, 0.0  ;;  %v9266_v10 = vpop.f32.mrf.mxu0  ;;  %9518 = vmatpush1.bf16.msra.mxu1 %v15107_v5  ;;  %v3125_v5 = vld [vmem:[#allocation9 + $0x1868] sm:$0xff]  ;;  %v14261_v58 = vcombine.low %v2366_v34, %v2374_v29 }
 0x4c8   : > { %9559 = vmatpush1.bf16.msra.mxu0 %v14341_v63  ;;  %v9226_v45 = vpop.f32.mrf.mxu1  ;;  %9519 = vmatprep.subr.bf16.mxu1 %v15092_v39  ;;  %v2358_v63 = vld [vmem:[#allocation9 + $0x70] sm:$0xff]  ;;  %v15027_v39 = vcombine.low %v3133_v49, %v3141_v37  ;;  %v3365_v13 = vld [vmem:[#allocation9 + $0x1fe8] sm:$0xff] }
 0x4c9   : > { %v15803_v53 = vpack.c.bf16 %v9891_v25, %v9890_v62  ;;  %v9267_v6 = vpop.f32.mrf.mxu0  ;;  %9560 = vmatprep.subr.bf16.mxu0 %v14326_v43  ;;  %v15012_v43 = vcombine.high %v3117_v1, %v3125_v5  ;;  %v14246_v9 = vcombine.high %v2350_v54, %v2358_v63  ;;  %v15011_v62 = vcombine.low %v3117_v1, %v3125_v5  ;;  %v3341_v45 = vld [vmem:[#allocation9 + $0x1f28] sm:$0xff] }
 0x4ca   : > { %v14245_v25 = vcombine.low %v2350_v54, %v2358_v63  ;;  %v15252_v10 = vcombine.high %v3357_v48, %v3365_v13  ;;  %v15251_v6 = vcombine.low %v3357_v48, %v3365_v13  ;;  %v3317_v50 = vld [vmem:[#allocation9 + $0x1e68] sm:$0xff] }
 0x4cb   : > { %9967 = vst [vmem:[#allocation2 + $0x10] sm:$0xff] %v15803_v53  ;;  %9520 = vmatpush1.bf16.msra.mxu1 %v15091_v44  ;;  %v14486_v44 = vcombine.high %v2590_v21, %v2598_v22  ;;  %v2582_v53 = vld [vmem:[#allocation9 + $0x770] sm:$0xff]  ;;  %v15204_v49 = vcombine.high %v3309_v47, %v3317_v50  ;;  %v3293_v34 = vld [vmem:[#allocation9 + $0x1da8] sm:$0xff] }
 0x4cc   : > { %9561 = vmatpush1.bf16.msra.mxu0 %v14325_v57  ;;  %9521 = vmatprep.subr.bf16.mxu1 %v15076_v23  ;;  %v3349_v57 = vld [vmem:[#allocation9 + $0x1f68] sm:$0xff]  ;;  %v2574_v23 = vld [vmem:[#allocation9 + $0x730] sm:$0xff] }
 0x4cd   : > { %9562 = vmatprep.subr.bf16.mxu0 %v14310_v26  ;;  %v14485_v26 = vcombine.low %v2590_v21, %v2598_v22  ;;  %v15236_v27 = vcombine.high %v3341_v45, %v3349_v57  ;;  %v14470_v28 = vcombine.high %v2574_v23, %v2582_v53  ;;  %v3301_v29 = vld [vmem:[#allocation9 + $0x1de8] sm:$0xff] }
 0x4ce   : > { %v15188_v1 = vcombine.high %v3293_v34, %v3301_v29  ;;  %v3277_v54 = vld [vmem:[#allocation9 + $0x1d28] sm:$0xff] }
 0x4cf   : > { %9522 = vmatpush1.bf16.msra.mxu1 %v15075_v11  ;;  %v2558_v11 = vld [vmem:[#allocation9 + $0x6b0] sm:$0xff]  ;;  %v3285_v63 = vld [vmem:[#allocation9 + $0x1d68] sm:$0xff] }
 0x4d0   : > { %9563 = vmatpush1.bf16.msra.mxu0 %v14309_v32  ;;  %9523 = vmatprep.subr.bf16.mxu1 %v15060_v36  ;;  %v2566_v32 = vld [vmem:[#allocation9 + $0x6f0] sm:$0xff]  ;;  %v15235_v36 = vcombine.low %v3341_v45, %v3349_v57  ;;  %v15172_v48 = vcombine.high %v3277_v54, %v3285_v63  ;;  %v3261_v21 = vld [vmem:[#allocation9 + $0x1ca8] sm:$0xff] }
 0x4d1   : > { %9564 = vmatprep.subr.bf16.mxu0 %v14294_v51  ;;  %v14469_v51 = vcombine.low %v2574_v23, %v2582_v53  ;;  %v14454_v42 = vcombine.high %v2558_v11, %v2566_v32  ;;  %v3269_v22 = vld [vmem:[#allocation9 + $0x1ce8] sm:$0xff] }
 0x4d2   : > { %v15156_v45 = vcombine.high %v3261_v21, %v3269_v22  ;;  %v3245_v23 = vld [vmem:[#allocation9 + $0x1c28] sm:$0xff] }
 0x4d3   : > { %9524 = vmatpush1.bf16.msra.mxu1 %v15059_v55  ;;  %v2542_v55 = vld [vmem:[#allocation9 + $0x630] sm:$0xff]  ;;  %v3253_v53 = vld [vmem:[#allocation9 + $0x1c68] sm:$0xff] }
 0x4d4   : > { %9565 = vmatpush1.bf16.msra.mxu0 %v14293_v30  ;;  %9525 = vmatprep.subr.bf16.mxu1 %v15044_v56  ;;  %v2550_v30 = vld [vmem:[#allocation9 + $0x670] sm:$0xff]  ;;  %v15219_v56 = vcombine.low %v3325_v18, %v3333_v31  ;;  %v15140_v18 = vcombine.high %v3245_v23, %v3253_v53 }
 0x4d5   : > { %9566 = vmatprep.subr.bf16.mxu0 %v14278_v60  ;;  %v14453_v60 = vcombine.low %v2558_v11, %v2566_v32  ;;  %v14438_v37 = vcombine.high %v2542_v55, %v2550_v30  ;;  %v2718_v11 = vld [vmem:[#allocation9 + $0xbb0] sm:$0xff] }
 0x4d6   : > { %v2726_v32 = vld [vmem:[#allocation9 + $0xbf0] sm:$0xff] }
 0x4d7   : > { %9526 = vmatpush1.bf16.msra.mxu1 %v15043_v61  ;;  %v2526_v61 = vld [vmem:[#allocation9 + $0x5b0] sm:$0xff] }
 0x4d8   : > { %9567 = vmatpush1.bf16.msra.mxu0 %v14277_v59  ;;  %9527 = vmatprep.subr.bf16.mxu1 %v15028_v0  ;;  %v2534_v59 = vld [vmem:[#allocation9 + $0x5f0] sm:$0xff]  ;;  %v15203_v0 = vcombine.low %v3309_v47, %v3317_v50  ;;  %v14614_v47 = vcombine.high %v2718_v11, %v2726_v32 }
 0x4d9   : > { %9568 = vmatprep.subr.bf16.mxu0 %v14262_v8  ;;  %v14437_v8 = vcombine.low %v2542_v55, %v2550_v30  ;;  %v14422_v5 = vcombine.high %v2526_v61, %v2534_v59  ;;  %v2702_v55 = vld [vmem:[#allocation9 + $0xb30] sm:$0xff] }
 0x4da   : > { %v2710_v30 = vld [vmem:[#allocation9 + $0xb70] sm:$0xff] }
 0x4db   : > { %9528 = vmatpush1.bf16.msra.mxu1 %v15027_v39  ;;  %v2510_v39 = vld [vmem:[#allocation9 + $0x530] sm:$0xff] }
 0x4dc   : > { %9569 = vmatpush1.bf16.msra.mxu0 %v14261_v58  ;;  %9529 = vmatprep.subr.bf16.mxu1 %v15012_v43  ;;  %v2518_v58 = vld [vmem:[#allocation9 + $0x570] sm:$0xff]  ;;  %v15187_v43 = vcombine.low %v3293_v34, %v3301_v29  ;;  %v14598_v34 = vcombine.high %v2702_v55, %v2710_v30 }
 0x4dd   : > { %9570 = vmatprep.subr.bf16.mxu0 %v14246_v9  ;;  %v14421_v9 = vcombine.low %v2526_v61, %v2534_v59  ;;  %v14406_v13 = vcombine.high %v2510_v39, %v2518_v58  ;;  %v2686_v29 = vld [vmem:[#allocation9 + $0xab0] sm:$0xff] }
 0x4de   : > { %v2694_v61 = vld [vmem:[#allocation9 + $0xaf0] sm:$0xff] }
 0x4df   : > { %9530 = vmatpush1.bf16.msra.mxu1 %v15011_v62  ;;  %v2494_v62 = vld [vmem:[#allocation9 + $0x4b0] sm:$0xff] }
 0x4e0   : > { %9571 = vmatpush1.bf16.msra.mxu0 %v14245_v25  ;;  %9531 = vmatprep.subr.bf16.mxu1 %v15252_v10  ;;  %v2502_v25 = vld [vmem:[#allocation9 + $0x4f0] sm:$0xff]  ;;  %v15171_v10 = vcombine.low %v3277_v54, %v3285_v63  ;;  %v14597_v54 = vcombine.low %v2702_v55, %v2710_v30 }
 0x4e1   : > { %9572 = vmatprep.subr.bf16.mxu0 %v14486_v44  ;;  %v14405_v44 = vcombine.low %v2510_v39, %v2518_v58  ;;  %v14390_v57 = vcombine.high %v2494_v62, %v2502_v25  ;;  %v14582_v58 = vcombine.high %v2686_v29, %v2694_v61 }
 0x4e3   : > { %9532 = vmatpush2.bf16.msra.mxu1 %v15251_v6  ;;  %v2478_v6 = vld [vmem:[#allocation9 + $0x430] sm:$0xff] }
 0x4e4   : > { %9573 = vmatpush2.bf16.msra.mxu0 %v14485_v26  ;;  %9533 = vmatprep.subr.bf16.mxu1 %v15236_v27  ;;  %v2486_v26 = vld [vmem:[#allocation9 + $0x470] sm:$0xff]  ;;  %v15155_v27 = vcombine.low %v3261_v21, %v3269_v22 }
 0x4e5   : > { %9574 = vmatprep.subr.bf16.mxu0 %v14470_v28  ;;  %v14389_v28 = vcombine.low %v2494_v62, %v2502_v25  ;;  %v14374_v31 = vcombine.high %v2478_v6, %v2486_v26  ;;  %v2926_v22 = vld [vmem:[#allocation9 + $0x1230] sm:$0xff] }
 0x4e6   : > { %v2934_v62 = vld [vmem:[#allocation9 + $0x1270] sm:$0xff] }
 0x4e7   : > { %9534 = vmatpush2.bf16.msra.mxu1 %v15235_v36  ;;  %v2974_v36 = vld [vmem:[#allocation9 + $0x13b0] sm:$0xff] }
 0x4e8   : > { %9575 = vmatpush2.bf16.msra.mxu0 %v14469_v51  ;;  %9535 = vmatprep.subr.bf16.mxu1 %v15220_v38  ;;  %v2982_v51 = vld [vmem:[#allocation9 + $0x13f0] sm:$0xff]  ;;  %v15139_v38 = vcombine.low %v3245_v23, %v3253_v53  ;;  %v14822_v53 = vcombine.high %v2926_v22, %v2934_v62 }
 0x4e9   : > { %9576 = vmatprep.subr.bf16.mxu0 %v14454_v42  ;;  %v14373_v42 = vcombine.low %v2478_v6, %v2486_v26  ;;  %v14870_v50 = vcombine.high %v2974_v36, %v2982_v51  ;;  %v2654_v6 = vld [vmem:[#allocation9 + $0x9b0] sm:$0xff] }
 0x4ea   : > { %v2662_v26 = vld [vmem:[#allocation9 + $0x9f0] sm:$0xff] }
 0x4eb   : > { %9536 = vmatpush2.bf16.msra.mxu1 %v15219_v56  ;;  %v14613_v56 = vcombine.low %v2718_v11, %v2726_v32  ;;  %v14550_v11 = vcombine.high %v2654_v6, %v2662_v26 }
 0x4ec   : > { %9577 = vmatpush2.bf16.msra.mxu0 %v14453_v60  ;;  %9537 = vmatprep.subr.bf16.mxu1 %v15204_v49  ;;  %v2958_v60 = vld [vmem:[#allocation9 + $0x1330] sm:$0xff] }
 0x4ed   : > { %9578 = vmatprep.subr.bf16.mxu0 %v14438_v37  ;;  %v2966_v49 = vld [vmem:[#allocation9 + $0x1370] sm:$0xff]  ;;  %v14869_v37 = vcombine.low %v2974_v36, %v2982_v51 }
 0x4ee   : > { %v14853_v39 = vcombine.low %v2958_v60, %v2966_v49  ;;  %v2638_v36 = vld [vmem:[#allocation9 + $0x930] sm:$0xff] }
 0x4ef   : > { %9538 = vmatpush2.bf16.msra.mxu1 %v15203_v0  ;;  %v14854_v0 = vcombine.high %v2958_v60, %v2966_v49  ;;  %v2646_v51 = vld [vmem:[#allocation9 + $0x970] sm:$0xff] }
 0x4f0   : > { %9579 = vmatpush2.bf16.msra.mxu0 %v14437_v8  ;;  %9539 = vmatprep.subr.bf16.mxu1 %v15188_v1  ;;  %v2942_v8 = vld [vmem:[#allocation9 + $0x12b0] sm:$0xff]  ;;  %v14534_v55 = vcombine.high %v2638_v36, %v2646_v51 }
 0x4f1   : > { %9580 = vmatprep.subr.bf16.mxu0 %v14422_v5  ;;  %v2950_v1 = vld [vmem:[#allocation9 + $0x12f0] sm:$0xff] }
 0x4f2   : > { %v2630_v60 = vld [vmem:[#allocation9 + $0x8f0] sm:$0xff] }
 0x4f3   : > { %9540 = vmatpush2.bf16.msra.mxu1 %v15187_v43  ;;  %v2878_v49 = vld [vmem:[#allocation9 + $0x10b0] sm:$0xff] }
 0x4f4   : > { %9581 = vmatpush2.bf16.msra.mxu0 %v14421_v9  ;;  %9541 = vmatprep.subr.bf16.mxu1 %v15172_v48  ;;  %v14838_v9 = vcombine.high %v2942_v8, %v2950_v1  ;;  %v2670_v48 = vld [vmem:[#allocation9 + $0xa30] sm:$0xff] }
 0x4f5   : > { %9582 = vmatprep.subr.bf16.mxu0 %v14406_v13  ;;  %v2678_v13 = vld [vmem:[#allocation9 + $0xa70] sm:$0xff] }
 0x4f7   : > { %9542 = vmatpush2.bf16.msra.mxu1 %v15171_v10  ;;  %v14581_v10 = vcombine.low %v2686_v29, %v2694_v61 }
 0x4f8   : > { %9583 = vmatpush2.bf16.msra.mxu0 %v14405_v44  ;;  %9543 = vmatprep.subr.bf16.mxu1 %v15156_v45  ;;  %v14837_v45 = vcombine.low %v2942_v8, %v2950_v1  ;;  %v2606_v8 = vld [vmem:[#allocation9 + $0x830] sm:$0xff] }
 0x4f9   : > { %9584 = vmatprep.subr.bf16.mxu0 %v14390_v57  ;;  %v14566_v57 = vcombine.high %v2670_v48, %v2678_v13  ;;  %v2614_v1 = vld [vmem:[#allocation9 + $0x870] sm:$0xff] }
 0x4fb   : > { %9544 = vmatpush2.bf16.msra.mxu1 %v15155_v27  ;;  %v2910_v27 = vld [vmem:[#allocation9 + $0x11b0] sm:$0xff] }
 0x4fc   : > { %9585 = vmatpush2.bf16.msra.mxu0 %v14389_v28  ;;  %9545 = vmatprep.subr.bf16.mxu1 %v15140_v18  ;;  %v2918_v28 = vld [vmem:[#allocation9 + $0x11f0] sm:$0xff]  ;;  %v14565_v18 = vcombine.low %v2670_v48, %v2678_v13  ;;  %v14502_v48 = vcombine.high %v2606_v8, %v2614_v1 }
 0x4fd   : > { %9586 = vmatprep.subr.bf16.mxu0 %v14374_v31  ;;  %v14821_v31 = vcombine.low %v2926_v22, %v2934_v62  ;;  %v14806_v32 = vcombine.high %v2910_v27, %v2918_v28  ;;  %v2854_v22 = vld [vmem:[#allocation9 + $0xff0] sm:$0xff] }
 0x4fe   : > { %v3102_v62 = vld [vmem:[#allocation9 + $0x17b0] sm:$0xff] }
 0x4ff   : > { %9546 = vmatpush2.bf16.msra.mxu1 %v15139_v38  ;;  %v2894_v38 = vld [vmem:[#allocation9 + $0x1130] sm:$0xff] }
 0x500   : > { %9587 = vmatpush2.bf16.msra.mxu0 %v14373_v42  ;;  %9597 = vmatprep.subr.bf16.mxu1 %v14614_v47  ;;  %v2902_v42 = vld [vmem:[#allocation9 + $0x1170] sm:$0xff]  ;;  %v14549_v47 = vcombine.low %v2654_v6, %v2662_v26 }
 0x501   : > { %9638 = vmatprep.subr.bf16.mxu0 %v14870_v50  ;;  %v14805_v50 = vcombine.low %v2910_v27, %v2918_v28  ;;  %v14790_v30 = vcombine.high %v2894_v38, %v2902_v42  ;;  %v14789_v29 = vcombine.low %v2894_v38, %v2902_v42  ;;  %v3086_v6 = vld [vmem:[#allocation9 + $0x1730] sm:$0xff] }
 0x502   : > { %v17500_v59 = vpop.f32.mrf.mxu1  ;;  %9548 = vmatmul.mubr.bf16.vlgmr.msra.gmra.mxu1 %v17369_v3  ;;  %v3094_v26 = vld [vmem:[#allocation9 + $0x1770] sm:$0xff] }
 0x503   : > { %v17503_v5 = vpop.f32.mrf.mxu0  ;;  %9589 = vmatmul.mubr.bf16.vlgmr.msra.gmra.mxu0 %v17321_v7  ;;  %9598 = vmatpush1.bf16.msra.mxu1 %v14613_v56  ;;  %v2622_v56 = vld [vmem:[#allocation9 + $0x8b0] sm:$0xff]  ;;  %v14981_v42 = vcombine.low %v3086_v6, %v3094_v26 }
 0x504   : > { %9629 = vmatprep.mubr.bf16.mxu1 %v17326_v41  ;;  %9639 = vmatpush1.bf16.msra.mxu0 %v14869_v37  ;;  %v17507_v63 = vpop.f32.mrf.mxu1  ;;  %v2886_v37 = vld [vmem:[#allocation9 + $0x10f0] sm:$0xff]  ;;  %v14518_v61 = vcombine.high %v2622_v56, %v2630_v60 }
 0x505   : > { %9670 = vmatprep.mubr.bf16.mxu0 %v17352_v12  ;;  %v17510_v43 = vpop.f32.mrf.mxu0  ;;  %9599 = vmatprep.subr.bf16.mxu1 %v14598_v34  ;;  %v14533_v34 = vcombine.low %v2638_v36, %v2646_v51  ;;  %v3070_v36 = vld [vmem:[#allocation9 + $0x16b0] sm:$0xff] }
 0x506   : > { %v9307_v21 = vpop.f32.mrf.mxu1  ;;  %9640 = vmatprep.subr.bf16.mxu0 %v14854_v0  ;;  %v14774_v0 = vcombine.high %v2878_v49, %v2886_v37  ;;  %v3078_v51 = vld [vmem:[#allocation9 + $0x16f0] sm:$0xff] }
 0x507   : > { %v9348_v25 = vpop.f32.mrf.mxu0  ;;  %9600 = vmatpush1.bf16.msra.mxu1 %v14597_v54  ;;  %v2862_v54 = vld [vmem:[#allocation9 + $0x1030] sm:$0xff] }
 0x508   : > { %9641 = vmatpush1.bf16.msra.mxu0 %v14853_v39  ;;  %v9308_v44 = vpop.f32.mrf.mxu1  ;;  %9601 = vmatprep.subr.bf16.mxu1 %v14582_v58  ;;  %v2870_v39 = vld [vmem:[#allocation9 + $0x1070] sm:$0xff]  ;;  %v14517_v58 = vcombine.low %v2622_v56, %v2630_v60 }
 0x509   : > { %v9349_v23 = vpop.f32.mrf.mxu0  ;;  %9642 = vmatprep.subr.bf16.mxu0 %v14838_v9  ;;  %v14773_v9 = vcombine.low %v2878_v49, %v2886_v37  ;;  %v14758_v13 = vcombine.high %v2862_v54, %v2870_v39  ;;  %v2846_v21 = vld [vmem:[#allocation9 + $0xfb0] sm:$0xff]  ;;  %v14757_v44 = vcombine.low %v2862_v54, %v2870_v39  ;;  %v14965_v37 = vcombine.low %v3070_v36, %v3078_v51 }
 0x50a   : > { %v3110_v25 = vld [vmem:[#allocation9 + $0x17f0] sm:$0xff]  ;;  %v14741_v27 = vcombine.low %v2846_v21, %v2854_v22 }
 0x50b   : > { %9602 = vmatpush1.bf16.msra.mxu1 %v14581_v10  ;;  %v14501_v10 = vcombine.low %v2606_v8, %v2614_v1  ;;  %v2830_v23 = vld [vmem:[#allocation9 + $0xf30] sm:$0xff]  ;;  %v14997_v28 = vcombine.low %v3102_v62, %v3110_v25 }
 0x50c   : > { %9643 = vmatpush1.bf16.msra.mxu0 %v14837_v45  ;;  %9603 = vmatprep.subr.bf16.mxu1 %v14566_v57  ;;  %v14742_v45 = vcombine.high %v2846_v21, %v2854_v22  ;;  %v14998_v57 = vcombine.high %v3102_v62, %v3110_v25  ;;  %v3054_v56 = vld [vmem:[#allocation9 + $0x1630] sm:$0xff] }
 0x50d   : > { %9644 = vmatprep.subr.bf16.mxu0 %v14822_v53  ;;  %v2838_v53 = vld [vmem:[#allocation9 + $0xf70] sm:$0xff] }
 0x50e   : > { %v14725_v38 = vcombine.low %v2830_v23, %v2838_v53  ;;  %v3062_v60 = vld [vmem:[#allocation9 + $0x1670] sm:$0xff] }
 0x50f   : > { %9604 = vmatpush1.bf16.msra.mxu1 %v14565_v18  ;;  %v14726_v18 = vcombine.high %v2830_v23, %v2838_v53  ;;  %v3038_v8 = vld [vmem:[#allocation9 + $0x15b0] sm:$0xff]  ;;  %v14949_v39 = vcombine.low %v3054_v56, %v3062_v60 }
 0x510   : > { %9645 = vmatpush1.bf16.msra.mxu0 %v14821_v31  ;;  %9605 = vmatprep.subr.bf16.mxu1 %v14550_v11  ;;  %v14982_v31 = vcombine.high %v3086_v6, %v3094_v26  ;;  %v2814_v11 = vld [vmem:[#allocation9 + $0xeb0] sm:$0xff]  ;;  %v17512_v26 = vld [vmem:[#allocation11 + $0x8] sm:$0xff] }
 0x511   : > { %9646 = vmatprep.subr.bf16.mxu0 %v14806_v32  ;;  %v2822_v32 = vld [vmem:[#allocation9 + $0xef0] sm:$0xff] }
 0x512   : > { %v14709_v49 = vcombine.low %v2814_v11, %v2822_v32  ;;  %v3046_v1 = vld [vmem:[#allocation9 + $0x15f0] sm:$0xff] }
 0x513   : > { %9606 = vmatpush1.bf16.msra.mxu1 %v14549_v47  ;;  %v14710_v47 = vcombine.high %v2814_v11, %v2822_v32  ;;  %v3022_v21 = vld [vmem:[#allocation9 + $0x1530] sm:$0xff]  ;;  %v14933_v25 = vcombine.low %v3038_v8, %v3046_v1 }
 0x514   : > { %9647 = vmatpush1.bf16.msra.mxu0 %v14805_v50  ;;  %9607 = vmatprep.subr.bf16.mxu1 %v14534_v55  ;;  %v14966_v50 = vcombine.high %v3070_v36, %v3078_v51  ;;  %v2798_v55 = vld [vmem:[#allocation9 + $0xe30] sm:$0xff]  ;;  %v3407_v51 = vrot.slane %v17512_v26, %v17301_v24 }
 0x515   : > { %9648 = vmatprep.subr.bf16.mxu0 %v14790_v30  ;;  %v2806_v30 = vld [vmem:[#allocation9 + $0xe70] sm:$0xff] }
 0x516   : > { %v14693_v54 = vcombine.low %v2798_v55, %v2806_v30  ;;  %v3030_v22 = vld [vmem:[#allocation9 + $0x1570] sm:$0xff] }
 0x517   : > { %9608 = vmatpush1.bf16.msra.mxu1 %v14533_v34  ;;  %v14694_v34 = vcombine.high %v2798_v55, %v2806_v30  ;;  %v3006_v23 = vld [vmem:[#allocation9 + $0x14b0] sm:$0xff] }
 0x518   : > { %9649 = vmatpush1.bf16.msra.mxu0 %v14789_v29  ;;  %9609 = vmatprep.subr.bf16.mxu1 %v14518_v61  ;;  %v14950_v29 = vcombine.high %v3054_v56, %v3062_v60  ;;  %v2782_v61 = vld [vmem:[#allocation9 + $0xdb0] sm:$0xff]  ;;  %v2463_v60 = vld [vmem:[#allocation9 + $0x3b8] sm:$0xff] }
 0x519   : > { %9650 = vmatprep.subr.bf16.mxu0 %v14774_v0  ;;  %v2790_v0 = vld [vmem:[#allocation9 + $0xdf0] sm:$0xff] }
 0x51a   : > { %v14677_v62 = vcombine.low %v2782_v61, %v2790_v0  ;;  %v3014_v53 = vld [vmem:[#allocation9 + $0x14f0] sm:$0xff] }
 0x51b   : > { %9610 = vmatpush1.bf16.msra.mxu1 %v14517_v58  ;;  %v14678_v58 = vcombine.high %v2782_v61, %v2790_v0  ;;  %v2742_v11 = vld [vmem:[#allocation9 + $0xc70] sm:$0xff] }
 0x51c   : > { %9651 = vmatpush1.bf16.msra.mxu0 %v14773_v9  ;;  %9611 = vmatprep.subr.bf16.mxu1 %v14502_v48  ;;  %v14934_v9 = vcombine.high %v3038_v8, %v3046_v1  ;;  %v2766_v48 = vld [vmem:[#allocation9 + $0xd30] sm:$0xff] }
 0x51d   : > { %9652 = vmatprep.subr.bf16.mxu0 %v14758_v13  ;;  %v2774_v13 = vld [vmem:[#allocation9 + $0xd70] sm:$0xff] }
 0x51e   : > { %v14661_v6 = vcombine.low %v2766_v48, %v2774_v13  ;;  %v2990_v32 = vld [vmem:[#allocation9 + $0x1430] sm:$0xff] }
 0x51f   : > { %9612 = vmatpush1.bf16.msra.mxu1 %v14501_v10  ;;  %v14662_v10 = vcombine.high %v2766_v48, %v2774_v13  ;;  %v2998_v36 = vld [vmem:[#allocation9 + $0x1470] sm:$0xff] }
 0x520   : > { %9653 = vmatpush1.bf16.msra.mxu0 %v14757_v44  ;;  %9613 = vmatprep.subr.bf16.mxu1 %v14742_v45  ;;  %v14918_v44 = vcombine.high %v3022_v21, %v3030_v22  ;;  %v2750_v45 = vld [vmem:[#allocation9 + $0xcb0] sm:$0xff]  ;;  %v14886_v55 = vcombine.high %v2990_v32, %v2998_v36  ;;  %v14885_v24 = vcombine.low %v2990_v32, %v2998_v36 }
 0x521   : > { %9654 = vmatprep.subr.bf16.mxu0 %v14998_v57  ;;  %v2758_v57 = vld [vmem:[#allocation9 + $0xcf0] sm:$0xff] }
 0x522   : > { %v3230_v30 = vld [vmem:[#allocation9 + $0x1bb0] sm:$0xff] }
 0x523   : > { %9614 = vmatpush2.bf16.msra.mxu1 %v14741_v27  ;;  %v14917_v27 = vcombine.low %v3022_v21, %v3030_v22  ;;  %v3238_v56 = vld [vmem:[#allocation9 + $0x1bf0] sm:$0xff] }
 0x524   : > { %9655 = vmatpush2.bf16.msra.mxu0 %v14997_v28  ;;  %9615 = vmatprep.subr.bf16.mxu1 %v14726_v18  ;;  %v14646_v28 = vcombine.high %v2750_v45, %v2758_v57  ;;  %v14902_v18 = vcombine.high %v3006_v23, %v3014_v53  ;;  %v3214_v8 = vld [vmem:[#allocation9 + $0x1b30] sm:$0xff] }
 0x525   : > { %9656 = vmatprep.subr.bf16.mxu0 %v14982_v31  ;;  %v2734_v31 = vld [vmem:[#allocation9 + $0xc30] sm:$0xff] }
 0x526   : > { %v3222_v1 = vld [vmem:[#allocation9 + $0x1b70] sm:$0xff] }
 0x527   : > { %9616 = vmatpush2.bf16.msra.mxu1 %v14725_v38  ;;  %v14645_v38 = vcombine.low %v2750_v45, %v2758_v57  ;;  %v15110_v13 = vcombine.high %v3214_v8, %v3222_v1  ;;  %v3206_v21 = vld [vmem:[#allocation9 + $0x1af0] sm:$0xff]  ;;  %v15109_v45 = vcombine.low %v3214_v8, %v3222_v1  ;;  %v2383_v8 = vld [vmem:[#allocation9 + $0x138] sm:$0xff] }
 0x528   : > { %9657 = vmatpush2.bf16.msra.mxu0 %v14981_v42  ;;  %9617 = vmatprep.subr.bf16.mxu1 %v14710_v47  ;;  %v14901_v42 = vcombine.low %v3006_v23, %v3014_v53  ;;  %v14630_v47 = vcombine.high %v2734_v31, %v2742_v11  ;;  %v2391_v1 = vld [vmem:[#allocation9 + $0x178] sm:$0xff] }
 0x529   : > { %9658 = vmatprep.subr.bf16.mxu0 %v14966_v50  ;;  %v3411_v50 = vrot.slane %v17512_v26, %v17285_v35 }
 0x52b   : > { %9618 = vmatpush2.bf16.msra.mxu1 %v14709_v49  ;;  %v2471_v49 = vld [vmem:[#allocation9 + $0x3f8] sm:$0xff]  ;;  %v9265_v61 = vadd.f32 %v17498_v19, %v3411_v50  ;;  %v3198_v19 = vld [vmem:[#allocation9 + $0x1ab0] sm:$0xff] }
 0x52c   : > { %9659 = vmatpush2.bf16.msra.mxu0 %v14965_v37  ;;  %9619 = vmatprep.subr.bf16.mxu1 %v14694_v34  ;;  %v9263_v37 = vadd.f32 %v17493_v4, %v3407_v51  ;;  %v14629_v34 = vcombine.low %v2734_v31, %v2742_v11  ;;  %v14360_v35 = vcombine.high %v2463_v60, %v2471_v49  ;;  %v2455_v4 = vld [vmem:[#allocation9 + $0x378] sm:$0xff] }
 0x52d   : > { %9660 = vmatprep.subr.bf16.mxu0 %v14950_v29  ;;  %v15126_v29 = vcombine.high %v3230_v30, %v3238_v56  ;;  %v15094_v23 = vcombine.high %v3198_v19, %v3206_v21  ;;  %v2415_v31 = vld [vmem:[#allocation9 + $0x238] sm:$0xff] }
 0x52e   : > { %v9304_v0 = vadd.f32 %v17500_v59, %v9263_v37  ;;  %v2423_v11 = vld [vmem:[#allocation9 + $0x278] sm:$0xff] }
 0x52f   : > { %9620 = vmatpush2.bf16.msra.mxu1 %v14693_v54  ;;  %v9306_v54 = vadd.f32 %v17507_v63, %v9265_v61  ;;  %v2407_v37 = vld [vmem:[#allocation9 + $0x1f8] sm:$0xff] }
 0x530   : > { %9661 = vmatpush2.bf16.msra.mxu0 %v14949_v39  ;;  %9621 = vmatprep.subr.bf16.mxu1 %v14678_v58  ;;  %v15125_v39 = vcombine.low %v3230_v30, %v3238_v56  ;;  %v2447_v58 = vld [vmem:[#allocation9 + $0x338] sm:$0xff]  ;;  %v9345_v48 = vadd.f32 %v17503_v5, %v9304_v0  ;;  %v14312_v30 = vcombine.high %v2415_v31, %v2423_v11  ;;  %v3166_v56 = vld [vmem:[#allocation9 + $0x19b0] sm:$0xff] }
 0x531   : > { %9662 = vmatprep.subr.bf16.mxu0 %v14934_v9  ;;  %v14359_v9 = vcombine.low %v2463_v60, %v2471_v49  ;;  %v14344_v22 = vcombine.high %v2447_v58, %v2455_v4  ;;  %v9347_v63 = vadd.f32 %v17510_v43, %v9306_v54  ;;  %v14343_v57 = vcombine.low %v2447_v58, %v2455_v4  ;;  %v3174_v60 = vld [vmem:[#allocation9 + $0x19f0] sm:$0xff]  ;;  %v2399_v49 = vld [vmem:[#allocation9 + $0x1b8] sm:$0xff] }
 0x532   : > { %v14296_v61 = vcombine.high %v2399_v49, %v2407_v37  ;;  %v3150_v0 = vld [vmem:[#allocation9 + $0x1930] sm:$0xff]  ;;  %v15061_v54 = vcombine.low %v3166_v56, %v3174_v60  ;;  %v14280_v4 = vcombine.high %v2383_v8, %v2391_v1 }
 0x533   : > { %9622 = vmatpush2.bf16.msra.mxu1 %v14677_v62  ;;  %v2431_v62 = vld [vmem:[#allocation9 + $0x2b8] sm:$0xff] }
 0x534   : > { %9663 = vmatpush2.bf16.msra.mxu0 %v14933_v25  ;;  %9623 = vmatprep.subr.bf16.mxu1 %v14662_v10  ;;  %v2439_v25 = vld [vmem:[#allocation9 + $0x2f8] sm:$0xff] }
 0x535   : > { %9664 = vmatprep.subr.bf16.mxu0 %v14918_v44  ;;  %v14328_v43 = vcombine.high %v2431_v62, %v2439_v25 }
 0x537   : > { %9624 = vmatpush2.bf16.msra.mxu1 %v14661_v6 }
 0x538   : > { %9665 = vmatpush2.bf16.msra.mxu0 %v14917_v27  ;;  %9625 = vmatprep.subr.bf16.mxu1 %v14646_v28  ;;  %v3182_v27 = vld [vmem:[#allocation9 + $0x1a30] sm:$0xff] }
 0x539   : > { %9666 = vmatprep.subr.bf16.mxu0 %v14902_v18  ;;  %v3190_v28 = vld [vmem:[#allocation9 + $0x1a70] sm:$0xff] }
 0x53b   : > { %9626 = vmatpush2.bf16.msra.mxu1 %v14645_v38  ;;  %v15093_v38 = vcombine.low %v3198_v19, %v3206_v21  ;;  %v2375_v19 = vld [vmem:[#allocation9 + $0xf8] sm:$0xff] }
 0x53c   : > { %9667 = vmatpush2.bf16.msra.mxu0 %v14901_v42  ;;  %9627 = vmatprep.subr.bf16.mxu1 %v14630_v47  ;;  %v15078_v47 = vcombine.high %v3182_v27, %v3190_v28 }
 0x53d   : > { %9668 = vmatprep.subr.bf16.mxu0 %v14886_v55 }
 0x53f   : > { %9628 = vmatpush2.bf16.msra.mxu1 %v14629_v34  ;;  %v15077_v34 = vcombine.low %v3182_v27, %v3190_v28  ;;  %v3366_v27 = vld [vmem:[#allocation9 + $0x1ff0] sm:$0xff]  ;;  %v2591_v28 = vld [vmem:[#allocation9 + $0x7b8] sm:$0xff] }
 0x540   : > { %9669 = vmatpush2.bf16.msra.mxu0 %v14885_v24  ;;  %9679 = vmatprep.subr.bf16.mxu1 %v15126_v29  ;;  %v14311_v24 = vcombine.low %v2415_v31, %v2423_v11  ;;  %v15062_v29 = vcombine.high %v3166_v56, %v3174_v60  ;;  %v3326_v56 = vld [vmem:[#allocation9 + $0x1eb0] sm:$0xff] }
 0x541   : > { %9720 = vmatprep.subr.bf16.mxu0 %v14360_v35  ;;  %v3158_v35 = vld [vmem:[#allocation9 + $0x1970] sm:$0xff] }
 0x542   : > { %v9385_v59 = vpop.f32.mrf.mxu1  ;;  %9630 = vmatmul.mubr.bf16.vlgmr.msra.gmra.mxu1 %v17334_v46  ;;  %v15046_v58 = vcombine.high %v3150_v0, %v3158_v35  ;;  %v15045_v21 = vcombine.low %v3150_v0, %v3158_v35  ;;  %v3334_v60 = vld [vmem:[#allocation9 + $0x1ef0] sm:$0xff] }
 0x543   : > { %v9386_v10 = vadd.f32 %v9385_v59, %v9345_v48  ;;  %v17525_v44 = vpop.f32.mrf.mxu0  ;;  %9671 = vmatmul.mubr.bf16.vlgmr.msra.gmra.mxu0 %v17354_v15  ;;  %9680 = vmatpush1.bf16.msra.mxu1 %v15125_v39  ;;  %v14295_v39 = vcombine.low %v2399_v49, %v2407_v37  ;;  %v3142_v48 = vld [vmem:[#allocation9 + $0x18f0] sm:$0xff]  ;;  %v14279_v59 = vcombine.low %v2383_v8, %v2391_v1  ;;  %v2559_v49 = vld [vmem:[#allocation9 + $0x6b8] sm:$0xff] }
 0x544   : > { %9711 = vmatprep.mubr.bf16.mxu1 %v17367_v52  ;;  %9721 = vmatpush1.bf16.msra.mxu0 %v14359_v9  ;;  %v9387_v5 = vpop.f32.mrf.mxu1  ;;  %v3134_v9 = vld [vmem:[#allocation9 + $0x18b0] sm:$0xff]  ;;  %v2567_v37 = vld [vmem:[#allocation9 + $0x6f8] sm:$0xff] }
 0x545   : > { %9752 = vmatprep.mubr.bf16.mxu0 %v17297_v14  ;;  %v9388_v53 = vadd.f32 %v9387_v5, %v9347_v63  ;;  %v17530_v6 = vpop.f32.mrf.mxu0  ;;  %9681 = vmatprep.subr.bf16.mxu1 %v15110_v13  ;;  %v9892_v32 = vmax.f32 %v9386_v10, 0.0  ;;  %v14327_v14 = vcombine.low %v2431_v62, %v2439_v25  ;;  %v2367_v13 = vld [vmem:[#allocation9 + $0xb8] sm:$0xff]  ;;  %v3118_v25 = vld [vmem:[#allocation9 + $0x1830] sm:$0xff]  ;;  %v15029_v5 = vcombine.low %v3134_v9, %v3142_v48 }
 0x546   : > { %v9389_v18 = vpop.f32.mrf.mxu1  ;;  %9722 = vmatprep.subr.bf16.mxu0 %v14344_v22  ;;  %v15030_v22 = vcombine.high %v3134_v9, %v3142_v48  ;;  %v14264_v62 = vcombine.high %v2367_v13, %v2375_v19  ;;  %v3126_v63 = vld [vmem:[#allocation9 + $0x1870] sm:$0xff]  ;;  %v2351_v10 = vld [vmem:[#allocation9 + $0x38] sm:$0xff] }
 0x547   : > { %v9893_v36 = vmax.f32 %v9388_v53, 0.0  ;;  %v9430_v51 = vpop.f32.mrf.mxu0  ;;  %9682 = vmatpush1.bf16.msra.mxu1 %v15109_v45  ;;  %v2359_v45 = vld [vmem:[#allocation9 + $0x78] sm:$0xff]  ;;  %v15013_v31 = vcombine.low %v3118_v25, %v3126_v63  ;;  %v3310_v0 = vld [vmem:[#allocation9 + $0x1e30] sm:$0xff] }
 0x548   : > { %9723 = vmatpush1.bf16.msra.mxu0 %v14343_v57  ;;  %v9390_v42 = vpop.f32.mrf.mxu1  ;;  %9683 = vmatprep.subr.bf16.mxu1 %v15094_v23  ;;  %v14263_v57 = vcombine.low %v2367_v13, %v2375_v19  ;;  %v15014_v23 = vcombine.high %v3118_v25, %v3126_v63  ;;  %v14248_v53 = vcombine.high %v2351_v10, %v2359_v45  ;;  %v2599_v18 = vld [vmem:[#allocation9 + $0x7f8] sm:$0xff]  ;;  %v3342_v51 = vld [vmem:[#allocation9 + $0x1f30] sm:$0xff] }
 0x549   : > { %v15804_v50 = vpack.c.bf16 %v9893_v36, %v9892_v32  ;;  %v9431_v55 = vpop.f32.mrf.mxu0  ;;  %9724 = vmatprep.subr.bf16.mxu0 %v14328_v43  ;;  %v3358_v43 = vld [vmem:[#allocation9 + $0x1fb0] sm:$0xff]  ;;  %v14247_v11 = vcombine.low %v2351_v10, %v2359_v45  ;;  %v14488_v36 = vcombine.high %v2591_v28, %v2599_v18  ;;  %v2575_v42 = vld [vmem:[#allocation9 + $0x738] sm:$0xff] }
 0x54a   : > { %v15254_v32 = vcombine.high %v3358_v43, %v3366_v27  ;;  %v3318_v35 = vld [vmem:[#allocation9 + $0x1e70] sm:$0xff]  ;;  %v2543_v8 = vld [vmem:[#allocation9 + $0x638] sm:$0xff] }
 0x54b   : > { %9968 = vst [vmem:[#allocation2 + $0x8] sm:$0xff] %v15804_v50  ;;  %9684 = vmatpush1.bf16.msra.mxu1 %v15093_v38  ;;  %v3350_v38 = vld [vmem:[#allocation9 + $0x1f70] sm:$0xff]  ;;  %v14487_v50 = vcombine.low %v2591_v28, %v2599_v18  ;;  %v2551_v1 = vld [vmem:[#allocation9 + $0x678] sm:$0xff] }
 0x54c   : > { %9725 = vmatpush1.bf16.msra.mxu0 %v14327_v14  ;;  %9685 = vmatprep.subr.bf16.mxu1 %v15078_v47  ;;  %v2583_v14 = vld [vmem:[#allocation9 + $0x778] sm:$0xff]  ;;  %v15253_v47 = vcombine.low %v3358_v43, %v3366_v27  ;;  %v15238_v55 = vcombine.high %v3342_v51, %v3350_v38  ;;  %v3294_v9 = vld [vmem:[#allocation9 + $0x1db0] sm:$0xff] }
 0x54d   : > { %9726 = vmatprep.subr.bf16.mxu0 %v14312_v30  ;;  %v14472_v30 = vcombine.high %v2575_v42, %v2583_v14  ;;  %v3302_v48 = vld [vmem:[#allocation9 + $0x1df0] sm:$0xff]  ;;  %v2527_v13 = vld [vmem:[#allocation9 + $0x5b8] sm:$0xff] }
 0x54e   : > { %v2535_v19 = vld [vmem:[#allocation9 + $0x5f8] sm:$0xff]  ;;  %v3278_v25 = vld [vmem:[#allocation9 + $0x1d30] sm:$0xff] }
 0x54f   : > { %9686 = vmatpush1.bf16.msra.mxu1 %v15077_v34  ;;  %v15237_v34 = vcombine.low %v3342_v51, %v3350_v38  ;;  %v3286_v63 = vld [vmem:[#allocation9 + $0x1d70] sm:$0xff]  ;;  %v2511_v10 = vld [vmem:[#allocation9 + $0x538] sm:$0xff] }
 0x550   : > { %9727 = vmatpush1.bf16.msra.mxu0 %v14311_v24  ;;  %9687 = vmatprep.subr.bf16.mxu1 %v15062_v29  ;;  %v14471_v24 = vcombine.low %v2575_v42, %v2583_v14  ;;  %v15222_v29 = vcombine.high %v3326_v56, %v3334_v60  ;;  %v2519_v45 = vld [vmem:[#allocation9 + $0x578] sm:$0xff]  ;;  %v3262_v43 = vld [vmem:[#allocation9 + $0x1cb0] sm:$0xff] }
 0x551   : > { %9728 = vmatprep.subr.bf16.mxu0 %v14296_v61  ;;  %v14456_v61 = vcombine.high %v2559_v49, %v2567_v37  ;;  %v3270_v27 = vld [vmem:[#allocation9 + $0x1cf0] sm:$0xff]  ;;  %v2495_v28 = vld [vmem:[#allocation9 + $0x4b8] sm:$0xff] }
 0x552   : > { %v2503_v18 = vld [vmem:[#allocation9 + $0x4f8] sm:$0xff]  ;;  %v3246_v51 = vld [vmem:[#allocation9 + $0x1c30] sm:$0xff] }
 0x553   : > { %9688 = vmatpush1.bf16.msra.mxu1 %v15061_v54  ;;  %v15221_v54 = vcombine.low %v3326_v56, %v3334_v60  ;;  %v3254_v38 = vld [vmem:[#allocation9 + $0x1c70] sm:$0xff]  ;;  %v2479_v42 = vld [vmem:[#allocation9 + $0x438] sm:$0xff] }
 0x554   : > { %9729 = vmatpush1.bf16.msra.mxu0 %v14295_v39  ;;  %9689 = vmatprep.subr.bf16.mxu1 %v15046_v58  ;;  %v14455_v39 = vcombine.low %v2559_v49, %v2567_v37  ;;  %v15206_v58 = vcombine.high %v3310_v0, %v3318_v35  ;;  %v2487_v14 = vld [vmem:[#allocation9 + $0x478] sm:$0xff] }
 0x555   : > { %9730 = vmatprep.subr.bf16.mxu0 %v14280_v4  ;;  %v14440_v4 = vcombine.high %v2543_v8, %v2551_v1  ;;  %v2719_v56 = vld [vmem:[#allocation9 + $0xbb8] sm:$0xff] }
 0x556   : > { %v2727_v60 = vld [vmem:[#allocation9 + $0xbf8] sm:$0xff] }
 0x557   : > { %9690 = vmatpush1.bf16.msra.mxu1 %v15045_v21  ;;  %v15205_v21 = vcombine.low %v3310_v0, %v3318_v35  ;;  %v2975_v49 = vld [vmem:[#allocation9 + $0x13b8] sm:$0xff] }
 0x558   : > { %9731 = vmatpush1.bf16.msra.mxu0 %v14279_v59  ;;  %9691 = vmatprep.subr.bf16.mxu1 %v15030_v22  ;;  %v14439_v59 = vcombine.low %v2543_v8, %v2551_v1  ;;  %v15190_v22 = vcombine.high %v3294_v9, %v3302_v48  ;;  %v2983_v37 = vld [vmem:[#allocation9 + $0x13f8] sm:$0xff]  ;;  %v14615_v8 = vcombine.low %v2719_v56, %v2727_v60 }
 0x559   : > { %9732 = vmatprep.subr.bf16.mxu0 %v14264_v62  ;;  %v14424_v62 = vcombine.high %v2527_v13, %v2535_v19  ;;  %v2703_v0 = vld [vmem:[#allocation9 + $0xb38] sm:$0xff] }
 0x55a   : > { %v2711_v35 = vld [vmem:[#allocation9 + $0xb78] sm:$0xff] }
 0x55b   : > { %9692 = vmatpush1.bf16.msra.mxu1 %v15029_v5  ;;  %v15189_v5 = vcombine.low %v3294_v9, %v3302_v48  ;;  %v2959_v1 = vld [vmem:[#allocation9 + $0x1338] sm:$0xff] }
 0x55c   : > { %9733 = vmatpush1.bf16.msra.mxu0 %v14263_v57  ;;  %9693 = vmatprep.subr.bf16.mxu1 %v15014_v23  ;;  %v14423_v57 = vcombine.low %v2527_v13, %v2535_v19  ;;  %v15174_v23 = vcombine.high %v3278_v25, %v3286_v63  ;;  %v2695_v9 = vld [vmem:[#allocation9 + $0xaf8] sm:$0xff] }
 0x55d   : > { %9734 = vmatprep.subr.bf16.mxu0 %v14248_v53  ;;  %v14408_v53 = vcombine.high %v2511_v10, %v2519_v45  ;;  %v2943_v19 = vld [vmem:[#allocation9 + $0x12b8] sm:$0xff] }
 0x55f   : > { %9694 = vmatpush1.bf16.msra.mxu1 %v15013_v31  ;;  %v15173_v31 = vcombine.low %v3278_v25, %v3286_v63 }
 0x560   : > { %9735 = vmatpush1.bf16.msra.mxu0 %v14247_v11  ;;  %9695 = vmatprep.subr.bf16.mxu1 %v15254_v32  ;;  %v14407_v11 = vcombine.low %v2511_v10, %v2519_v45  ;;  %v15158_v32 = vcombine.high %v3262_v43, %v3270_v27 }
 0x561   : > { %9736 = vmatprep.subr.bf16.mxu0 %v14488_v36  ;;  %v14392_v36 = vcombine.high %v2495_v28, %v2503_v18 }
 0x563   : > { %9696 = vmatpush2.bf16.msra.mxu1 %v15253_v47  ;;  %v15157_v47 = vcombine.low %v3262_v43, %v3270_v27 }
 0x564   : > { %9737 = vmatpush2.bf16.msra.mxu0 %v14487_v50  ;;  %9697 = vmatprep.subr.bf16.mxu1 %v15238_v55  ;;  %v14391_v50 = vcombine.low %v2495_v28, %v2503_v18  ;;  %v15142_v55 = vcombine.high %v3246_v51, %v3254_v38 }
 0x565   : > { %9738 = vmatprep.subr.bf16.mxu0 %v14472_v30  ;;  %v14376_v30 = vcombine.high %v2479_v42, %v2487_v14 }
 0x567   : > { %9698 = vmatpush2.bf16.msra.mxu1 %v15237_v34  ;;  %v15141_v34 = vcombine.low %v3246_v51, %v3254_v38  ;;  %v2919_v51 = vld [vmem:[#allocation9 + $0x11f8] sm:$0xff] }
 0x568   : > { %9739 = vmatpush2.bf16.msra.mxu0 %v14471_v24  ;;  %9699 = vmatprep.subr.bf16.mxu1 %v15222_v29  ;;  %v14375_v24 = vcombine.low %v2479_v42, %v2487_v14  ;;  %v14616_v29 = vcombine.high %v2719_v56, %v2727_v60  ;;  %v2903_v56 = vld [vmem:[#allocation9 + $0x1178] sm:$0xff] }
 0x569   : > { %9740 = vmatprep.subr.bf16.mxu0 %v14456_v61  ;;  %v14872_v61 = vcombine.high %v2975_v49, %v2983_v37 }
 0x56b   : > { %9700 = vmatpush2.bf16.msra.mxu1 %v15221_v54  ;;  %v2967_v54 = vld [vmem:[#allocation9 + $0x1378] sm:$0xff] }
 0x56c   : > { %9741 = vmatpush2.bf16.msra.mxu0 %v14455_v39  ;;  %9701 = vmatprep.subr.bf16.mxu1 %v15206_v58  ;;  %v14871_v39 = vcombine.low %v2975_v49, %v2983_v37  ;;  %v14600_v58 = vcombine.high %v2703_v0, %v2711_v35  ;;  %v14856_v13 = vcombine.high %v2959_v1, %v2967_v54 }
 0x56d   : > { %9742 = vmatprep.subr.bf16.mxu0 %v14440_v4  ;;  %v2687_v4 = vld [vmem:[#allocation9 + $0xab8] sm:$0xff]  ;;  %v14855_v25 = vcombine.low %v2959_v1, %v2967_v54 }
 0x56e   : > { %v14584_v63 = vcombine.high %v2687_v4, %v2695_v9 }
 0x56f   : > { %9702 = vmatpush2.bf16.msra.mxu1 %v15205_v21  ;;  %v2951_v21 = vld [vmem:[#allocation9 + $0x12f8] sm:$0xff] }
 0x570   : > { %9743 = vmatpush2.bf16.msra.mxu0 %v14439_v59  ;;  %9703 = vmatprep.subr.bf16.mxu1 %v15190_v22  ;;  %v14599_v22 = vcombine.low %v2703_v0, %v2711_v35  ;;  %v14840_v45 = vcombine.high %v2943_v19, %v2951_v21  ;;  %v14839_v28 = vcombine.low %v2943_v19, %v2951_v21  ;;  %v2887_v0 = vld [vmem:[#allocation9 + $0x10f8] sm:$0xff] }
 0x571   : > { %9744 = vmatprep.subr.bf16.mxu0 %v14424_v62 }
 0x573   : > { %9704 = vmatpush2.bf16.msra.mxu1 %v15189_v5  ;;  %v2671_v5 = vld [vmem:[#allocation9 + $0xa38] sm:$0xff] }
 0x574   : > { %9745 = vmatpush2.bf16.msra.mxu0 %v14423_v57  ;;  %9705 = vmatprep.subr.bf16.mxu1 %v15174_v23  ;;  %v2679_v57 = vld [vmem:[#allocation9 + $0xa78] sm:$0xff] }
 0x575   : > { %9746 = vmatprep.subr.bf16.mxu0 %v14408_v53  ;;  %v2935_v53 = vld [vmem:[#allocation9 + $0x1278] sm:$0xff]  ;;  %v14568_v18 = vcombine.high %v2671_v5, %v2679_v57  ;;  %v14567_v38 = vcombine.low %v2671_v5, %v2679_v57 }
 0x576   : > { %v3111_v5 = vld [vmem:[#allocation9 + $0x17f8] sm:$0xff] }
 0x577   : > { %9706 = vmatpush2.bf16.msra.mxu1 %v15173_v31 }
 0x578   : > { %9747 = vmatpush2.bf16.msra.mxu0 %v14407_v11  ;;  %9707 = vmatprep.subr.bf16.mxu1 %v15158_v32  ;;  %v2655_v11 = vld [vmem:[#allocation9 + $0x9b8] sm:$0xff] }
 0x579   : > { %9748 = vmatprep.subr.bf16.mxu0 %v14392_v36  ;;  %v2663_v32 = vld [vmem:[#allocation9 + $0x9f8] sm:$0xff] }
 0x57a   : > { %v2911_v36 = vld [vmem:[#allocation9 + $0x11b8] sm:$0xff]  ;;  %v14552_v14 = vcombine.high %v2655_v11, %v2663_v32  ;;  %v14551_v60 = vcombine.low %v2655_v11, %v2663_v32 }
 0x57b   : > { %9708 = vmatpush2.bf16.msra.mxu1 %v15157_v47  ;;  %v14808_v47 = vcombine.high %v2911_v36, %v2919_v51  ;;  %v14807_v49 = vcombine.low %v2911_v36, %v2919_v51  ;;  %v2815_v32 = vld [vmem:[#allocation9 + $0xeb8] sm:$0xff] }
 0x57c   : > { %9749 = vmatpush2.bf16.msra.mxu0 %v14391_v50  ;;  %9709 = vmatprep.subr.bf16.mxu1 %v15142_v55  ;;  %v2639_v50 = vld [vmem:[#allocation9 + $0x938] sm:$0xff] }
 0x57d   : > { %9750 = vmatprep.subr.bf16.mxu0 %v14376_v30  ;;  %v2647_v55 = vld [vmem:[#allocation9 + $0x978] sm:$0xff] }
 0x57e   : > { %v2895_v30 = vld [vmem:[#allocation9 + $0x1138] sm:$0xff]  ;;  %v14536_v37 = vcombine.high %v2639_v50, %v2647_v55  ;;  %v14535_v35 = vcombine.low %v2639_v50, %v2647_v55 }
 0x57f   : > { %9710 = vmatpush2.bf16.msra.mxu1 %v15141_v34  ;;  %v14792_v34 = vcombine.high %v2895_v30, %v2903_v56  ;;  %v2823_v36 = vld [vmem:[#allocation9 + $0xef8] sm:$0xff] }
 0x580   : > { %9751 = vmatpush2.bf16.msra.mxu0 %v14375_v24  ;;  %9761 = vmatprep.subr.bf16.mxu1 %v14616_v29  ;;  %v2623_v24 = vld [vmem:[#allocation9 + $0x8b8] sm:$0xff] }
 0x581   : > { %9802 = vmatprep.subr.bf16.mxu0 %v14872_v61  ;;  %v2631_v29 = vld [vmem:[#allocation9 + $0x8f8] sm:$0xff] }
 0x582   : > { %v17532_v48 = vpop.f32.mrf.mxu1  ;;  %9712 = vmatmul.mubr.bf16.vlgmr.msra.gmra.mxu1 %v17369_v3  ;;  %v2879_v61 = vld [vmem:[#allocation9 + $0x10b8] sm:$0xff]  ;;  %v14520_v1 = vcombine.high %v2623_v24, %v2631_v29 }
 0x583   : > { %v17535_v59 = vpop.f32.mrf.mxu0  ;;  %9753 = vmatmul.mubr.bf16.vlgmr.msra.gmra.mxu0 %v17321_v7  ;;  %9762 = vmatpush1.bf16.msra.mxu1 %v14615_v8  ;;  %v2927_v7 = vld [vmem:[#allocation9 + $0x1238] sm:$0xff]  ;;  %v14791_v8 = vcombine.low %v2895_v30, %v2903_v56  ;;  %v14776_v54 = vcombine.high %v2879_v61, %v2887_v0  ;;  %v14775_v19 = vcombine.low %v2879_v61, %v2887_v0 }
 0x584   : > { %9793 = vmatprep.mubr.bf16.mxu1 %v17326_v41  ;;  %9803 = vmatpush1.bf16.msra.mxu0 %v14871_v39  ;;  %v17539_v62 = vpop.f32.mrf.mxu1  ;;  %v14583_v41 = vcombine.low %v2687_v4, %v2695_v9  ;;  %v14823_v42 = vcombine.low %v2927_v7, %v2935_v53  ;;  %v2607_v39 = vld [vmem:[#allocation9 + $0x838] sm:$0xff] }
 0x585   : > { %9834 = vmatprep.mubr.bf16.mxu0 %v17352_v12  ;;  %v17542_v10 = vpop.f32.mrf.mxu0  ;;  %9763 = vmatprep.subr.bf16.mxu1 %v14600_v58  ;;  %v14824_v12 = vcombine.high %v2927_v7, %v2935_v53  ;;  %v2615_v58 = vld [vmem:[#allocation9 + $0x878] sm:$0xff] }
 0x586   : > { %v9471_v23 = vpop.f32.mrf.mxu1  ;;  %9804 = vmatprep.subr.bf16.mxu0 %v14856_v13  ;;  %v2863_v4 = vld [vmem:[#allocation9 + $0x1038] sm:$0xff]  ;;  %v14519_v13 = vcombine.low %v2623_v24, %v2631_v29  ;;  %v14504_v21 = vcombine.high %v2607_v39, %v2615_v58  ;;  %v14503_v57 = vcombine.low %v2607_v39, %v2615_v58 }
 0x587   : > { %v9512_v43 = vpop.f32.mrf.mxu0  ;;  %9764 = vmatpush1.bf16.msra.mxu1 %v14599_v22  ;;  %v2871_v9 = vld [vmem:[#allocation9 + $0x1078] sm:$0xff] }
 0x588   : > { %9805 = vmatpush1.bf16.msra.mxu0 %v14855_v25  ;;  %v9472_v27 = vpop.f32.mrf.mxu1  ;;  %9765 = vmatprep.subr.bf16.mxu1 %v14584_v63  ;;  %v14760_v22 = vcombine.high %v2863_v4, %v2871_v9  ;;  %v2847_v25 = vld [vmem:[#allocation9 + $0xfb8] sm:$0xff]  ;;  %v14759_v23 = vcombine.low %v2863_v4, %v2871_v9 }
 0x589   : > { %v9513_v31 = vpop.f32.mrf.mxu0  ;;  %9806 = vmatprep.subr.bf16.mxu0 %v14840_v45  ;;  %v2855_v63 = vld [vmem:[#allocation9 + $0xff8] sm:$0xff] }
 0x58a   : > { %v3103_v45 = vld [vmem:[#allocation9 + $0x17b8] sm:$0xff]  ;;  %v14744_v7 = vcombine.high %v2847_v25, %v2855_v63 }
 0x58b   : > { %9766 = vmatpush1.bf16.msra.mxu1 %v14583_v41  ;;  %v15000_v53 = vcombine.high %v3103_v45, %v3111_v5  ;;  %v2831_v43 = vld [vmem:[#allocation9 + $0xf38] sm:$0xff]  ;;  %v14999_v31 = vcombine.low %v3103_v45, %v3111_v5 }
 0x58c   : > { %9807 = vmatpush1.bf16.msra.mxu0 %v14839_v28  ;;  %9767 = vmatprep.subr.bf16.mxu1 %v14568_v18  ;;  %v2839_v41 = vld [vmem:[#allocation9 + $0xf78] sm:$0xff]  ;;  %v14743_v18 = vcombine.low %v2847_v25, %v2855_v63 }
 0x58d   : > { %9808 = vmatprep.subr.bf16.mxu0 %v14824_v12  ;;  %v3087_v27 = vld [vmem:[#allocation9 + $0x1738] sm:$0xff]  ;;  %v14728_v12 = vcombine.high %v2831_v43, %v2839_v41 }
 0x58e   : > { %v3095_v28 = vld [vmem:[#allocation9 + $0x1778] sm:$0xff] }
 0x58f   : > { %9768 = vmatpush1.bf16.msra.mxu1 %v14567_v38  ;;  %v14984_v11 = vcombine.high %v3087_v27, %v3095_v28  ;;  %v3071_v51 = vld [vmem:[#allocation9 + $0x16b8] sm:$0xff] }
 0x590   : > { %9809 = vmatpush1.bf16.msra.mxu0 %v14823_v42  ;;  %9769 = vmatprep.subr.bf16.mxu1 %v14552_v14  ;;  %v3079_v38 = vld [vmem:[#allocation9 + $0x16f8] sm:$0xff]  ;;  %v14727_v42 = vcombine.low %v2831_v43, %v2839_v41  ;;  %v14983_v14 = vcombine.low %v3087_v27, %v3095_v28 }
 0x591   : > { %9810 = vmatprep.subr.bf16.mxu0 %v14808_v47  ;;  %v14712_v47 = vcombine.high %v2815_v32, %v2823_v36  ;;  %v14968_v50 = vcombine.high %v3071_v51, %v3079_v38  ;;  %v2799_v55 = vld [vmem:[#allocation9 + $0xe38] sm:$0xff] }
 0x592   : > { %v2807_v30 = vld [vmem:[#allocation9 + $0xe78] sm:$0xff] }
 0x593   : > { %9770 = vmatpush1.bf16.msra.mxu1 %v14551_v60  ;;  %v3055_v56 = vld [vmem:[#allocation9 + $0x1638] sm:$0xff] }
 0x594   : > { %9811 = vmatpush1.bf16.msra.mxu0 %v14807_v49  ;;  %9771 = vmatprep.subr.bf16.mxu1 %v14536_v37  ;;  %v3063_v60 = vld [vmem:[#allocation9 + $0x1678] sm:$0xff]  ;;  %v14711_v49 = vcombine.low %v2815_v32, %v2823_v36  ;;  %v14967_v37 = vcombine.low %v3071_v51, %v3079_v38  ;;  %v3419_v36 = vrot.slane %v17512_v26, %v17315_v2 }
 0x595   : > { %9812 = vmatprep.subr.bf16.mxu0 %v14792_v34  ;;  %v14696_v34 = vcombine.high %v2799_v55, %v2807_v30  ;;  %v14952_v24 = vcombine.high %v3055_v56, %v3063_v60  ;;  %v2783_v29 = vld [vmem:[#allocation9 + $0xdb8] sm:$0xff] }
 0x596   : > { %v2791_v61 = vld [vmem:[#allocation9 + $0xdf8] sm:$0xff] }
 0x597   : > { %9772 = vmatpush1.bf16.msra.mxu1 %v14535_v35  ;;  %v3039_v0 = vld [vmem:[#allocation9 + $0x15b8] sm:$0xff] }
 0x598   : > { %9813 = vmatpush1.bf16.msra.mxu0 %v14791_v8  ;;  %9773 = vmatprep.subr.bf16.mxu1 %v14520_v1  ;;  %v3047_v35 = vld [vmem:[#allocation9 + $0x15f8] sm:$0xff]  ;;  %v14695_v8 = vcombine.low %v2799_v55, %v2807_v30  ;;  %v14951_v1 = vcombine.low %v3055_v56, %v3063_v60  ;;  %v9429_v55 = vadd.f32 %v17530_v6, %v3419_v36 }
 0x599   : > { %9814 = vmatprep.subr.bf16.mxu0 %v14776_v54  ;;  %v14680_v54 = vcombine.high %v2783_v29, %v2791_v61  ;;  %v14936_v39 = vcombine.high %v3039_v0, %v3047_v35  ;;  %v2767_v58 = vld [vmem:[#allocation9 + $0xd38] sm:$0xff] }
 0x59a   : > { %v2775_v4 = vld [vmem:[#allocation9 + $0xd78] sm:$0xff]  ;;  %v9470_v2 = vadd.f32 %v17539_v62, %v9429_v55 }
 0x59b   : > { %9774 = vmatpush1.bf16.msra.mxu1 %v14519_v13  ;;  %v3023_v9 = vld [vmem:[#allocation9 + $0x1538] sm:$0xff] }
 0x59c   : > { %9815 = vmatpush1.bf16.msra.mxu0 %v14775_v19  ;;  %9775 = vmatprep.subr.bf16.mxu1 %v14504_v21  ;;  %v3031_v13 = vld [vmem:[#allocation9 + $0x1578] sm:$0xff]  ;;  %v14679_v19 = vcombine.low %v2783_v29, %v2791_v61  ;;  %v14935_v21 = vcombine.low %v3039_v0, %v3047_v35  ;;  %v9511_v6 = vadd.f32 %v17542_v10, %v9470_v2 }
 0x59d   : > { %9816 = vmatprep.subr.bf16.mxu0 %v14760_v22  ;;  %v14664_v22 = vcombine.high %v2767_v58, %v2775_v4  ;;  %v14920_v25 = vcombine.high %v3023_v9, %v3031_v13  ;;  %v2751_v63 = vld [vmem:[#allocation9 + $0xcb8] sm:$0xff] }
 0x59e   : > { %v2759_v45 = vld [vmem:[#allocation9 + $0xcf8] sm:$0xff] }
 0x59f   : > { %9776 = vmatpush1.bf16.msra.mxu1 %v14503_v57  ;;  %v3007_v5 = vld [vmem:[#allocation9 + $0x14b8] sm:$0xff] }
 0x5a0   : > { %9817 = vmatpush1.bf16.msra.mxu0 %v14759_v23  ;;  %9777 = vmatprep.subr.bf16.mxu1 %v14744_v7  ;;  %v3015_v57 = vld [vmem:[#allocation9 + $0x14f8] sm:$0xff]  ;;  %v14663_v23 = vcombine.low %v2767_v58, %v2775_v4  ;;  %v14919_v7 = vcombine.low %v3023_v9, %v3031_v13 }
 0x5a1   : > { %9818 = vmatprep.subr.bf16.mxu0 %v15000_v53  ;;  %v14648_v53 = vcombine.high %v2751_v63, %v2759_v45  ;;  %v14904_v43 = vcombine.high %v3007_v5, %v3015_v57  ;;  %v2735_v41 = vld [vmem:[#allocation9 + $0xc38] sm:$0xff] }
 0x5a2   : > { %v2743_v27 = vld [vmem:[#allocation9 + $0xc78] sm:$0xff] }
 0x5a3   : > { %9778 = vmatpush2.bf16.msra.mxu1 %v14743_v18  ;;  %v2991_v28 = vld [vmem:[#allocation9 + $0x1438] sm:$0xff]  ;;  %v14632_v32 = vcombine.high %v2735_v41, %v2743_v27 }
 0x5a4   : > { %9819 = vmatpush2.bf16.msra.mxu0 %v14999_v31  ;;  %9779 = vmatprep.subr.bf16.mxu1 %v14728_v12  ;;  %v2999_v18 = vld [vmem:[#allocation9 + $0x1478] sm:$0xff]  ;;  %v3415_v31 = vrot.slane %v17512_v26, %v17312_v16  ;;  %v14647_v12 = vcombine.low %v2751_v63, %v2759_v45 }
 0x5a5   : > { %9820 = vmatprep.subr.bf16.mxu0 %v14984_v11  ;;  %v14903_v11 = vcombine.low %v3007_v5, %v3015_v57  ;;  %v14888_v51 = vcombine.high %v2991_v28, %v2999_v18  ;;  %v3231_v38 = vld [vmem:[#allocation9 + $0x1bb8] sm:$0xff]  ;;  %v14887_v16 = vcombine.low %v2991_v28, %v2999_v18 }
 0x5a6   : > { %v3215_v56 = vld [vmem:[#allocation9 + $0x1b38] sm:$0xff] }
 0x5a7   : > { %9780 = vmatpush2.bf16.msra.mxu1 %v14727_v42  ;;  %v3239_v42 = vld [vmem:[#allocation9 + $0x1bf8] sm:$0xff] }
 0x5a8   : > { %9821 = vmatpush2.bf16.msra.mxu0 %v14983_v14  ;;  %9781 = vmatprep.subr.bf16.mxu1 %v14712_v47  ;;  %v9427_v14 = vadd.f32 %v17525_v44, %v3415_v31  ;;  %v14631_v47 = vcombine.low %v2735_v41, %v2743_v27  ;;  %v3223_v60 = vld [vmem:[#allocation9 + $0x1b78] sm:$0xff]  ;;  %v15127_v26 = vcombine.low %v3231_v38, %v3239_v42 }
 0x5a9   : > { %9822 = vmatprep.subr.bf16.mxu0 %v14968_v50  ;;  %v15128_v50 = vcombine.high %v3231_v38, %v3239_v42  ;;  %v15112_v44 = vcombine.high %v3215_v56, %v3223_v60  ;;  %v15111_v62 = vcombine.low %v3215_v56, %v3223_v60  ;;  %v3159_v63 = vld [vmem:[#allocation9 + $0x1978] sm:$0xff] }
 0x5aa   : > { %v9468_v30 = vadd.f32 %v17532_v48, %v9427_v14  ;;  %v3135_v57 = vld [vmem:[#allocation9 + $0x18b8] sm:$0xff] }
 0x5ab   : > { %9782 = vmatpush2.bf16.msra.mxu1 %v14711_v49  ;;  %v3127_v41 = vld [vmem:[#allocation9 + $0x1878] sm:$0xff] }
 0x5ac   : > { %9823 = vmatpush2.bf16.msra.mxu0 %v14967_v37  ;;  %9783 = vmatprep.subr.bf16.mxu1 %v14696_v34  ;;  %v9509_v49 = vadd.f32 %v17535_v59, %v9468_v30  ;;  %v3199_v37 = vld [vmem:[#allocation9 + $0x1ab8] sm:$0xff] }
 0x5ad   : > { %9824 = vmatprep.subr.bf16.mxu0 %v14952_v24  ;;  %v3207_v34 = vld [vmem:[#allocation9 + $0x1af8] sm:$0xff] }
 0x5ae   : > { %v15096_v0 = vcombine.high %v3199_v37, %v3207_v34  ;;  %v15095_v58 = vcombine.low %v3199_v37, %v3207_v34  ;;  %v3359_v18 = vld [vmem:[#allocation9 + $0x1fb8] sm:$0xff] }
 0x5af   : > { %9784 = vmatpush2.bf16.msra.mxu1 %v14695_v8  ;;  %v3183_v8 = vld [vmem:[#allocation9 + $0x1a38] sm:$0xff] }
 0x5b0   : > { %9825 = vmatpush2.bf16.msra.mxu0 %v14951_v1  ;;  %9785 = vmatprep.subr.bf16.mxu1 %v14680_v54  ;;  %v3191_v1 = vld [vmem:[#allocation9 + $0x1a78] sm:$0xff] }
 0x5b1   : > { %9826 = vmatprep.subr.bf16.mxu0 %v14936_v39  ;;  %v3367_v31 = vld [vmem:[#allocation9 + $0x1ff8] sm:$0xff] }
 0x5b2   : > { %v3351_v36 = vld [vmem:[#allocation9 + $0x1f78] sm:$0xff] }
 0x5b3   : > { %9786 = vmatpush2.bf16.msra.mxu1 %v14679_v19  ;;  %v3175_v19 = vld [vmem:[#allocation9 + $0x19f8] sm:$0xff] }
 0x5b4   : > { %9827 = vmatpush2.bf16.msra.mxu0 %v14935_v21  ;;  %9787 = vmatprep.subr.bf16.mxu1 %v14664_v22  ;;  %v15079_v21 = vcombine.low %v3183_v8, %v3191_v1  ;;  %v3327_v42 = vld [vmem:[#allocation9 + $0x1eb8] sm:$0xff] }
 0x5b5   : > { %9828 = vmatprep.subr.bf16.mxu0 %v14920_v25  ;;  %v3151_v25 = vld [vmem:[#allocation9 + $0x1938] sm:$0xff] }
 0x5b6   : > { %v15048_v5 = vcombine.high %v3151_v25, %v3159_v63  ;;  %v3335_v14 = vld [vmem:[#allocation9 + $0x1ef8] sm:$0xff] }
 0x5b7   : > { %9788 = vmatpush2.bf16.msra.mxu1 %v14663_v23  ;;  %v3143_v23 = vld [vmem:[#allocation9 + $0x18f8] sm:$0xff]  ;;  %v15223_v30 = vcombine.low %v3327_v42, %v3335_v14 }
 0x5b8   : > { %9829 = vmatpush2.bf16.msra.mxu0 %v14919_v7  ;;  %9789 = vmatprep.subr.bf16.mxu1 %v14648_v53  ;;  %v15047_v7 = vcombine.low %v3151_v25, %v3159_v63  ;;  %v15032_v53 = vcombine.high %v3135_v57, %v3143_v23  ;;  %v15031_v27 = vcombine.low %v3135_v57, %v3143_v23  ;;  %v3319_v55 = vld [vmem:[#allocation9 + $0x1e78] sm:$0xff] }
 0x5b9   : > { %9830 = vmatprep.subr.bf16.mxu0 %v14904_v43  ;;  %v3119_v43 = vld [vmem:[#allocation9 + $0x1838] sm:$0xff] }
 0x5ba   : > { %v15016_v28 = vcombine.high %v3119_v43, %v3127_v41  ;;  %v3295_v60 = vld [vmem:[#allocation9 + $0x1db8] sm:$0xff] }
 0x5bb   : > { %9790 = vmatpush2.bf16.msra.mxu1 %v14647_v12  ;;  %v15015_v12 = vcombine.low %v3119_v43, %v3127_v41  ;;  %v3303_v2 = vld [vmem:[#allocation9 + $0x1df8] sm:$0xff] }
 0x5bc   : > { %9831 = vmatpush2.bf16.msra.mxu0 %v14903_v11  ;;  %9791 = vmatprep.subr.bf16.mxu1 %v14632_v32  ;;  %v15256_v11 = vcombine.high %v3359_v18, %v3367_v31  ;;  %v3343_v32 = vld [vmem:[#allocation9 + $0x1f38] sm:$0xff]  ;;  %v15191_v34 = vcombine.low %v3295_v60, %v3303_v2 }
 0x5bd   : > { %9832 = vmatprep.subr.bf16.mxu0 %v14888_v51  ;;  %v15255_v51 = vcombine.low %v3359_v18, %v3367_v31  ;;  %v15240_v38 = vcombine.high %v3343_v32, %v3351_v36  ;;  %v3287_v37 = vld [vmem:[#allocation9 + $0x1d78] sm:$0xff] }
 0x5bf   : > { %9792 = vmatpush2.bf16.msra.mxu1 %v14631_v47  ;;  %v15239_v47 = vcombine.low %v3343_v32, %v3351_v36 }
 0x5c0   : > { %9833 = vmatpush2.bf16.msra.mxu0 %v14887_v16  ;;  %9843 = vmatprep.subr.bf16.mxu1 %v15128_v50  ;;  %v15224_v16 = vcombine.high %v3327_v42, %v3335_v14  ;;  %v3311_v50 = vld [vmem:[#allocation9 + $0x1e38] sm:$0xff] }
 0x5c1   : > { %v15208_v56 = vcombine.high %v3311_v50, %v3319_v55 }
 0x5c2   : > { %v9549_v24 = vpop.f32.mrf.mxu1  ;;  %9794 = vmatmul.mubr.bf16.vlgmr.msra.gmra.mxu1 %v17334_v46 }
 0x5c3   : > { %v9550_v48 = vadd.f32 %v9549_v24, %v9509_v49  ;;  %v17555_v29 = vpop.f32.mrf.mxu0  ;;  %9835 = vmatmul.mubr.bf16.vlgmr.msra.gmra.mxu0 %v17354_v15  ;;  %9844 = vmatpush1.bf16.msra.mxu1 %v15127_v26  ;;  %v15080_v15 = vcombine.high %v3183_v8, %v3191_v1  ;;  %v15207_v26 = vcombine.low %v3311_v50, %v3319_v55  ;;  %v3279_v49 = vld [vmem:[#allocation9 + $0x1d38] sm:$0xff] }
 0x5c4   : > { %9875 = vmatprep.mubr.bf16.mxu1 %v17367_v52  ;;  %v9551_v61 = vpop.f32.mrf.mxu1  ;;  %9845 = vmatprep.subr.bf16.mxu1 %v15112_v44  ;;  %v3167_v52 = vld [vmem:[#allocation9 + $0x19b8] sm:$0xff]  ;;  %v15192_v44 = vcombine.high %v3295_v60, %v3303_v2  ;;  %v15176_v24 = vcombine.high %v3279_v49, %v3287_v37 }
 0x5c5   : > { %v9552_v59 = vadd.f32 %v9551_v61, %v9511_v6  ;;  %v17559_v35 = vpop.f32.mrf.mxu0  ;;  %v9894_v54 = vmax.f32 %v9550_v48, 0.0  ;;  %v15064_v22 = vcombine.high %v3167_v52, %v3175_v19  ;;  %v15063_v45 = vcombine.low %v3167_v52, %v3175_v19  ;;  %v3263_v6 = vld [vmem:[#allocation9 + $0x1cb8] sm:$0xff]  ;;  %v15925_v52 = vld [vmem:[#allocation11 + $0x8] sm:$0xff] }
 0x5c6   : > { %v9553_v46 = vpop.f32.mrf.mxu1  ;;  %v3271_v48 = vld [vmem:[#allocation9 + $0x1cf8] sm:$0xff]  ;;  %v3423_v19 = vrot.slane %v15925_v52, %v17341_v33  ;;  %v3431_v14 = vrot.slane %v15925_v52, %v17360_v17 }
 0x5c7   : > { %v9895_v10 = vmax.f32 %v9552_v59, 0.0  ;;  %v9594_v39 = vpop.f32.mrf.mxu0  ;;  %9846 = vmatpush1.bf16.msra.mxu1 %v15111_v62  ;;  %v15175_v62 = vcombine.low %v3279_v49, %v3287_v37  ;;  %v15160_v61 = vcombine.high %v3263_v6, %v3271_v48  ;;  %v3255_v59 = vld [vmem:[#allocation9 + $0x1c78] sm:$0xff]  ;;  %v15159_v8 = vcombine.low %v3263_v6, %v3271_v48 }
 0x5c8   : > { %v9554_v4 = vpop.f32.mrf.mxu1  ;;  %9847 = vmatprep.subr.bf16.mxu1 %v15096_v0  ;;  %v3247_v0 = vld [vmem:[#allocation9 + $0x1c38] sm:$0xff] }
 0x5c9   : > { %v15805_v9 = vpack.c.bf16 %v9895_v10, %v9894_v54  ;;  %v9595_v13 = vpop.f32.mrf.mxu0  ;;  %v15144_v1 = vcombine.high %v3247_v0, %v3255_v59  ;;  %v15143_v46 = vcombine.low %v3247_v0, %v3255_v59 }
 0x5cb   : > { %9969 = vst [vmem:[#allocation2 + $0x20] sm:$0xff] %v15805_v9  ;;  %9848 = vmatpush1.bf16.msra.mxu1 %v15095_v58 }
 0x5cc   : > { %9849 = vmatprep.subr.bf16.mxu1 %v15080_v15 }
 0x5cf   : > { %9850 = vmatpush1.bf16.msra.mxu1 %v15079_v21  ;;  %v3427_v21 = vrot.slane %v15925_v52, %v17344_v40 }
 0x5d0   : > { %9851 = vmatprep.subr.bf16.mxu1 %v15064_v22  ;;  %v9591_v22 = vadd.f32 %v17555_v29, %v3423_v19 }
 0x5d1   : > { %v9593_v25 = vadd.f32 %v17559_v35, %v3427_v21 }
 0x5d3   : > { %9852 = vmatpush1.bf16.msra.mxu1 %v15063_v45 }
 0x5d4   : > { %9853 = vmatprep.subr.bf16.mxu1 %v15048_v5 }
 0x5d7   : > { %9854 = vmatpush1.bf16.msra.mxu1 %v15047_v7 }
 0x5d8   : > { %9855 = vmatprep.subr.bf16.mxu1 %v15032_v53 }
 0x5db   : > { %9856 = vmatpush1.bf16.msra.mxu1 %v15031_v27 }
 0x5dc   : > { %9857 = vmatprep.subr.bf16.mxu1 %v15016_v28 }
 0x5df   : > { %9858 = vmatpush1.bf16.msra.mxu1 %v15015_v12 }
 0x5e0   : > { %9859 = vmatprep.subr.bf16.mxu1 %v15256_v11 }
 0x5e3   : > { %9860 = vmatpush2.bf16.msra.mxu1 %v15255_v51 }
 0x5e4   : > { %9861 = vmatprep.subr.bf16.mxu1 %v15240_v38 }
 0x5e7   : > { %9862 = vmatpush2.bf16.msra.mxu1 %v15239_v47  ;;  %v3435_v47 = vrot.slane %v15925_v52, %v17363_v20 }
 0x5e8   : > { %9863 = vmatprep.subr.bf16.mxu1 %v15224_v16 }
 0x5eb   : > { %9864 = vmatpush2.bf16.msra.mxu1 %v15223_v30 }
 0x5ec   : > { %9865 = vmatprep.subr.bf16.mxu1 %v15208_v56 }
 0x5ef   : > { %9866 = vmatpush2.bf16.msra.mxu1 %v15207_v26 }
 0x5f0   : > { %9867 = vmatprep.subr.bf16.mxu1 %v15192_v44 }
 0x5f3   : > { %9868 = vmatpush2.bf16.msra.mxu1 %v15191_v34 }
 0x5f4   : > { %9869 = vmatprep.subr.bf16.mxu1 %v15176_v24 }
 0x5f7   : > { %9870 = vmatpush2.bf16.msra.mxu1 %v15175_v62 }
 0x5f8   : > { %9871 = vmatprep.subr.bf16.mxu1 %v15160_v61 }
 0x5fb   : > { %9872 = vmatpush2.bf16.msra.mxu1 %v15159_v8 }
 0x5fc   : > { %9873 = vmatprep.subr.bf16.mxu1 %v15144_v1 }
 0x5ff   : > { %9874 = vmatpush2.bf16.msra.mxu1 %v15143_v46 }
 0x602   : > { %v9631_v54 = vpop.f32.mrf.mxu1  ;;  %9876 = vmatmul.mubr.bf16.vlgmr.msra.gmra.mxu1 %v17369_v3 }
 0x603   : > { %v9672_v10 = vpop.f32.mrf.mxu0  ;;  %v9632_v63 = vadd.f32 %v9631_v54, %v9591_v22 }
 0x604   : > { %v9633_v39 = vpop.f32.mrf.mxu1 }
 0x605   : > { %v9674_v58 = vpop.f32.mrf.mxu0  ;;  %v9634_v45 = vadd.f32 %v9633_v39, %v9593_v25  ;;  %v9673_v5 = vadd.f32 %v9672_v10, %v9632_v63 }
 0x606   : > { %v9635_v4 = vpop.f32.mrf.mxu1 }
 0x607   : > { %v9676_v15 = vpop.f32.mrf.mxu0  ;;  %v9675_v57 = vadd.f32 %v9674_v58, %v9634_v45 }
 0x608   : > { %v9636_v9 = vpop.f32.mrf.mxu1 }
 0x609   : > { %v9677_v13 = vpop.f32.mrf.mxu0 }
 0x642   : > { %v9713_v3 = vpop.f32.mrf.mxu1 }
 0x643   : > { %v9714_v23 = vadd.f32 %v9713_v3, %v9673_v5  ;;  %v9754_v7 = vpop.f32.mrf.mxu0 }
 0x644   : > { %v9715_v53 = vpop.f32.mrf.mxu1  ;;  %v9755_v16 = vadd.f32 %v9754_v7, %v3431_v14 }
 0x645   : > { %v9716_v43 = vadd.f32 %v9715_v53, %v9675_v57  ;;  %v9756_v41 = vpop.f32.mrf.mxu0  ;;  %v9896_v28 = vmax.f32 %v9714_v23, 0.0 }
 0x646   : > { %v9717_v27 = vpop.f32.mrf.mxu1  ;;  %v9757_v50 = vadd.f32 %v9756_v41, %v3435_v47 }
 0x647   : > { %v9897_v18 = vmax.f32 %v9716_v43, 0.0  ;;  %v9758_v33 = vpop.f32.mrf.mxu0 }
 0x648   : > { %v9718_v31 = vpop.f32.mrf.mxu1 }
 0x649   : > { %v15806_v40 = vpack.c.bf16 %v9897_v18, %v9896_v28  ;;  %v9759_v12 = vpop.f32.mrf.mxu0 }
 0x64b   : > { %9970 = vst [vmem:[#allocation2 + $0x28] sm:$0xff] %v15806_v40 }
 0x682   : > { %v9795_v29 = vpop.f32.mrf.mxu1 }
 0x683   : > { %v9836_v35 = vpop.f32.mrf.mxu0  ;;  %v9796_v55 = vadd.f32 %v9795_v29, %v9755_v16 }
 0x684   : > { %v9797_v11 = vpop.f32.mrf.mxu1 }
 0x685   : > { %v9838_v32 = vpop.f32.mrf.mxu0  ;;  %v9798_v30 = vadd.f32 %v9797_v11, %v9757_v50  ;;  %v9837_v56 = vadd.f32 %v9836_v35, %v9796_v55 }
 0x686   : > { %v9799_v36 = vpop.f32.mrf.mxu1 }
 0x687   : > { %v9840_v51 = vpop.f32.mrf.mxu0  ;;  %v9839_v2 = vadd.f32 %v9838_v32, %v9798_v30 }
 0x688   : > { %v9800_v38 = vpop.f32.mrf.mxu1 }
 0x689   : > { %v9841_v42 = vpop.f32.mrf.mxu0 }
 0x6c2   : > { %v9877_v60 = vpop.f32.mrf.mxu1 }
 0x6c3   : > { %v9878_v26 = vadd.f32 %v9877_v60, %v9837_v56 }
 0x6c4   : > { %v9879_v44 = vpop.f32.mrf.mxu1 }
 0x6c5   : > { %v9880_v49 = vadd.f32 %v9879_v44, %v9839_v2  ;;  %v9898_v34 = vmax.f32 %v9878_v26, 0.0 }
 0x6c6   : > { %v9881_v37 = vpop.f32.mrf.mxu1 }
 0x6c7   : > { %v9899_v24 = vmax.f32 %v9880_v49, 0.0 }
 0x6c8   : > { %v9882_v6 = vpop.f32.mrf.mxu1 }
 0x6c9   : > { %v15807_v48 = vpack.c.bf16 %v9899_v24, %v9898_v34 }
 0x6cb   : > { %9971 = vst [vmem:[#allocation2 + $0x38] sm:$0xff] %v15807_v48 }
 0x6cc PF: > { %v15926_v17 = vld [vmem:[%s17234_s13 + $0xe4] ss:$16 sps:$4 sm:$0xff]   ;;  %v15930_v62 = vld [vmem:[%s17234_s13 + $0xe0] ss:$16 sps:$4 sm:$0xff]   ;;  %v9972_v42 = vld [vmem:[#allocation2 + $0x30] sm:$0xff]  ;;  %s15808_s30 = sshll.u32 %s17059_s28, 9 }
 0x6cd   : > { %v15928_v20 = vld [vmem:[%s17234_s13 + $0x2e4] ss:$16 sps:$4 sm:$0xff]   ;;  %13130 = vmatprep.subr.bf16.mxu0 %v15926_v17  ;;  %v15931_v61 = vld [vmem:[%s17234_s13 + $0x2e0] ss:$16 sps:$4 sm:$0xff]   ;;  %v17614_v14 = vcombine.high %v9972_v42, %v9972_v42  ;;  %v9973_v47 = vld [vmem:[#allocation2] sm:$0xff]  ;;  %s13809_s23 = sshll.u32 %s17244_s12, 4  ;;  %s18220_s22 = scalar_lea.hbm %s18264_s7, %s15808_s30  ;;  %s13810_s23 = int_to_ptr.vmem [resolvable:$true] %s13809_s23 }
 0x6ce   : > { %13171 = vmatprep.subr.bf16.mxu1 %v15928_v20  ;;  %v15932_v0 = vld [vmem:[%s17234_s13 + $0xc4] ss:$16 sps:$4 sm:$0xff]   ;;  %13131 = vmatpush1.bf16.msra.mxu0 %v15930_v62  ;;  %v15936_v8 = vld [vmem:[%s17234_s13 + $0xc0] ss:$16 sps:$4 sm:$0xff]   ;;  %v17618_v55 = vcombine.high %v9973_v47, %v9973_v47  ;;  %s13795_s10 = scalar_lea.sflag [#allocation5], %s17231_s20  ;;  %s16905_s3 = scalar_lea.vmem %s13810_s23, 512 }
 0x6cf   : > { %13172 = vmatpush1.bf16.msra.mxu1 %v15931_v61  ;;  %v15934_v59 = vld [vmem:[%s17234_s13 + $0x2c4] ss:$16 sps:$4 sm:$0xff]   ;;  %13132 = vmatprep.subr.bf16.mxu0 %v15932_v0  ;;  %v15937_v1 = vld [vmem:[%s17234_s13 + $0x2c0] ss:$16 sps:$4 sm:$0xff]   ;;  %p16906_p6 = scmp.ne.s32.totalorder %s13810_s23, %s16905_s3  ;;  %p18304_p8 = scmp.ne.s32.totalorder %s18287_s18, 0 }
 0x6d0   : > { %13173 = vmatprep.subr.bf16.mxu1 %v15934_v59  ;;  %v15938_v46 = vld [vmem:[%s17234_s13 + $0xa4] ss:$16 sps:$4 sm:$0xff]   ;;  %v15942_v10 = vld [vmem:[%s17234_s13 + $0xa0] ss:$16 sps:$4 sm:$0xff]   ;;  %13162 = vmatprep.mubr.bf16.mxu0 %v17614_v14  ;;  %s16997_s17 = smov [#allocation15]  }
 0x6d1   : > { %v15940_v54 = vld [vmem:[%s17234_s13 + $0x2a4] ss:$16 sps:$4 sm:$0xff]   ;;  %v15943_v39 = vld [vmem:[%s17234_s13 + $0x2a0] ss:$16 sps:$4 sm:$0xff]   ;;  %13203 = vmatprep.mubr.bf16.mxu1 %v17618_v55  ;;  %p16907_p12 = pnand %p16906_p6, %p18304_p8  ;;  %s16909_s19 = sshll.u32 %s16997_s17, 4  ;;  %s16910_s19 = int_to_ptr.vmem [resolvable:$false] %s16909_s19 }
 0x6d2   : > { %13133 = vmatpush1.bf16.msra.mxu0 %v15936_v8  ;;  %v15944_v58 = vld [vmem:[%s17234_s13 + $0x84] ss:$16 sps:$4 sm:$0xff]   ;;  %v15948_v15 = vld [vmem:[%s17234_s13 + $0x80] ss:$16 sps:$4 sm:$0xff]   ;;  %v17640_v8 = vcombine.low %v9972_v42, %v9972_v42  ;;  %s16911_s28 = scalar_lea.vmem %s16910_s19, 1024  ;;  %p16912_p2 = scmp.lt.s32.totalorder %s13810_s23, %s16910_s19 }
 0x6d3   : > { %13174 = vmatpush1.bf16.msra.mxu1 %v15937_v1  ;;  %13134 = vmatprep.subr.bf16.mxu0 %v15938_v46  ;;  %v15946_v4 = vld [vmem:[%s17234_s13 + $0x284] ss:$16 sps:$4 sm:$0xff]   ;;  %v15949_v9 = vld [vmem:[%s17234_s13 + $0x280] ss:$16 sps:$4 sm:$0xff]   ;;  %v17642_v1 = vcombine.low %v9973_v47, %v9973_v47  ;;  %p16908_p5 = pneg %p16907_p12  ;;  %p16913_p1 = scmp.lt.s32.totalorder %s16911_s28, %s16905_s3 }
 0x6d4   : > { %13175 = vmatprep.subr.bf16.mxu1 %v15940_v54  ;;  %v15950_v13 = vld [vmem:[%s17234_s13 + $0x64] ss:$16 sps:$4 sm:$0xff]   ;;  %v15954_v19 = vld [vmem:[%s17234_s13 + $0x60] ss:$16 sps:$4 sm:$0xff]  }
 0x6d5   : > { %v15952_v52 = vld [vmem:[%s17234_s13 + $0x264] ss:$16 sps:$4 sm:$0xff]   ;;  %v15955_v21 = vld [vmem:[%s17234_s13 + $0x260] ss:$16 sps:$4 sm:$0xff]   ;;  %p16914_p7 = por %p16913_p1, %p16912_p2 }
 0x6d6   : > { %13135 = vmatpush1.bf16.msra.mxu0 %v15942_v10  ;;  %v15956_v22 = vld [vmem:[%s17234_s13 + $0x44] ss:$16 sps:$4 sm:$0xff]   ;;  %v15960_v63 = vld [vmem:[%s17234_s13 + $0x40] ss:$16 sps:$4 sm:$0xff]  }
 0x6d7   : > { %13176 = vmatpush1.bf16.msra.mxu1 %v15943_v39  ;;  %13136 = vmatprep.subr.bf16.mxu0 %v15944_v58  ;;  %v15958_v25 = vld [vmem:[%s17234_s13 + $0x244] ss:$16 sps:$4 sm:$0xff]   ;;  %v15961_v45 = vld [vmem:[%s17234_s13 + $0x240] ss:$16 sps:$4 sm:$0xff]   ;;  %p16915_p9 = pnand %p16914_p7, %p16908_p5 }
 0x6d8   : > { %13177 = vmatprep.subr.bf16.mxu1 %v15946_v4  ;;  %v15962_v5 = vld [vmem:[%s17234_s13 + $0x24] ss:$16 sps:$4 sm:$0xff]   ;;  %v15966_v57 = vld [vmem:[%s17234_s13 + $0x20] ss:$16 sps:$4 sm:$0xff]  }
 0x6d9   : > { %v15964_v3 = vld [vmem:[%s17234_s13 + $0x224] ss:$16 sps:$4 sm:$0xff]   ;;  %v15967_v23 = vld [vmem:[%s17234_s13 + $0x220] ss:$16 sps:$4 sm:$0xff]  }
 0x6da   : > { %13137 = vmatpush1.bf16.msra.mxu0 %v15948_v15  ;;  %v15968_v7 = vld [vmem:[%s17234_s13 + $0x4] ss:$16 sps:$4 sm:$0xff]   ;;  %v15972_v43 = vld [vmem:[%s17234_s13] ss:$16 sps:$4 sm:$0xff]  }
 0x6db   : > { %13178 = vmatpush1.bf16.msra.mxu1 %v15949_v9  ;;  %13138 = vmatprep.subr.bf16.mxu0 %v15950_v13  ;;  %v15970_v53 = vld [vmem:[%s17234_s13 + $0x204] ss:$16 sps:$4 sm:$0xff]   ;;  %v15973_v41 = vld [vmem:[%s17234_s13 + $0x200] ss:$16 sps:$4 sm:$0xff]  }
 0x6dc   : > { %13179 = vmatprep.subr.bf16.mxu1 %v15952_v52  ;;  %v15974_v27 = vld [vmem:[%s17234_s13 + $0x1e4] ss:$16 sps:$4 sm:$0xff]   ;;  %v15978_v18 = vld [vmem:[%s17234_s13 + $0x1e0] ss:$16 sps:$4 sm:$0xff]  }
 0x6dd   : > { %v15976_v28 = vld [vmem:[%s17234_s13 + $0x3e4] ss:$16 sps:$4 sm:$0xff]   ;;  %v15979_v33 = vld [vmem:[%s17234_s13 + $0x3e0] ss:$16 sps:$4 sm:$0xff]  }
 0x6de   : > { %13139 = vmatpush1.bf16.msra.mxu0 %v15954_v19  ;;  %v15980_v31 = vld [vmem:[%s17234_s13 + $0x1c4] ss:$16 sps:$4 sm:$0xff]   ;;  %v15984_v12 = vld [vmem:[%s17234_s13 + $0x1c0] ss:$16 sps:$4 sm:$0xff]  }
 0x6df   : > { %13180 = vmatpush1.bf16.msra.mxu1 %v15955_v21  ;;  %13140 = vmatprep.subr.bf16.mxu0 %v15956_v22  ;;  %v15982_v40 = vld [vmem:[%s17234_s13 + $0x3c4] ss:$16 sps:$4 sm:$0xff]   ;;  %v15985_v29 = vld [vmem:[%s17234_s13 + $0x3c0] ss:$16 sps:$4 sm:$0xff]  }
 0x6e0   : > { %13181 = vmatprep.subr.bf16.mxu1 %v15958_v25  ;;  %v15986_v35 = vld [vmem:[%s17234_s13 + $0x1a4] ss:$16 sps:$4 sm:$0xff]   ;;  %v15990_v32 = vld [vmem:[%s17234_s13 + $0x1a0] ss:$16 sps:$4 sm:$0xff]  }
 0x6e1   : > { %v15988_v11 = vld [vmem:[%s17234_s13 + $0x3a4] ss:$16 sps:$4 sm:$0xff]   ;;  %v15991_v36 = vld [vmem:[%s17234_s13 + $0x3a0] ss:$16 sps:$4 sm:$0xff]  }
 0x6e2   : > { %13141 = vmatpush1.bf16.msra.mxu0 %v15960_v63  ;;  %v15992_v51 = vld [vmem:[%s17234_s13 + $0x184] ss:$16 sps:$4 sm:$0xff]   ;;  %v15996_v16 = vld [vmem:[%s17234_s13 + $0x180] ss:$16 sps:$4 sm:$0xff]  }
 0x6e3   : > { %13182 = vmatpush1.bf16.msra.mxu1 %v15961_v45  ;;  %13142 = vmatprep.subr.bf16.mxu0 %v15962_v5  ;;  %v15994_v38 = vld [vmem:[%s17234_s13 + $0x384] ss:$16 sps:$4 sm:$0xff]   ;;  %v15997_v50 = vld [vmem:[%s17234_s13 + $0x380] ss:$16 sps:$4 sm:$0xff]  }
 0x6e4   : > { %13183 = vmatprep.subr.bf16.mxu1 %v15964_v3  ;;  %v15998_v30 = vld [vmem:[%s17234_s13 + $0x164] ss:$16 sps:$4 sm:$0xff]   ;;  %v16002_v60 = vld [vmem:[%s17234_s13 + $0x160] ss:$16 sps:$4 sm:$0xff]  }
 0x6e5   : > { %v16000_v56 = vld [vmem:[%s17234_s13 + $0x364] ss:$16 sps:$4 sm:$0xff]   ;;  %v16003_v2 = vld [vmem:[%s17234_s13 + $0x360] ss:$16 sps:$4 sm:$0xff]  }
 0x6e6   : > { %13143 = vmatpush1.bf16.msra.mxu0 %v15966_v57  ;;  %v16004_v26 = vld [vmem:[%s17234_s13 + $0x144] ss:$16 sps:$4 sm:$0xff]   ;;  %v16008_v49 = vld [vmem:[%s17234_s13 + $0x140] ss:$16 sps:$4 sm:$0xff]  }
 0x6e7   : > { %13184 = vmatpush1.bf16.msra.mxu1 %v15967_v23  ;;  %13144 = vmatprep.subr.bf16.mxu0 %v15968_v7  ;;  %v16006_v44 = vld [vmem:[%s17234_s13 + $0x344] ss:$16 sps:$4 sm:$0xff]   ;;  %v16009_v37 = vld [vmem:[%s17234_s13 + $0x340] ss:$16 sps:$4 sm:$0xff]  }
 0x6e8   : > { %13185 = vmatprep.subr.bf16.mxu1 %v15970_v53  ;;  %v16010_v34 = vld [vmem:[%s17234_s13 + $0x124] ss:$16 sps:$4 sm:$0xff]   ;;  %v16014_v6 = vld [vmem:[%s17234_s13 + $0x120] ss:$16 sps:$4 sm:$0xff]  }
 0x6e9   : > { %v16012_v24 = vld [vmem:[%s17234_s13 + $0x324] ss:$16 sps:$4 sm:$0xff]   ;;  %v16015_v48 = vld [vmem:[%s17234_s13 + $0x320] ss:$16 sps:$4 sm:$0xff]  }
 0x6ea   : > { %13145 = vmatpush1.bf16.msra.mxu0 %v15972_v43  ;;  %v16016_v17 = vld [vmem:[%s17234_s13 + $0x104] ss:$16 sps:$4 sm:$0xff]   ;;  %v16020_v62 = vld [vmem:[%s17234_s13 + $0x100] ss:$16 sps:$4 sm:$0xff]  }
 0x6eb   : > { %13186 = vmatpush1.bf16.msra.mxu1 %v15973_v41  ;;  %13146 = vmatprep.subr.bf16.mxu0 %v15974_v27  ;;  %v16018_v20 = vld [vmem:[%s17234_s13 + $0x304] ss:$16 sps:$4 sm:$0xff]   ;;  %v16021_v61 = vld [vmem:[%s17234_s13 + $0x300] ss:$16 sps:$4 sm:$0xff]  }
 0x6ec   : > { %13187 = vmatprep.subr.bf16.mxu1 %v15976_v28  ;;  %v16028_v0 = vld [vmem:[%s17234_s13 + $0x4e4] ss:$16 sps:$4 sm:$0xff]   ;;  %v16026_v46 = vld [vmem:[%s17234_s13 + $0x4e0] ss:$16 sps:$4 sm:$0xff]   ;;  %v17672_v28 = vld [vmem:[#allocation2 + $0x10] sm:$0xff] }
 0x6ed   : > { %v16031_v59 = vld [vmem:[%s17234_s13 + $0x6e4] ss:$16 sps:$4 sm:$0xff]   ;;  %v16029_v54 = vld [vmem:[%s17234_s13 + $0x6e0] ss:$16 sps:$4 sm:$0xff]  }
 0x6ee   : > { %13147 = vmatpush2.bf16.msra.mxu0 %v15978_v18  ;;  %v16034_v10 = vld [vmem:[%s17234_s13 + $0x4c4] ss:$16 sps:$4 sm:$0xff]   ;;  %v16032_v58 = vld [vmem:[%s17234_s13 + $0x4c0] ss:$16 sps:$4 sm:$0xff]  }
 0x6ef   : > { %13188 = vmatpush2.bf16.msra.mxu1 %v15979_v33  ;;  %13148 = vmatprep.subr.bf16.mxu0 %v15980_v31  ;;  %v16037_v39 = vld [vmem:[%s17234_s13 + $0x6c4] ss:$16 sps:$4 sm:$0xff]   ;;  %v16035_v4 = vld [vmem:[%s17234_s13 + $0x6c0] ss:$16 sps:$4 sm:$0xff]  }
 0x6f0   : > { %13189 = vmatprep.subr.bf16.mxu1 %v15982_v40  ;;  %v16040_v15 = vld [vmem:[%s17234_s13 + $0x4a4] ss:$16 sps:$4 sm:$0xff]   ;;  %v16038_v13 = vld [vmem:[%s17234_s13 + $0x4a0] ss:$16 sps:$4 sm:$0xff]   ;;  %v17682_v40 = vcombine.high %v17672_v28, %v17672_v28 }
 0x6f1   : > { %v16043_v9 = vld [vmem:[%s17234_s13 + $0x6a4] ss:$16 sps:$4 sm:$0xff]   ;;  %v16041_v52 = vld [vmem:[%s17234_s13 + $0x6a0] ss:$16 sps:$4 sm:$0xff]  }
 0x6f2   : > { %13149 = vmatpush2.bf16.msra.mxu0 %v15984_v12  ;;  %v16046_v19 = vld [vmem:[%s17234_s13 + $0x484] ss:$16 sps:$4 sm:$0xff]   ;;  %v16044_v22 = vld [vmem:[%s17234_s13 + $0x480] ss:$16 sps:$4 sm:$0xff]  }
 0x6f3   : > { %13190 = vmatpush2.bf16.msra.mxu1 %v15985_v29  ;;  %13150 = vmatprep.subr.bf16.mxu0 %v15986_v35  ;;  %v16049_v21 = vld [vmem:[%s17234_s13 + $0x684] ss:$16 sps:$4 sm:$0xff]   ;;  %v16047_v25 = vld [vmem:[%s17234_s13 + $0x680] ss:$16 sps:$4 sm:$0xff]  }
 0x6f4   : > { %13191 = vmatprep.subr.bf16.mxu1 %v15988_v11  ;;  %v16052_v63 = vld [vmem:[%s17234_s13 + $0x464] ss:$16 sps:$4 sm:$0xff]   ;;  %v16050_v5 = vld [vmem:[%s17234_s13 + $0x460] ss:$16 sps:$4 sm:$0xff]  }
 0x6f5   : > { %v16055_v45 = vld [vmem:[%s17234_s13 + $0x664] ss:$16 sps:$4 sm:$0xff]   ;;  %v16053_v3 = vld [vmem:[%s17234_s13 + $0x660] ss:$16 sps:$4 sm:$0xff]  }
 0x6f6   : > { %13151 = vmatpush2.bf16.msra.mxu0 %v15990_v32  ;;  %v16058_v57 = vld [vmem:[%s17234_s13 + $0x444] ss:$16 sps:$4 sm:$0xff]   ;;  %v16056_v7 = vld [vmem:[%s17234_s13 + $0x440] ss:$16 sps:$4 sm:$0xff]  }
 0x6f7   : > { %13192 = vmatpush2.bf16.msra.mxu1 %v15991_v36  ;;  %13152 = vmatprep.subr.bf16.mxu0 %v15992_v51  ;;  %v16061_v23 = vld [vmem:[%s17234_s13 + $0x644] ss:$16 sps:$4 sm:$0xff]   ;;  %v16059_v53 = vld [vmem:[%s17234_s13 + $0x640] ss:$16 sps:$4 sm:$0xff]  }
 0x6f8   : > { %13193 = vmatprep.subr.bf16.mxu1 %v15994_v38  ;;  %v16064_v43 = vld [vmem:[%s17234_s13 + $0x424] ss:$16 sps:$4 sm:$0xff]   ;;  %v16062_v18 = vld [vmem:[%s17234_s13 + $0x420] ss:$16 sps:$4 sm:$0xff]  }
 0x6f9   : > { %v16067_v41 = vld [vmem:[%s17234_s13 + $0x624] ss:$16 sps:$4 sm:$0xff]   ;;  %v16065_v33 = vld [vmem:[%s17234_s13 + $0x620] ss:$16 sps:$4 sm:$0xff]  }
 0x6fa   : > { %13153 = vmatpush2.bf16.msra.mxu0 %v15996_v16  ;;  %v17670_v27 = vld [vmem:[#allocation2 + $0x18] sm:$0xff] }
 0x6fb   : > { %13194 = vmatpush2.bf16.msra.mxu1 %v15997_v50  ;;  %13154 = vmatprep.subr.bf16.mxu0 %v15998_v30  ;;  %v17678_v31 = vcombine.high %v17670_v27, %v17670_v27  ;;  %v16070_v12 = vld [vmem:[%s17234_s13 + $0x404] ss:$16 sps:$4 sm:$0xff]   ;;  %v16068_v35 = vld [vmem:[%s17234_s13 + $0x400] ss:$16 sps:$4 sm:$0xff]  }
 0x6fc   : > { %13195 = vmatprep.subr.bf16.mxu1 %v16000_v56  ;;  %v16073_v29 = vld [vmem:[%s17234_s13 + $0x604] ss:$16 sps:$4 sm:$0xff]   ;;  %v16071_v11 = vld [vmem:[%s17234_s13 + $0x600] ss:$16 sps:$4 sm:$0xff]  }
 0x6fd   : > { %v16076_v32 = vld [vmem:[%s17234_s13 + $0x5e4] ss:$16 sps:$4 sm:$0xff]   ;;  %v16074_v51 = vld [vmem:[%s17234_s13 + $0x5e0] ss:$16 sps:$4 sm:$0xff]  }
 0x6fe   : > { %13155 = vmatpush2.bf16.msra.mxu0 %v16002_v60  ;;  %v16079_v36 = vld [vmem:[%s17234_s13 + $0x7e4] ss:$16 sps:$4 sm:$0xff]   ;;  %v16077_v38 = vld [vmem:[%s17234_s13 + $0x7e0] ss:$16 sps:$4 sm:$0xff]  }
 0x6ff   : > { %13196 = vmatpush2.bf16.msra.mxu1 %v16003_v2  ;;  %13156 = vmatprep.subr.bf16.mxu0 %v16004_v26  ;;  %v16082_v42 = vld [vmem:[%s17234_s13 + $0x5c4] ss:$16 sps:$4 sm:$0xff]   ;;  %v16080_v16 = vld [vmem:[%s17234_s13 + $0x5c0] ss:$16 sps:$4 sm:$0xff]  }
 0x700   : > { %13197 = vmatprep.subr.bf16.mxu1 %v16006_v44  ;;  %v16085_v47 = vld [vmem:[%s17234_s13 + $0x7c4] ss:$16 sps:$4 sm:$0xff]   ;;  %v16083_v50 = vld [vmem:[%s17234_s13 + $0x7c0] ss:$16 sps:$4 sm:$0xff]  }
 0x701   : > { %v16088_v30 = vld [vmem:[%s17234_s13 + $0x5a4] ss:$16 sps:$4 sm:$0xff]   ;;  %v16086_v60 = vld [vmem:[%s17234_s13 + $0x5a0] ss:$16 sps:$4 sm:$0xff]  }
 0x702   : > { %13157 = vmatpush2.bf16.msra.mxu0 %v16008_v49  ;;  %v16091_v56 = vld [vmem:[%s17234_s13 + $0x7a4] ss:$16 sps:$4 sm:$0xff]   ;;  %v16089_v2 = vld [vmem:[%s17234_s13 + $0x7a0] ss:$16 sps:$4 sm:$0xff]  }
 0x703   : > { %13198 = vmatpush2.bf16.msra.mxu1 %v16009_v37  ;;  %13158 = vmatprep.subr.bf16.mxu0 %v16010_v34  ;;  %v16094_v26 = vld [vmem:[%s17234_s13 + $0x584] ss:$16 sps:$4 sm:$0xff]   ;;  %v16092_v49 = vld [vmem:[%s17234_s13 + $0x580] ss:$16 sps:$4 sm:$0xff]  }
 0x704   : > { %13199 = vmatprep.subr.bf16.mxu1 %v16012_v24  ;;  %v16097_v44 = vld [vmem:[%s17234_s13 + $0x784] ss:$16 sps:$4 sm:$0xff]   ;;  %v16095_v37 = vld [vmem:[%s17234_s13 + $0x780] ss:$16 sps:$4 sm:$0xff]  }
 0x705   : > { %v16100_v34 = vld [vmem:[%s17234_s13 + $0x564] ss:$16 sps:$4 sm:$0xff]  }
 0x706   : > { %13159 = vmatpush2.bf16.msra.mxu0 %v16014_v6  ;;  %v16103_v24 = vld [vmem:[%s17234_s13 + $0x764] ss:$16 sps:$4 sm:$0xff]   ;;  %v16098_v6 = vld [vmem:[%s17234_s13 + $0x560] ss:$16 sps:$4 sm:$0xff]  }
 0x707   : > { %13200 = vmatpush2.bf16.msra.mxu1 %v16015_v48  ;;  %13160 = vmatprep.subr.bf16.mxu0 %v16016_v17  ;;  %v16101_v48 = vld [vmem:[%s17234_s13 + $0x760] ss:$16 sps:$4 sm:$0xff]   ;;  %v16106_v17 = vld [vmem:[%s17234_s13 + $0x544] ss:$16 sps:$4 sm:$0xff]  }
 0x708   : > { %13201 = vmatprep.subr.bf16.mxu1 %v16018_v20  ;;  %v16109_v20 = vld [vmem:[%s17234_s13 + $0x744] ss:$16 sps:$4 sm:$0xff]  }
 0x70a   : > { %13161 = vmatpush2.bf16.msra.mxu0 %v16020_v62  ;;  %v16104_v62 = vld [vmem:[%s17234_s13 + $0x540] ss:$16 sps:$4 sm:$0xff]  }
 0x70b   : > { %13202 = vmatpush2.bf16.msra.mxu1 %v16021_v61  ;;  %13212 = vmatprep.subr.bf16.mxu0 %v16028_v0  ;;  %v16107_v61 = vld [vmem:[%s17234_s13 + $0x740] ss:$16 sps:$4 sm:$0xff]   ;;  %v16112_v0 = vld [vmem:[%s17234_s13 + $0x524] ss:$16 sps:$4 sm:$0xff]  }
 0x70c   : > { %13253 = vmatprep.subr.bf16.mxu1 %v16031_v59  ;;  %v16115_v59 = vld [vmem:[%s17234_s13 + $0x724] ss:$16 sps:$4 sm:$0xff]  }
 0x70d   : > { %13163 = vmatmul.mubr.bf16.vlgmr.msra.gmra.mxu0 %v17640_v8 }
 0x70e   : > { %13204 = vmatmul.mubr.bf16.vlgmr.msra.gmra.mxu1 %v17642_v1  ;;  %13213 = vmatpush1.bf16.msra.mxu0 %v16026_v46  ;;  %v16110_v46 = vld [vmem:[%s17234_s13 + $0x520] ss:$16 sps:$4 sm:$0xff]  }
 0x70f   : > { %13254 = vmatpush1.bf16.msra.mxu1 %v16029_v54  ;;  %13214 = vmatprep.subr.bf16.mxu0 %v16034_v10  ;;  %v16113_v54 = vld [vmem:[%s17234_s13 + $0x720] ss:$16 sps:$4 sm:$0xff]   ;;  %v16118_v10 = vld [vmem:[%s17234_s13 + $0x504] ss:$16 sps:$4 sm:$0xff]  }
 0x710   : > { %13255 = vmatprep.subr.bf16.mxu1 %v16037_v39  ;;  %13244 = vmatprep.mubr.bf16.mxu0 %v17678_v31  ;;  %v16121_v39 = vld [vmem:[%s17234_s13 + $0x704] ss:$16 sps:$4 sm:$0xff]  }
 0x711   : > { %13285 = vmatprep.mubr.bf16.mxu1 %v17682_v40 }
 0x712   : > { %13215 = vmatpush1.bf16.msra.mxu0 %v16032_v58  ;;  %v16116_v58 = vld [vmem:[%s17234_s13 + $0x500] ss:$16 sps:$4 sm:$0xff]  }
 0x713   : > { %13256 = vmatpush1.bf16.msra.mxu1 %v16035_v4  ;;  %13216 = vmatprep.subr.bf16.mxu0 %v16040_v15  ;;  %v16119_v4 = vld [vmem:[%s17234_s13 + $0x700] ss:$16 sps:$4 sm:$0xff]   ;;  %v16128_v15 = vld [vmem:[%s17234_s13 + $0x8e4] ss:$16 sps:$4 sm:$0xff]  }
 0x714   : > { %13257 = vmatprep.subr.bf16.mxu1 %v16043_v9  ;;  %v16131_v9 = vld [vmem:[%s17234_s13 + $0xae4] ss:$16 sps:$4 sm:$0xff]  }
 0x716   : > { %13217 = vmatpush1.bf16.msra.mxu0 %v16038_v13  ;;  %v17726_v13 = vcombine.low %v17670_v27, %v17670_v27  ;;  %v16146_v27 = vld [vmem:[%s17234_s13 + $0x884] ss:$16 sps:$4 sm:$0xff]  }
 0x717   : > { %13258 = vmatpush1.bf16.msra.mxu1 %v16041_v52  ;;  %13218 = vmatprep.subr.bf16.mxu0 %v16046_v19  ;;  %v17730_v52 = vcombine.low %v17672_v28, %v17672_v28  ;;  %v16126_v19 = vld [vmem:[%s17234_s13 + $0x8e0] ss:$16 sps:$4 sm:$0xff]   ;;  %v16149_v28 = vld [vmem:[%s17234_s13 + $0xa84] ss:$16 sps:$4 sm:$0xff]  }
 0x718   : > { %13259 = vmatprep.subr.bf16.mxu1 %v16049_v21  ;;  %v16129_v21 = vld [vmem:[%s17234_s13 + $0xae0] ss:$16 sps:$4 sm:$0xff]  }
 0x71a   : > { %13219 = vmatpush1.bf16.msra.mxu0 %v16044_v22  ;;  %v16134_v22 = vld [vmem:[%s17234_s13 + $0x8c4] ss:$16 sps:$4 sm:$0xff]  }
 0x71b   : > { %13260 = vmatpush1.bf16.msra.mxu1 %v16047_v25  ;;  %13220 = vmatprep.subr.bf16.mxu0 %v16052_v63  ;;  %v16137_v25 = vld [vmem:[%s17234_s13 + $0xac4] ss:$16 sps:$4 sm:$0xff]  }
 0x71c   : > { %13261 = vmatprep.subr.bf16.mxu1 %v16055_v45  ;;  %v17736_v63 = vld [vmem:[#allocation2 + $0x8] sm:$0xff]  ;;  %v17738_v45 = vld [vmem:[#allocation2 + $0x20] sm:$0xff] }
 0x71e   : > { %13221 = vmatpush1.bf16.msra.mxu0 %v16050_v5  ;;  %v17742_v5 = vcombine.high %v17736_v63, %v17736_v63 }
 0x71f   : > { %13262 = vmatpush1.bf16.msra.mxu1 %v16053_v3  ;;  %13222 = vmatprep.subr.bf16.mxu0 %v16058_v57  ;;  %v17746_v3 = vcombine.high %v17738_v45, %v17738_v45  ;;  %v16132_v57 = vld [vmem:[%s17234_s13 + $0x8c0] ss:$16 sps:$4 sm:$0xff]  }
 0x720   : > { %13263 = vmatprep.subr.bf16.mxu1 %v16061_v23  ;;  %v16135_v23 = vld [vmem:[%s17234_s13 + $0xac0] ss:$16 sps:$4 sm:$0xff]  }
 0x722   : > { %13223 = vmatpush1.bf16.msra.mxu0 %v16056_v7  ;;  %v16140_v7 = vld [vmem:[%s17234_s13 + $0x8a4] ss:$16 sps:$4 sm:$0xff]  }
 0x723   : > { %13264 = vmatpush1.bf16.msra.mxu1 %v16059_v53  ;;  %13224 = vmatprep.subr.bf16.mxu0 %v16064_v43  ;;  %v16143_v53 = vld [vmem:[%s17234_s13 + $0xaa4] ss:$16 sps:$4 sm:$0xff]   ;;  %v16138_v43 = vld [vmem:[%s17234_s13 + $0x8a0] ss:$16 sps:$4 sm:$0xff]  }
 0x724   : > { %13265 = vmatprep.subr.bf16.mxu1 %v16067_v41  ;;  %v16141_v41 = vld [vmem:[%s17234_s13 + $0xaa0] ss:$16 sps:$4 sm:$0xff]  }
 0x726   : > { %13225 = vmatpush1.bf16.msra.mxu0 %v16062_v18  ;;  %v16144_v18 = vld [vmem:[%s17234_s13 + $0x880] ss:$16 sps:$4 sm:$0xff]  }
 0x727   : > { %13266 = vmatpush1.bf16.msra.mxu1 %v16065_v33  ;;  %13226 = vmatprep.subr.bf16.mxu0 %v16070_v12  ;;  %v16147_v33 = vld [vmem:[%s17234_s13 + $0xa80] ss:$16 sps:$4 sm:$0xff]   ;;  %v16152_v12 = vld [vmem:[%s17234_s13 + $0x864] ss:$16 sps:$4 sm:$0xff]  }
 0x728   : > { %13267 = vmatprep.subr.bf16.mxu1 %v16073_v29  ;;  %v16155_v29 = vld [vmem:[%s17234_s13 + $0xa64] ss:$16 sps:$4 sm:$0xff]  }
 0x72a   : > { %13227 = vmatpush1.bf16.msra.mxu0 %v16068_v35  ;;  %v16150_v35 = vld [vmem:[%s17234_s13 + $0x860] ss:$16 sps:$4 sm:$0xff]  }
 0x72b   : > { %13268 = vmatpush1.bf16.msra.mxu1 %v16071_v11  ;;  %13228 = vmatprep.subr.bf16.mxu0 %v16076_v32  ;;  %v16153_v11 = vld [vmem:[%s17234_s13 + $0xa60] ss:$16 sps:$4 sm:$0xff]   ;;  %v16158_v32 = vld [vmem:[%s17234_s13 + $0x844] ss:$16 sps:$4 sm:$0xff]  }
 0x72c   : > { %13269 = vmatprep.subr.bf16.mxu1 %v16079_v36  ;;  %v16161_v36 = vld [vmem:[%s17234_s13 + $0xa44] ss:$16 sps:$4 sm:$0xff]  }
 0x72e   : > { %13229 = vmatpush2.bf16.msra.mxu0 %v16074_v51  ;;  %v16156_v51 = vld [vmem:[%s17234_s13 + $0x840] ss:$16 sps:$4 sm:$0xff]  }
 0x72f   : > { %13270 = vmatpush2.bf16.msra.mxu1 %v16077_v38  ;;  %13230 = vmatprep.subr.bf16.mxu0 %v16082_v42  ;;  %v16159_v38 = vld [vmem:[%s17234_s13 + $0xa40] ss:$16 sps:$4 sm:$0xff]   ;;  %v16164_v42 = vld [vmem:[%s17234_s13 + $0x824] ss:$16 sps:$4 sm:$0xff]  }
 0x730   : > { %13271 = vmatprep.subr.bf16.mxu1 %v16085_v47  ;;  %v16167_v47 = vld [vmem:[%s17234_s13 + $0xa24] ss:$16 sps:$4 sm:$0xff]  }
 0x732   : > { %13231 = vmatpush2.bf16.msra.mxu0 %v16080_v16  ;;  %v16162_v16 = vld [vmem:[%s17234_s13 + $0x820] ss:$16 sps:$4 sm:$0xff]  }
 0x733   : > { %13272 = vmatpush2.bf16.msra.mxu1 %v16083_v50  ;;  %13232 = vmatprep.subr.bf16.mxu0 %v16088_v30  ;;  %v16165_v50 = vld [vmem:[%s17234_s13 + $0xa20] ss:$16 sps:$4 sm:$0xff]   ;;  %v16170_v30 = vld [vmem:[%s17234_s13 + $0x804] ss:$16 sps:$4 sm:$0xff]  }
 0x734   : > { %13273 = vmatprep.subr.bf16.mxu1 %v16091_v56  ;;  %v16173_v56 = vld [vmem:[%s17234_s13 + $0xa04] ss:$16 sps:$4 sm:$0xff]  }
 0x736   : > { %13233 = vmatpush2.bf16.msra.mxu0 %v16086_v60  ;;  %v16168_v60 = vld [vmem:[%s17234_s13 + $0x800] ss:$16 sps:$4 sm:$0xff]  }
 0x737   : > { %13274 = vmatpush2.bf16.msra.mxu1 %v16089_v2  ;;  %13234 = vmatprep.subr.bf16.mxu0 %v16094_v26  ;;  %v16171_v2 = vld [vmem:[%s17234_s13 + $0xa00] ss:$16 sps:$4 sm:$0xff]   ;;  %v16176_v26 = vld [vmem:[%s17234_s13 + $0x9e4] ss:$16 sps:$4 sm:$0xff]  }
 0x738   : > { %13275 = vmatprep.subr.bf16.mxu1 %v16097_v44  ;;  %v16179_v44 = vld [vmem:[%s17234_s13 + $0xbe4] ss:$16 sps:$4 sm:$0xff]  }
 0x73a   : > { %13235 = vmatpush2.bf16.msra.mxu0 %v16092_v49  ;;  %v16174_v49 = vld [vmem:[%s17234_s13 + $0x9e0] ss:$16 sps:$4 sm:$0xff]  }
 0x73b   : > { %13276 = vmatpush2.bf16.msra.mxu1 %v16095_v37  ;;  %13236 = vmatprep.subr.bf16.mxu0 %v16100_v34  ;;  %v16177_v37 = vld [vmem:[%s17234_s13 + $0xbe0] ss:$16 sps:$4 sm:$0xff]   ;;  %v16182_v34 = vld [vmem:[%s17234_s13 + $0x9c4] ss:$16 sps:$4 sm:$0xff]  }
 0x73c   : > { %13277 = vmatprep.subr.bf16.mxu1 %v16103_v24  ;;  %v16185_v24 = vld [vmem:[%s17234_s13 + $0xbc4] ss:$16 sps:$4 sm:$0xff]  }
 0x73e   : > { %13237 = vmatpush2.bf16.msra.mxu0 %v16098_v6  ;;  %v16180_v6 = vld [vmem:[%s17234_s13 + $0x9c0] ss:$16 sps:$4 sm:$0xff]  }
 0x73f   : > { %13278 = vmatpush2.bf16.msra.mxu1 %v16101_v48  ;;  %13238 = vmatprep.subr.bf16.mxu0 %v16106_v17  ;;  %v16183_v48 = vld [vmem:[%s17234_s13 + $0xbc0] ss:$16 sps:$4 sm:$0xff]   ;;  %v16188_v17 = vld [vmem:[%s17234_s13 + $0x9a4] ss:$16 sps:$4 sm:$0xff]  }
 0x740   : > { %13279 = vmatprep.subr.bf16.mxu1 %v16109_v20  ;;  %v16191_v20 = vld [vmem:[%s17234_s13 + $0xba4] ss:$16 sps:$4 sm:$0xff]  }
 0x742   : > { %13239 = vmatpush2.bf16.msra.mxu0 %v16104_v62  ;;  %v16186_v62 = vld [vmem:[%s17234_s13 + $0x9a0] ss:$16 sps:$4 sm:$0xff]  }
 0x743   : > { %13280 = vmatpush2.bf16.msra.mxu1 %v16107_v61  ;;  %13240 = vmatprep.subr.bf16.mxu0 %v16112_v0  ;;  %v16189_v61 = vld [vmem:[%s17234_s13 + $0xba0] ss:$16 sps:$4 sm:$0xff]   ;;  %v16194_v0 = vld [vmem:[%s17234_s13 + $0x984] ss:$16 sps:$4 sm:$0xff]  }
 0x744   : > { %13281 = vmatprep.subr.bf16.mxu1 %v16115_v59  ;;  %v16197_v59 = vld [vmem:[%s17234_s13 + $0xb84] ss:$16 sps:$4 sm:$0xff]  }
 0x746   : > { %13241 = vmatpush2.bf16.msra.mxu0 %v16110_v46  ;;  %v16192_v46 = vld [vmem:[%s17234_s13 + $0x980] ss:$16 sps:$4 sm:$0xff]  }
 0x747   : > { %13282 = vmatpush2.bf16.msra.mxu1 %v16113_v54  ;;  %13242 = vmatprep.subr.bf16.mxu0 %v16118_v10  ;;  %v16195_v54 = vld [vmem:[%s17234_s13 + $0xb80] ss:$16 sps:$4 sm:$0xff]   ;;  %v16200_v10 = vld [vmem:[%s17234_s13 + $0x964] ss:$16 sps:$4 sm:$0xff]  }
 0x748   : > { %13283 = vmatprep.subr.bf16.mxu1 %v16121_v39  ;;  %v16203_v39 = vld [vmem:[%s17234_s13 + $0xb64] ss:$16 sps:$4 sm:$0xff]  }
 0x74a   : > { %13243 = vmatpush2.bf16.msra.mxu0 %v16116_v58  ;;  %v16198_v58 = vld [vmem:[%s17234_s13 + $0x960] ss:$16 sps:$4 sm:$0xff]  }
 0x74b   : > { %13284 = vmatpush2.bf16.msra.mxu1 %v16119_v4  ;;  %13294 = vmatprep.subr.bf16.mxu0 %v16128_v15  ;;  %v16201_v4 = vld [vmem:[%s17234_s13 + $0xb60] ss:$16 sps:$4 sm:$0xff]   ;;  %v16206_v15 = vld [vmem:[%s17234_s13 + $0x944] ss:$16 sps:$4 sm:$0xff]  }
 0x74c   : > { %13335 = vmatprep.subr.bf16.mxu1 %v16131_v9  ;;  %v16209_v9 = vld [vmem:[%s17234_s13 + $0xb44] ss:$16 sps:$4 sm:$0xff]  }
 0x74d   : > { %13245 = vmatmul.mubr.bf16.vlgmr.msra.gmra.mxu0 %v17726_v13 }
 0x74e   : > { %13286 = vmatmul.mubr.bf16.vlgmr.msra.gmra.mxu1 %v17730_v52  ;;  %13295 = vmatpush1.bf16.msra.mxu0 %v16126_v19  ;;  %v16204_v19 = vld [vmem:[%s17234_s13 + $0x940] ss:$16 sps:$4 sm:$0xff]  }
 0x74f   : > { %13336 = vmatpush1.bf16.msra.mxu1 %v16129_v21  ;;  %13296 = vmatprep.subr.bf16.mxu0 %v16134_v22  ;;  %v16207_v21 = vld [vmem:[%s17234_s13 + $0xb40] ss:$16 sps:$4 sm:$0xff]   ;;  %v16212_v22 = vld [vmem:[%s17234_s13 + $0x924] ss:$16 sps:$4 sm:$0xff]  }
 0x750   : > { %13337 = vmatprep.subr.bf16.mxu1 %v16137_v25  ;;  %13326 = vmatprep.mubr.bf16.mxu0 %v17742_v5  ;;  %v16215_v25 = vld [vmem:[%s17234_s13 + $0xb24] ss:$16 sps:$4 sm:$0xff]  }
 0x751   : > { %13367 = vmatprep.mubr.bf16.mxu1 %v17746_v3 }
 0x752   : > { %13297 = vmatpush1.bf16.msra.mxu0 %v16132_v57  ;;  %v16210_v57 = vld [vmem:[%s17234_s13 + $0x920] ss:$16 sps:$4 sm:$0xff]  }
 0x753   : > { %13338 = vmatpush1.bf16.msra.mxu1 %v16135_v23  ;;  %13298 = vmatprep.subr.bf16.mxu0 %v16140_v7  ;;  %v16213_v23 = vld [vmem:[%s17234_s13 + $0xb20] ss:$16 sps:$4 sm:$0xff]   ;;  %v16218_v7 = vld [vmem:[%s17234_s13 + $0x904] ss:$16 sps:$4 sm:$0xff]  }
 0x754   : > { %13339 = vmatprep.subr.bf16.mxu1 %v16143_v53  ;;  %v16221_v53 = vld [vmem:[%s17234_s13 + $0xb04] ss:$16 sps:$4 sm:$0xff]  }
 0x756   : > { %13299 = vmatpush1.bf16.msra.mxu0 %v16138_v43  ;;  %v16216_v43 = vld [vmem:[%s17234_s13 + $0x900] ss:$16 sps:$4 sm:$0xff]  }
 0x757   : > { %13340 = vmatpush1.bf16.msra.mxu1 %v16141_v41  ;;  %13300 = vmatprep.subr.bf16.mxu0 %v16146_v27  ;;  %v16219_v41 = vld [vmem:[%s17234_s13 + $0xb00] ss:$16 sps:$4 sm:$0xff]   ;;  %v16228_v27 = vld [vmem:[%s17234_s13 + $0xce4] ss:$16 sps:$4 sm:$0xff]  }
 0x758   : > { %13341 = vmatprep.subr.bf16.mxu1 %v16149_v28  ;;  %v16231_v28 = vld [vmem:[%s17234_s13 + $0xee4] ss:$16 sps:$4 sm:$0xff]  }
 0x75a   : > { %13301 = vmatpush1.bf16.msra.mxu0 %v16144_v18  ;;  %v16226_v18 = vld [vmem:[%s17234_s13 + $0xce0] ss:$16 sps:$4 sm:$0xff]  }
 0x75b   : > { %13342 = vmatpush1.bf16.msra.mxu1 %v16147_v33  ;;  %13302 = vmatprep.subr.bf16.mxu0 %v16152_v12  ;;  %v17813_v33 = vld [vmem:[#allocation2 + $0x28] sm:$0xff]  ;;  %v17817_v12 = vcombine.low %v17736_v63, %v17736_v63 }
 0x75c   : > { %13343 = vmatprep.subr.bf16.mxu1 %v16155_v29  ;;  %v17821_v29 = vcombine.low %v17738_v45, %v17738_v45  ;;  %v17830_v63 = vcombine.high %v17813_v33, %v17813_v33 }
 0x75e   : > { %13303 = vmatpush1.bf16.msra.mxu0 %v16150_v35  ;;  %v17823_v35 = vld [vmem:[#allocation2 + $0x38] sm:$0xff] }
 0x75f   : > { %13344 = vmatpush1.bf16.msra.mxu1 %v16153_v11  ;;  %13304 = vmatprep.subr.bf16.mxu0 %v16158_v32  ;;  %v16229_v11 = vld [vmem:[%s17234_s13 + $0xee0] ss:$16 sps:$4 sm:$0xff]   ;;  %v16234_v32 = vld [vmem:[%s17234_s13 + $0xcc4] ss:$16 sps:$4 sm:$0xff]   ;;  %v17834_v45 = vcombine.high %v17823_v35, %v17823_v35 }
 0x760   : > { %13345 = vmatprep.subr.bf16.mxu1 %v16161_v36  ;;  %v16237_v36 = vld [vmem:[%s17234_s13 + $0xec4] ss:$16 sps:$4 sm:$0xff]  }
 0x762   : > { %13305 = vmatpush1.bf16.msra.mxu0 %v16156_v51  ;;  %v16232_v51 = vld [vmem:[%s17234_s13 + $0xcc0] ss:$16 sps:$4 sm:$0xff]  }
 0x763   : > { %13346 = vmatpush1.bf16.msra.mxu1 %v16159_v38  ;;  %13306 = vmatprep.subr.bf16.mxu0 %v16164_v42  ;;  %v16235_v38 = vld [vmem:[%s17234_s13 + $0xec0] ss:$16 sps:$4 sm:$0xff]   ;;  %v16240_v42 = vld [vmem:[%s17234_s13 + $0xca4] ss:$16 sps:$4 sm:$0xff]  }
 0x764   : > { %13347 = vmatprep.subr.bf16.mxu1 %v16167_v47  ;;  %v16243_v47 = vld [vmem:[%s17234_s13 + $0xea4] ss:$16 sps:$4 sm:$0xff]  }
 0x766   : > { %13307 = vmatpush1.bf16.msra.mxu0 %v16162_v16  ;;  %v16238_v16 = vld [vmem:[%s17234_s13 + $0xca0] ss:$16 sps:$4 sm:$0xff]  }
 0x767   : > { %13348 = vmatpush1.bf16.msra.mxu1 %v16165_v50  ;;  %13308 = vmatprep.subr.bf16.mxu0 %v16170_v30  ;;  %v16241_v50 = vld [vmem:[%s17234_s13 + $0xea0] ss:$16 sps:$4 sm:$0xff]   ;;  %v16246_v30 = vld [vmem:[%s17234_s13 + $0xc84] ss:$16 sps:$4 sm:$0xff]  }
 0x768   : > { %13349 = vmatprep.subr.bf16.mxu1 %v16173_v56  ;;  %v16249_v56 = vld [vmem:[%s17234_s13 + $0xe84] ss:$16 sps:$4 sm:$0xff]  }
 0x76a   : > { %13309 = vmatpush1.bf16.msra.mxu0 %v16168_v60  ;;  %v16244_v60 = vld [vmem:[%s17234_s13 + $0xc80] ss:$16 sps:$4 sm:$0xff]  }
 0x76b   : > { %13350 = vmatpush1.bf16.msra.mxu1 %v16171_v2  ;;  %13310 = vmatprep.subr.bf16.mxu0 %v16176_v26  ;;  %v16247_v2 = vld [vmem:[%s17234_s13 + $0xe80] ss:$16 sps:$4 sm:$0xff]   ;;  %v16252_v26 = vld [vmem:[%s17234_s13 + $0xc64] ss:$16 sps:$4 sm:$0xff]  }
 0x76c   : > { %13351 = vmatprep.subr.bf16.mxu1 %v16179_v44  ;;  %v16255_v44 = vld [vmem:[%s17234_s13 + $0xe64] ss:$16 sps:$4 sm:$0xff]  }
 0x76e   : > { %13311 = vmatpush2.bf16.msra.mxu0 %v16174_v49  ;;  %v16250_v49 = vld [vmem:[%s17234_s13 + $0xc60] ss:$16 sps:$4 sm:$0xff]  }
 0x76f   : > { %13352 = vmatpush2.bf16.msra.mxu1 %v16177_v37  ;;  %13312 = vmatprep.subr.bf16.mxu0 %v16182_v34  ;;  %v16253_v37 = vld [vmem:[%s17234_s13 + $0xe60] ss:$16 sps:$4 sm:$0xff]   ;;  %v16258_v34 = vld [vmem:[%s17234_s13 + $0xc44] ss:$16 sps:$4 sm:$0xff]  }
 0x770   : > { %13353 = vmatprep.subr.bf16.mxu1 %v16185_v24  ;;  %v16261_v24 = vld [vmem:[%s17234_s13 + $0xe44] ss:$16 sps:$4 sm:$0xff]  }
 0x772   : > { %13313 = vmatpush2.bf16.msra.mxu0 %v16180_v6  ;;  %v16256_v6 = vld [vmem:[%s17234_s13 + $0xc40] ss:$16 sps:$4 sm:$0xff]  }
 0x773   : > { %13354 = vmatpush2.bf16.msra.mxu1 %v16183_v48  ;;  %13314 = vmatprep.subr.bf16.mxu0 %v16188_v17  ;;  %v16259_v48 = vld [vmem:[%s17234_s13 + $0xe40] ss:$16 sps:$4 sm:$0xff]   ;;  %v16264_v17 = vld [vmem:[%s17234_s13 + $0xc24] ss:$16 sps:$4 sm:$0xff]  }
 0x774   : > { %13355 = vmatprep.subr.bf16.mxu1 %v16191_v20  ;;  %v16267_v20 = vld [vmem:[%s17234_s13 + $0xe24] ss:$16 sps:$4 sm:$0xff]  }
 0x776   : > { %13315 = vmatpush2.bf16.msra.mxu0 %v16186_v62  ;;  %v16262_v62 = vld [vmem:[%s17234_s13 + $0xc20] ss:$16 sps:$4 sm:$0xff]  }
 0x777   : > { %13356 = vmatpush2.bf16.msra.mxu1 %v16189_v61  ;;  %13316 = vmatprep.subr.bf16.mxu0 %v16194_v0  ;;  %v16265_v61 = vld [vmem:[%s17234_s13 + $0xe20] ss:$16 sps:$4 sm:$0xff]   ;;  %v16270_v0 = vld [vmem:[%s17234_s13 + $0xc04] ss:$16 sps:$4 sm:$0xff]  }
 0x778   : > { %13357 = vmatprep.subr.bf16.mxu1 %v16197_v59  ;;  %v16273_v59 = vld [vmem:[%s17234_s13 + $0xe04] ss:$16 sps:$4 sm:$0xff]  }
 0x77a   : > { %13317 = vmatpush2.bf16.msra.mxu0 %v16192_v46  ;;  %v16268_v46 = vld [vmem:[%s17234_s13 + $0xc00] ss:$16 sps:$4 sm:$0xff]  }
 0x77b   : > { %13358 = vmatpush2.bf16.msra.mxu1 %v16195_v54  ;;  %13318 = vmatprep.subr.bf16.mxu0 %v16200_v10  ;;  %v16271_v54 = vld [vmem:[%s17234_s13 + $0xe00] ss:$16 sps:$4 sm:$0xff]   ;;  %v16276_v10 = vld [vmem:[%s17234_s13 + $0xde4] ss:$16 sps:$4 sm:$0xff]  }
 0x77c   : > { %13359 = vmatprep.subr.bf16.mxu1 %v16203_v39  ;;  %v16279_v39 = vld [vmem:[%s17234_s13 + $0xfe4] ss:$16 sps:$4 sm:$0xff]  }
 0x77e   : > { %13319 = vmatpush2.bf16.msra.mxu0 %v16198_v58  ;;  %v16274_v58 = vld [vmem:[%s17234_s13 + $0xde0] ss:$16 sps:$4 sm:$0xff]  }
 0x77f   : > { %13360 = vmatpush2.bf16.msra.mxu1 %v16201_v4  ;;  %13320 = vmatprep.subr.bf16.mxu0 %v16206_v15  ;;  %v16277_v4 = vld [vmem:[%s17234_s13 + $0xfe0] ss:$16 sps:$4 sm:$0xff]   ;;  %v16282_v15 = vld [vmem:[%s17234_s13 + $0xdc4] ss:$16 sps:$4 sm:$0xff]  }
 0x780   : > { %13361 = vmatprep.subr.bf16.mxu1 %v16209_v9  ;;  %v16285_v9 = vld [vmem:[%s17234_s13 + $0xfc4] ss:$16 sps:$4 sm:$0xff]  }
 0x782   : > { %13321 = vmatpush2.bf16.msra.mxu0 %v16204_v19  ;;  %v16280_v19 = vld [vmem:[%s17234_s13 + $0xdc0] ss:$16 sps:$4 sm:$0xff]  }
 0x783   : > { %13362 = vmatpush2.bf16.msra.mxu1 %v16207_v21  ;;  %13322 = vmatprep.subr.bf16.mxu0 %v16212_v22  ;;  %v16283_v21 = vld [vmem:[%s17234_s13 + $0xfc0] ss:$16 sps:$4 sm:$0xff]   ;;  %v16288_v22 = vld [vmem:[%s17234_s13 + $0xda4] ss:$16 sps:$4 sm:$0xff]  }
 0x784   : > { %13363 = vmatprep.subr.bf16.mxu1 %v16215_v25  ;;  %v16291_v25 = vld [vmem:[%s17234_s13 + $0xfa4] ss:$16 sps:$4 sm:$0xff]  }
 0x786   : > { %13323 = vmatpush2.bf16.msra.mxu0 %v16210_v57  ;;  %v16286_v57 = vld [vmem:[%s17234_s13 + $0xda0] ss:$16 sps:$4 sm:$0xff]  }
 0x787   : > { %13364 = vmatpush2.bf16.msra.mxu1 %v16213_v23  ;;  %13324 = vmatprep.subr.bf16.mxu0 %v16218_v7  ;;  %v16289_v23 = vld [vmem:[%s17234_s13 + $0xfa0] ss:$16 sps:$4 sm:$0xff]   ;;  %v16294_v7 = vld [vmem:[%s17234_s13 + $0xd84] ss:$16 sps:$4 sm:$0xff]  }
 0x788   : > { %13365 = vmatprep.subr.bf16.mxu1 %v16221_v53  ;;  %v16297_v53 = vld [vmem:[%s17234_s13 + $0xf84] ss:$16 sps:$4 sm:$0xff]  }
 0x78a   : > { %13325 = vmatpush2.bf16.msra.mxu0 %v16216_v43  ;;  %v16292_v43 = vld [vmem:[%s17234_s13 + $0xd80] ss:$16 sps:$4 sm:$0xff]  }
 0x78b   : > { %13366 = vmatpush2.bf16.msra.mxu1 %v16219_v41  ;;  %13376 = vmatprep.subr.bf16.mxu0 %v16228_v27  ;;  %v16295_v41 = vld [vmem:[%s17234_s13 + $0xf80] ss:$16 sps:$4 sm:$0xff]   ;;  %v16300_v27 = vld [vmem:[%s17234_s13 + $0xd64] ss:$16 sps:$4 sm:$0xff]  }
 0x78c   : > { %13417 = vmatprep.subr.bf16.mxu1 %v16231_v28  ;;  %v16303_v28 = vld [vmem:[%s17234_s13 + $0xf64] ss:$16 sps:$4 sm:$0xff]  }
 0x78d   : > { %13327 = vmatmul.mubr.bf16.vlgmr.msra.gmra.mxu0 %v17817_v12 }
 0x78e   : > { %13368 = vmatmul.mubr.bf16.vlgmr.msra.gmra.mxu1 %v17821_v29  ;;  %13377 = vmatpush1.bf16.msra.mxu0 %v16226_v18  ;;  %v16298_v18 = vld [vmem:[%s17234_s13 + $0xd60] ss:$16 sps:$4 sm:$0xff]  }
 0x78f   : > { %13418 = vmatpush1.bf16.msra.mxu1 %v16229_v11  ;;  %13378 = vmatprep.subr.bf16.mxu0 %v16234_v32  ;;  %v16301_v11 = vld [vmem:[%s17234_s13 + $0xf60] ss:$16 sps:$4 sm:$0xff]   ;;  %v16306_v32 = vld [vmem:[%s17234_s13 + $0xd44] ss:$16 sps:$4 sm:$0xff]  }
 0x790   : > { %13419 = vmatprep.subr.bf16.mxu1 %v16237_v36  ;;  %13408 = vmatprep.mubr.bf16.mxu0 %v17830_v63  ;;  %v16309_v36 = vld [vmem:[%s17234_s13 + $0xf44] ss:$16 sps:$4 sm:$0xff]  }
 0x791   : > { %13449 = vmatprep.mubr.bf16.mxu1 %v17834_v45 }
 0x792   : > { %13379 = vmatpush1.bf16.msra.mxu0 %v16232_v51  ;;  %v16304_v51 = vld [vmem:[%s17234_s13 + $0xd40] ss:$16 sps:$4 sm:$0xff]  }
 0x793   : > { %13420 = vmatpush1.bf16.msra.mxu1 %v16235_v38  ;;  %13380 = vmatprep.subr.bf16.mxu0 %v16240_v42  ;;  %v16307_v38 = vld [vmem:[%s17234_s13 + $0xf40] ss:$16 sps:$4 sm:$0xff]   ;;  %v10494_v42 = vlaneseq }
 0x794   : > { %13421 = vmatprep.subr.bf16.mxu1 %v16243_v47  ;;  %v16312_v47 = vld [vmem:[%s17234_s13 + $0xd24] ss:$16 sps:$4 sm:$0xff]  }
 0x796   : > { %13381 = vmatpush1.bf16.msra.mxu0 %v16238_v16  ;;  %v16315_v16 = vld [vmem:[%s17234_s13 + $0xf24] ss:$16 sps:$4 sm:$0xff]  }
 0x797   : > { %13422 = vmatpush1.bf16.msra.mxu1 %v16241_v50  ;;  %13382 = vmatprep.subr.bf16.mxu0 %v16246_v30  ;;  %v16310_v50 = vld [vmem:[%s17234_s13 + $0xd20] ss:$16 sps:$4 sm:$0xff]  }
 0x798   : > { %13423 = vmatprep.subr.bf16.mxu1 %v16249_v56  ;;  %v16313_v30 = vld [vmem:[%s17234_s13 + $0xf20] ss:$16 sps:$4 sm:$0xff]   ;;  %v17894_v56 = vshrl.u32 %v10494_v42, 7  ;;  %v16359_v42 = vld [vmem:[%s17234_s13 + $0x248] ss:$16 sps:$4 sm:$0xff]  }
 0x79a   : > { %13383 = vmatpush1.bf16.msra.mxu0 %v16244_v60  ;;  %v16318_v60 = vld [vmem:[%s17234_s13 + $0xd04] ss:$16 sps:$4 sm:$0xff]  }
 0x79b   : > { %13424 = vmatpush1.bf16.msra.mxu1 %v16247_v2  ;;  %13384 = vmatprep.subr.bf16.mxu0 %v16252_v26  ;;  %v16321_v2 = vld [vmem:[%s17234_s13 + $0xf04] ss:$16 sps:$4 sm:$0xff]   ;;  %v16316_v26 = vld [vmem:[%s17234_s13 + $0xd00] ss:$16 sps:$4 sm:$0xff]  }
 0x79c   : > { %13425 = vmatprep.subr.bf16.mxu1 %v16255_v44  ;;  %v16319_v44 = vld [vmem:[%s17234_s13 + $0xf00] ss:$16 sps:$4 sm:$0xff]  }
 0x79e   : > { %13385 = vmatpush1.bf16.msra.mxu0 %v16250_v49  ;;  %v10492_v49 = vld [vmem:[%s17242_s5] sm:$0xf] }
 0x79f   : > { %13426 = vmatpush1.bf16.msra.mxu1 %v16253_v37  ;;  %13386 = vmatprep.subr.bf16.mxu0 %v16258_v34  ;;  %v10496_v37 = vsub.s32 0, %v17894_v56  ;;  %v16328_v34 = vld [vmem:[%s17234_s13 + $0xec] ss:$16 sps:$4 sm:$0xff]  }
 0x7a0   : > { %13427 = vmatprep.subr.bf16.mxu1 %v16261_v24  ;;  %v16331_v24 = vld [vmem:[%s17234_s13 + $0x2ec] ss:$16 sps:$4 sm:$0xff]  }
 0x7a2   : > { %13387 = vmatpush1.bf16.msra.mxu0 %v16256_v6  ;;  %v10500_v6 = vsub.s32 1, %v17894_v56 }
 0x7a3   : > { %13428 = vmatpush1.bf16.msra.mxu1 %v16259_v48  ;;  %13388 = vmatprep.subr.bf16.mxu0 %v16264_v17  ;;  %v17907_v48 = vcombine.low %v17813_v33, %v17813_v33  ;;  %v17911_v17 = vcombine.low %v17823_v35, %v17823_v35  ;;  %v16332_v35 = vld [vmem:[%s17234_s13 + $0xc8] ss:$16 sps:$4 sm:$0xff]  }
 0x7a4   : > { %13429 = vmatprep.subr.bf16.mxu1 %v16267_v20  ;;  %v16326_v20 = vld [vmem:[%s17234_s13 + $0xe8] ss:$16 sps:$4 sm:$0xff]  }
 0x7a6   : > { %13389 = vmatpush1.bf16.msra.mxu0 %v16262_v62  ;;  %v10497_v62 = vrot.slane %v10492_v49, %v10496_v37  ;;  %v16379_v37 = vld [vmem:[%s17234_s13 + $0x3ec] ss:$16 sps:$4 sm:$0xff]  }
 0x7a7   : > { %13430 = vmatpush1.bf16.msra.mxu1 %v16265_v61  ;;  %13390 = vmatprep.subr.bf16.mxu0 %v16270_v0  ;;  %v16329_v61 = vld [vmem:[%s17234_s13 + $0x2e8] ss:$16 sps:$4 sm:$0xff]   ;;  %v16334_v0 = vld [vmem:[%s17234_s13 + $0xcc] ss:$16 sps:$4 sm:$0xff]  }
 0x7a8   : > { %13431 = vmatprep.subr.bf16.mxu1 %v16273_v59  ;;  %v16337_v59 = vld [vmem:[%s17234_s13 + $0x2cc] ss:$16 sps:$4 sm:$0xff]  }
 0x7aa   : > { %13391 = vmatpush1.bf16.msra.mxu0 %v16268_v46  ;;  %v10501_v46 = vrot.slane %v10492_v49, %v10500_v6  ;;  %v16376_v49 = vld [vmem:[%s17234_s13 + $0x1ec] ss:$16 sps:$4 sm:$0xff]  }
 0x7ab   : > { %13432 = vmatpush1.bf16.msra.mxu1 %v16271_v54  ;;  %13392 = vmatprep.subr.bf16.mxu0 %v16276_v10  ;;  %v16382_v6 = vld [vmem:[%s17234_s13 + $0x1cc] ss:$16 sps:$4 sm:$0xff]  }
 0x7ac   : > { %13433 = vmatprep.subr.bf16.mxu1 %v16279_v39  ;;  %v16335_v39 = vld [vmem:[%s17234_s13 + $0x2c8] ss:$16 sps:$4 sm:$0xff]  }
 0x7ae   : > { %13393 = vmatpush2.bf16.msra.mxu0 %v16274_v58 }
 0x7af   : > { %13434 = vmatpush2.bf16.msra.mxu1 %v16277_v4  ;;  %13394 = vmatprep.subr.bf16.mxu0 %v16282_v15  ;;  %v16340_v15 = vld [vmem:[%s17234_s13 + $0xac] ss:$16 sps:$4 sm:$0xff]  }
 0x7b0   : > { %13435 = vmatprep.subr.bf16.mxu1 %v16285_v9  ;;  %v16343_v9 = vld [vmem:[%s17234_s13 + $0x2ac] ss:$16 sps:$4 sm:$0xff]  }
 0x7b2   : > { %13395 = vmatpush2.bf16.msra.mxu0 %v16280_v19 }
 0x7b3   : > { %13436 = vmatpush2.bf16.msra.mxu1 %v16283_v21  ;;  %13396 = vmatprep.subr.bf16.mxu0 %v16288_v22 }
 0x7b4   : > { %13437 = vmatprep.subr.bf16.mxu1 %v16291_v25 }
 0x7b6   : > { %13397 = vmatpush2.bf16.msra.mxu0 %v16286_v57  ;;  %v16338_v57 = vld [vmem:[%s17234_s13 + $0xa8] ss:$16 sps:$4 sm:$0xff]  }
 0x7b7   : > { %13438 = vmatpush2.bf16.msra.mxu1 %v16289_v23  ;;  %13398 = vmatprep.subr.bf16.mxu0 %v16294_v7  ;;  %v16341_v7 = vld [vmem:[%s17234_s13 + $0x2a8] ss:$16 sps:$4 sm:$0xff]  }
 0x7b8   : > { %13439 = vmatprep.subr.bf16.mxu1 %v16297_v53 }
 0x7ba   : > { %13399 = vmatpush2.bf16.msra.mxu0 %v16292_v43 }
 0x7bb   : > { %13440 = vmatpush2.bf16.msra.mxu1 %v16295_v41  ;;  %13400 = vmatprep.subr.bf16.mxu0 %v16300_v27  ;;  %v16344_v41 = vld [vmem:[%s17234_s13 + $0x88] ss:$16 sps:$4 sm:$0xff]  }
 0x7bc   : > { %13441 = vmatprep.subr.bf16.mxu1 %v16303_v28  ;;  %v16347_v27 = vld [vmem:[%s17234_s13 + $0x288] ss:$16 sps:$4 sm:$0xff]   ;;  %v16352_v28 = vld [vmem:[%s17234_s13 + $0x6c] ss:$16 sps:$4 sm:$0xff]  }
 0x7be   : > { %13401 = vmatpush2.bf16.msra.mxu0 %v16298_v18  ;;  %v16355_v18 = vld [vmem:[%s17234_s13 + $0x26c] ss:$16 sps:$4 sm:$0xff]  }
 0x7bf   : > { %13442 = vmatpush2.bf16.msra.mxu1 %v16301_v11  ;;  %13402 = vmatprep.subr.bf16.mxu0 %v16306_v32  ;;  %v16350_v11 = vld [vmem:[%s17234_s13 + $0x68] ss:$16 sps:$4 sm:$0xff]  }
 0x7c0   : > { %13443 = vmatprep.subr.bf16.mxu1 %v16309_v36  ;;  %v16353_v32 = vld [vmem:[%s17234_s13 + $0x268] ss:$16 sps:$4 sm:$0xff]   ;;  %v16358_v36 = vld [vmem:[%s17234_s13 + $0x4c] ss:$16 sps:$4 sm:$0xff]  }
 0x7c2   : > { %13403 = vmatpush2.bf16.msra.mxu0 %v16304_v51  ;;  %v16361_v51 = vld [vmem:[%s17234_s13 + $0x24c] ss:$16 sps:$4 sm:$0xff]  }
 0x7c3   : > { %13444 = vmatpush2.bf16.msra.mxu1 %v16307_v38  ;;  %13404 = vmatprep.subr.bf16.mxu0 %v16312_v47  ;;  %v16356_v38 = vld [vmem:[%s17234_s13 + $0x48] ss:$16 sps:$4 sm:$0xff]   ;;  %v16364_v47 = vld [vmem:[%s17234_s13 + $0x2c] ss:$16 sps:$4 sm:$0xff]  }
 0x7c4   : > { %13445 = vmatprep.subr.bf16.mxu1 %v16315_v16  ;;  %v16367_v16 = vld [vmem:[%s17234_s13 + $0x22c] ss:$16 sps:$4 sm:$0xff]  }
 0x7c6   : > { %13405 = vmatpush2.bf16.msra.mxu0 %v16310_v50  ;;  %v16362_v50 = vld [vmem:[%s17234_s13 + $0x28] ss:$16 sps:$4 sm:$0xff]  }
 0x7c7   : > { %13446 = vmatpush2.bf16.msra.mxu1 %v16313_v30  ;;  %13406 = vmatprep.subr.bf16.mxu0 %v16318_v60  ;;  %v16365_v30 = vld [vmem:[%s17234_s13 + $0x228] ss:$16 sps:$4 sm:$0xff]   ;;  %v16370_v60 = vld [vmem:[%s17234_s13 + $0xc] ss:$16 sps:$4 sm:$0xff]  }
 0x7c8   : > { %13447 = vmatprep.subr.bf16.mxu1 %v16321_v2  ;;  %v16373_v2 = vld [vmem:[%s17234_s13 + $0x20c] ss:$16 sps:$4 sm:$0xff]  }
 0x7ca   : > { %13407 = vmatpush2.bf16.msra.mxu0 %v16316_v26  ;;  %v16368_v26 = vld [vmem:[%s17234_s13 + $0x8] ss:$16 sps:$4 sm:$0xff]  }
 0x7cb   : > { %13448 = vmatpush2.bf16.msra.mxu1 %v16319_v44  ;;  %13458 = vmatprep.subr.bf16.mxu0 %v16328_v34  ;;  %v16371_v44 = vld [vmem:[%s17234_s13 + $0x208] ss:$16 sps:$4 sm:$0xff]  }
 0x7cc   : > { %13499 = vmatprep.subr.bf16.mxu1 %v16331_v24  ;;  %v16374_v34 = vld [vmem:[%s17234_s13 + $0x1e8] ss:$16 sps:$4 sm:$0xff]  }
 0x7cd   : > { %v13164_v33 = vpop.f32.mrf.mxu0  ;;  %13409 = vmatmul.mubr.bf16.vlgmr.msra.gmra.mxu0 %v17907_v48  ;;  %v16377_v24 = vld [vmem:[%s17234_s13 + $0x3e8] ss:$16 sps:$4 sm:$0xff]  }
 0x7ce   : > { %v13205_v54 = vpop.f32.mrf.mxu1  ;;  %13450 = vmatmul.mubr.bf16.vlgmr.msra.gmra.mxu1 %v17911_v17  ;;  %v13165_v10 = vadd.f32 %v13164_v33, %v10497_v62  ;;  %13459 = vmatpush1.bf16.msra.mxu0 %v16326_v20  ;;  %v16385_v20 = vld [vmem:[%s17234_s13 + $0x3cc] ss:$16 sps:$4 sm:$0xff]   ;;  %v16380_v62 = vld [vmem:[%s17234_s13 + $0x1c8] ss:$16 sps:$4 sm:$0xff]  }
 0x7cf   : > { %13500 = vmatpush1.bf16.msra.mxu1 %v16329_v61  ;;  %v13166_v58 = vpop.f32.mrf.mxu0  ;;  %13460 = vmatprep.subr.bf16.mxu0 %v16334_v0  ;;  %v16383_v61 = vld [vmem:[%s17234_s13 + $0x3c8] ss:$16 sps:$4 sm:$0xff]   ;;  %v16388_v0 = vld [vmem:[%s17234_s13 + $0x1ac] ss:$16 sps:$4 sm:$0xff]  }
 0x7d0   : > { %v13207_v4 = vpop.f32.mrf.mxu1  ;;  %13501 = vmatprep.subr.bf16.mxu1 %v16337_v59  ;;  %v17923_v19 = vadd.f32 %v13205_v54, %v13165_v10  ;;  %v13167_v21 = vadd.f32 %v13166_v58, %v10501_v46  ;;  %13490 = vmatprep.mubr.bf16.mxu0 %v17614_v14  ;;  %v16346_v14 = vld [vmem:[%s17234_s13 + $0x8c] ss:$16 sps:$4 sm:$0xff]   ;;  %v16386_v46 = vld [vmem:[%s17234_s13 + $0x1a8] ss:$16 sps:$4 sm:$0xff]  }
 0x7d1   : > { %13531 = vmatprep.mubr.bf16.mxu1 %v17618_v55  ;;  %v13168_v22 = vpop.f32.mrf.mxu0  ;;  %v16349_v55 = vld [vmem:[%s17234_s13 + $0x28c] ss:$16 sps:$4 sm:$0xff]   ;;  %v16389_v33 = vld [vmem:[%s17234_s13 + $0x3a8] ss:$16 sps:$4 sm:$0xff]  }
 0x7d2   : > { %v13209_v25 = vpop.f32.mrf.mxu1  ;;  %v17928_v23 = vadd.f32 %v13207_v4, %v13167_v21  ;;  %13461 = vmatpush1.bf16.msra.mxu0 %v16332_v35  ;;  %v16391_v59 = vld [vmem:[%s17234_s13 + $0x3ac] ss:$16 sps:$4 sm:$0xff]   ;;  %v16392_v10 = vld [vmem:[%s17234_s13 + $0x188] ss:$16 sps:$4 sm:$0xff]  }
 0x7d3   : > { %13502 = vmatpush1.bf16.msra.mxu1 %v16335_v39  ;;  %v13169_v53 = vpop.f32.mrf.mxu0  ;;  %13462 = vmatprep.subr.bf16.mxu0 %v16340_v15  ;;  %v16394_v54 = vld [vmem:[%s17234_s13 + $0x18c] ss:$16 sps:$4 sm:$0xff]   ;;  %v16395_v39 = vld [vmem:[%s17234_s13 + $0x388] ss:$16 sps:$4 sm:$0xff]  }
 0x7d4   : > { %v13210_v43 = vpop.f32.mrf.mxu1  ;;  %13503 = vmatprep.subr.bf16.mxu1 %v16343_v9  ;;  %v16397_v35 = vld [vmem:[%s17234_s13 + $0x38c] ss:$16 sps:$4 sm:$0xff]   ;;  %v16398_v15 = vld [vmem:[%s17234_s13 + $0x168] ss:$16 sps:$4 sm:$0xff]  }
 0x7d5   : > { %v16400_v58 = vld [vmem:[%s17234_s13 + $0x16c] ss:$16 sps:$4 sm:$0xff]   ;;  %v16401_v9 = vld [vmem:[%s17234_s13 + $0x368] ss:$16 sps:$4 sm:$0xff]  }
 0x7d6   : > { %13463 = vmatpush1.bf16.msra.mxu0 %v16338_v57  ;;  %v16403_v4 = vld [vmem:[%s17234_s13 + $0x36c] ss:$16 sps:$4 sm:$0xff]   ;;  %v16404_v25 = vld [vmem:[%s17234_s13 + $0x148] ss:$16 sps:$4 sm:$0xff]  }
 0x7d7   : > { %13504 = vmatpush1.bf16.msra.mxu1 %v16341_v7  ;;  %13464 = vmatprep.subr.bf16.mxu0 %v16346_v14  ;;  %v16406_v21 = vld [vmem:[%s17234_s13 + $0x14c] ss:$16 sps:$4 sm:$0xff]   ;;  %v16407_v57 = vld [vmem:[%s17234_s13 + $0x348] ss:$16 sps:$4 sm:$0xff]  }
 0x7d8   : > { %13505 = vmatprep.subr.bf16.mxu1 %v16349_v55  ;;  %v16409_v22 = vld [vmem:[%s17234_s13 + $0x34c] ss:$16 sps:$4 sm:$0xff]   ;;  %v16410_v43 = vld [vmem:[%s17234_s13 + $0x128] ss:$16 sps:$4 sm:$0xff]  }
 0x7d9   : > { %v16412_v7 = vld [vmem:[%s17234_s13 + $0x12c] ss:$16 sps:$4 sm:$0xff]   ;;  %v16413_v14 = vld [vmem:[%s17234_s13 + $0x328] ss:$16 sps:$4 sm:$0xff]  }
 0x7da   : > { %13465 = vmatpush1.bf16.msra.mxu0 %v16344_v41  ;;  %v16415_v53 = vld [vmem:[%s17234_s13 + $0x32c] ss:$16 sps:$4 sm:$0xff]  }
 0x7db   : > { %13506 = vmatpush1.bf16.msra.mxu1 %v16347_v27  ;;  %13466 = vmatprep.subr.bf16.mxu0 %v16352_v28  ;;  %v16418_v55 = vld [vmem:[%s17234_s13 + $0x10c] ss:$16 sps:$4 sm:$0xff]   ;;  %v16416_v27 = vld [vmem:[%s17234_s13 + $0x108] ss:$16 sps:$4 sm:$0xff]  }
 0x7dc   : > { %13507 = vmatprep.subr.bf16.mxu1 %v16355_v18  ;;  %v16421_v41 = vld [vmem:[%s17234_s13 + $0x30c] ss:$16 sps:$4 sm:$0xff]   ;;  %v16419_v28 = vld [vmem:[%s17234_s13 + $0x308] ss:$16 sps:$4 sm:$0xff]  }
 0x7dd   : > { %v16424_v18 = vld [vmem:[%s17234_s13 + $0x4ec] ss:$16 sps:$4 sm:$0xff]  }
 0x7de   : > { %13467 = vmatpush1.bf16.msra.mxu0 %v16350_v11  ;;  %v16427_v11 = vld [vmem:[%s17234_s13 + $0x6ec] ss:$16 sps:$4 sm:$0xff]  }
 0x7df   : > { %13508 = vmatpush1.bf16.msra.mxu1 %v16353_v32  ;;  %13468 = vmatprep.subr.bf16.mxu0 %v16358_v36  ;;  %v16422_v32 = vld [vmem:[%s17234_s13 + $0x4e8] ss:$16 sps:$4 sm:$0xff]  }
 0x7e0   : > { %13509 = vmatprep.subr.bf16.mxu1 %v16361_v51  ;;  %v16425_v36 = vld [vmem:[%s17234_s13 + $0x6e8] ss:$16 sps:$4 sm:$0xff]   ;;  %v16430_v51 = vld [vmem:[%s17234_s13 + $0x4cc] ss:$16 sps:$4 sm:$0xff]  }
 0x7e2   : > { %13469 = vmatpush1.bf16.msra.mxu0 %v16356_v38  ;;  %v16433_v38 = vld [vmem:[%s17234_s13 + $0x6cc] ss:$16 sps:$4 sm:$0xff]  }
 0x7e3   : > { %13510 = vmatpush1.bf16.msra.mxu1 %v16359_v42  ;;  %13470 = vmatprep.subr.bf16.mxu0 %v16364_v47 }
 0x7e4   : > { %13511 = vmatprep.subr.bf16.mxu1 %v16367_v16 }
 0x7e6   : > { %13471 = vmatpush1.bf16.msra.mxu0 %v16362_v50  ;;  %v16428_v50 = vld [vmem:[%s17234_s13 + $0x4c8] ss:$16 sps:$4 sm:$0xff]  }
 0x7e7   : > { %13512 = vmatpush1.bf16.msra.mxu1 %v16365_v30  ;;  %13472 = vmatprep.subr.bf16.mxu0 %v16370_v60  ;;  %v16431_v30 = vld [vmem:[%s17234_s13 + $0x6c8] ss:$16 sps:$4 sm:$0xff]  }
 0x7e8   : > { %13513 = vmatprep.subr.bf16.mxu1 %v16373_v2 }
 0x7ea   : > { %13473 = vmatpush1.bf16.msra.mxu0 %v16368_v26  ;;  %v16436_v26 = vld [vmem:[%s17234_s13 + $0x4ac] ss:$16 sps:$4 sm:$0xff]  }
 0x7eb   : > { %13514 = vmatpush1.bf16.msra.mxu1 %v16371_v44  ;;  %13474 = vmatprep.subr.bf16.mxu0 %v16376_v49  ;;  %v16439_v44 = vld [vmem:[%s17234_s13 + $0x6ac] ss:$16 sps:$4 sm:$0xff]  }
 0x7ec   : > { %13515 = vmatprep.subr.bf16.mxu1 %v16379_v37 }
 0x7ee   : > { %13475 = vmatpush2.bf16.msra.mxu0 %v16374_v34  ;;  %v16434_v34 = vld [vmem:[%s17234_s13 + $0x4a8] ss:$16 sps:$4 sm:$0xff]  }
 0x7ef   : > { %13516 = vmatpush2.bf16.msra.mxu1 %v16377_v24  ;;  %13476 = vmatprep.subr.bf16.mxu0 %v16382_v6  ;;  %v16437_v24 = vld [vmem:[%s17234_s13 + $0x6a8] ss:$16 sps:$4 sm:$0xff]  }
 0x7f0   : > { %13517 = vmatprep.subr.bf16.mxu1 %v16385_v20 }
 0x7f2   : > { %13477 = vmatpush2.bf16.msra.mxu0 %v16380_v62  ;;  %v16443_v62 = vld [vmem:[%s17234_s13 + $0x688] ss:$16 sps:$4 sm:$0xff]  }
 0x7f3   : > { %13518 = vmatpush2.bf16.msra.mxu1 %v16383_v61  ;;  %13478 = vmatprep.subr.bf16.mxu0 %v16388_v0  ;;  %v16448_v61 = vld [vmem:[%s17234_s13 + $0x46c] ss:$16 sps:$4 sm:$0xff]  }
 0x7f4   : > { %13519 = vmatprep.subr.bf16.mxu1 %v16391_v59  ;;  %v16451_v0 = vld [vmem:[%s17234_s13 + $0x66c] ss:$16 sps:$4 sm:$0xff]   ;;  %v16446_v59 = vld [vmem:[%s17234_s13 + $0x468] ss:$16 sps:$4 sm:$0xff]  }
 0x7f6   : > { %13479 = vmatpush2.bf16.msra.mxu0 %v16386_v46  ;;  %v16449_v46 = vld [vmem:[%s17234_s13 + $0x668] ss:$16 sps:$4 sm:$0xff]  }
 0x7f7   : > { %13520 = vmatpush2.bf16.msra.mxu1 %v16389_v33  ;;  %13480 = vmatprep.subr.bf16.mxu0 %v16394_v54  ;;  %v16454_v33 = vld [vmem:[%s17234_s13 + $0x44c] ss:$16 sps:$4 sm:$0xff]  }
 0x7f8   : > { %13521 = vmatprep.subr.bf16.mxu1 %v16397_v35  ;;  %v16457_v54 = vld [vmem:[%s17234_s13 + $0x64c] ss:$16 sps:$4 sm:$0xff]   ;;  %v16452_v35 = vld [vmem:[%s17234_s13 + $0x448] ss:$16 sps:$4 sm:$0xff]  }
 0x7fa   : > { %13481 = vmatpush2.bf16.msra.mxu0 %v16392_v10  ;;  %v16455_v10 = vld [vmem:[%s17234_s13 + $0x648] ss:$16 sps:$4 sm:$0xff]  }
 0x7fb   : > { %13522 = vmatpush2.bf16.msra.mxu1 %v16395_v39  ;;  %13482 = vmatprep.subr.bf16.mxu0 %v16400_v58  ;;  %v16460_v39 = vld [vmem:[%s17234_s13 + $0x42c] ss:$16 sps:$4 sm:$0xff]  }
 0x7fc   : > { %13523 = vmatprep.subr.bf16.mxu1 %v16403_v4  ;;  %v16463_v58 = vld [vmem:[%s17234_s13 + $0x62c] ss:$16 sps:$4 sm:$0xff]   ;;  %v16458_v4 = vld [vmem:[%s17234_s13 + $0x428] ss:$16 sps:$4 sm:$0xff]  }
 0x7fe   : > { %13483 = vmatpush2.bf16.msra.mxu0 %v16398_v15  ;;  %v16461_v15 = vld [vmem:[%s17234_s13 + $0x628] ss:$16 sps:$4 sm:$0xff]  }
 0x7ff   : > { %13524 = vmatpush2.bf16.msra.mxu1 %v16401_v9  ;;  %13484 = vmatprep.subr.bf16.mxu0 %v16406_v21  ;;  %v16466_v9 = vld [vmem:[%s17234_s13 + $0x40c] ss:$16 sps:$4 sm:$0xff]  }
 0x800   : > { %13525 = vmatprep.subr.bf16.mxu1 %v16409_v22  ;;  %v16469_v21 = vld [vmem:[%s17234_s13 + $0x60c] ss:$16 sps:$4 sm:$0xff]   ;;  %v16464_v22 = vld [vmem:[%s17234_s13 + $0x408] ss:$16 sps:$4 sm:$0xff]  }
 0x802   : > { %13485 = vmatpush2.bf16.msra.mxu0 %v16404_v25  ;;  %v16467_v25 = vld [vmem:[%s17234_s13 + $0x608] ss:$16 sps:$4 sm:$0xff]  }
 0x803   : > { %13526 = vmatpush2.bf16.msra.mxu1 %v16407_v57  ;;  %13486 = vmatprep.subr.bf16.mxu0 %v16412_v7  ;;  %v16472_v57 = vld [vmem:[%s17234_s13 + $0x5ec] ss:$16 sps:$4 sm:$0xff]  }
 0x804   : > { %13527 = vmatprep.subr.bf16.mxu1 %v16415_v53  ;;  %v16475_v7 = vld [vmem:[%s17234_s13 + $0x7ec] ss:$16 sps:$4 sm:$0xff]   ;;  %v16470_v53 = vld [vmem:[%s17234_s13 + $0x5e8] ss:$16 sps:$4 sm:$0xff]  }
 0x806   : > { %13487 = vmatpush2.bf16.msra.mxu0 %v16410_v43  ;;  %v16473_v43 = vld [vmem:[%s17234_s13 + $0x7e8] ss:$16 sps:$4 sm:$0xff]  }
 0x807   : > { %13528 = vmatpush2.bf16.msra.mxu1 %v16413_v14  ;;  %13488 = vmatprep.subr.bf16.mxu0 %v16418_v55  ;;  %v16478_v14 = vld [vmem:[%s17234_s13 + $0x5cc] ss:$16 sps:$4 sm:$0xff]  }
 0x808   : > { %13529 = vmatprep.subr.bf16.mxu1 %v16421_v41  ;;  %v16481_v55 = vld [vmem:[%s17234_s13 + $0x7cc] ss:$16 sps:$4 sm:$0xff]   ;;  %v16476_v41 = vld [vmem:[%s17234_s13 + $0x5c8] ss:$16 sps:$4 sm:$0xff]  }
 0x80a   : > { %13489 = vmatpush2.bf16.msra.mxu0 %v16416_v27  ;;  %v16479_v27 = vld [vmem:[%s17234_s13 + $0x7c8] ss:$16 sps:$4 sm:$0xff]  }
 0x80b   : > { %13530 = vmatpush2.bf16.msra.mxu1 %v16419_v28  ;;  %13540 = vmatprep.subr.bf16.mxu0 %v16424_v18  ;;  %v16484_v28 = vld [vmem:[%s17234_s13 + $0x5ac] ss:$16 sps:$4 sm:$0xff]  }
 0x80c   : > { %13581 = vmatprep.subr.bf16.mxu1 %v16427_v11  ;;  %v16487_v18 = vld [vmem:[%s17234_s13 + $0x7ac] ss:$16 sps:$4 sm:$0xff]   ;;  %v16482_v11 = vld [vmem:[%s17234_s13 + $0x5a8] ss:$16 sps:$4 sm:$0xff]  }
 0x80d   : > { %v13246_v42 = vpop.f32.mrf.mxu0  ;;  %13491 = vmatmul.mubr.bf16.vlgmr.msra.gmra.mxu0 %v17640_v8 }
 0x80e   : > { %v13287_v47 = vpop.f32.mrf.mxu1  ;;  %13532 = vmatmul.mubr.bf16.vlgmr.msra.gmra.mxu1 %v17642_v1  ;;  %v13247_v16 = vadd.f32 %v13246_v42, %v17923_v19  ;;  %13541 = vmatpush1.bf16.msra.mxu0 %v16422_v32  ;;  %v16485_v32 = vld [vmem:[%s17234_s13 + $0x7a8] ss:$16 sps:$4 sm:$0xff]  }
 0x80f   : > { %13582 = vmatpush1.bf16.msra.mxu1 %v16425_v36  ;;  %v13248_v60 = vpop.f32.mrf.mxu0  ;;  %13542 = vmatprep.subr.bf16.mxu0 %v16430_v51  ;;  %v16490_v36 = vld [vmem:[%s17234_s13 + $0x58c] ss:$16 sps:$4 sm:$0xff]   ;;  %v16491_v42 = vld [vmem:[%s17234_s13 + $0x788] ss:$16 sps:$4 sm:$0xff]  }
 0x810   : > { %v13289_v2 = vpop.f32.mrf.mxu1  ;;  %13583 = vmatprep.subr.bf16.mxu1 %v16433_v38  ;;  %v17996_v49 = vadd.f32 %v13287_v47, %v13247_v16  ;;  %v13249_v8 = vadd.f32 %v13248_v60, %v17928_v23  ;;  %13572 = vmatprep.mubr.bf16.mxu0 %v17678_v31  ;;  %v16442_v31 = vld [vmem:[%s17234_s13 + $0x48c] ss:$16 sps:$4 sm:$0xff]   ;;  %v16440_v23 = vld [vmem:[%s17234_s13 + $0x488] ss:$16 sps:$4 sm:$0xff]  }
 0x811   : > { %13613 = vmatprep.mubr.bf16.mxu1 %v17682_v40  ;;  %v13250_v1 = vpop.f32.mrf.mxu0  ;;  %v16445_v40 = vld [vmem:[%s17234_s13 + $0x68c] ss:$16 sps:$4 sm:$0xff]   ;;  %v16488_v38 = vld [vmem:[%s17234_s13 + $0x588] ss:$16 sps:$4 sm:$0xff]  }
 0x812   : > { %v13291_v19 = vpop.f32.mrf.mxu1  ;;  %v18001_v37 = vadd.f32 %v13289_v2, %v13249_v8  ;;  %13543 = vmatpush1.bf16.msra.mxu0 %v16428_v50  ;;  %v16493_v51 = vld [vmem:[%s17234_s13 + $0x78c] ss:$16 sps:$4 sm:$0xff]   ;;  %v16494_v50 = vld [vmem:[%s17234_s13 + $0x568] ss:$16 sps:$4 sm:$0xff]  }
 0x813   : > { %13584 = vmatpush1.bf16.msra.mxu1 %v16431_v30  ;;  %v13251_v6 = vpop.f32.mrf.mxu0  ;;  %13544 = vmatprep.subr.bf16.mxu0 %v16436_v26  ;;  %v16496_v47 = vld [vmem:[%s17234_s13 + $0x56c] ss:$16 sps:$4 sm:$0xff]   ;;  %v16497_v30 = vld [vmem:[%s17234_s13 + $0x768] ss:$16 sps:$4 sm:$0xff]  }
 0x814   : > { %v13292_v20 = vpop.f32.mrf.mxu1  ;;  %13585 = vmatprep.subr.bf16.mxu1 %v16439_v44  ;;  %v16499_v16 = vld [vmem:[%s17234_s13 + $0x76c] ss:$16 sps:$4 sm:$0xff]   ;;  %v16500_v26 = vld [vmem:[%s17234_s13 + $0x548] ss:$16 sps:$4 sm:$0xff]  }
 0x815   : > { %v16502_v60 = vld [vmem:[%s17234_s13 + $0x54c] ss:$16 sps:$4 sm:$0xff]   ;;  %v16503_v44 = vld [vmem:[%s17234_s13 + $0x748] ss:$16 sps:$4 sm:$0xff]  }
 0x816   : > { %13545 = vmatpush1.bf16.msra.mxu0 %v16434_v34  ;;  %v16505_v2 = vld [vmem:[%s17234_s13 + $0x74c] ss:$16 sps:$4 sm:$0xff]   ;;  %v16506_v19 = vld [vmem:[%s17234_s13 + $0x528] ss:$16 sps:$4 sm:$0xff]  }
 0x817   : > { %13586 = vmatpush1.bf16.msra.mxu1 %v16437_v24  ;;  %13546 = vmatprep.subr.bf16.mxu0 %v16442_v31  ;;  %v16508_v8 = vld [vmem:[%s17234_s13 + $0x52c] ss:$16 sps:$4 sm:$0xff]   ;;  %v16509_v34 = vld [vmem:[%s17234_s13 + $0x728] ss:$16 sps:$4 sm:$0xff]  }
 0x818   : > { %13587 = vmatprep.subr.bf16.mxu1 %v16445_v40  ;;  %v16511_v1 = vld [vmem:[%s17234_s13 + $0x72c] ss:$16 sps:$4 sm:$0xff]   ;;  %v16512_v20 = vld [vmem:[%s17234_s13 + $0x508] ss:$16 sps:$4 sm:$0xff]  }
 0x819   : > { %v16514_v24 = vld [vmem:[%s17234_s13 + $0x50c] ss:$16 sps:$4 sm:$0xff]   ;;  %v16515_v31 = vld [vmem:[%s17234_s13 + $0x708] ss:$16 sps:$4 sm:$0xff]  }
 0x81a   : > { %13547 = vmatpush1.bf16.msra.mxu0 %v16440_v23  ;;  %v16517_v6 = vld [vmem:[%s17234_s13 + $0x70c] ss:$16 sps:$4 sm:$0xff]  }
 0x81b   : > { %13588 = vmatpush1.bf16.msra.mxu1 %v16443_v62  ;;  %13548 = vmatprep.subr.bf16.mxu0 %v16448_v61  ;;  %v16520_v40 = vld [vmem:[%s17234_s13 + $0x8ec] ss:$16 sps:$4 sm:$0xff]   ;;  %v16518_v62 = vld [vmem:[%s17234_s13 + $0x8e8] ss:$16 sps:$4 sm:$0xff]  }
 0x81c   : > { %13589 = vmatprep.subr.bf16.mxu1 %v16451_v0  ;;  %v16523_v23 = vld [vmem:[%s17234_s13 + $0xaec] ss:$16 sps:$4 sm:$0xff]   ;;  %v16521_v61 = vld [vmem:[%s17234_s13 + $0xae8] ss:$16 sps:$4 sm:$0xff]  }
 0x81d   : > { %v16526_v0 = vld [vmem:[%s17234_s13 + $0x8cc] ss:$16 sps:$4 sm:$0xff]  }
 0x81e   : > { %13549 = vmatpush1.bf16.msra.mxu0 %v16446_v59  ;;  %v16529_v59 = vld [vmem:[%s17234_s13 + $0xacc] ss:$16 sps:$4 sm:$0xff]  }
 0x81f   : > { %13590 = vmatpush1.bf16.msra.mxu1 %v16449_v46  ;;  %13550 = vmatprep.subr.bf16.mxu0 %v16454_v33 }
 0x820   : > { %13591 = vmatprep.subr.bf16.mxu1 %v16457_v54  ;;  %v16524_v54 = vld [vmem:[%s17234_s13 + $0x8c8] ss:$16 sps:$4 sm:$0xff]  }
 0x822   : > { %13551 = vmatpush1.bf16.msra.mxu0 %v16452_v35  ;;  %v16527_v35 = vld [vmem:[%s17234_s13 + $0xac8] ss:$16 sps:$4 sm:$0xff]  }
 0x823   : > { %13592 = vmatpush1.bf16.msra.mxu1 %v16455_v10  ;;  %13552 = vmatprep.subr.bf16.mxu0 %v16460_v39 }
 0x824   : > { %13593 = vmatprep.subr.bf16.mxu1 %v16463_v58  ;;  %v16532_v58 = vld [vmem:[%s17234_s13 + $0x8ac] ss:$16 sps:$4 sm:$0xff]  }
 0x826   : > { %13553 = vmatpush1.bf16.msra.mxu0 %v16458_v4  ;;  %v16535_v4 = vld [vmem:[%s17234_s13 + $0xaac] ss:$16 sps:$4 sm:$0xff]  }
 0x827   : > { %13594 = vmatpush1.bf16.msra.mxu1 %v16461_v15  ;;  %13554 = vmatprep.subr.bf16.mxu0 %v16466_v9  ;;  %v16530_v15 = vld [vmem:[%s17234_s13 + $0x8a8] ss:$16 sps:$4 sm:$0xff]  }
 0x828   : > { %13595 = vmatprep.subr.bf16.mxu1 %v16469_v21  ;;  %v16533_v9 = vld [vmem:[%s17234_s13 + $0xaa8] ss:$16 sps:$4 sm:$0xff]  }
 0x82a   : > { %13555 = vmatpush1.bf16.msra.mxu0 %v16464_v22 }
 0x82b   : > { %13596 = vmatpush1.bf16.msra.mxu1 %v16467_v25  ;;  %13556 = vmatprep.subr.bf16.mxu0 %v16472_v57  ;;  %v16538_v25 = vld [vmem:[%s17234_s13 + $0x88c] ss:$16 sps:$4 sm:$0xff]   ;;  %v16539_v57 = vld [vmem:[%s17234_s13 + $0xa88] ss:$16 sps:$4 sm:$0xff]  }
 0x82c   : > { %13597 = vmatprep.subr.bf16.mxu1 %v16475_v7  ;;  %v16544_v7 = vld [vmem:[%s17234_s13 + $0x86c] ss:$16 sps:$4 sm:$0xff]  }
 0x82e   : > { %13557 = vmatpush2.bf16.msra.mxu0 %v16470_v53  ;;  %v16547_v53 = vld [vmem:[%s17234_s13 + $0xa6c] ss:$16 sps:$4 sm:$0xff]  }
 0x82f   : > { %13598 = vmatpush2.bf16.msra.mxu1 %v16473_v43  ;;  %13558 = vmatprep.subr.bf16.mxu0 %v16478_v14  ;;  %v16542_v43 = vld [vmem:[%s17234_s13 + $0x868] ss:$16 sps:$4 sm:$0xff]  }
 0x830   : > { %13599 = vmatprep.subr.bf16.mxu1 %v16481_v55  ;;  %v16545_v14 = vld [vmem:[%s17234_s13 + $0xa68] ss:$16 sps:$4 sm:$0xff]   ;;  %v16550_v55 = vld [vmem:[%s17234_s13 + $0x84c] ss:$16 sps:$4 sm:$0xff]  }
 0x832   : > { %13559 = vmatpush2.bf16.msra.mxu0 %v16476_v41  ;;  %v16553_v41 = vld [vmem:[%s17234_s13 + $0xa4c] ss:$16 sps:$4 sm:$0xff]  }
 0x833   : > { %13600 = vmatpush2.bf16.msra.mxu1 %v16479_v27  ;;  %13560 = vmatprep.subr.bf16.mxu0 %v16484_v28  ;;  %v16548_v27 = vld [vmem:[%s17234_s13 + $0x848] ss:$16 sps:$4 sm:$0xff]  }
 0x834   : > { %13601 = vmatprep.subr.bf16.mxu1 %v16487_v18  ;;  %v16551_v28 = vld [vmem:[%s17234_s13 + $0xa48] ss:$16 sps:$4 sm:$0xff]   ;;  %v16556_v18 = vld [vmem:[%s17234_s13 + $0x82c] ss:$16 sps:$4 sm:$0xff]  }
 0x836   : > { %13561 = vmatpush2.bf16.msra.mxu0 %v16482_v11  ;;  %v16559_v11 = vld [vmem:[%s17234_s13 + $0xa2c] ss:$16 sps:$4 sm:$0xff]  }
 0x837   : > { %13602 = vmatpush2.bf16.msra.mxu1 %v16485_v32  ;;  %13562 = vmatprep.subr.bf16.mxu0 %v16490_v36  ;;  %v16554_v32 = vld [vmem:[%s17234_s13 + $0x828] ss:$16 sps:$4 sm:$0xff]  }
 0x838   : > { %13603 = vmatprep.subr.bf16.mxu1 %v16493_v51  ;;  %v16557_v36 = vld [vmem:[%s17234_s13 + $0xa28] ss:$16 sps:$4 sm:$0xff]   ;;  %v16562_v51 = vld [vmem:[%s17234_s13 + $0x80c] ss:$16 sps:$4 sm:$0xff]  }
 0x83a   : > { %13563 = vmatpush2.bf16.msra.mxu0 %v16488_v38  ;;  %v16565_v38 = vld [vmem:[%s17234_s13 + $0xa0c] ss:$16 sps:$4 sm:$0xff]  }
 0x83b   : > { %13604 = vmatpush2.bf16.msra.mxu1 %v16491_v42  ;;  %13564 = vmatprep.subr.bf16.mxu0 %v16496_v47  ;;  %v16560_v42 = vld [vmem:[%s17234_s13 + $0x808] ss:$16 sps:$4 sm:$0xff]  }
 0x83c   : > { %13605 = vmatprep.subr.bf16.mxu1 %v16499_v16  ;;  %v16563_v47 = vld [vmem:[%s17234_s13 + $0xa08] ss:$16 sps:$4 sm:$0xff]   ;;  %v16568_v16 = vld [vmem:[%s17234_s13 + $0x9ec] ss:$16 sps:$4 sm:$0xff]  }
 0x83e   : > { %13565 = vmatpush2.bf16.msra.mxu0 %v16494_v50  ;;  %v16571_v50 = vld [vmem:[%s17234_s13 + $0xbec] ss:$16 sps:$4 sm:$0xff]  }
 0x83f   : > { %13606 = vmatpush2.bf16.msra.mxu1 %v16497_v30  ;;  %13566 = vmatprep.subr.bf16.mxu0 %v16502_v60  ;;  %v16566_v30 = vld [vmem:[%s17234_s13 + $0x9e8] ss:$16 sps:$4 sm:$0xff]  }
 0x840   : > { %13607 = vmatprep.subr.bf16.mxu1 %v16505_v2  ;;  %v16569_v60 = vld [vmem:[%s17234_s13 + $0xbe8] ss:$16 sps:$4 sm:$0xff]   ;;  %v16574_v2 = vld [vmem:[%s17234_s13 + $0x9cc] ss:$16 sps:$4 sm:$0xff]  }
 0x842   : > { %13567 = vmatpush2.bf16.msra.mxu0 %v16500_v26  ;;  %v16577_v26 = vld [vmem:[%s17234_s13 + $0xbcc] ss:$16 sps:$4 sm:$0xff]  }
 0x843   : > { %13608 = vmatpush2.bf16.msra.mxu1 %v16503_v44  ;;  %13568 = vmatprep.subr.bf16.mxu0 %v16508_v8  ;;  %v16572_v44 = vld [vmem:[%s17234_s13 + $0x9c8] ss:$16 sps:$4 sm:$0xff]  }
 0x844   : > { %13609 = vmatprep.subr.bf16.mxu1 %v16511_v1  ;;  %v16575_v8 = vld [vmem:[%s17234_s13 + $0xbc8] ss:$16 sps:$4 sm:$0xff]   ;;  %v16580_v1 = vld [vmem:[%s17234_s13 + $0x9ac] ss:$16 sps:$4 sm:$0xff]  }
 0x846   : > { %13569 = vmatpush2.bf16.msra.mxu0 %v16506_v19  ;;  %v16583_v19 = vld [vmem:[%s17234_s13 + $0xbac] ss:$16 sps:$4 sm:$0xff]  }
 0x847   : > { %13610 = vmatpush2.bf16.msra.mxu1 %v16509_v34  ;;  %13570 = vmatprep.subr.bf16.mxu0 %v16514_v24  ;;  %v16578_v34 = vld [vmem:[%s17234_s13 + $0x9a8] ss:$16 sps:$4 sm:$0xff]  }
 0x848   : > { %13611 = vmatprep.subr.bf16.mxu1 %v16517_v6  ;;  %v16581_v24 = vld [vmem:[%s17234_s13 + $0xba8] ss:$16 sps:$4 sm:$0xff]   ;;  %v16586_v6 = vld [vmem:[%s17234_s13 + $0x98c] ss:$16 sps:$4 sm:$0xff]  }
 0x84a   : > { %13571 = vmatpush2.bf16.msra.mxu0 %v16512_v20  ;;  %v16589_v20 = vld [vmem:[%s17234_s13 + $0xb8c] ss:$16 sps:$4 sm:$0xff]  }
 0x84b   : > { %13612 = vmatpush2.bf16.msra.mxu1 %v16515_v31  ;;  %13622 = vmatprep.subr.bf16.mxu0 %v16520_v40  ;;  %v16584_v31 = vld [vmem:[%s17234_s13 + $0x988] ss:$16 sps:$4 sm:$0xff]  }
 0x84c   : > { %13663 = vmatprep.subr.bf16.mxu1 %v16523_v23  ;;  %v16587_v40 = vld [vmem:[%s17234_s13 + $0xb88] ss:$16 sps:$4 sm:$0xff]   ;;  %v16592_v23 = vld [vmem:[%s17234_s13 + $0x96c] ss:$16 sps:$4 sm:$0xff]  }
 0x84d   : > { %v18063_v46 = vpop.f32.mrf.mxu0  ;;  %13573 = vmatmul.mubr.bf16.vlgmr.msra.gmra.mxu0 %v17726_v13 }
 0x84e   : > { %v18065_v33 = vpop.f32.mrf.mxu1  ;;  %13614 = vmatmul.mubr.bf16.vlgmr.msra.gmra.mxu1 %v17730_v52  ;;  %13623 = vmatpush1.bf16.msra.mxu0 %v16518_v62  ;;  %v16595_v62 = vld [vmem:[%s17234_s13 + $0xb6c] ss:$16 sps:$4 sm:$0xff]  }
 0x84f   : > { %13664 = vmatpush1.bf16.msra.mxu1 %v16521_v61  ;;  %v18071_v10 = vpop.f32.mrf.mxu0  ;;  %13624 = vmatprep.subr.bf16.mxu0 %v16526_v0  ;;  %v16590_v61 = vld [vmem:[%s17234_s13 + $0x968] ss:$16 sps:$4 sm:$0xff]  }
 0x850   : > { %v18073_v39 = vpop.f32.mrf.mxu1  ;;  %13665 = vmatprep.subr.bf16.mxu1 %v16529_v59  ;;  %13654 = vmatprep.mubr.bf16.mxu0 %v17742_v5  ;;  %v16541_v5 = vld [vmem:[%s17234_s13 + $0xa8c] ss:$16 sps:$4 sm:$0xff]   ;;  %v16593_v0 = vld [vmem:[%s17234_s13 + $0xb68] ss:$16 sps:$4 sm:$0xff]  }
 0x851   : > { %13695 = vmatprep.mubr.bf16.mxu1 %v17746_v3  ;;  %v13332_v13 = vpop.f32.mrf.mxu0  ;;  %v16536_v3 = vld [vmem:[%s17234_s13 + $0x888] ss:$16 sps:$4 sm:$0xff]   ;;  %v16598_v59 = vld [vmem:[%s17234_s13 + $0x94c] ss:$16 sps:$4 sm:$0xff]  }
 0x852   : > { %v13373_v52 = vpop.f32.mrf.mxu1  ;;  %13625 = vmatpush1.bf16.msra.mxu0 %v16524_v54  ;;  %v16601_v54 = vld [vmem:[%s17234_s13 + $0xb4c] ss:$16 sps:$4 sm:$0xff]  }
 0x853   : > { %13666 = vmatpush1.bf16.msra.mxu1 %v16527_v35  ;;  %v13333_v21 = vpop.f32.mrf.mxu0  ;;  %13626 = vmatprep.subr.bf16.mxu0 %v16532_v58  ;;  %v16596_v35 = vld [vmem:[%s17234_s13 + $0x948] ss:$16 sps:$4 sm:$0xff]   ;;  %v16607_v13 = vld [vmem:[%s17234_s13 + $0xb2c] ss:$16 sps:$4 sm:$0xff]  }
 0x854   : > { %v13374_v22 = vpop.f32.mrf.mxu1  ;;  %13667 = vmatprep.subr.bf16.mxu1 %v16535_v4  ;;  %v16599_v58 = vld [vmem:[%s17234_s13 + $0xb48] ss:$16 sps:$4 sm:$0xff]   ;;  %v16604_v4 = vld [vmem:[%s17234_s13 + $0x92c] ss:$16 sps:$4 sm:$0xff]  }
 0x855   : > { %v16602_v52 = vld [vmem:[%s17234_s13 + $0x928] ss:$16 sps:$4 sm:$0xff]   ;;  %v16613_v21 = vld [vmem:[%s17234_s13 + $0xb0c] ss:$16 sps:$4 sm:$0xff]  }
 0x856   : > { %13627 = vmatpush1.bf16.msra.mxu0 %v16530_v15  ;;  %v16605_v15 = vld [vmem:[%s17234_s13 + $0xb28] ss:$16 sps:$4 sm:$0xff]  }
 0x857   : > { %13668 = vmatpush1.bf16.msra.mxu1 %v16533_v9  ;;  %13628 = vmatprep.subr.bf16.mxu0 %v16538_v25  ;;  %v16610_v9 = vld [vmem:[%s17234_s13 + $0x90c] ss:$16 sps:$4 sm:$0xff]   ;;  %v16608_v22 = vld [vmem:[%s17234_s13 + $0x908] ss:$16 sps:$4 sm:$0xff]  }
 0x858   : > { %13669 = vmatprep.subr.bf16.mxu1 %v16541_v5  ;;  %v16611_v25 = vld [vmem:[%s17234_s13 + $0xb08] ss:$16 sps:$4 sm:$0xff]   ;;  %v16616_v5 = vld [vmem:[%s17234_s13 + $0xcec] ss:$16 sps:$4 sm:$0xff]  }
 0x85a   : > { %13629 = vmatpush1.bf16.msra.mxu0 %v16536_v3  ;;  %v16619_v3 = vld [vmem:[%s17234_s13 + $0xeec] ss:$16 sps:$4 sm:$0xff]  }
 0x85b   : > { %13670 = vmatpush1.bf16.msra.mxu1 %v16539_v57  ;;  %13630 = vmatprep.subr.bf16.mxu0 %v16544_v7  ;;  %v13329_v57 = vadd.f32 %v18063_v46, %v17996_v49  ;;  %v13331_v7 = vadd.f32 %v18071_v10, %v18001_v37  ;;  %v16620_v46 = vld [vmem:[%s17234_s13 + $0xcc8] ss:$16 sps:$4 sm:$0xff]  }
 0x85c   : > { %13671 = vmatprep.subr.bf16.mxu1 %v16547_v53  ;;  %v16614_v53 = vld [vmem:[%s17234_s13 + $0xce8] ss:$16 sps:$4 sm:$0xff]  }
 0x85d   : > { %v13372_v49 = vadd.f32 %v18073_v39, %v13331_v7  ;;  %v16623_v10 = vld [vmem:[%s17234_s13 + $0xec8] ss:$16 sps:$4 sm:$0xff]  }
 0x85e   : > { %13631 = vmatpush1.bf16.msra.mxu0 %v16542_v43  ;;  %v16617_v43 = vld [vmem:[%s17234_s13 + $0xee8] ss:$16 sps:$4 sm:$0xff]  }
 0x85f   : > { %13672 = vmatpush1.bf16.msra.mxu1 %v16545_v14  ;;  %13632 = vmatprep.subr.bf16.mxu0 %v16550_v55  ;;  %v16622_v14 = vld [vmem:[%s17234_s13 + $0xccc] ss:$16 sps:$4 sm:$0xff]   ;;  %v16680_v7 = vld [vmem:[%s17234_s13 + $0xd88] ss:$16 sps:$4 sm:$0xff]  }
 0x860   : > { %13673 = vmatprep.subr.bf16.mxu1 %v16553_v41  ;;  %v16625_v55 = vld [vmem:[%s17234_s13 + $0xecc] ss:$16 sps:$4 sm:$0xff]   ;;  %v13370_v41 = vadd.f32 %v18065_v33, %v13329_v57 }
 0x861   : > { %v16628_v33 = vld [vmem:[%s17234_s13 + $0xcac] ss:$16 sps:$4 sm:$0xff]  }
 0x862   : > { %13633 = vmatpush1.bf16.msra.mxu0 %v16548_v27  ;;  %v16685_v57 = vld [vmem:[%s17234_s13 + $0xf8c] ss:$16 sps:$4 sm:$0xff]  }
 0x863   : > { %13674 = vmatpush1.bf16.msra.mxu1 %v16551_v28  ;;  %13634 = vmatprep.subr.bf16.mxu0 %v16556_v18 }
 0x864   : > { %13675 = vmatprep.subr.bf16.mxu1 %v16559_v11 }
 0x866   : > { %13635 = vmatpush1.bf16.msra.mxu0 %v16554_v32  ;;  %v16631_v32 = vld [vmem:[%s17234_s13 + $0xeac] ss:$16 sps:$4 sm:$0xff]  }
 0x867   : > { %13676 = vmatpush1.bf16.msra.mxu1 %v16557_v36  ;;  %13636 = vmatprep.subr.bf16.mxu0 %v16562_v51 }
 0x868   : > { %13677 = vmatprep.subr.bf16.mxu1 %v16565_v38  ;;  %v16626_v38 = vld [vmem:[%s17234_s13 + $0xca8] ss:$16 sps:$4 sm:$0xff]  }
 0x86a   : > { %13637 = vmatpush1.bf16.msra.mxu0 %v16560_v42  ;;  %v16629_v42 = vld [vmem:[%s17234_s13 + $0xea8] ss:$16 sps:$4 sm:$0xff]  }
 0x86b   : > { %13678 = vmatpush1.bf16.msra.mxu1 %v16563_v47  ;;  %13638 = vmatprep.subr.bf16.mxu0 %v16568_v16 }
 0x86c   : > { %13679 = vmatprep.subr.bf16.mxu1 %v16571_v50  ;;  %v16632_v50 = vld [vmem:[%s17234_s13 + $0xc88] ss:$16 sps:$4 sm:$0xff]  }
 0x86e   : > { %13639 = vmatpush2.bf16.msra.mxu0 %v16566_v30  ;;  %v16635_v30 = vld [vmem:[%s17234_s13 + $0xe88] ss:$16 sps:$4 sm:$0xff]  }
 0x86f   : > { %13680 = vmatpush2.bf16.msra.mxu1 %v16569_v60  ;;  %13640 = vmatprep.subr.bf16.mxu0 %v16574_v2  ;;  %v16640_v60 = vld [vmem:[%s17234_s13 + $0xc6c] ss:$16 sps:$4 sm:$0xff]  }
 0x870   : > { %13681 = vmatprep.subr.bf16.mxu1 %v16577_v26  ;;  %v16643_v2 = vld [vmem:[%s17234_s13 + $0xe6c] ss:$16 sps:$4 sm:$0xff]   ;;  %v16638_v26 = vld [vmem:[%s17234_s13 + $0xc68] ss:$16 sps:$4 sm:$0xff]  }
 0x872   : > { %13641 = vmatpush2.bf16.msra.mxu0 %v16572_v44  ;;  %v16641_v44 = vld [vmem:[%s17234_s13 + $0xe68] ss:$16 sps:$4 sm:$0xff]  }
 0x873   : > { %13682 = vmatpush2.bf16.msra.mxu1 %v16575_v8  ;;  %13642 = vmatprep.subr.bf16.mxu0 %v16580_v1  ;;  %v16646_v8 = vld [vmem:[%s17234_s13 + $0xc4c] ss:$16 sps:$4 sm:$0xff]  }
 0x874   : > { %13683 = vmatprep.subr.bf16.mxu1 %v16583_v19  ;;  %v16649_v1 = vld [vmem:[%s17234_s13 + $0xe4c] ss:$16 sps:$4 sm:$0xff]   ;;  %v16644_v19 = vld [vmem:[%s17234_s13 + $0xc48] ss:$16 sps:$4 sm:$0xff]  }
 0x876   : > { %13643 = vmatpush2.bf16.msra.mxu0 %v16578_v34  ;;  %v16647_v34 = vld [vmem:[%s17234_s13 + $0xe48] ss:$16 sps:$4 sm:$0xff]  }
 0x877   : > { %13684 = vmatpush2.bf16.msra.mxu1 %v16581_v24  ;;  %13644 = vmatprep.subr.bf16.mxu0 %v16586_v6  ;;  %v16652_v6 = vld [vmem:[%s17234_s13 + $0xc2c] ss:$16 sps:$4 sm:$0xff]  }
 0x878   : > { %13685 = vmatprep.subr.bf16.mxu1 %v16589_v20  ;;  %v16655_v20 = vld [vmem:[%s17234_s13 + $0xe2c] ss:$16 sps:$4 sm:$0xff]  }
 0x87a   : > { %13645 = vmatpush2.bf16.msra.mxu0 %v16584_v31 }
 0x87b   : > { %13686 = vmatpush2.bf16.msra.mxu1 %v16587_v40  ;;  %13646 = vmatprep.subr.bf16.mxu0 %v16592_v23  ;;  %v16650_v40 = vld [vmem:[%s17234_s13 + $0xc28] ss:$16 sps:$4 sm:$0xff]  }
 0x87c   : > { %13687 = vmatprep.subr.bf16.mxu1 %v16595_v62  ;;  %v16653_v23 = vld [vmem:[%s17234_s13 + $0xe28] ss:$16 sps:$4 sm:$0xff]   ;;  %v16658_v62 = vld [vmem:[%s17234_s13 + $0xc0c] ss:$16 sps:$4 sm:$0xff]  }
 0x87e   : > { %13647 = vmatpush2.bf16.msra.mxu0 %v16590_v61  ;;  %v16661_v61 = vld [vmem:[%s17234_s13 + $0xe0c] ss:$16 sps:$4 sm:$0xff]  }
 0x87f   : > { %13688 = vmatpush2.bf16.msra.mxu1 %v16593_v0  ;;  %13648 = vmatprep.subr.bf16.mxu0 %v16598_v59  ;;  %v16656_v0 = vld [vmem:[%s17234_s13 + $0xc08] ss:$16 sps:$4 sm:$0xff]  }
 0x880   : > { %13689 = vmatprep.subr.bf16.mxu1 %v16601_v54  ;;  %v16659_v59 = vld [vmem:[%s17234_s13 + $0xe08] ss:$16 sps:$4 sm:$0xff]   ;;  %v16664_v54 = vld [vmem:[%s17234_s13 + $0xdec] ss:$16 sps:$4 sm:$0xff]  }
 0x882   : > { %13649 = vmatpush2.bf16.msra.mxu0 %v16596_v35  ;;  %v16667_v35 = vld [vmem:[%s17234_s13 + $0xfec] ss:$16 sps:$4 sm:$0xff]  }
 0x883   : > { %13690 = vmatpush2.bf16.msra.mxu1 %v16599_v58  ;;  %13650 = vmatprep.subr.bf16.mxu0 %v16604_v4  ;;  %v16662_v58 = vld [vmem:[%s17234_s13 + $0xde8] ss:$16 sps:$4 sm:$0xff]  }
 0x884   : > { %13691 = vmatprep.subr.bf16.mxu1 %v16607_v13  ;;  %v16665_v4 = vld [vmem:[%s17234_s13 + $0xfe8] ss:$16 sps:$4 sm:$0xff]   ;;  %v16670_v13 = vld [vmem:[%s17234_s13 + $0xdcc] ss:$16 sps:$4 sm:$0xff]  }
 0x886   : > { %13651 = vmatpush2.bf16.msra.mxu0 %v16602_v52  ;;  %v16673_v52 = vld [vmem:[%s17234_s13 + $0xfcc] ss:$16 sps:$4 sm:$0xff]  }
 0x887   : > { %13692 = vmatpush2.bf16.msra.mxu1 %v16605_v15  ;;  %13652 = vmatprep.subr.bf16.mxu0 %v16610_v9  ;;  %v16668_v15 = vld [vmem:[%s17234_s13 + $0xdc8] ss:$16 sps:$4 sm:$0xff]  }
 0x888   : > { %13693 = vmatprep.subr.bf16.mxu1 %v16613_v21  ;;  %v16671_v9 = vld [vmem:[%s17234_s13 + $0xfc8] ss:$16 sps:$4 sm:$0xff]   ;;  %v16676_v21 = vld [vmem:[%s17234_s13 + $0xdac] ss:$16 sps:$4 sm:$0xff]  }
 0x88a   : > { %13653 = vmatpush2.bf16.msra.mxu0 %v16608_v22  ;;  %v16679_v22 = vld [vmem:[%s17234_s13 + $0xfac] ss:$16 sps:$4 sm:$0xff]  }
 0x88b   : > { %13694 = vmatpush2.bf16.msra.mxu1 %v16611_v25  ;;  %13704 = vmatprep.subr.bf16.mxu0 %v16616_v5  ;;  %v16674_v25 = vld [vmem:[%s17234_s13 + $0xda8] ss:$16 sps:$4 sm:$0xff]  }
 0x88c   : > { %13745 = vmatprep.subr.bf16.mxu1 %v16619_v3  ;;  %v16677_v5 = vld [vmem:[%s17234_s13 + $0xfa8] ss:$16 sps:$4 sm:$0xff]   ;;  %v16682_v3 = vld [vmem:[%s17234_s13 + $0xd8c] ss:$16 sps:$4 sm:$0xff]  }
 0x88d   : > { %v13410_v27 = vpop.f32.mrf.mxu0  ;;  %13655 = vmatmul.mubr.bf16.vlgmr.msra.gmra.mxu0 %v17817_v12 }
 0x88e   : > { %v13451_v28 = vpop.f32.mrf.mxu1  ;;  %13696 = vmatmul.mubr.bf16.vlgmr.msra.gmra.mxu1 %v17821_v29  ;;  %v13411_v37 = vadd.f32 %v13410_v27, %v13370_v41  ;;  %13705 = vmatpush1.bf16.msra.mxu0 %v16614_v53  ;;  %v16683_v53 = vld [vmem:[%s17234_s13 + $0xf88] ss:$16 sps:$4 sm:$0xff]   ;;  %v16694_v27 = vld [vmem:[%s17234_s13 + $0xd4c] ss:$16 sps:$4 sm:$0xff]  }
 0x88f   : > { %13746 = vmatpush1.bf16.msra.mxu1 %v16617_v43  ;;  %v13412_v18 = vpop.f32.mrf.mxu0  ;;  %13706 = vmatprep.subr.bf16.mxu0 %v16622_v14  ;;  %v16688_v43 = vld [vmem:[%s17234_s13 + $0xd6c] ss:$16 sps:$4 sm:$0xff]   ;;  %v16689_v41 = vld [vmem:[%s17234_s13 + $0xf68] ss:$16 sps:$4 sm:$0xff]  }
 0x890   : > { %v13453_v11 = vpop.f32.mrf.mxu1  ;;  %13747 = vmatprep.subr.bf16.mxu1 %v16625_v55  ;;  %v13452_v36 = vadd.f32 %v13451_v28, %v13411_v37  ;;  %v13413_v12 = vadd.f32 %v13412_v18, %v13372_v49  ;;  %13736 = vmatprep.mubr.bf16.mxu0 %v17830_v63  ;;  %v16634_v63 = vld [vmem:[%s17234_s13 + $0xc8c] ss:$16 sps:$4 sm:$0xff]   ;;  %v16686_v55 = vld [vmem:[%s17234_s13 + $0xd68] ss:$16 sps:$4 sm:$0xff]  }
 0x891   : > { %13777 = vmatprep.mubr.bf16.mxu1 %v17834_v45  ;;  %v13414_v29 = vpop.f32.mrf.mxu0  ;;  %v16637_v45 = vld [vmem:[%s17234_s13 + $0xe8c] ss:$16 sps:$4 sm:$0xff]   ;;  %v16692_v49 = vld [vmem:[%s17234_s13 + $0xd48] ss:$16 sps:$4 sm:$0xff]  }
 0x892   : > { %v13455_v39 = vpop.f32.mrf.mxu1  ;;  %16710 = vtanh.f32 %v13452_v36  ;;  %v13454_v51 = vadd.f32 %v13453_v11, %v13413_v12  ;;  %13707 = vmatpush1.bf16.msra.mxu0 %v16620_v46  ;;  %v16691_v14 = vld [vmem:[%s17234_s13 + $0xf6c] ss:$16 sps:$4 sm:$0xff]   ;;  %v16695_v37 = vld [vmem:[%s17234_s13 + $0xf48] ss:$16 sps:$4 sm:$0xff]   ;;  %v10504_v29 = vsub.s32 2, %v17894_v56 }
 0x893   : > { %13748 = vmatpush1.bf16.msra.mxu1 %v16623_v10  ;;  %v13415_v47 = vpop.f32.mrf.mxu0  ;;  %13708 = vmatprep.subr.bf16.mxu0 %v16628_v33  ;;  %v16697_v28 = vld [vmem:[%s17234_s13 + $0xf4c] ss:$16 sps:$4 sm:$0xff]   ;;  %v16698_v18 = vld [vmem:[%s17234_s13 + $0xd28] ss:$16 sps:$4 sm:$0xff]   ;;  %v10508_v39 = vsub.s32 3, %v17894_v56 }
 0x894   : > { %v13456_v16 = vpop.f32.mrf.mxu1  ;;  %13749 = vmatprep.subr.bf16.mxu1 %v16631_v32  ;;  %16712 = vtanh.f32 %v13454_v51  ;;  %v16700_v46 = vld [vmem:[%s17234_s13 + $0xd2c] ss:$16 sps:$4 sm:$0xff]   ;;  %v16701_v11 = vld [vmem:[%s17234_s13 + $0xf28] ss:$16 sps:$4 sm:$0xff]   ;;  %v16718_v51 = vld [vmem:[%s17242_s5] sm:$0xf] }
 0x895   : > { %v16703_v10 = vld [vmem:[%s17234_s13 + $0xf2c] ss:$16 sps:$4 sm:$0xff]   ;;  %v16704_v36 = vld [vmem:[%s17234_s13 + $0xd08] ss:$16 sps:$4 sm:$0xff]  }
 0x896   : > { %13709 = vmatpush1.bf16.msra.mxu0 %v16626_v38  ;;  %v16706_v33 = vld [vmem:[%s17234_s13 + $0xd0c] ss:$16 sps:$4 sm:$0xff]   ;;  %v16707_v12 = vld [vmem:[%s17234_s13 + $0xf08] ss:$16 sps:$4 sm:$0xff]   ;;  %v10505_v38 = vrot.slane %v16718_v51, %v10504_v29 }
 0x897   : > { %13750 = vmatpush1.bf16.msra.mxu1 %v16629_v42  ;;  %13710 = vmatprep.subr.bf16.mxu0 %v16634_v63  ;;  %v16709_v32 = vld [vmem:[%s17234_s13 + $0xf0c] ss:$16 sps:$4 sm:$0xff]   ;;  %v10509_v42 = vrot.slane %v16718_v51, %v10508_v39 }
 0x898   : > { %13751 = vmatprep.subr.bf16.mxu1 %v16637_v45 }
 0x89a   : > { %13711 = vmatpush1.bf16.msra.mxu0 %v16632_v50 }
 0x89b   : > { %13752 = vmatpush1.bf16.msra.mxu1 %v16635_v30  ;;  %13712 = vmatprep.subr.bf16.mxu0 %v16640_v60 }
 0x89c   : > { %13753 = vmatprep.subr.bf16.mxu1 %v16643_v2 }
 0x89e   : > { %13713 = vmatpush1.bf16.msra.mxu0 %v16638_v26 }
 0x89f   : > { %13754 = vmatpush1.bf16.msra.mxu1 %v16641_v44  ;;  %v16711_v24 = vpop.eup %16710  ;;  %13714 = vmatprep.subr.bf16.mxu0 %v16646_v8 }
 0x8a0   : > { %13755 = vmatprep.subr.bf16.mxu1 %v16649_v1  ;;  %13790 = vst [vmem:[%s17244_s12] sm:$0xff] %v16711_v24 }
 0x8a1   : > { %v16713_v31 = vpop.eup %16712 }
 0x8a2   : > { %13791 = vst [vmem:[%s17244_s12 + $0x8] sm:$0xff] %v16713_v31  ;;  %13715 = vmatpush1.bf16.msra.mxu0 %v16644_v19 }
 0x8a3   : > { %13756 = vmatpush1.bf16.msra.mxu1 %v16647_v34  ;;  %13716 = vmatprep.subr.bf16.mxu0 %v16652_v6 }
 0x8a4   : > { %13757 = vmatprep.subr.bf16.mxu1 %v16655_v20 }
 0x8a6   : > { %13717 = vmatpush1.bf16.msra.mxu0 %v16650_v40 }
 0x8a7   : > { %13758 = vmatpush1.bf16.msra.mxu1 %v16653_v23  ;;  %13718 = vmatprep.subr.bf16.mxu0 %v16658_v62 }
 0x8a8   : > { %13759 = vmatprep.subr.bf16.mxu1 %v16661_v61 }
 0x8aa   : > { %13719 = vmatpush1.bf16.msra.mxu0 %v16656_v0 }
 0x8ab   : > { %13760 = vmatpush1.bf16.msra.mxu1 %v16659_v59  ;;  %13720 = vmatprep.subr.bf16.mxu0 %v16664_v54 }
 0x8ac   : > { %13761 = vmatprep.subr.bf16.mxu1 %v16667_v35 }
 0x8ae   : > { %13721 = vmatpush2.bf16.msra.mxu0 %v16662_v58 }
 0x8af   : > { %13762 = vmatpush2.bf16.msra.mxu1 %v16665_v4  ;;  %13722 = vmatprep.subr.bf16.mxu0 %v16670_v13 }
 0x8b0   : > { %13763 = vmatprep.subr.bf16.mxu1 %v16673_v52 }
 0x8b2   : > { %13723 = vmatpush2.bf16.msra.mxu0 %v16668_v15 }
 0x8b3   : > { %13764 = vmatpush2.bf16.msra.mxu1 %v16671_v9  ;;  %13724 = vmatprep.subr.bf16.mxu0 %v16676_v21 }
 0x8b4   : > { %13765 = vmatprep.subr.bf16.mxu1 %v16679_v22 }
 0x8b6   : > { %13725 = vmatpush2.bf16.msra.mxu0 %v16674_v25 }
 0x8b7   : > { %13766 = vmatpush2.bf16.msra.mxu1 %v16677_v5  ;;  %13726 = vmatprep.subr.bf16.mxu0 %v16682_v3 }
 0x8b8   : > { %13767 = vmatprep.subr.bf16.mxu1 %v16685_v57 }
 0x8ba   : > { %13727 = vmatpush2.bf16.msra.mxu0 %v16680_v7 }
 0x8bb   : > { %13768 = vmatpush2.bf16.msra.mxu1 %v16683_v53  ;;  %13728 = vmatprep.subr.bf16.mxu0 %v16688_v43 }
 0x8bc   : > { %13769 = vmatprep.subr.bf16.mxu1 %v16691_v14 }
 0x8be   : > { %13729 = vmatpush2.bf16.msra.mxu0 %v16686_v55 }
 0x8bf   : > { %13770 = vmatpush2.bf16.msra.mxu1 %v16689_v41  ;;  %13730 = vmatprep.subr.bf16.mxu0 %v16694_v27 }
 0x8c0   : > { %13771 = vmatprep.subr.bf16.mxu1 %v16697_v28 }
 0x8c2   : > { %13731 = vmatpush2.bf16.msra.mxu0 %v16692_v49 }
 0x8c3   : > { %13772 = vmatpush2.bf16.msra.mxu1 %v16695_v37  ;;  %13732 = vmatprep.subr.bf16.mxu0 %v16700_v46 }
 0x8c4   : > { %13773 = vmatprep.subr.bf16.mxu1 %v16703_v10 }
 0x8c6   : > { %13733 = vmatpush2.bf16.msra.mxu0 %v16698_v18 }
 0x8c7   : > { %13774 = vmatpush2.bf16.msra.mxu1 %v16701_v11  ;;  %13734 = vmatprep.subr.bf16.mxu0 %v16706_v33 }
 0x8c8   : > { %13775 = vmatprep.subr.bf16.mxu1 %v16709_v32 }
 0x8ca   : > { %13735 = vmatpush2.bf16.msra.mxu0 %v16704_v36 }
 0x8cb   : > { %13776 = vmatpush2.bf16.msra.mxu1 %v16707_v12 }
 0x8cd   : > { %v13492_v47 = vpop.f32.mrf.mxu0  ;;  %13737 = vmatmul.mubr.bf16.vlgmr.msra.gmra.mxu0 %v17907_v48 }
 0x8ce   : > { %v13533_v16 = vpop.f32.mrf.mxu1  ;;  %13778 = vmatmul.mubr.bf16.vlgmr.msra.gmra.mxu1 %v17911_v17  ;;  %v13493_v63 = vadd.f32 %v13492_v47, %v10505_v38 }
 0x8cf   : > { %v13494_v45 = vpop.f32.mrf.mxu0 }
 0x8d0   : > { %v13535_v50 = vpop.f32.mrf.mxu1  ;;  %v13534_v30 = vadd.f32 %v13533_v16, %v13493_v63  ;;  %v13495_v60 = vadd.f32 %v13494_v45, %v10509_v42 }
 0x8d1   : > { %v13496_v2 = vpop.f32.mrf.mxu0 }
 0x8d2   : > { %v13537_v26 = vpop.f32.mrf.mxu1  ;;  %v13536_v44 = vadd.f32 %v13535_v50, %v13495_v60 }
 0x8d3   : > { %v13497_v56 = vpop.f32.mrf.mxu0 }
 0x8d4   : > { %v13538_v8 = vpop.f32.mrf.mxu1 }
 0x90d   : > { %v13574_v1 = vpop.f32.mrf.mxu0 }
 0x90e   : > { %v13615_v19 = vpop.f32.mrf.mxu1  ;;  %v13575_v34 = vadd.f32 %v13574_v1, %v13534_v30 }
 0x90f   : > { %v13576_v24 = vpop.f32.mrf.mxu0 }
 0x910   : > { %v13617_v6 = vpop.f32.mrf.mxu1  ;;  %v13616_v20 = vadd.f32 %v13615_v19, %v13575_v34  ;;  %v13577_v31 = vadd.f32 %v13576_v24, %v13536_v44 }
 0x911   : > { %v13578_v48 = vpop.f32.mrf.mxu0 }
 0x912   : > { %v13619_v40 = vpop.f32.mrf.mxu1  ;;  %v13618_v17 = vadd.f32 %v13617_v6, %v13577_v31 }
 0x913   : > { %v13579_v23 = vpop.f32.mrf.mxu0 }
 0x914   : > { %v13620_v62 = vpop.f32.mrf.mxu1 }
 0x94d   : > { %v13656_v61 = vpop.f32.mrf.mxu0 }
 0x94e   : > { %v13697_v0 = vpop.f32.mrf.mxu1  ;;  %v13657_v52 = vadd.f32 %v13656_v61, %v13616_v20 }
 0x94f   : > { %v13658_v59 = vpop.f32.mrf.mxu0 }
 0x950   : > { %v13699_v54 = vpop.f32.mrf.mxu1  ;;  %v13659_v15 = vadd.f32 %v13658_v59, %v13618_v17  ;;  %v13698_v9 = vadd.f32 %v13697_v0, %v13657_v52 }
 0x951   : > { %v13660_v35 = vpop.f32.mrf.mxu0 }
 0x952   : > { %v13701_v58 = vpop.f32.mrf.mxu1  ;;  %v13700_v25 = vadd.f32 %v13699_v54, %v13659_v15 }
 0x953   : > { %v13661_v4 = vpop.f32.mrf.mxu0 }
 0x954   : > { %v13702_v13 = vpop.f32.mrf.mxu1 }
 0x98d   : > { %v13738_v21 = vpop.f32.mrf.mxu0 }
 0x98e   : > { %v13779_v22 = vpop.f32.mrf.mxu1  ;;  %v13739_v5 = vadd.f32 %v13738_v21, %v13698_v9 }
 0x98f   : > { %v13740_v3 = vpop.f32.mrf.mxu0 }
 0x990   : > { %v13781_v57 = vpop.f32.mrf.mxu1  ;;  %v13780_v7 = vadd.f32 %v13779_v22, %v13739_v5  ;;  %v13741_v53 = vadd.f32 %v13740_v3, %v13700_v25 }
 0x991   : > { %v13742_v43 = vpop.f32.mrf.mxu0 }
 0x992   : > { %v13783_v14 = vpop.f32.mrf.mxu1  ;;  %16714 = vtanh.f32 %v13780_v7  ;;  %v13782_v55 = vadd.f32 %v13781_v57, %v13741_v53 }
 0x993   : > { %v13743_v41 = vpop.f32.mrf.mxu0 }
 0x994   : > { %v13784_v27 = vpop.f32.mrf.mxu1  ;;  %16716 = vtanh.f32 %v13782_v55 }
 0x99f   : > { %v16715_v28 = vpop.eup %16714 }
 0x9a0   : > { %13792 = vst [vmem:[%s17244_s12 + $0x10] sm:$0xff] %v16715_v28 }
 0x9a1   : > { %v16717_v49 = vpop.eup %16716 }
 0x9a2   : > { %13793 = vst [vmem:[%s17244_s12 + $0x18] sm:$0xff] %v16717_v49 }
 0x9a3   : > { %16918 = shalt.err (!%p16915_p9)
}
 0x9a4   : > { %s16919_s9 = scalar_lea.hbm %s18220_s22, 512  ;;  %s16923_s29 = scalar_lea.hbm %s18264_s7, 3072 }
 0x9a5   : > { %p16920_p11 = scmp.ne.s32.totalorder %s18220_s22, %s16919_s9  ;;  %p16924_p13 = scmp.lt.s32.totalorder %s18220_s22, %s18264_s7 }
 0x9a6   : > { %p16925_p0 = scmp.lt.s32.totalorder %s16923_s29, %s16919_s9 }
 0x9a7   : > { %p16921_p3 = pnand %p16920_p11, %p18304_p8 }
 0x9a8   : > { %p16926_p10 = por %p16925_p0, %p16924_p13 }
 0x9a9   : > { %p16922_p4 = pneg %p16921_p3 }
 0x9ab   : > { %p16927_p6 = pnand %p16926_p10, %p16922_p4 }
 0x9ad   : > { %16930 = shalt.err (!%p16927_p6)
}
 0x9ae   : > { %15833 = dma.vmem_to_hbm [thread:$0]  (%p18304_p8), %s13810_s23, 512, %s18220_s22, %s13795_s10  }
 0x9af PF: > { %p15873_p12 = scmp.ge.s32.totalorder %s16981_s27, 2  ;;  %s13821_s1 = sand.u32 1, %s16969_s24  }
 0x9b0   : > { %p18305_p5 = scmp.ne.s32.totalorder %s18279_s8, 0  ;;  %s13822_s5 = scalar_lea.sflag [#allocation5], %s13821_s1 }
 0x9b2   : > { %p15859_p2 = pnand %p15873_p12, %p18305_p5 }
 0x9b4   : > { %p15860_p1 = pneg %p15859_p2 }
 0x9b6   : > { %16964 = dma.done.wait (%p15860_p1), %s13822_s5, 512  }
 0x9b7   : > { %16966 = vsyncadd (%p15860_p1), %s13822_s5, 4294966784  ;;  %s18306_s12 = sld [smem:[#allocation21_spill]]  ;;  %p23_p7 = scmp.ge.s32.totalorder %s17112_s11, 8  }
 0x9b8   : > { %s18307_s24 = smov %s16973_s25  ;;  %s18308_s25 = smov %s16977_s26 }
 0x9b9   : > { %s18310_s27 = smov %s17112_s11  ;;  %25 = sbr.rel (!%p23_p7) target bundleno = 12 (0xc), region = 129 }
 0x9bd   : > { %s18309_s26 = smov %s18306_s12 }
 0x9be   :  { %13827 = vsyncpa [#allocation4], 1 }
 0x9bf   :  { %13829 = vsyncpa [#allocation4 + $0x1], 1 }
 0x9c0   :  { %13830 = vsyncpa [#allocation7], 1 }
 0x9c1   :  { %13831 = vsyncpa [#allocation10], 1 }
 0x9c2   :  { %13832 = vsyncpa [#allocation13], 1 }
 0x9c3   :  { %13834 = vsyncpa [#allocation13 + $0x1], 1 }
 0x9c4   :  { %13835 = vsyncpa [#allocation5], 1 }
 0x9c5   :  { %13837 = vsyncpa [#allocation5 + $0x1], 1 }

</bundles_post_ra>
